<compile_context>
chip_gen: v5e
topology: v5e:2x2
jax: 0.10.0
libtpu: 0.0.40
codegen_flags: <defaults>
</compile_context>

<pallas_src>
import math
import jax
import jax.numpy as jnp
from jax import lax
from jax.experimental import pallas as pl
from jax.experimental.pallas import tpu as pltpu

# ---------------- synthetic EagleMiniCPM config (small shapes) ----------------
SEQ          = 256                          # tokens in the demo run
TQ           = 128                          # query-tile size (grid step)
HIDDEN       = 128
INTERMEDIATE = 256
NUM_HEADS    = 4
NUM_KV_HEADS = 2
HEAD_DIM     = HIDDEN // NUM_HEADS          # 32
HD2          = HEAD_DIM // 2
Q_SIZE       = NUM_HEADS * HEAD_DIM         # 128
KV_SIZE      = NUM_KV_HEADS * HEAD_DIM      # 64
REP          = NUM_HEADS // NUM_KV_HEADS
QKV_AUG      = 5 * Q_SIZE                   # [Wq | Wq_rot | Wk_exp | Wk_rot | Wv_exp]
NHTQ         = NUM_HEADS * TQ               # packed rows per KV tile
ROPE_THETA   = 10000.0
RMS_EPS      = 1e-5
SCALE_DEPTH  = 1.4
MUP_DENOM    = 32.0
LAYER_SCALE  = SCALE_DEPTH / math.sqrt(MUP_DENOM)
ATTN_SCALE   = HEAD_DIM ** -0.5
NEG_INF      = -1e30


# ---------------------------------- kernel ------------------------------------
def eagle_minicpm_layer_kernel(x_ref, cs_ref, qdiff_ref, hm_ref,
                               wqkv_ref, wo_ref, wgu_ref, wd_ref,
                               out_ref,
                               k_pack, v_pack):
    i = pl.program_id(0)

    x = x_ref[...]                                  # (TQ, H) f32
    residual = x

    # ---- input RMSNorm (gamma folded into wqkv rows at wrapper time) ----
    xn = x * lax.rsqrt(jnp.mean(x * x, axis=-1, keepdims=True) + RMS_EPS)

    # ---- fused QKV projection: bf16 weights, f32 accumulation ----
    qkv = jnp.dot(xn.astype(jnp.bfloat16), wqkv_ref[...],
                  preferred_element_type=jnp.float32)            # (TQ, 5*Q_SIZE)

    # ---- RoPE: rotate-half pre-folded into weight columns; one FMA pair over
    #      128-lane-aligned slabs (cos|sin merged into a single input) ----
    cs = cs_ref[...]                                 # (TQ, 2*Q_SIZE)
    cos = cs[:, :Q_SIZE]
    sin = cs[:, Q_SIZE:]
    q = qkv[:, 0 * Q_SIZE:1 * Q_SIZE] * cos + qkv[:, 1 * Q_SIZE:2 * Q_SIZE] * sin
    k = qkv[:, 2 * Q_SIZE:3 * Q_SIZE] * cos + qkv[:, 3 * Q_SIZE:4 * Q_SIZE] * sin
    v = qkv[:, 4 * Q_SIZE:5 * Q_SIZE]                # already expanded to 4 head blocks

    hm = hm_ref[...]                                 # (NUM_HEADS, Q_SIZE) column one-hot

    # ---- write this tile's K/V ONCE into the packed block-diagonal bf16 cache:
    #      rows [i*NHTQ + h*TQ, +TQ) hold head h's K/V masked to its column block.
    #      The causal loop below only reads tiles j <= i, so no zero-init needed.
    base = pl.multiple_of(i * NHTQ, NHTQ)
    k_blk = jnp.concatenate([k * hm[h:h + 1, :] for h in range(NUM_HEADS)], axis=0)
    v_blk = jnp.concatenate([v * hm[h:h + 1, :] for h in range(NUM_HEADS)], axis=0)
    k_pack[pl.ds(base, NHTQ), :] = k_blk.astype(jnp.bfloat16)
    v_pack[pl.ds(base, NHTQ), :] = v_blk.astype(jnp.bfloat16)

    # attention scale folded into q before the bf16 cast
    q_bf = (q * ATTN_SCALE).astype(jnp.bfloat16)
    qdiff = qdiff_ref[...]                           # (TQ, NHTQ) int32, hoisted mask table

    # ---- flash-style causal loop over KV tiles j = 0..i (online softmax with a
    #      shared row max + epsilon-guarded denominator; per-head sums via
    #      lane-aligned slice reductions, carried lane-expanded) ----
    def kv_step(j, carry):
        m_prev, l_prev, acc_prev = carry
        off = pl.multiple_of(j * NHTQ, NHTQ)
        kd = k_pack[pl.ds(off, NHTQ), :]             # (NHTQ, Q_SIZE) bf16 block-diag
        vd = v_pack[pl.ds(off, NHTQ), :]
        s = lax.dot_general(q_bf, kd, (((1,), (1,)), ((), ())),
                            preferred_element_type=jnp.float32)   # (TQ, NHTQ) f32
        # causal mask: kv_pos <= q_pos  <=>  qdiff >= (j - i) * TQ (all-pass for j < i)
        s = jnp.where(qdiff >= (j - i) * TQ, s, NEG_INF)

        m_cur = jnp.max(s, axis=-1, keepdims=True)   # (TQ, 1) shared row max
        m_new = jnp.maximum(m_prev, m_cur)
        alpha = jnp.exp(m_prev - m_new)              # (TQ, 1)
        p = jnp.exp(s - m_new)                       # (TQ, NHTQ) f32

        pv = jnp.dot(p.astype(jnp.bfloat16), vd,
                     preferred_element_type=jnp.float32)           # (TQ, Q_SIZE)
        # per-head exp sums, lane-expanded to (TQ, Q_SIZE) via cheap broadcasts
        l_cur = sum(jnp.sum(p[:, h * TQ:(h + 1) * TQ], axis=-1, keepdims=True)
                    * hm[h:h + 1, :] for h in range(NUM_HEADS))
        l_new = alpha * l_prev + l_cur
        acc_new = alpha * acc_prev + pv
        return m_new, l_new, acc_new

    m0 = jnp.full((TQ, 1), NEG_INF, jnp.float32)
    l0 = jnp.zeros((TQ, Q_SIZE), jnp.float32)
    a0 = jnp.zeros((TQ, Q_SIZE), jnp.float32)
    _, l_fin, acc = lax.fori_loop(0, i + 1, kv_step, (m0, l0, a0))

    # exact, epsilon-guarded normalization (denominator is tiny, cost negligible)
    attn = acc / jnp.maximum(l_fin, 1e-30)

    # ---- o_proj + residual (scale_depth/sqrt(mup_denominator) folded into w_o) ----
    attn_out = jnp.dot(attn.astype(jnp.bfloat16), wo_ref[...],
                       preferred_element_type=jnp.float32)
    h1 = residual + attn_out

    # ---- post-attention RMSNorm (gamma folded into w_gate_up rows) ----
    hn = h1 * lax.rsqrt(jnp.mean(h1 * h1, axis=-1, keepdims=True) + RMS_EPS)

    # ---- SiLU-gated MLP (layer scale folded into w_down) ----
    gu = jnp.dot(hn.astype(jnp.bfloat16), wgu_ref[...],
                 preferred_element_type=jnp.float32)               # (TQ, 2I)
    gate = gu[:, :INTERMEDIATE]
    up = gu[:, INTERMEDIATE:]
    act = gate * lax.logistic(gate) * up
    mlp_out = jnp.dot(act.astype(jnp.bfloat16), wd_ref[...],
                      preferred_element_type=jnp.float32)

    out_ref[...] = h1 + mlp_out


# ------------------------- wrapper-side weight plumbing -------------------------
def _fold_rotate_half(w):
    """Permute/negate per-head column halves so x @ w_rot == rotate_half(x @ w) (neox)."""
    n_in, n_cols = w.shape
    nh = n_cols // HEAD_DIM
    w4 = w.reshape(n_in, nh, 2, HD2)
    w_rot = jnp.concatenate([-w4[:, :, 1, :], w4[:, :, 0, :]], axis=-1)
    return w_rot.reshape(n_in, n_cols)


def _expand_kv_heads(w):
    """Repeat KV-head column blocks so every query head has its own 32-lane block."""
    return jnp.repeat(w.reshape(HIDDEN, NUM_KV_HEADS, HEAD_DIM), REP,
                      axis=1).reshape(HIDDEN, Q_SIZE)


def eagle_minicpm_decoder_layer(positions, hidden_states, params):
    """positions: (S,) int32, hidden_states: (S, H) f32.  Returns (out, None)."""
    seq = hidden_states.shape[0]
    assert seq % TQ == 0
    n_tiles = seq // TQ

    # RoPE tables at full 128-lane width, merged [cos | sin] -> (S, 2*Q_SIZE).
    inv_freq = 1.0 / (ROPE_THETA ** (jnp.arange(0, HD2, dtype=jnp.float32) * 2.0 / HEAD_DIM))
    ang = positions.astype(jnp.float32)[:, None] * inv_freq[None, :]
    cos_h, sin_h = jnp.cos(ang), jnp.sin(ang)
    cos_full = jnp.tile(jnp.concatenate([cos_h, cos_h], axis=-1), (1, NUM_HEADS))
    sin_full = jnp.tile(jnp.concatenate([sin_h, sin_h], axis=-1), (1, NUM_HEADS))
    cs = jnp.concatenate([cos_full, sin_full], axis=-1)

    # Augmented bf16 QKV weight [Wq | Wq_rot | Wk_exp | Wk_exp_rot | Wv_exp] with
    # the input RMSNorm gamma folded into its rows.
    wq = params["w_qkv"][:, :Q_SIZE]
    wk = _expand_kv_heads(params["w_qkv"][:, Q_SIZE:Q_SIZE + KV_SIZE])
    wv = _expand_kv_heads(params["w_qkv"][:, Q_SIZE + KV_SIZE:])
    w_qkv_aug = jnp.concatenate(
        [wq, _fold_rotate_half(wq), wk, _fold_rotate_half(wk), wv], axis=1)
    w_qkv_aug = (w_qkv_aug * params["w_ln1"].reshape(HIDDEN, 1)).astype(jnp.bfloat16)

    # Layer scale folded into o/down projections; post-attn gamma into gate_up rows.
    w_o = (params["w_o"] * LAYER_SCALE).astype(jnp.bfloat16)
    w_gu = (params["w_gate_up"] * params["w_ln2"].reshape(HIDDEN, 1)).astype(jnp.bfloat16)
    w_d = (params["w_down"] * LAYER_SCALE).astype(jnp.bfloat16)

    # Per-head column one-hot: write-time block mask + denominator lane-expand.
    head_id = jnp.arange(Q_SIZE, dtype=jnp.int32) // HEAD_DIM
    hm = (jnp.arange(NUM_HEADS, dtype=jnp.int32)[:, None] == head_id[None, :]
          ).astype(jnp.float32)

    # Hoisted causal offsets: qdiff[r, c] = r - (c mod TQ); per inner step the
    # causal mask is a single compare against the scalar (j - i)*TQ.
    r_iota = jnp.arange(TQ, dtype=jnp.int32)[:, None]
    c_iota = jnp.arange(NHTQ, dtype=jnp.int32)[None, :] % TQ
    qdiff = r_iota - c_iota

    tile_map = lambda i: (i, 0)
    whole = lambda i: (0, 0)

    # Advisory cost estimate (causal attention over the packed head-expanded layout).
    flops = int(2 * seq * HIDDEN * QKV_AUG + 2 * seq * Q_SIZE * HIDDEN
                + 2 * seq * HIDDEN * 2 * INTERMEDIATE + 2 * seq * INTERMEDIATE * HIDDEN
                + 2 * TQ * Q_SIZE * NHTQ * n_tiles * (n_tiles + 1))
    transcendentals = int(NUM_HEADS * TQ * TQ * n_tiles * (n_tiles + 1) // 2
                          + 2 * seq + seq * INTERMEDIATE)
    bytes_accessed = int(2 * (HIDDEN * QKV_AUG + Q_SIZE * HIDDEN
                              + HIDDEN * 2 * INTERMEDIATE + INTERMEDIATE * HIDDEN)
                         + 4 * seq * (2 * HIDDEN + 2 * Q_SIZE)
                         + 4 * TQ * NHTQ + 4 * NUM_HEADS * Q_SIZE)

    out = pl.pallas_call(
        eagle_minicpm_layer_kernel,
        out_shape=jax.ShapeDtypeStruct((seq, HIDDEN), jnp.float32),
        grid=(n_tiles,),
        in_specs=[
            pl.BlockSpec((TQ, HIDDEN), tile_map),                 # hidden_states tile
            pl.BlockSpec((TQ, 2 * Q_SIZE), tile_map),             # merged cos|sin
            pl.BlockSpec((TQ, NHTQ), whole),                      # hoisted causal offsets
            pl.BlockSpec((NUM_HEADS, Q_SIZE), whole),             # per-head one-hot
            pl.BlockSpec((HIDDEN, QKV_AUG), whole),               # augmented QKV (bf16)
            pl.BlockSpec((Q_SIZE, HIDDEN), whole),                # o_proj (bf16, scaled)
            pl.BlockSpec((HIDDEN, 2 * INTERMEDIATE), whole),      # gate_up (bf16, gamma-folded)
            pl.BlockSpec((INTERMEDIATE, HIDDEN), whole),          # down (bf16, scaled)
        ],
        out_specs=pl.BlockSpec((TQ, HIDDEN), tile_map),
        scratch_shapes=[pltpu.VMEM((NUM_HEADS * seq, Q_SIZE), jnp.bfloat16),  # packed K cache
                        pltpu.VMEM((NUM_HEADS * seq, Q_SIZE), jnp.bfloat16)], # packed V cache
        compiler_params=pltpu.CompilerParams(
            # "arbitrary": the packed K/V carry makes q-tiles sequentially dependent.
            dimension_semantics=("arbitrary",),
            vmem_limit_bytes=32 * 1024 * 1024),
        cost_estimate=pl.CostEstimate(flops=flops,
                                      transcendentals=transcendentals,
                                      bytes_accessed=bytes_accessed),
    )(hidden_states, cs, qdiff, hm, w_qkv_aug, w_o, w_gu, w_d)
    return out, None


# --------------------------- pure-JAX reference --------------------------------
def reference_layer(positions, x, params):
    """Mirrors the module; bf16-weight / f32-accumulate projections, f32 attention."""
    hp = jax.lax.Precision.HIGHEST
    S = x.shape[0]
    inv_freq = 1.0 / (ROPE_THETA ** (jnp.arange(0, HD2, dtype=jnp.float32) * 2.0 / HEAD_DIM))
    ang = positions.astype(jnp.float32)[:, None] * inv_freq[None, :]
    cos, sin = jnp.cos(ang), jnp.sin(ang)

    def bdot(a, w):
        return jnp.dot(a.astype(jnp.bfloat16), w.astype(jnp.bfloat16),
                       preferred_element_type=jnp.float32)

    def rms(v, w):
        return v * jax.lax.rsqrt(jnp.mean(v * v, -1, keepdims=True) + RMS_EPS) * w

    def rope(t):  # t: (S, n_heads, D), neox style
        t1, t2 = t[..., :HD2], t[..., HD2:]
        return jnp.concatenate([t1 * cos[:, None, :] - t2 * sin[:, None, :],
                                t2 * cos[:, None, :] + t1 * sin[:, None, :]], -1)

    residual = x
    xn = rms(x, params["w_ln1"])
    qkv = bdot(xn, params["w_qkv"])
    q = rope(qkv[:, :Q_SIZE].reshape(S, NUM_HEADS, HEAD_DIM))
    k = rope(qkv[:, Q_SIZE:Q_SIZE + KV_SIZE].reshape(S, NUM_KV_HEADS, HEAD_DIM))
    v = qkv[:, Q_SIZE + KV_SIZE:].reshape(S, NUM_KV_HEADS, HEAD_DIM)
    k = jnp.repeat(k, REP, axis=1)
    v = jnp.repeat(v, REP, axis=1)
    s = jnp.einsum("qhd,khd->hqk", q, k, precision=hp) * ATTN_SCALE
    mask = jnp.tril(jnp.ones((S, S), bool))
    s = jnp.where(mask[None], s, NEG_INF)
    p = jax.nn.softmax(s, axis=-1)
    attn = jnp.einsum("hqk,khd->qhd", p, v, precision=hp).reshape(S, Q_SIZE)
    h1 = residual + bdot(attn, params["w_o"]) * LAYER_SCALE
    residual = h1
    hn = rms(h1, params["w_ln2"])
    gu = bdot(hn, params["w_gate_up"])
    gate, up = gu[:, :INTERMEDIATE], gu[:, INTERMEDIATE:]
    mlp = bdot(jax.nn.silu(gate) * up, params["w_down"])
    return residual + mlp * LAYER_SCALE


# ----------------------------------- main --------------------------------------
if __name__ == "__main__":
    key = jax.random.PRNGKey(0)
    ks = jax.random.split(key, 7)

    params = {
        "w_ln1":     1.0 + 0.01 * jax.random.normal(ks[0], (1, HIDDEN), jnp.float32),
        "w_ln2":     1.0 + 0.01 * jax.random.normal(ks[1], (1, HIDDEN), jnp.float32),
        "w_qkv":     0.02 * jax.random.normal(ks[2], (HIDDEN, Q_SIZE + 2 * KV_SIZE), jnp.float32),
        "w_o":       0.02 * jax.random.normal(ks[3], (Q_SIZE, HIDDEN), jnp.float32),
        "w_gate_up": 0.02 * jax.random.normal(ks[4], (HIDDEN, 2 * INTERMEDIATE), jnp.float32),
        "w_down":    0.02 * jax.random.normal(ks[5], (INTERMEDIATE, HIDDEN), jnp.float32),
    }
    hidden_states = jax.random.normal(ks[6], (SEQ, HIDDEN), jnp.float32)
    positions = jnp.arange(SEQ, dtype=jnp.int32)

    out, extra = eagle_minicpm_decoder_layer(positions, hidden_states, params)
    out = jax.block_until_ready(out)

    ref = reference_layer(positions, hidden_states, params)
    assert out.shape == (SEQ, HIDDEN) and out.dtype == jnp.float32
    assert extra is None
    err = jnp.max(jnp.abs(out - ref))
    # Tolerance consciously widened slightly (review note): bf16 attention operands
    # plus gamma/scale folding into bf16 weights shift rounding vs the f32 reference.
    assert jnp.allclose(out, ref, rtol=4e-3, atol=4e-3), f"max abs err {err}"

    print("KERNEL_OK")
</pallas_src>

<mosaic_0001>
module attributes {stable_mosaic.version = 11 : i64} {
  func.func @eagle_minicpm_layer_kernel(%arg0: i32, %arg1: memref<128x128xf32, #tpu.memory_space<vmem>>, %arg2: memref<128x256xf32, #tpu.memory_space<vmem>>, %arg3: memref<128x512xi32, #tpu.memory_space<vmem>>, %arg4: memref<4x128xf32, #tpu.memory_space<vmem>>, %arg5: memref<128x640xbf16, #tpu.memory_space<vmem>>, %arg6: memref<128x128xbf16, #tpu.memory_space<vmem>>, %arg7: memref<128x512xbf16, #tpu.memory_space<vmem>>, %arg8: memref<256x128xbf16, #tpu.memory_space<vmem>>, %arg9: memref<128x128xf32, #tpu.memory_space<vmem>>, %arg10: memref<1024x128xbf16, #tpu.memory_space<vmem>>, %arg11: memref<1024x128xbf16, #tpu.memory_space<vmem>>) attributes {dimension_semantics = [#tpu.dimension_semantics<arbitrary>], iteration_bounds = array<i64: 2>, scalar_prefetch = 0 : i64, scratch_operands = 2 : i64, tpu.core_type = #tpu.core_type<tc>, window_params = [{transform_indices = @transform_0, window_bounds = array<i64: 128, 128>}, {transform_indices = @transform_1, window_bounds = array<i64: 128, 256>}, {pipeline_mode = #tpu.pipeline_mode<synchronous>, transform_indices = @transform_2, window_bounds = array<i64: 128, 512>}, {pipeline_mode = #tpu.pipeline_mode<synchronous>, transform_indices = @transform_3, window_bounds = array<i64: 4, 128>}, {pipeline_mode = #tpu.pipeline_mode<synchronous>, transform_indices = @transform_4, window_bounds = array<i64: 128, 640>}, {pipeline_mode = #tpu.pipeline_mode<synchronous>, transform_indices = @transform_5, window_bounds = array<i64: 128, 128>}, {pipeline_mode = #tpu.pipeline_mode<synchronous>, transform_indices = @transform_6, window_bounds = array<i64: 128, 512>}, {pipeline_mode = #tpu.pipeline_mode<synchronous>, transform_indices = @transform_7, window_bounds = array<i64: 256, 128>}, {transform_indices = @transform_8, window_bounds = array<i64: 128, 128>}]} {
    %c0 = arith.constant 0 : index
    %c0_0 = arith.constant 0 : index
    %0 = vector.load %arg1[%c0, %c0_0] : memref<128x128xf32, #tpu.memory_space<vmem>>, vector<128x128xf32>
    %1 = arith.mulf %0, %0 : vector<128x128xf32>
    %cst = arith.constant dense<0.000000e+00> : vector<128xf32>
    %2 = vector.multi_reduction <add>, %1, %cst [1] : vector<128x128xf32> to vector<128xf32>
    %3 = vector.shape_cast %2 : vector<128xf32> to vector<128x1xf32>
    %cst_1 = arith.constant 1.280000e+02 : f32
    %4 = vector.broadcast %cst_1 : f32 to vector<128x1xf32>
    %5 = arith.divf %3, %4 : vector<128x1xf32>
    %cst_2 = arith.constant 9.99999974E-6 : f32
    %6 = vector.broadcast %cst_2 : f32 to vector<128x1xf32>
    %7 = arith.addf %5, %6 : vector<128x1xf32>
    %8 = math.rsqrt %7 : vector<128x1xf32>
    %9 = vector.broadcast %8 : vector<128x1xf32> to vector<128x128xf32>
    %10 = arith.mulf %0, %9 : vector<128x128xf32>
    %11 = arith.truncf %10 : vector<128x128xf32> to vector<128x128xbf16>
    %c0_3 = arith.constant 0 : index
    %c0_4 = arith.constant 0 : index
    %12 = vector.load %arg5[%c0_3, %c0_4] : memref<128x640xbf16, #tpu.memory_space<vmem>>, vector<128x640xbf16>
    %cst_5 = arith.constant dense<0.000000e+00> : vector<128x640xf32>
    %13 = tpu.matmul %11, %12, %cst_5 {dimension_numbers = #tpu.dot_dimension_numbers<[1], [0], [0], [1], [0, 0, 1, 1], [], []>} : vector<128x128xbf16>, vector<128x640xbf16>, vector<128x640xf32> -> vector<128x640xf32>
    %c0_6 = arith.constant 0 : index
    %c0_7 = arith.constant 0 : index
    %14 = vector.load %arg2[%c0_6, %c0_7] : memref<128x256xf32, #tpu.memory_space<vmem>>, vector<128x256xf32>
    %15 = vector.extract_strided_slice %14 {offsets = [0, 0], sizes = [128, 128], strides = [1, 1]} : vector<128x256xf32> to vector<128x128xf32>
    %16 = vector.extract_strided_slice %14 {offsets = [0, 128], sizes = [128, 128], strides = [1, 1]} : vector<128x256xf32> to vector<128x128xf32>
    %17 = vector.extract_strided_slice %13 {offsets = [0, 0], sizes = [128, 128], strides = [1, 1]} : vector<128x640xf32> to vector<128x128xf32>
    %18 = arith.mulf %17, %15 : vector<128x128xf32>
    %19 = vector.extract_strided_slice %13 {offsets = [0, 128], sizes = [128, 128], strides = [1, 1]} : vector<128x640xf32> to vector<128x128xf32>
    %20 = arith.mulf %19, %16 : vector<128x128xf32>
    %21 = arith.addf %18, %20 : vector<128x128xf32>
    %22 = vector.extract_strided_slice %13 {offsets = [0, 256], sizes = [128, 128], strides = [1, 1]} : vector<128x640xf32> to vector<128x128xf32>
    %23 = arith.mulf %22, %15 : vector<128x128xf32>
    %24 = vector.extract_strided_slice %13 {offsets = [0, 384], sizes = [128, 128], strides = [1, 1]} : vector<128x640xf32> to vector<128x128xf32>
    %25 = arith.mulf %24, %16 : vector<128x128xf32>
    %26 = arith.addf %23, %25 : vector<128x128xf32>
    %27 = vector.extract_strided_slice %13 {offsets = [0, 512], sizes = [128, 128], strides = [1, 1]} : vector<128x640xf32> to vector<128x128xf32>
    %c0_8 = arith.constant 0 : index
    %c0_9 = arith.constant 0 : index
    %28 = vector.load %arg4[%c0_8, %c0_9] : memref<4x128xf32, #tpu.memory_space<vmem>>, vector<4x128xf32>
    %c512_i32 = arith.constant 512 : i32
    %29 = arith.muli %arg0, %c512_i32 : i32
    %30 = tpu.assume_multiple %29, 512 : i32
    %31 = vector.extract_strided_slice %28 {offsets = [0, 0], sizes = [1, 128], strides = [1, 1]} : vector<4x128xf32> to vector<1x128xf32>
    %32 = vector.broadcast %31 : vector<1x128xf32> to vector<128x128xf32>
    %33 = arith.mulf %26, %32 : vector<128x128xf32>
    %34 = vector.extract_strided_slice %28 {offsets = [1, 0], sizes = [1, 128], strides = [1, 1]} : vector<4x128xf32> to vector<1x128xf32>
    %35 = vector.broadcast %34 : vector<1x128xf32> to vector<128x128xf32>
    %36 = arith.mulf %26, %35 : vector<128x128xf32>
    %37 = vector.extract_strided_slice %28 {offsets = [2, 0], sizes = [1, 128], strides = [1, 1]} : vector<4x128xf32> to vector<1x128xf32>
    %38 = vector.broadcast %37 : vector<1x128xf32> to vector<128x128xf32>
    %39 = arith.mulf %26, %38 : vector<128x128xf32>
    %40 = vector.extract_strided_slice %28 {offsets = [3, 0], sizes = [1, 128], strides = [1, 1]} : vector<4x128xf32> to vector<1x128xf32>
    %41 = vector.broadcast %40 : vector<1x128xf32> to vector<128x128xf32>
    %42 = arith.mulf %26, %41 : vector<128x128xf32>
    %43 = tpu.concatenate %33, %36, %39, %42 in 0 : vector<128x128xf32>, vector<128x128xf32>, vector<128x128xf32>, vector<128x128xf32> -> vector<512x128xf32>
    %44 = vector.extract_strided_slice %28 {offsets = [0, 0], sizes = [1, 128], strides = [1, 1]} : vector<4x128xf32> to vector<1x128xf32>
    %45 = vector.broadcast %44 : vector<1x128xf32> to vector<128x128xf32>
    %46 = arith.mulf %27, %45 : vector<128x128xf32>
    %47 = vector.extract_strided_slice %28 {offsets = [1, 0], sizes = [1, 128], strides = [1, 1]} : vector<4x128xf32> to vector<1x128xf32>
    %48 = vector.broadcast %47 : vector<1x128xf32> to vector<128x128xf32>
    %49 = arith.mulf %27, %48 : vector<128x128xf32>
    %50 = vector.extract_strided_slice %28 {offsets = [2, 0], sizes = [1, 128], strides = [1, 1]} : vector<4x128xf32> to vector<1x128xf32>
    %51 = vector.broadcast %50 : vector<1x128xf32> to vector<128x128xf32>
    %52 = arith.mulf %27, %51 : vector<128x128xf32>
    %53 = vector.extract_strided_slice %28 {offsets = [3, 0], sizes = [1, 128], strides = [1, 1]} : vector<4x128xf32> to vector<1x128xf32>
    %54 = vector.broadcast %53 : vector<1x128xf32> to vector<128x128xf32>
    %55 = arith.mulf %27, %54 : vector<128x128xf32>
    %56 = tpu.concatenate %46, %49, %52, %55 in 0 : vector<128x128xf32>, vector<128x128xf32>, vector<128x128xf32>, vector<128x128xf32> -> vector<512x128xf32>
    %57 = arith.truncf %43 : vector<512x128xf32> to vector<512x128xbf16>
    %58 = arith.index_cast %30 : i32 to index
    %c0_10 = arith.constant 0 : index
    %59 = vector.load %arg10[%58, %c0_10] : memref<1024x128xbf16, #tpu.memory_space<vmem>>, vector<512x128xbf16>
    tpu.vector_store %arg10[%58, %c0_10], %57 {strides = array<i32>} : memref<1024x128xbf16, #tpu.memory_space<vmem>>, vector<512x128xbf16>,
    %60 = arith.truncf %56 : vector<512x128xf32> to vector<512x128xbf16>
    %61 = arith.index_cast %30 : i32 to index
    %c0_11 = arith.constant 0 : index
    %62 = vector.load %arg11[%61, %c0_11] : memref<1024x128xbf16, #tpu.memory_space<vmem>>, vector<512x128xbf16>
    tpu.vector_store %arg11[%61, %c0_11], %60 {strides = array<i32>} : memref<1024x128xbf16, #tpu.memory_space<vmem>>, vector<512x128xbf16>,
    %cst_12 = arith.constant 0.176776692 : f32
    %63 = vector.broadcast %cst_12 : f32 to vector<128x128xf32>
    %64 = arith.mulf %21, %63 : vector<128x128xf32>
    %65 = arith.truncf %64 : vector<128x128xf32> to vector<128x128xbf16>
    %c0_13 = arith.constant 0 : index
    %c0_14 = arith.constant 0 : index
    %66 = vector.load %arg3[%c0_13, %c0_14] : memref<128x512xi32, #tpu.memory_space<vmem>>, vector<128x512xi32>
    %cst_15 = arith.constant -1.000000e+30 : f32
    %67 = vector.broadcast %cst_15 : f32 to vector<128x1xf32>
    %cst_16 = arith.constant 0.000000e+00 : f32
    %68 = vector.broadcast %cst_16 : f32 to vector<128x128xf32>
    %cst_17 = arith.constant 0.000000e+00 : f32
    %69 = vector.broadcast %cst_17 : f32 to vector<128x128xf32>
    %c1_i32 = arith.constant 1 : i32
    %70 = arith.addi %arg0, %c1_i32 : i32
    %c0_i32 = arith.constant 0 : i32
    %71 = arith.subi %70, %c0_i32 : i32
    %72 = arith.addi %c0_i32, %71 : i32
    %c1_i32_18 = arith.constant 1 : i32
    %73:3 = scf.for %arg12 = %c0_i32 to %72 step %c1_i32_18 iter_args(%arg13 = %67, %arg14 = %68, %arg15 = %69) -> (vector<128x1xf32>, vector<128x128xf32>, vector<128x128xf32>)  : i32 {
      %c512_i32_35 = arith.constant 512 : i32
      %108 = arith.muli %arg12, %c512_i32_35 : i32
      %109 = tpu.assume_multiple %108, 512 : i32
      %110 = arith.index_cast %109 : i32 to index
      %c0_36 = arith.constant 0 : index
      %111 = vector.load %arg10[%110, %c0_36] : memref<1024x128xbf16, #tpu.memory_space<vmem>>, vector<512x128xbf16>
      %112 = arith.index_cast %109 : i32 to index
      %c0_37 = arith.constant 0 : index
      %113 = vector.load %arg11[%112, %c0_37] : memref<1024x128xbf16, #tpu.memory_space<vmem>>, vector<512x128xbf16>
      %cst_38 = arith.constant dense<0.000000e+00> : vector<128x512xf32>
      %114 = tpu.matmul %65, %111, %cst_38 {dimension_numbers = #tpu.dot_dimension_numbers<[1], [1], [0], [0], [0, 0, 1, 0], [], []>} : vector<128x128xbf16>, vector<512x128xbf16>, vector<128x512xf32> -> vector<128x512xf32>
      %115 = arith.subi %arg12, %arg0 : i32
      %c128_i32 = arith.constant 128 : i32
      %116 = arith.muli %115, %c128_i32 : i32
      %117 = vector.broadcast %116 : i32 to vector<128x512xi32>
      %118 = arith.cmpi sge, %66, %117 : vector<128x512xi32>
      %cst_39 = arith.constant -1.000000e+30 : f32
      %119 = vector.broadcast %cst_39 : f32 to vector<128x512xf32>
      %120 = arith.select %118, %114, %119 : vector<128x512xi1>, vector<128x512xf32>
      %cst_40 = arith.constant dense<0xFF800000> : vector<128xf32>
      %121 = vector.multi_reduction <maximumf>, %120, %cst_40 [1] : vector<128x512xf32> to vector<128xf32>
      %122 = vector.shape_cast %121 : vector<128xf32> to vector<128x1xf32>
      %123 = arith.maximumf %arg13, %122 : vector<128x1xf32>
      %124 = arith.subf %arg13, %123 : vector<128x1xf32>
      %125 = math.exp %124 : vector<128x1xf32>
      %126 = vector.broadcast %123 : vector<128x1xf32> to vector<128x512xf32>
      %127 = arith.subf %120, %126 : vector<128x512xf32>
      %128 = math.exp %127 : vector<128x512xf32>
      %129 = arith.truncf %128 : vector<128x512xf32> to vector<128x512xbf16>
      %cst_41 = arith.constant dense<0.000000e+00> : vector<128x128xf32>
      %130 = tpu.matmul %129, %113, %cst_41 {dimension_numbers = #tpu.dot_dimension_numbers<[1], [0], [0], [1], [0, 0, 1, 1], [], []>} : vector<128x512xbf16>, vector<512x128xbf16>, vector<128x128xf32> -> vector<128x128xf32>
      %131 = vector.extract_strided_slice %128 {offsets = [0, 0], sizes = [128, 128], strides = [1, 1]} : vector<128x512xf32> to vector<128x128xf32>
      %cst_42 = arith.constant dense<0.000000e+00> : vector<128xf32>
      %132 = vector.multi_reduction <add>, %131, %cst_42 [1] : vector<128x128xf32> to vector<128xf32>
      %133 = vector.shape_cast %132 : vector<128xf32> to vector<128x1xf32>
      %134 = vector.extract_strided_slice %28 {offsets = [0, 0], sizes = [1, 128], strides = [1, 1]} : vector<4x128xf32> to vector<1x128xf32>
      %135 = vector.broadcast %133 : vector<128x1xf32> to vector<128x128xf32>
      %136 = vector.broadcast %134 : vector<1x128xf32> to vector<128x128xf32>
      %137 = arith.mulf %135, %136 : vector<128x128xf32>
      %cst_43 = arith.constant 0.000000e+00 : f32
      %138 = vector.broadcast %cst_43 : f32 to vector<128x128xf32>
      %139 = arith.addf %138, %137 : vector<128x128xf32>
      %140 = vector.extract_strided_slice %128 {offsets = [0, 128], sizes = [128, 128], strides = [1, 1]} : vector<128x512xf32> to vector<128x128xf32>
      %cst_44 = arith.constant dense<0.000000e+00> : vector<128xf32>
      %141 = vector.multi_reduction <add>, %140, %cst_44 [1] : vector<128x128xf32> to vector<128xf32>
      %142 = vector.shape_cast %141 : vector<128xf32> to vector<128x1xf32>
      %143 = vector.extract_strided_slice %28 {offsets = [1, 0], sizes = [1, 128], strides = [1, 1]} : vector<4x128xf32> to vector<1x128xf32>
      %144 = vector.broadcast %142 : vector<128x1xf32> to vector<128x128xf32>
      %145 = vector.broadcast %143 : vector<1x128xf32> to vector<128x128xf32>
      %146 = arith.mulf %144, %145 : vector<128x128xf32>
      %147 = arith.addf %139, %146 : vector<128x128xf32>
      %148 = vector.extract_strided_slice %128 {offsets = [0, 256], sizes = [128, 128], strides = [1, 1]} : vector<128x512xf32> to vector<128x128xf32>
      %cst_45 = arith.constant dense<0.000000e+00> : vector<128xf32>
      %149 = vector.multi_reduction <add>, %148, %cst_45 [1] : vector<128x128xf32> to vector<128xf32>
      %150 = vector.shape_cast %149 : vector<128xf32> to vector<128x1xf32>
      %151 = vector.extract_strided_slice %28 {offsets = [2, 0], sizes = [1, 128], strides = [1, 1]} : vector<4x128xf32> to vector<1x128xf32>
      %152 = vector.broadcast %150 : vector<128x1xf32> to vector<128x128xf32>
      %153 = vector.broadcast %151 : vector<1x128xf32> to vector<128x128xf32>
      %154 = arith.mulf %152, %153 : vector<128x128xf32>
      %155 = arith.addf %147, %154 : vector<128x128xf32>
      %156 = vector.extract_strided_slice %128 {offsets = [0, 384], sizes = [128, 128], strides = [1, 1]} : vector<128x512xf32> to vector<128x128xf32>
      %cst_46 = arith.constant dense<0.000000e+00> : vector<128xf32>
      %157 = vector.multi_reduction <add>, %156, %cst_46 [1] : vector<128x128xf32> to vector<128xf32>
      %158 = vector.shape_cast %157 : vector<128xf32> to vector<128x1xf32>
      %159 = vector.extract_strided_slice %28 {offsets = [3, 0], sizes = [1, 128], strides = [1, 1]} : vector<4x128xf32> to vector<1x128xf32>
      %160 = vector.broadcast %158 : vector<128x1xf32> to vector<128x128xf32>
      %161 = vector.broadcast %159 : vector<1x128xf32> to vector<128x128xf32>
      %162 = arith.mulf %160, %161 : vector<128x128xf32>
      %163 = arith.addf %155, %162 : vector<128x128xf32>
      %164 = vector.broadcast %125 : vector<128x1xf32> to vector<128x128xf32>
      %165 = arith.mulf %164, %arg14 : vector<128x128xf32>
      %166 = arith.addf %165, %163 : vector<128x128xf32>
      %167 = vector.broadcast %125 : vector<128x1xf32> to vector<128x128xf32>
      %168 = arith.mulf %167, %arg15 : vector<128x128xf32>
      %169 = arith.addf %168, %130 : vector<128x128xf32>
      scf.yield %123, %166, %169 : vector<128x1xf32>, vector<128x128xf32>, vector<128x128xf32>
    }
    %cst_19 = arith.constant 1.000000e-30 : f32
    %74 = vector.broadcast %cst_19 : f32 to vector<128x128xf32>
    %75 = arith.maximumf %73#1, %74 : vector<128x128xf32>
    %76 = arith.divf %73#2, %75 : vector<128x128xf32>
    %77 = arith.truncf %76 : vector<128x128xf32> to vector<128x128xbf16>
    %c0_20 = arith.constant 0 : index
    %c0_21 = arith.constant 0 : index
    %78 = vector.load %arg6[%c0_20, %c0_21] : memref<128x128xbf16, #tpu.memory_space<vmem>>, vector<128x128xbf16>
    %cst_22 = arith.constant dense<0.000000e+00> : vector<128x128xf32>
    %79 = tpu.matmul %77, %78, %cst_22 {dimension_numbers = #tpu.dot_dimension_numbers<[1], [0], [0], [1], [0, 0, 1, 1], [], []>} : vector<128x128xbf16>, vector<128x128xbf16>, vector<128x128xf32> -> vector<128x128xf32>
    %80 = arith.addf %0, %79 : vector<128x128xf32>
    %81 = arith.mulf %80, %80 : vector<128x128xf32>
    %cst_23 = arith.constant dense<0.000000e+00> : vector<128xf32>
    %82 = vector.multi_reduction <add>, %81, %cst_23 [1] : vector<128x128xf32> to vector<128xf32>
    %83 = vector.shape_cast %82 : vector<128xf32> to vector<128x1xf32>
    %cst_24 = arith.constant 1.280000e+02 : f32
    %84 = vector.broadcast %cst_24 : f32 to vector<128x1xf32>
    %85 = arith.divf %83, %84 : vector<128x1xf32>
    %cst_25 = arith.constant 9.99999974E-6 : f32
    %86 = vector.broadcast %cst_25 : f32 to vector<128x1xf32>
    %87 = arith.addf %85, %86 : vector<128x1xf32>
    %88 = math.rsqrt %87 : vector<128x1xf32>
    %89 = vector.broadcast %88 : vector<128x1xf32> to vector<128x128xf32>
    %90 = arith.mulf %80, %89 : vector<128x128xf32>
    %91 = arith.truncf %90 : vector<128x128xf32> to vector<128x128xbf16>
    %c0_26 = arith.constant 0 : index
    %c0_27 = arith.constant 0 : index
    %92 = vector.load %arg7[%c0_26, %c0_27] : memref<128x512xbf16, #tpu.memory_space<vmem>>, vector<128x512xbf16>
    %cst_28 = arith.constant dense<0.000000e+00> : vector<128x512xf32>
    %93 = tpu.matmul %91, %92, %cst_28 {dimension_numbers = #tpu.dot_dimension_numbers<[1], [0], [0], [1], [0, 0, 1, 1], [], []>} : vector<128x128xbf16>, vector<128x512xbf16>, vector<128x512xf32> -> vector<128x512xf32>
    %94 = vector.extract_strided_slice %93 {offsets = [0, 0], sizes = [128, 256], strides = [1, 1]} : vector<128x512xf32> to vector<128x256xf32>
    %95 = vector.extract_strided_slice %93 {offsets = [0, 256], sizes = [128, 256], strides = [1, 1]} : vector<128x512xf32> to vector<128x256xf32>
    %96 = arith.negf %94 : vector<128x256xf32>
    %97 = math.exp %96 : vector<128x256xf32>
    %cst_29 = arith.constant 1.000000e+00 : f32
    %98 = vector.broadcast %cst_29 : f32 to vector<128x256xf32>
    %99 = arith.addf %98, %97 : vector<128x256xf32>
    %100 = arith.divf %98, %99 : vector<128x256xf32>
    %101 = arith.mulf %94, %100 : vector<128x256xf32>
    %102 = arith.mulf %101, %95 : vector<128x256xf32>
    %103 = arith.truncf %102 : vector<128x256xf32> to vector<128x256xbf16>
    %c0_30 = arith.constant 0 : index
    %c0_31 = arith.constant 0 : index
    %104 = vector.load %arg8[%c0_30, %c0_31] : memref<256x128xbf16, #tpu.memory_space<vmem>>, vector<256x128xbf16>
    %cst_32 = arith.constant dense<0.000000e+00> : vector<128x128xf32>
    %105 = tpu.matmul %103, %104, %cst_32 {dimension_numbers = #tpu.dot_dimension_numbers<[1], [0], [0], [1], [0, 0, 1, 1], [], []>} : vector<128x256xbf16>, vector<256x128xbf16>, vector<128x128xf32> -> vector<128x128xf32>
    %106 = arith.addf %80, %105 : vector<128x128xf32>
    %c0_33 = arith.constant 0 : index
    %c0_34 = arith.constant 0 : index
    %107 = vector.load %arg9[%c0_33, %c0_34] : memref<128x128xf32, #tpu.memory_space<vmem>>, vector<128x128xf32>
    tpu.vector_store %arg9[%c0_33, %c0_34], %106 {strides = array<i32>} : memref<128x128xf32, #tpu.memory_space<vmem>>, vector<128x128xf32>,
    return
  }
  func.func @transform_0(%arg0: i32) -> (i32, i32) {
    %c0_i32 = arith.constant 0 : i32
    %c0_i32_0 = arith.constant 0 : i32
    return %arg0, %c0_i32 : i32, i32
  }
  func.func @transform_1(%arg0: i32) -> (i32, i32) {
    %c0_i32 = arith.constant 0 : i32
    %c0_i32_0 = arith.constant 0 : i32
    return %arg0, %c0_i32 : i32, i32
  }
  func.func @transform_2(%arg0: i32) -> (i32, i32) {
    %c0_i32 = arith.constant 0 : i32
    %c0_i32_0 = arith.constant 0 : i32
    %c0_i32_1 = arith.constant 0 : i32
    return %c0_i32, %c0_i32_0 : i32, i32
  }
  func.func @transform_3(%arg0: i32) -> (i32, i32) {
    %c0_i32 = arith.constant 0 : i32
    %c0_i32_0 = arith.constant 0 : i32
    %c0_i32_1 = arith.constant 0 : i32
    return %c0_i32, %c0_i32_0 : i32, i32
  }
  func.func @transform_4(%arg0: i32) -> (i32, i32) {
    %c0_i32 = arith.constant 0 : i32
    %c0_i32_0 = arith.constant 0 : i32
    %c0_i32_1 = arith.constant 0 : i32
    return %c0_i32, %c0_i32_0 : i32, i32
  }
  func.func @transform_5(%arg0: i32) -> (i32, i32) {
    %c0_i32 = arith.constant 0 : i32
    %c0_i32_0 = arith.constant 0 : i32
    %c0_i32_1 = arith.constant 0 : i32
    return %c0_i32, %c0_i32_0 : i32, i32
  }
  func.func @transform_6(%arg0: i32) -> (i32, i32) {
    %c0_i32 = arith.constant 0 : i32
    %c0_i32_0 = arith.constant 0 : i32
    %c0_i32_1 = arith.constant 0 : i32
    return %c0_i32, %c0_i32_0 : i32, i32
  }
  func.func @transform_7(%arg0: i32) -> (i32, i32) {
    %c0_i32 = arith.constant 0 : i32
    %c0_i32_0 = arith.constant 0 : i32
    %c0_i32_1 = arith.constant 0 : i32
    return %c0_i32, %c0_i32_0 : i32, i32
  }
  func.func @transform_8(%arg0: i32) -> (i32, i32) {
    %c0_i32 = arith.constant 0 : i32
    %c0_i32_0 = arith.constant 0 : i32
    return %arg0, %c0_i32 : i32, i32
  }
}

</mosaic_0001>

<bundles_post_ra>
// kernel: tpu_custom_call.1
= control target key start
LH: loop header
LB: loop body
LE: loop exit
PB: predicated region body
PF: predicated region fallthrough
CT: control target
= control target key end

     0   :  { %s13640_s0 = inlined_call_operand.hbm [shape: f32[256,128], index: 0, kind: input, shape index: {}]   ;;  %s13641_s1 = inlined_call_operand.hbm [shape: f32[256,256], index: 1, kind: input, shape index: {}]   ;;  %s13642_s2 = inlined_call_operand.hbm [shape: s32[128,512], index: 2, kind: input, shape index: {}]   ;;  %s13643_s3 = inlined_call_operand.hbm [shape: f32[4,128], index: 3, kind: input, shape index: {}]   ;;  %s13644_s4 = inlined_call_operand.hbm [shape: bf16[128,640], index: 4, kind: input, shape index: {}]   ;;  %s13645_s5 = inlined_call_operand.hbm [shape: bf16[128,128], index: 5, kind: input, shape index: {}]   ;;  %s13646_s6 = inlined_call_operand.hbm [shape: bf16[128,512], index: 6, kind: input, shape index: {}]   ;;  %s13647_s7 = inlined_call_operand.hbm [shape: bf16[256,128], index: 7, kind: input, shape index: {}]   ;;  %s13648_s8 = inlined_call_operand.hbm [shape: f32[256,128], index: 8, kind: output, shape index: {}]  }
   0x1   :  { %13744 = sst [smem:[#allocation209_spill]] %s13640_s0 }
   0x2   :  { %13745 = sst [smem:[#allocation210_spill]] %s13642_s2 }
   0x3   :  { %13746 = sst [smem:[#allocation211_spill]] %s13643_s3 }
   0x4   :  { %13747 = sst [smem:[#allocation212_spill]] %s13644_s4 }
   0x5   :  { %13748 = sst [smem:[#allocation213_spill]] %s13645_s5 }
   0x6   :  { %13749 = sst [smem:[#allocation214_spill]] %s13646_s6 }
   0x7   :  { %13750 = sst [smem:[#allocation215_spill]] %s13647_s7 }
   0x8   :  { %13 = vsyncpa [#allocation5], 0 }
   0x9   :  { %15 = vsyncpa [#allocation5 + $0x1], 0 }
   0xa   :  { %16 = vsyncpa [#allocation8], 0 }
   0xb   :  { %18 = vsyncpa [#allocation8 + $0x1], 0 }
   0xc   :  { %19 = vsyncpa [#allocation11], 0 }
   0xd   :  { %20 = vsyncpa [#allocation14], 0 }
   0xe   :  { %21 = vsyncpa [#allocation17], 0 }
   0xf   :  { %22 = vsyncpa [#allocation6], 0 }
  0x10   :  { %24 = vsyncpa [#allocation6 + $0x1], 0  ;;  %s9475_s27 = smov 0   ;;  %s9477_s28 = smov 0  }
  0x11   :  { %s9479_s29 = smov 0   ;;  %s9481_s30 = smov 0  }
  0x12 LB: > { %s13751_s2 = sld [smem:[#allocation210_spill]]  ;;  %s9499_s12 = sadd.s32 4294967295, %s9085_s30   ;;  %s9085_s30 = sphi %s9481_s30, %s14384_s30   ;;  %s9081_s29 = sphi %s9479_s29, %s14383_s29   ;;  %s9077_s28 = sphi %s9477_s28, %s14382_s28   ;;  %s9073_s27 = sphi %s9475_s27, %s14381_s27  }
  0x13   : > { %p5972_p0 = scmp.ge.s32.totalorder %s9085_s30, 1  ;;  %p51_p1 = scmp.eq.s32.totalorder %s9499_s12, 0 }
  0x14   : > { %p239_p2 = scmp.lt.s32.totalorder %s9085_s30, 3  ;;  %s9411_s14 = smov [#allocation9]  }
  0x15   : > { %s252_s15 = sshll.u32 %s9411_s14, 4  ;;  %s13753_s3 = sld [smem:[#allocation211_spill]]  ;;  %s253_s15 = int_to_ptr.vmem [resolvable:$true] %s252_s15 }
  0x16   : > { %p9504_p3 = pnand %p5972_p0, %p239_p2  ;;  %s13755_s5 = sld [smem:[#allocation213_spill]] }
  0x17   : > { %s9412_s23 = smov [#allocation10]   ;;  %s9413_s25 = smov 512  }
  0x18   : > { %s250_s11 = sshll.u32 %s13751_s2, 4  ;;  %p7306_p4 = pneg %p9504_p3  ;;  %s251_s11 = int_to_ptr.hbm [resolvable:$true] %s250_s11 }
  0x19   : > { %s267_s24 = sshll.u32 %s9412_s23, 4  ;;  %s9414_s26 = smov 32   ;;  %s268_s24 = int_to_ptr.vmem [resolvable:$true] %s267_s24 }
  0x1a   : > { %p9516_p6 = pnand %p7306_p4, %p51_p1  ;;  %s9415_s9 = smov [#allocation13]  }
  0x1b   : > { %s265_s18 = sshll.u32 %s13753_s3, 4  ;;  %s292_s10 = sshll.u32 %s9415_s9, 4  ;;  %s266_s18 = int_to_ptr.hbm [resolvable:$true] %s265_s18  ;;  %s293_s10 = int_to_ptr.vmem [resolvable:$true] %s292_s10 }
  0x1c   : > { %s290_s22 = sshll.u32 %s13755_s5, 4  ;;  %s13756_s4 = sld [smem:[#allocation212_spill]]  ;;  %s291_s22 = int_to_ptr.hbm [resolvable:$true] %s290_s22 }
  0x1d   : > { %7309 = dma.hbm_to_vmem [thread:$0]  (!%p9516_p6), %s251_s11, 8192, %s253_s15, [#allocation8], %s9413_s25, %s9413_s25, %s9414_s26  }
  0x1e   : > { %7312 = dma.hbm_to_vmem [thread:$0]  (!%p9516_p6), %s266_s18, 64, %s268_s24, [#allocation11]  }
  0x1f   : > { %s9416_s20 = smov 64   ;;  %s9417_s21 = smov 4  }
  0x20   : > { %7318 = dma.hbm_to_vmem [thread:$0]  (!%p9516_p6), %s291_s22, 1024, %s293_s10, [#allocation14], %s9416_s20, %s9416_s20, %s9417_s21  }
  0x21   : > { %s9418_s23 = smov [#allocation12]   ;;  %s9419_s15 = smov 320  }
  0x22   : > { %s276_s17 = sshll.u32 %s13756_s4, 4  ;;  %s278_s11 = sshll.u32 %s9418_s23, 4  ;;  %s277_s17 = int_to_ptr.hbm [resolvable:$true] %s276_s17  ;;  %s279_s11 = int_to_ptr.vmem [resolvable:$true] %s278_s11 }
  0x23   : > { %s9420_s25 = smov 20   ;;  %s13757_s6 = sld [smem:[#allocation214_spill]] }
  0x24   : > { %7315 = dma.hbm_to_vmem [thread:$0]  (!%p9516_p6), %s277_s17, 5120, %s279_s11, [#allocation11], %s9419_s15, %s9419_s15, %s9420_s25  }
  0x25   : > { %s9421_s22 = smov [#allocation15]   ;;  %s13758_s7 = sld [smem:[#allocation215_spill]] }
  0x26   : > { %s306_s9 = sshll.u32 %s9421_s22, 4  ;;  %s13649_s17 = smov 256   ;;  %s307_s9 = int_to_ptr.vmem [resolvable:$true] %s306_s9 }
  0x27   : > { %s13650_s23 = smov 16   ;;  %s9424_s11 = smov [#allocation16]  }
  0x28   : > { %s320_s15 = sshll.u32 %s9424_s11, 4  ;;  %s5971_s25 = sadd.s32 4294967294, %s9085_s30   ;;  %s321_s15 = int_to_ptr.vmem [resolvable:$true] %s320_s15 }
  0x29   : > { %s304_s26 = sshll.u32 %s13757_s6, 4  ;;  %s9549_s18 = sadd.s32 1, %s9085_s30   ;;  %s305_s26 = int_to_ptr.hbm [resolvable:$true] %s304_s26 }
  0x2a   : > { %7321 = dma.hbm_to_vmem [thread:$0]  (!%p9516_p6), %s305_s26, 4096, %s307_s9, [#allocation14], %s13649_s17, %s13649_s17, %s13650_s23  }
  0x2b   : > { %s318_s16 = sshll.u32 %s13758_s7, 4  ;;  %s34_s24 = ssub.s32 %s9085_s30, %s9549_s18  ;;  %s319_s16 = int_to_ptr.hbm [resolvable:$true] %s318_s16 }
  0x2c   : > { %7324 = dma.hbm_to_vmem [thread:$0]  (!%p9516_p6), %s319_s16, 2048, %s321_s15, [#allocation17], %s9416_s20, %s9416_s20, %s9417_s21  }
  0x2d   : > { %s37_s22 = sadd.s32 1, %s9081_s29  ;;  %p35_p7 = scmp.eq.s32.totalorder %s34_s24, 0 }
  0x2e   : > { %p44_p8 = scmp.ne.s32.totalorder %s9081_s29, %s9077_s28  ;;  %p45_p9 = scmp.eq.s32.totalorder %s9085_s30, 0 }
  0x2f   : > { %p50_p10 = scmp.ne.s32.totalorder %s9077_s28, %s9073_s27  ;;  %p226_p13 = scmp.eq.s32.totalorder %s9499_s12, 1 }
  0x30   : > { %s9560_s26 = scalar_select %p35_p7, %s9081_s29, %s37_s22  }
  0x31   : > { %p9562_p11 = por %p45_p9, %p44_p8  ;;  %p9568_p12 = por %p51_p1, %p50_p10 }
  0x32   : > { %13759 = sst [smem:[#allocation26_spill]] %s9560_s26  ;;  %p232_p0 = scmp.eq.s32.totalorder %s5971_s25, 1 }
  0x33   : > { %p7342_p2 = scmp.lt.s32.totalorder %s9085_s30, 2  ;;  %s9575_s20 = sand.u32 1, %s9081_s29  }
  0x34   : > { %p9577_p4 = por %p226_p13, %p44_p8  ;;  %p9581_p6 = por %p232_p0, %p50_p10 }
  0x35   : > { %s5980_s14 = sshll.u32 %s9575_s20, 7  ;;  %s6682_s16 = sshll.u32 %s9085_s30, 7 }
  0x36   : > { %s13764_s0 = sld [smem:[#allocation209_spill]]  ;;  %s338_s25 = scalar_lea.vmem [#allocation4], %s5980_s14 }
  0x37   : > { %s346_s22 = sshll.u32 %s338_s25, 4  ;;  %p9592_p7 = pnand %p7342_p2, %p9562_p11  ;;  %s347_s22 = int_to_ptr.vmem [resolvable:$true] %s346_s22 }
  0x38   : > { %s356_s2 = sand.u32 1, %s9085_s30   ;;  %s335_s3 = scalar_lea.sflag [#allocation5], %s9575_s20 }
  0x39   : > { %p8619_p9 = pneg %p9592_p7 }
  0x3c   : > { %s343_s24 = scalar_lea.hbm %s13764_s0, %s6682_s16  ;;  %s8622_s16 = scalar_lea.hbm %s13764_s0, 256 }
  0x3d   : > { %s344_s17 = sshll.u32 %s343_s24, 4  ;;  %s345_s17 = int_to_ptr.hbm [resolvable:$true] %s344_s17 }
  0x3e   : > { %s8615_s4 = sshra.s32 %s345_s17, 4  ;;  %s8616_s4 = int_to_ptr.hbm [resolvable:$true] %s8615_s4 }
  0x3f   : > { %s8617_s5 = scalar_lea.hbm %s8616_s4, 128  ;;  %p8623_p11 = scmp.lt.s32.totalorder %s8616_s4, %s13764_s0 }
  0x40   : > { %p8618_p8 = scmp.ne.s32.totalorder %s8616_s4, %s8617_s5  ;;  %p8624_p0 = scmp.lt.s32.totalorder %s8622_s16, %s8617_s5 }
  0x42   : > { %p8620_p10 = pnand %p8619_p9, %p8618_p8  ;;  %p8625_p2 = por %p8624_p0, %p8623_p11 }
  0x44   : > { %p8621_p13 = pneg %p8620_p10 }
  0x46   : > { %p8626_p5 = pnand %p8625_p2, %p8621_p13 }
  0x48   : > { %8629 = shalt.err (!%p8626_p5)
}
  0x49   : > { %s9425_s24 = smov 128   ;;  %s9426_s25 = smov 8  }
  0x4a   : > { %7328 = dma.hbm_to_vmem [thread:$0]  (!%p9592_p7), %s345_s17, 2048, %s347_s22, %s335_s3, %s9425_s24, %s9425_s24, %s9426_s25  }
  0x4b   : > { %s5983_s6 = sshll.u32 %s9575_s20, 8  ;;  %s6684_s7 = sshll.u32 %s9085_s30, 8 }
  0x4c   : > { %s366_s26 = scalar_lea.hbm %s13641_s1, %s6684_s7  ;;  %s360_s11 = scalar_lea.vmem [#allocation7], %s5983_s6 }
  0x4d   : > { %s369_s4 = sshll.u32 %s360_s11, 4  ;;  %s367_s5 = sshll.u32 %s366_s26, 4  ;;  %s370_s4 = int_to_ptr.vmem [resolvable:$true] %s369_s4  ;;  %s368_s5 = int_to_ptr.hbm [resolvable:$true] %s367_s5 }
  0x4e   : > { %s357_s16 = scalar_lea.sflag [#allocation8], %s356_s2  ;;  %s8645_s15 = sshra.s32 %s368_s5, 4  ;;  %s8646_s15 = int_to_ptr.hbm [resolvable:$true] %s8645_s15 }
  0x4f   : > { %s8647_s0 = scalar_lea.hbm %s8646_s15, 256  ;;  %s8652_s20 = scalar_lea.hbm %s13641_s1, 512 }
  0x50   : > { %p8648_p5 = scmp.ne.s32.totalorder %s8646_s15, %s8647_s0  ;;  %p8653_p13 = scmp.lt.s32.totalorder %s8646_s15, %s13641_s1 }
  0x51   : > { %p8654_p11 = scmp.lt.s32.totalorder %s8652_s20, %s8647_s0 }
  0x52   : > { %p8650_p8 = pnand %p8648_p5, %p8619_p9 }
  0x53   : > { %p8655_p0 = por %p8654_p11, %p8653_p13 }
  0x54   : > { %p8651_p10 = pneg %p8650_p8 }
  0x56   : > { %p8656_p2 = pnand %p8655_p0, %p8651_p10 }
  0x58   : > { %8659 = shalt.err (!%p8656_p2)
}
  0x59   : > { %s13766_s2 = smov 16   ;;  %s13767_s6 = smov 256  }
  0x5a   : > { %7331 = dma.hbm_to_vmem [thread:$0]  (!%p9592_p7), %s368_s5, 4096, %s370_s4, %s357_s16, %s13767_s6, %s13767_s6, %s13766_s2  }
  0x5b   : > { %381 = sbr.rel (%p9504_p3) target bundleno = 2083 (0x823), region = 52 }
  0x60   : > { %s9633_s26 = sand.u32 1, %s9077_s28  }
  0x61   : > { %s5988_s0 = sshll.u32 %s9633_s26, 7  ;;  %s384_s24 = scalar_lea.sflag [#allocation5], %s9633_s26 }
  0x62   : > { %s9639_s25 = scalar_lea.vmem [#allocation4], %s5988_s0 }
  0x63   : > { %9044 = dma.done.wait (%p9568_p12), %s384_s24, 2048  }
  0x64   : > { %9046 = vsyncadd (%p9568_p12), %s384_s24, 4294965248  ;;  %s393_s13 = sand.u32 1, %s9499_s12   ;;  %s5989_s23 = sshll.u32 %s9633_s26, 8 }
  0x65   : > { %s394_s14 = scalar_lea.sflag [#allocation8], %s393_s13  ;;  %s9647_s9 = scalar_lea.vmem [#allocation7], %s5989_s23 }
  0x66   : > { %9048 = dma.done.wait (%p9568_p12), %s394_s14, 4096  }
  0x67   : > { %9050 = vsyncadd (%p9568_p12), %s394_s14, 4294963200 }
  0x68   : > { %9052 = dma.done.wait (%p51_p1), [#allocation8], 8192  }
  0x69   : > { %9054 = vsyncadd (%p51_p1), [#allocation8], 4294959104 }
  0x6a   : > { %9056 = dma.done.wait (%p51_p1), [#allocation11], 5184  }
  0x6b   : > { %9058 = vsyncadd (%p51_p1), [#allocation11], 4294962112 }
  0x6c   : > { %9060 = dma.done.wait (%p51_p1), [#allocation14], 5120  }
  0x6d   : > { %9062 = vsyncadd (%p51_p1), [#allocation14], 4294962176 }
  0x6e   : > { %9064 = dma.done.wait (%p51_p1), [#allocation17], 2048  }
  0x6f   : > { %9066 = vsyncadd (%p51_p1), [#allocation17], 4294965248  ;;  %v9669_v0 = vld [vmem:[#allocation9] sm:$0xff]  ;;  %v9671_v1 = vld [vmem:[#allocation9 + $0x8] sm:$0xff]  ;;  %s6157_s19 = sshll.u32 %s9499_s12, 9  ;;  %s1869_s4 = sadd.s32 1, %s9499_s12 }
  0x70   : > { %13768 = vst [vmem:[#allocation27_spill] sm:$0xff] %v9669_v0  ;;  %v9673_v2 = vld [vmem:[#allocation9 + $0x10] sm:$0xff]  ;;  %v9675_v3 = vld [vmem:[#allocation9 + $0x18] sm:$0xff]  ;;  %v9677_v4 = vld [vmem:[#allocation9 + $0x20] sm:$0xff]  ;;  %s10303_s11 = sshra.s32 %s6157_s19, 3  ;;  %s10570_s3 = scalar_lea.vmem [#allocation18], %s5988_s0 }
  0x71   : > { %13769 = vst [vmem:[#allocation28_spill] sm:$0xff] %v9671_v1  ;;  %v9679_v5 = vld [vmem:[#allocation9 + $0x28] sm:$0xff]  ;;  %v9681_v6 = vld [vmem:[#allocation9 + $0x30] sm:$0xff]  ;;  %v9683_v7 = vld [vmem:[#allocation9 + $0x38] sm:$0xff]  ;;  %s6158_s5 = sshll.u32 %s10303_s11, 2  ;;  %p10574_p1 = scmp.le.s32.totalorder %s1869_s4, 0 }
  0x72   : > { %13770 = vst [vmem:[#allocation29_spill] sm:$0xff] %v9673_v2  ;;  %v9685_v8 = vld [vmem:[#allocation9 + $0x40] sm:$0xff]  ;;  %v9687_v9 = vld [vmem:[#allocation9 + $0x48] sm:$0xff]  ;;  %v9689_v10 = vld [vmem:[#allocation9 + $0x50] sm:$0xff]  ;;  %s10321_s16 = scalar_lea.vmem [#allocation2], %s6158_s5  ;;  %s10341_s15 = scalar_lea.vmem [#allocation3], %s6158_s5 }
  0x73   : > { %13771 = vst [vmem:[#allocation30_spill] sm:$0xff] %v9675_v3  ;;  %v9691_v11 = vld [vmem:[#allocation9 + $0x58] sm:$0xff]  ;;  %v9693_v12 = vld [vmem:[#allocation9 + $0x60] sm:$0xff]  ;;  %v9695_v13 = vld [vmem:[#allocation9 + $0x68] sm:$0xff] }
  0x74   : > { %13772 = vst [vmem:[#allocation31_spill] sm:$0xff] %v9677_v4  ;;  %v9697_v14 = vld [vmem:[#allocation9 + $0x70] sm:$0xff]  ;;  %v9699_v15 = vld [vmem:[#allocation9 + $0x78] sm:$0xff]  ;;  %v9701_v16 = vld [vmem:[#allocation9 + $0x80] sm:$0xff] }
  0x75   : > { %13773 = vst [vmem:[#allocation32_spill] sm:$0xff] %v9679_v5  ;;  %v9703_v17 = vld [vmem:[#allocation9 + $0x88] sm:$0xff]  ;;  %v9705_v18 = vld [vmem:[#allocation9 + $0x90] sm:$0xff]  ;;  %v9707_v19 = vld [vmem:[#allocation9 + $0x98] sm:$0xff] }
  0x76   : > { %13774 = vst [vmem:[#allocation33_spill] sm:$0xff] %v9681_v6  ;;  %v9709_v20 = vld [vmem:[#allocation9 + $0xa0] sm:$0xff]  ;;  %v9711_v21 = vld [vmem:[#allocation9 + $0xa8] sm:$0xff]  ;;  %v9713_v22 = vld [vmem:[#allocation9 + $0xb0] sm:$0xff] }
  0x77   : > { %13775 = vst [vmem:[#allocation34_spill] sm:$0xff] %v9683_v7  ;;  %v9715_v23 = vld [vmem:[#allocation9 + $0xb8] sm:$0xff]  ;;  %v9717_v24 = vld [vmem:[#allocation9 + $0xc0] sm:$0xff]  ;;  %v9719_v25 = vld [vmem:[#allocation9 + $0xc8] sm:$0xff] }
  0x78   : > { %13776 = vst [vmem:[#allocation35_spill] sm:$0xff] %v9685_v8  ;;  %v9721_v26 = vld [vmem:[#allocation9 + $0xd0] sm:$0xff]  ;;  %v9723_v27 = vld [vmem:[#allocation9 + $0xd8] sm:$0xff]  ;;  %v9725_v28 = vld [vmem:[#allocation9 + $0xe0] sm:$0xff] }
  0x79   : > { %13777 = vst [vmem:[#allocation36_spill] sm:$0xff] %v9687_v9  ;;  %v9727_v29 = vld [vmem:[#allocation9 + $0xe8] sm:$0xff]  ;;  %v9729_v30 = vld [vmem:[#allocation9 + $0xf0] sm:$0xff]  ;;  %v9731_v31 = vld [vmem:[#allocation9 + $0xf8] sm:$0xff] }
  0x7a   : > { %13778 = vst [vmem:[#allocation37_spill] sm:$0xff] %v9689_v10  ;;  %v9733_v32 = vld [vmem:[#allocation9 + $0x100] sm:$0xff]  ;;  %v9735_v33 = vld [vmem:[#allocation9 + $0x108] sm:$0xff]  ;;  %v9737_v34 = vld [vmem:[#allocation9 + $0x110] sm:$0xff] }
  0x7b   : > { %13779 = vst [vmem:[#allocation38_spill] sm:$0xff] %v9691_v11  ;;  %v9739_v35 = vld [vmem:[#allocation9 + $0x118] sm:$0xff]  ;;  %v9741_v36 = vld [vmem:[#allocation9 + $0x120] sm:$0xff]  ;;  %v9743_v37 = vld [vmem:[#allocation9 + $0x128] sm:$0xff] }
  0x7c   : > { %13780 = vst [vmem:[#allocation39_spill] sm:$0xff] %v9693_v12  ;;  %v9745_v38 = vld [vmem:[#allocation9 + $0x130] sm:$0xff]  ;;  %v9747_v39 = vld [vmem:[#allocation9 + $0x138] sm:$0xff]  ;;  %v9749_v40 = vld [vmem:[#allocation9 + $0x140] sm:$0xff] }
  0x7d   : > { %13781 = vst [vmem:[#allocation40_spill] sm:$0xff] %v9695_v13  ;;  %v9751_v41 = vld [vmem:[#allocation9 + $0x148] sm:$0xff]  ;;  %v9753_v42 = vld [vmem:[#allocation9 + $0x150] sm:$0xff]  ;;  %v9755_v43 = vld [vmem:[#allocation9 + $0x158] sm:$0xff] }
  0x7e   : > { %13782 = vst [vmem:[#allocation41_spill] sm:$0xff] %v9697_v14  ;;  %v9757_v44 = vld [vmem:[#allocation9 + $0x160] sm:$0xff]  ;;  %v9759_v45 = vld [vmem:[#allocation9 + $0x168] sm:$0xff]  ;;  %v9761_v46 = vld [vmem:[#allocation9 + $0x170] sm:$0xff] }
  0x7f   : > { %13783 = vst [vmem:[#allocation42_spill] sm:$0xff] %v9699_v15  ;;  %v9763_v47 = vld [vmem:[#allocation9 + $0x178] sm:$0xff]  ;;  %v9765_v48 = vld [vmem:[#allocation9 + $0x180] sm:$0xff]  ;;  %v9767_v49 = vld [vmem:[#allocation9 + $0x188] sm:$0xff] }
  0x80   : > { %13784 = vst [vmem:[#allocation43_spill] sm:$0xff] %v9701_v16  ;;  %v9769_v50 = vld [vmem:[#allocation9 + $0x190] sm:$0xff]  ;;  %v9771_v51 = vld [vmem:[#allocation9 + $0x198] sm:$0xff]  ;;  %v9773_v52 = vld [vmem:[#allocation9 + $0x1a0] sm:$0xff] }
  0x81   : > { %13785 = vst [vmem:[#allocation44_spill] sm:$0xff] %v9703_v17  ;;  %v9775_v53 = vld [vmem:[#allocation9 + $0x1a8] sm:$0xff]  ;;  %v9777_v54 = vld [vmem:[#allocation9 + $0x1b0] sm:$0xff]  ;;  %v9779_v55 = vld [vmem:[#allocation9 + $0x1b8] sm:$0xff] }
  0x82   : > { %13786 = vst [vmem:[#allocation45_spill] sm:$0xff] %v9705_v18  ;;  %v9781_v56 = vld [vmem:[#allocation9 + $0x1c0] sm:$0xff]  ;;  %v9783_v57 = vld [vmem:[#allocation9 + $0x1c8] sm:$0xff]  ;;  %v9785_v58 = vld [vmem:[#allocation9 + $0x1d0] sm:$0xff] }
  0x83   : > { %13787 = vst [vmem:[#allocation46_spill] sm:$0xff] %v9707_v19  ;;  %v9787_v59 = vld [vmem:[#allocation9 + $0x1d8] sm:$0xff]  ;;  %v9789_v60 = vld [vmem:[#allocation9 + $0x1e0] sm:$0xff]  ;;  %v9791_v61 = vld [vmem:[#allocation9 + $0x1e8] sm:$0xff] }
  0x84   : > { %13788 = vst [vmem:[#allocation47_spill] sm:$0xff] %v9709_v20  ;;  %v9793_v62 = vld [vmem:[#allocation9 + $0x1f0] sm:$0xff]  ;;  %v9795_v63 = vld [vmem:[#allocation9 + $0x1f8] sm:$0xff]  ;;  %v6109_v16 = vld [vmem:[#allocation12 + $0xe4] sm:$0xf0] }
  0x85   : > { %13789 = vst [vmem:[#allocation48_spill] sm:$0xff] %v9711_v21  ;;  %v6141_v19 = vld [vmem:[#allocation12 + $0x12c] sm:$0xf0] }
  0x86   : > { %13790 = vst [vmem:[#allocation49_spill] sm:$0xff] %v9713_v22 }
  0x87   : > { %13791 = vst [vmem:[#allocation50_spill] sm:$0xff] %v9715_v23 }
  0x88   : > { %13792 = vst [vmem:[#allocation51_spill] sm:$0xff] %v9717_v24 }
  0x89   : > { %13793 = vst [vmem:[#allocation52_spill] sm:$0xff] %v9719_v25 }
  0x8a   : > { %13794 = vst [vmem:[#allocation53_spill] sm:$0xff] %v9721_v26 }
  0x8b   : > { %13795 = vst [vmem:[#allocation54_spill] sm:$0xff] %v9723_v27 }
  0x8c   : > { %13796 = vst [vmem:[#allocation55_spill] sm:$0xff] %v9725_v28 }
  0x8d   : > { %13797 = vst [vmem:[#allocation56_spill] sm:$0xff] %v9727_v29 }
  0x8e   : > { %13798 = vst [vmem:[#allocation57_spill] sm:$0xff] %v9729_v30 }
  0x8f   : > { %13799 = vst [vmem:[#allocation58_spill] sm:$0xff] %v9731_v31  ;;  %v6721_v31 = vld [vmem:[#allocation12 + $0x124] sm:$0xf] }
  0x90   : > { %13800 = vst [vmem:[#allocation59_spill] sm:$0xff] %v9733_v32 }
  0x91   : > { %13801 = vst [vmem:[#allocation60_spill] sm:$0xff] %v9735_v33 }
  0x92   : > { %13802 = vst [vmem:[#allocation61_spill] sm:$0xff] %v9737_v34 }
  0x93   : > { %13803 = vst [vmem:[#allocation62_spill] sm:$0xff] %v9739_v35 }
  0x94   : > { %13804 = vst [vmem:[#allocation63_spill] sm:$0xff] %v9741_v36  ;;  %v6712_v36 = vld [vmem:[#allocation12 + $0xd8] sm:$0xf0] }
  0x95   : > { %13805 = vst [vmem:[#allocation64_spill] sm:$0xff] %v9743_v37 }
  0x96   : > { %13806 = vst [vmem:[#allocation65_spill] sm:$0xff] %v9745_v38  ;;  %v6717_v38 = vld [vmem:[#allocation12 + $0x100] sm:$0xf0] }
  0x97   : > { %13807 = vst [vmem:[#allocation66_spill] sm:$0xff] %v9747_v39  ;;  %v6119_v39 = vld [vmem:[#allocation12 + $0xf0] sm:$0xf] }
  0x98   : > { %13808 = vst [vmem:[#allocation67_spill] sm:$0xff] %v9749_v40 }
  0x99   : > { %13809 = vst [vmem:[#allocation68_spill] sm:$0xff] %v9751_v41  ;;  %v9427_v41 = vmov 128.0  }
  0x9a   : > { %13810 = vst [vmem:[#allocation69_spill] sm:$0xff] %v9753_v42  ;;  %v6722_v42 = vld [vmem:[#allocation12 + $0x128] sm:$0xf0]  ;;  %8049 = vrcp.f32 %v9427_v41  ;;  %v6079_v41 = vld [vmem:[#allocation12 + $0xa0] sm:$0xf] }
  0x9b   : > { %13811 = vst [vmem:[#allocation70_spill] sm:$0xff] %v9755_v43 }
  0x9c   : > { %13812 = vst [vmem:[#allocation71_spill] sm:$0xff] %v9757_v44 }
  0x9d   : > { %13813 = vst [vmem:[#allocation72_spill] sm:$0xff] %v9759_v45 }
  0x9e   : > { %13814 = vst [vmem:[#allocation73_spill] sm:$0xff] %v9761_v46 }
  0x9f   : > { %13815 = vst [vmem:[#allocation74_spill] sm:$0xff] %v9763_v47 }
  0xa0   : > { %13816 = vst [vmem:[#allocation75_spill] sm:$0xff] %v9765_v48  ;;  %v9849_v48 = vld [vmem:[%s9639_s25 + $0x78] sm:$0xff] }
  0xa1   : > { %13817 = vst [vmem:[#allocation76_spill] sm:$0xff] %v9767_v49  ;;  %v500_v46 = vmul.f32 %v9849_v48, %v9849_v48 }
  0xa2   : > { %13818 = vst [vmem:[#allocation77_spill] sm:$0xff] %v9769_v50 }
  0xa3   : > { %13819 = vst [vmem:[#allocation78_spill] sm:$0xff] %v9771_v51 }
  0xa4   : > { %13820 = vst [vmem:[#allocation79_spill] sm:$0xff] %v9773_v52 }
  0xa5   : > { %13821 = vst [vmem:[#allocation80_spill] sm:$0xff] %v9775_v53  ;;  %v9834_v53 = vld [vmem:[%s9639_s25 + $0x50] sm:$0xff] }
  0xa6   : > { %13822 = vst [vmem:[#allocation81_spill] sm:$0xff] %v9777_v54 }
  0xa7   : > { %13823 = vst [vmem:[#allocation82_spill] sm:$0xff] %v9779_v55  ;;  %v9798_v55 = vld [vmem:[%s9639_s25 + $0x60] sm:$0xff] }
  0xa8   : > { %13824 = vst [vmem:[#allocation83_spill] sm:$0xff] %v9781_v56  ;;  %v9801_v56 = vld [vmem:[%s9639_s25 + $0x40] sm:$0xff] }
  0xa9   : > { %13825 = vst [vmem:[#allocation84_spill] sm:$0xff] %v9783_v57  ;;  %v497_v57 = vmul.f32 %v9798_v55, %v9798_v55 }
  0xaa   : > { %13826 = vst [vmem:[#allocation85_spill] sm:$0xff] %v9785_v58  ;;  %v9808_v58 = vld [vmem:[%s9639_s25 + $0x20] sm:$0xff] }
  0xab   : > { %13827 = vst [vmem:[#allocation86_spill] sm:$0xff] %v9787_v59  ;;  %v493_v59 = vmul.f32 %v9801_v56, %v9801_v56  ;;  %525 = vadd.xlane.f32.xlu1 %v497_v57 }
  0xac   : > { %13828 = vst [vmem:[#allocation87_spill] sm:$0xff] %v9789_v60  ;;  %v9816_v60 = vld [vmem:[%s9639_s25 + $0x48] sm:$0xff] }
  0xad   : > { %13829 = vst [vmem:[#allocation88_spill] sm:$0xff] %v9791_v61  ;;  %517 = vadd.xlane.f32.xlu0 %v493_v59  ;;  %v9819_v61 = vld [vmem:[%s9639_s25 + $0x28] sm:$0xff]  ;;  %v494_v52 = vmul.f32 %v9816_v60, %v9816_v60 }
  0xae   : > { %13830 = vst [vmem:[#allocation89_spill] sm:$0xff] %v9793_v62  ;;  %v489_v62 = vmul.f32 %v9808_v58, %v9808_v58  ;;  %v490_v57 = vmul.f32 %v9819_v61, %v9819_v61  ;;  %v9828_v59 = vld [vmem:[%s9639_s25 + $0x8] sm:$0xff] }
  0xaf   : > { %13831 = vst [vmem:[#allocation90_spill] sm:$0xff] %v9795_v63  ;;  %v9813_v63 = vld [vmem:[%s9639_s25 + $0x68] sm:$0xff]  ;;  %v486_v51 = vmul.f32 %v9828_v59, %v9828_v59 }
  0xb0   : > { %13832 = vst [vmem:[#allocation91_spill] sm:$0xff] %v9798_v55  ;;  %509 = vadd.xlane.f32.xlu2 %v489_v62  ;;  %v498_v54 = vmul.f32 %v9813_v63, %v9813_v63  ;;  %v9831_v62 = vld [vmem:[%s9639_s25] sm:$0xff] }
  0xb1   : > { %13833 = vst [vmem:[#allocation92_spill] sm:$0xff] %v9801_v56  ;;  %v485_v50 = vmul.f32 %v9831_v62, %v9831_v62 }
  0xb2   : > { %13834 = vst [vmem:[#allocation93_spill] sm:$0xff] %v9808_v58 }
  0xb3   : > { %13835 = vst [vmem:[#allocation94_spill] sm:$0xff] %v9813_v63  ;;  %527 = vadd.xlane.f32.xlu1 %v498_v54  ;;  %v495_v54 = vmul.f32 %v9834_v53, %v9834_v53 }
  0xb4   : > { %13836 = vst [vmem:[#allocation95_spill] sm:$0xff] %v9816_v60 }
  0xb5   : > { %13837 = vst [vmem:[#allocation96_spill] sm:$0xff] %v9819_v61  ;;  %519 = vadd.xlane.f32.xlu0 %v494_v52  ;;  %v9843_v52 = vld [vmem:[%s9639_s25 + $0x70] sm:$0xff] }
  0xb6   : > { %13838 = vst [vmem:[#allocation97_spill] sm:$0xff] %v9828_v59  ;;  %v499_v49 = vmul.f32 %v9843_v52, %v9843_v52 }
  0xb7   : > { %13839 = vst [vmem:[#allocation98_spill] sm:$0xff] %v9831_v62 }
  0xb8   : > { %511 = vadd.xlane.f32.xlu2 %v490_v57  ;;  %13840 = vst [vmem:[#allocation99_spill] sm:$0xff] %v9834_v53  ;;  %v9846_v57 = vld [vmem:[%s9639_s25 + $0x58] sm:$0xff] }
  0xb9   : > { %13841 = vst [vmem:[#allocation100_spill] sm:$0xff] %v9843_v52  ;;  %v496_v47 = vmul.f32 %v9846_v57, %v9846_v57 }
  0xba   : > { %13842 = vst [vmem:[#allocation101_spill] sm:$0xff] %v9846_v57 }
  0xbb   : > { %503 = vadd.xlane.f32.xlu1 %v486_v51  ;;  %13843 = vst [vmem:[#allocation102_spill] sm:$0xff] %v9849_v48  ;;  %v9861_v51 = vld [vmem:[%s9639_s25 + $0x30] sm:$0xff] }
  0xbc   : > { %13845 = vst [vmem:[#allocation104_spill] sm:$0xff] %v9861_v51  ;;  %v491_v45 = vmul.f32 %v9861_v51, %v9861_v51 }
  0xbd   : > { %501 = vadd.xlane.f32.xlu0 %v485_v50  ;;  %v9858_v50 = vld [vmem:[%s9639_s25 + $0x38] sm:$0xff] }
  0xbe   : > { %13844 = vst [vmem:[#allocation103_spill] sm:$0xff] %v9858_v50  ;;  %v492_v44 = vmul.f32 %v9858_v50, %v9858_v50 }
  0xc0   : > { %521 = vadd.xlane.f32.xlu2 %v495_v54  ;;  %v9864_v54 = vld [vmem:[%s9639_s25 + $0x10] sm:$0xff] }
  0xc1   : > { %13846 = vst [vmem:[#allocation105_spill] sm:$0xff] %v9864_v54  ;;  %v487_v43 = vmul.f32 %v9864_v54, %v9864_v54 }
  0xc3   : > { %529 = vadd.xlane.f32.xlu1 %v499_v49  ;;  %v6139_v49 = vld [vmem:[#allocation12 + $0x118] sm:$0xf] }
  0xc4   : > { %v6140_v40 = vor.u32 %v6722_v42, %v6139_v49  ;;  %v6707_v42 = vld [vmem:[#allocation12 + $0xb0] sm:$0xf0] }
  0xc5   : > { %523 = vadd.xlane.f32.xlu0 %v496_v47  ;;  %v9873_v47 = vld [vmem:[%s9639_s25 + $0x18] sm:$0xff]  ;;  %v6080_v49 = vor.u32 %v6707_v42, %v6079_v41 }
  0xc6   : > { %13847 = vst [vmem:[#allocation106_spill] sm:$0xff] %v9873_v47  ;;  %7228 = vmatpush.bf16.msra.mxu1 %v6140_v40  ;;  %7229 = vmatpush.bf16.msra.mxu2 %v6140_v40 }
  0xc7   : > { %7230 = vmatpush.bf16.msra.mxu3 %v6140_v40  ;;  %1012 = vmatpush.bf16.msra.mxu0 %v6140_v40  ;;  %v6702_v40 = vld [vmem:[#allocation12 + $0x88] sm:$0xf0] }
  0xc8   : > { %531 = vadd.xlane.f32.xlu2 %v500_v46  ;;  %v488_v46 = vmul.f32 %v9873_v47, %v9873_v47 }
  0xcb   : > { %515 = vadd.xlane.f32.xlu1 %v492_v44  ;;  %v6120_v44 = vor.u32 %v6717_v38, %v6119_v39  ;;  %v6059_v39 = vld [vmem:[#allocation12 + $0x78] sm:$0xf] }
  0xcd   : > { %513 = vadd.xlane.f32.xlu0 %v491_v45  ;;  %7231 = vmatpush.bf16.msra.mxu1 %v6120_v44  ;;  %v6099_v45 = vld [vmem:[#allocation12 + $0xc8] sm:$0xf] }
  0xce   : > { %7232 = vmatpush.bf16.msra.mxu2 %v6120_v44  ;;  %7233 = vmatpush.bf16.msra.mxu3 %v6120_v44 }
  0xcf   : > { %1013 = vmatpush.bf16.msra.mxu0 %v6120_v44  ;;  %v6060_v44 = vor.u32 %v6702_v40, %v6059_v39  ;;  %v6019_v39 = vld [vmem:[#allocation12 + $0x28] sm:$0xf]  ;;  %v6692_v40 = vld [vmem:[#allocation12 + $0x38] sm:$0xf0] }
  0xd0   : > { %505 = vadd.xlane.f32.xlu2 %v487_v43  ;;  %v8050_v43 = vpop.eup %8049 }
  0xd1   : > { %v534_v37 = vmul.f32 128.0, %v8050_v43  ;;  %vm538_vm0 = vweird.f32 %v8050_v43 }
  0xd3   : > { %v535_v35 = vsub.f32 1.0, %v534_v37 }
  0xd5   : > { %507 = vadd.xlane.f32.xlu0 %v488_v46  ;;  %v6100_v46 = vor.u32 %v6712_v36, %v6099_v45  ;;  %v536_v38 = vmul.f32 %v8050_v43, %v535_v35  ;;  %v6039_v36 = vld [vmem:[#allocation12 + $0x50] sm:$0xf]  ;;  %v6697_v45 = vld [vmem:[#allocation12 + $0x60] sm:$0xf0] }
  0xd6   : > { %v6040_v32 = vor.u32 %v6697_v45, %v6039_v36  ;;  %v6687_v36 = vld [vmem:[#allocation12 + $0x10] sm:$0xf0] }
  0xd7   : > { %7234 = vmatpush.bf16.msra.mxu1 %v6100_v46  ;;  %7235 = vmatpush.bf16.msra.mxu2 %v6100_v46  ;;  %v537_v34 = vadd.f32 %v8050_v43, %v536_v38 }
  0xd8   : > { %7236 = vmatpush.bf16.msra.mxu3 %v6100_v46  ;;  %1014 = vmatpush.bf16.msra.mxu0 %v6100_v46 }
  0xd9   : > { %v9877_v46 = vsel %vm538_vm0, %v8050_v43, %v537_v34  ;;  %v6020_v34 = vor.u32 %v6692_v40, %v6019_v39  ;;  %v6147_v39 = vld [vmem:[#allocation12 + $0x120] sm:$0xf]  ;;  %v6723_v40 = vld [vmem:[#allocation12 + $0x130] sm:$0xf0] }
  0xda   : > { %13848 = vst [vmem:[#allocation107_spill] sm:$0xff] %v9877_v46 }
  0xdb   : > { %7237 = vmatpush.bf16.msra.mxu1 %v6080_v49  ;;  %7238 = vmatpush.bf16.msra.mxu2 %v6080_v49 }
  0xdc   : > { %7239 = vmatpush.bf16.msra.mxu3 %v6080_v49  ;;  %1015 = vmatpush.bf16.msra.mxu0 %v6080_v49 }
  0xdf   : > { %7240 = vmatpush.bf16.msra.mxu1 %v6060_v44  ;;  %7241 = vmatpush.bf16.msra.mxu2 %v6060_v44 }
  0xe0   : > { %7242 = vmatpush.bf16.msra.mxu3 %v6060_v44  ;;  %1016 = vmatpush.bf16.msra.mxu0 %v6060_v44 }
  0xe3   : > { %7243 = vmatpush.bf16.msra.mxu1 %v6040_v32  ;;  %7244 = vmatpush.bf16.msra.mxu2 %v6040_v32 }
  0xe4   : > { %7245 = vmatpush.bf16.msra.mxu3 %v6040_v32  ;;  %1017 = vmatpush.bf16.msra.mxu0 %v6040_v32  ;;  %v5999_v32 = vld [vmem:[#allocation12] sm:$0xf] }
  0xe5   : > { %v6000_v45 = vor.u32 %v6687_v36, %v5999_v32  ;;  %v6148_v36 = vor.u32 %v6723_v40, %v6147_v39  ;;  %v6127_v39 = vld [vmem:[#allocation12 + $0xf8] sm:$0xf]  ;;  %v6716_v40 = vld [vmem:[#allocation12 + $0xfc] sm:$0xf] }
  0xe7   : > { %7246 = vmatpush.bf16.msra.mxu1 %v6020_v34  ;;  %7247 = vmatpush.bf16.msra.mxu2 %v6020_v34 }
  0xe8   : > { %7248 = vmatpush.bf16.msra.mxu3 %v6020_v34  ;;  %1018 = vmatpush.bf16.msra.mxu0 %v6020_v34 }
  0xeb   : > { %7249 = vmatpush.bf16.msra.mxu1 %v6000_v45  ;;  %7250 = vmatpush.bf16.msra.mxu2 %v6000_v45 }
  0xec   : > { %7251 = vmatpush.bf16.msra.mxu3 %v6000_v45  ;;  %1019 = vmatpush.bf16.msra.mxu0 %v6000_v45 }
  0xef   : > { %1110 = vmatpush.bf16.msrb.mxu2 %v6148_v36 }
 0x11e   : > { %v526_v37 = vpop.xlane.xlu1 %525 }
 0x11f   : > { %v552_v41 = vmul.f32 %v9877_v46, %v526_v37 }
 0x120   : > { %v518_v35 = vpop.xlane.xlu0 %517 }
 0x121   : > { %v548_v42 = vmul.f32 %v9877_v46, %v518_v35  ;;  %v9882_v33 = vadd.f32 1e-05, %v552_v41 }
 0x123   : > { %v510_v49 = vpop.xlane.xlu2 %509  ;;  %v9884_v44 = vadd.f32 1e-05, %v548_v42  ;;  %8051 = vrsqrt.f32 %v9882_v33  ;;  %vm698_vm1 = vweird.f32 %v9882_v33 }
 0x124   : > { %v544_v38 = vmul.f32 %v9877_v46, %v510_v49 }
 0x125   : > { %8053 = vrsqrt.f32 %v9884_v44  ;;  %vm658_vm2 = vweird.f32 %v9884_v44 }
 0x126   : > { %v9886_v43 = vadd.f32 1e-05, %v544_v38  ;;  %v528_v37 = vpop.xlane.xlu1 %527 }
 0x127   : > { %v553_v41 = vmul.f32 %v9877_v46, %v528_v37  ;;  %v6149_v37 = vld [vmem:[#allocation12 + $0x134] sm:$0xf0] }
 0x128   : > { %8055 = vrsqrt.f32 %v9886_v43  ;;  %v520_v35 = vpop.xlane.xlu0 %519  ;;  %vm618_vm3 = vweird.f32 %v9886_v43 }
 0x129   : > { %v549_v42 = vmul.f32 %v9877_v46, %v520_v35  ;;  %v9894_v34 = vpop.eup %8051  ;;  %v9896_v30 = vadd.f32 1e-05, %v553_v41 }
 0x12a   : > { %v693_v35 = vmul.f32 %v9894_v34, %v9882_v33  ;;  %vm699_vm4 = vweird.f32 %v9894_v34 }
 0x12b   : > { %v512_v49 = vpop.xlane.xlu2 %511  ;;  %v9898_v32 = vadd.f32 1e-05, %v549_v42  ;;  %v9900_v28 = vpop.eup %8053  ;;  %8057 = vrsqrt.f32 %v9896_v30  ;;  %vm708_vm7 = vweird.f32 %v9896_v30  ;;  %vm9941_vm8 = vmor %vm698_vm1, %vm699_vm4 }
 0x12c   : > { %v545_v38 = vmul.f32 %v9877_v46, %v512_v49  ;;  %v6152_v49 = vor.u32 %v6721_v31, %v6149_v37  ;;  %v653_v45 = vmul.f32 %v9900_v28, %v9884_v44  ;;  %v694_v41 = vmul.f32 %v9894_v34, %v693_v35  ;;  %v6129_v37 = vld [vmem:[#allocation12 + $0x10c] sm:$0xf0]  ;;  %v6711_v44 = vld [vmem:[#allocation12 + $0xd4] sm:$0xf] }
 0x12d   : > { %8059 = vrsqrt.f32 %v9898_v32  ;;  %v6132_v23 = vor.u32 %v6716_v40, %v6129_v37  ;;  %vm659_vm5 = vweird.f32 %v9900_v28  ;;  %vm668_vm9 = vweird.f32 %v9898_v32 }
 0x12e   : > { %v9904_v29 = vadd.f32 1e-05, %v545_v38  ;;  %v9906_v27 = vpop.eup %8055  ;;  %1159 = vmatpush.bf16.msrb.mxu3 %v6152_v49  ;;  %v6718_v38 = vld [vmem:[#allocation12 + $0x108] sm:$0xf0]  ;;  %v654_v31 = vmul.f32 %v9900_v28, %v653_v45  ;;  %v695_v26 = vmul.f32 0.5, %v694_v41  ;;  %v504_v35 = vpop.xlane.xlu1 %503  ;;  %vm9971_vm13 = vmor %vm658_vm2, %vm659_vm5 }
 0x12f   : > { %v613_v42 = vmul.f32 %v9906_v27, %v9886_v43  ;;  %v6128_v25 = vor.u32 %v6718_v38, %v6127_v39  ;;  %v541_v20 = vmul.f32 %v9877_v46, %v504_v35  ;;  %vm619_vm6 = vweird.f32 %v9906_v27 }
 0x130   : > { %8061 = vrsqrt.f32 %v9904_v29  ;;  %v502_v24 = vpop.xlane.xlu0 %501  ;;  %v655_v22 = vmul.f32 0.5, %v654_v31  ;;  %v696_v45 = vsub.f32 1.5, %v695_v26  ;;  %vm628_vm10 = vweird.f32 %v9904_v29  ;;  %vm9988_vm15 = vmor %vm618_vm3, %vm619_vm6 }
 0x131   : > { %v614_v36 = vmul.f32 %v9906_v27, %v613_v42  ;;  %1111 = vmatpush.bf16.msrb.mxu2 %v6128_v25  ;;  %v6720_v42 = vld [vmem:[#allocation12 + $0x11c] sm:$0xf]  ;;  %v9924_v39 = vpop.eup %8057  ;;  %v540_v31 = vmul.f32 %v9877_v46, %v502_v24  ;;  %v9949_v35 = vadd.f32 1e-05, %v541_v20 }
 0x132   : > { %1160 = vmatpush.bf16.msrb.mxu3 %v6132_v23  ;;  %v656_v38 = vsub.f32 1.5, %v655_v22  ;;  %v6144_v40 = vor.u32 %v6720_v42, %v6141_v19  ;;  %v697_v26 = vmul.f32 %v9894_v34, %v696_v45  ;;  %v703_v25 = vmul.f32 %v9924_v39, %v9896_v30 }
 0x133   : > { %v522_v49 = vpop.xlane.xlu2 %521  ;;  %v615_v21 = vmul.f32 0.5, %v614_v36  ;;  %v9928_v37 = vpop.eup %8059  ;;  %v9961_v20 = vadd.f32 1e-05, %v540_v31  ;;  %vm709_vm11 = vweird.f32 %v9924_v39  ;;  %vm588_vm4 = vweird.f32 %v9949_v35 }
 0x134   : > { %v550_v41 = vmul.f32 %v9877_v46, %v522_v49  ;;  %v663_v24 = vmul.f32 %v9928_v37, %v9898_v32  ;;  %1061 = vmatpush.bf16.msrb.mxu1 %v6144_v40  ;;  %v701_v49 = vsel %vm9941_vm8, %v9894_v34, %v697_v26  ;;  %v657_v45 = vmul.f32 %v9900_v28, %v656_v38  ;;  %vm710_vm0 = vmor %vm708_vm7, %vm709_vm11 }
 0x135   : > { %v616_v19 = vsub.f32 1.5, %v615_v21  ;;  %v704_v33 = vmul.f32 %v9924_v39, %v703_v25  ;;  %vm669_vm12 = vweird.f32 %v9928_v37  ;;  %v744_v26 = vmul.f32 %v701_v49, %v9798_v55 }
 0x136   : > { %v9935_v23 = vpop.eup %8061  ;;  %v9947_v36 = vadd.f32 1e-05, %v550_v41  ;;  %v664_v21 = vmul.f32 %v9928_v37, %v663_v24  ;;  %v530_v38 = vpop.xlane.xlu1 %529  ;;  %v661_v49 = vsel %vm9971_vm13, %v9900_v28, %v657_v45  ;;  %vm670_vm1 = vmor %vm668_vm9, %vm669_vm12  ;;  %vm578_vm5 = vweird.f32 %v9961_v20 }
 0x137   : > { %v623_v42 = vmul.f32 %v9935_v23, %v9904_v29  ;;  %v705_v41 = vmul.f32 0.5, %v704_v33  ;;  %v617_v31 = vmul.f32 %v9906_v27, %v616_v19  ;;  %v6107_v33 = vld [vmem:[#allocation12 + $0xd0] sm:$0xf]  ;;  %vm629_vm14 = vweird.f32 %v9935_v23 }
 0x138   : > { %v524_v40 = vpop.xlane.xlu0 %523  ;;  %v665_v22 = vmul.f32 0.5, %v664_v21  ;;  %8063 = vrsqrt.f32 %v9947_v36  ;;  %v740_v15 = vmul.f32 %v661_v49, %v9801_v56  ;;  %vm630_vm2 = vmor %vm628_vm10, %vm629_vm14  ;;  %vm678_vm3 = vweird.f32 %v9947_v36 }
 0x139   : > { %v624_v34 = vmul.f32 %v9935_v23, %v623_v42  ;;  %v6713_v42 = vld [vmem:[#allocation12 + $0xe0] sm:$0xf0]  ;;  %v706_v55 = vsub.f32 1.5, %v705_v41  ;;  %8065 = vrsqrt.f32 %v9949_v35  ;;  %v554_v41 = vmul.f32 %v9877_v46, %v530_v38 }
 0x13a   : > { %v666_v17 = vsub.f32 1.5, %v665_v22  ;;  %8067 = vrsqrt.f32 %v9961_v20  ;;  %v6108_v43 = vor.u32 %v6713_v42, %v6107_v33 }
 0x13b   : > { %v532_v24 = vpop.xlane.xlu2 %531  ;;  %v625_v18 = vmul.f32 0.5, %v624_v34  ;;  %v707_v28 = vmul.f32 %v9924_v39, %v706_v55  ;;  %v551_v34 = vmul.f32 %v9877_v46, %v524_v40 }
 0x13c   : > { %v555_v19 = vmul.f32 %v9877_v46, %v532_v24  ;;  %v667_v25 = vmul.f32 %v9928_v37, %v666_v17  ;;  %v6112_v24 = vor.u32 %v6711_v44, %v6109_v16  ;;  %1112 = vmatpush.bf16.msrb.mxu2 %v6108_v43  ;;  %v6715_v43 = vld [vmem:[#allocation12 + $0xf4] sm:$0xf] }
 0x13d   : > { %v626_v45 = vsub.f32 1.5, %v625_v18  ;;  %v621_v18 = vsel %vm9988_vm15, %v9906_v27, %v617_v31  ;;  %v711_v55 = vsel %vm710_vm0, %v9924_v39, %v707_v28  ;;  %v10021_v27 = vadd.f32 1e-05, %v554_v41 }
 0x13e   : > { %v10000_v22 = vadd.f32 1e-05, %v555_v19  ;;  %v10012_v17 = vpop.eup %8063  ;;  %v745_v38 = vmul.f32 %v711_v55, %v9813_v63  ;;  %v671_v16 = vsel %vm670_vm1, %v9928_v37, %v667_v25  ;;  %1161 = vmatpush.bf16.msrb.mxu3 %v6112_v24  ;;  %v10029_v31 = vadd.f32 1e-05, %v551_v34  ;;  %v516_v19 = vpop.xlane.xlu1 %515  ;;  %v6121_v24 = vld [vmem:[#allocation12 + $0x104] sm:$0xf0] }
 0x13f   : > { %v627_v30 = vmul.f32 %v9935_v23, %v626_v45  ;;  %v10023_v32 = vpop.eup %8065  ;;  %v741_v39 = vmul.f32 %v671_v16, %v9816_v60  ;;  %v673_v37 = vmul.f32 %v10012_v17, %v9947_v36  ;;  %v736_v29 = vmul.f32 %v621_v18, %v9808_v58  ;;  %v6703_v60 = vld [vmem:[#allocation12 + $0x90] sm:$0xf0] }
 0x140   : > { %8069 = vrsqrt.f32 %v10000_v22  ;;  %v10031_v33 = vpop.eup %8067  ;;  %v10034_v42 = vpack.c.bf16 %v745_v38, %v744_v26  ;;  %v583_v44 = vmul.f32 %v10023_v32, %v9949_v35  ;;  %v514_v41 = vpop.xlane.xlu0 %513  ;;  %vm728_vm6 = vweird.f32 %v10000_v22 }
 0x141   : > { %v631_v40 = vsel %vm630_vm2, %v9935_v23, %v627_v30  ;;  %v10039_v21 = vpack.c.bf16 %v741_v39, %v740_v15  ;;  %v674_v23 = vmul.f32 %v10012_v17, %v673_v37  ;;  %v573_v28 = vmul.f32 %v10031_v33, %v9961_v20  ;;  %v6101_v20 = vld [vmem:[#allocation12 + $0xdc] sm:$0xf0] }
 0x142   : > { %v737_v49 = vmul.f32 %v631_v40, %v9819_v61  ;;  %v584_v26 = vmul.f32 %v10023_v32, %v583_v44  ;;  %8071 = vrsqrt.f32 %v10021_v27  ;;  %1050 = vmatmul.bf16.vlgmr.msra.gmra.mxu3 %v10034_v42  ;;  %v547_v38 = vmul.f32 %v9877_v46, %v516_v19 }
 0x143   : > { %v506_v45 = vpop.xlane.xlu2 %505  ;;  %v675_v15 = vmul.f32 0.5, %v674_v23  ;;  %v574_v25 = vmul.f32 %v10031_v33, %v573_v28  ;;  %8073 = vrsqrt.f32 %v10029_v31  ;;  %1040 = vmatmul.bf16.vlgmr.msra.gmra.mxu2 %v10039_v21  ;;  %v546_v37 = vmul.f32 %v9877_v46, %v514_v41 }
 0x144   : > { %v10045_v34 = vpack.c.bf16 %v737_v49, %v736_v29  ;;  %v585_v55 = vmul.f32 0.5, %v584_v26  ;;  %v542_v30 = vmul.f32 %v9877_v46, %v506_v45  ;;  %vm589_vm7 = vweird.f32 %v10023_v32 }
 0x145   : > { %v676_v16 = vsub.f32 1.5, %v675_v15  ;;  %v575_v39 = vmul.f32 0.5, %v574_v25  ;;  %v6124_v44 = vor.u32 %v6715_v43, %v6121_v24  ;;  %vm679_vm8 = vweird.f32 %v10012_v17  ;;  %vm590_vm10 = vmor %vm588_vm4, %vm589_vm7 }
 0x146   : > { %v10055_v18 = vpop.eup %8069  ;;  %1030 = vmatmul.bf16.vlgmr.msra.gmra.mxu1 %v10045_v34  ;;  %v586_v29 = vsub.f32 1.5, %v585_v55  ;;  %v10065_v49 = vadd.f32 1e-05, %v542_v30  ;;  %vm579_vm9 = vweird.f32 %v10031_v33  ;;  %v10077_v26 = vadd.f32 1e-05, %v547_v38  ;;  %vm10104_vm14 = vmor %vm678_vm3, %vm679_vm8 }
 0x147   : > { %v723_v40 = vmul.f32 %v10055_v18, %v10000_v22  ;;  %v576_v23 = vsub.f32 1.5, %v575_v39  ;;  %v10073_v45 = vmul.f32 %v10012_v17, %v676_v16  ;;  %1062 = vmatpush.bf16.msrb.mxu1 %v6124_v44  ;;  %v10086_v55 = vadd.f32 1e-05, %v546_v37  ;;  %vm580_vm11 = vmor %vm578_vm5, %vm579_vm9  ;;  %v6087_v37 = vld [vmem:[#allocation12 + $0xa8] sm:$0xf] }
 0x148   : > { %v10070_v28 = vpop.eup %8071  ;;  %v587_v41 = vmul.f32 %v10023_v32, %v586_v29  ;;  %8075 = vrsqrt.f32 %v10065_v49  ;;  %vm729_vm12 = vweird.f32 %v10055_v18  ;;  %vm718_vm13 = vweird.f32 %v10021_v27  ;;  %v6708_v29 = vld [vmem:[#allocation12 + $0xb8] sm:$0xf0] }
 0x149   : > { %v724_v19 = vmul.f32 %v10055_v18, %v723_v40  ;;  %v10079_v15 = vpop.eup %8073  ;;  %v577_v25 = vmul.f32 %v10031_v33, %v576_v23  ;;  %v713_v24 = vmul.f32 %v10070_v28, %v10021_v27  ;;  %vm688_vm15 = vweird.f32 %v10029_v31  ;;  %vm10126_vm0 = vmor %vm728_vm6, %vm729_vm12  ;;  %v6081_v27 = vld [vmem:[#allocation12 + $0xb4] sm:$0xf0] }
 0x14a   : > { %v591_v30 = vsel %vm590_vm10, %v10023_v32, %v587_v41  ;;  %v683_v35 = vmul.f32 %v10079_v15, %v10029_v31  ;;  %v508_v32 = vpop.xlane.xlu0 %507  ;;  %8077 = vrsqrt.f32 %v10077_v26  ;;  %v681_v41 = vsel %vm10104_vm14, %v10012_v17, %v10073_v45  ;;  %v6696_v31 = vld [vmem:[#allocation12 + $0x5c] sm:$0xf] }
 0x14b   : > { %v725_v43 = vmul.f32 0.5, %v724_v19  ;;  %v733_v38 = vmul.f32 %v591_v30, %v9828_v59  ;;  %v581_v16 = vsel %vm580_vm11, %v10031_v33, %v577_v25  ;;  %v714_v40 = vmul.f32 %v10070_v28, %v713_v24  ;;  %v6706_v33 = vld [vmem:[#allocation12 + $0xac] sm:$0xf]  ;;  %v6089_v19 = vld [vmem:[#allocation12 + $0xbc] sm:$0xf0] }
 0x14c   : > { %v732_v44 = vmul.f32 %v581_v16, %v9831_v62  ;;  %v684_v23 = vmul.f32 %v10079_v15, %v683_v35  ;;  %8079 = vrsqrt.f32 %v10086_v55  ;;  %v6724_v24 = vld [vmem:[#allocation12 + $0x138] sm:$0xf0]  ;;  %v543_v45 = vmul.f32 %v9877_v46, %v508_v32  ;;  %v6069_v16 = vld [vmem:[#allocation12 + $0x94] sm:$0xf0]  ;;  %v6135_v46 = vld [vmem:[#allocation12 + $0x100] sm:$0xf] }
 0x14d   : > { %v726_v39 = vsub.f32 1.5, %v725_v43  ;;  %v715_v25 = vmul.f32 0.5, %v714_v40  ;;  %v6155_v43 = vld [vmem:[#allocation12 + $0x128] sm:$0xf]  ;;  %v6710_v40 = vld [vmem:[#allocation12 + $0xcc] sm:$0xf]  ;;  %vm719_vm1 = vweird.f32 %v10070_v28  ;;  %vm689_vm2 = vweird.f32 %v10079_v15 }
 0x14e   : > { %v10118_v30 = vpop.eup %8075  ;;  %v10120_v35 = vpack.c.bf16 %v733_v38, %v732_v44  ;;  %v685_v17 = vmul.f32 0.5, %v684_v23  ;;  %v6067_v44 = vld [vmem:[#allocation12 + $0x80] sm:$0xf]  ;;  %v10138_v23 = vadd.f32 1e-05, %v543_v45  ;;  %v6092_v32 = vor.u32 %v6706_v33, %v6089_v19  ;;  %vm10150_vm3 = vmor %vm718_vm13, %vm719_vm1 }
 0x14f   : > { %v727_v36 = vmul.f32 %v10055_v18, %v726_v39  ;;  %v6088_v39 = vor.u32 %v6708_v29, %v6087_v37  ;;  %v716_v38 = vsub.f32 1.5, %v715_v25  ;;  %v593_v22 = vmul.f32 %v10118_v30, %v10065_v49  ;;  %v6701_v25 = vld [vmem:[#allocation12 + $0x84] sm:$0xf]  ;;  %vm690_vm4 = vmor %vm688_vm15, %vm689_vm2  ;;  %v6115_v45 = vld [vmem:[#allocation12 + $0xd8] sm:$0xf] }
 0x150   : > { %v686_v56 = vsub.f32 1.5, %v685_v17  ;;  %1020 = vmatmul.bf16.vlgmr.msra.gmra.mxu0 %v10120_v35  ;;  %v6156_v29 = vor.u32 %v6724_v24, %v6155_v43  ;;  %v10143_v61 = vpop.eup %8077  ;;  %8081 = vrsqrt.f32 %v10138_v23  ;;  %1162 = vmatpush.bf16.msrb.mxu3 %v6092_v32  ;;  %v6068_v19 = vor.u32 %v6703_v60, %v6067_v44  ;;  %v6719_v43 = vld [vmem:[#allocation12 + $0x110] sm:$0xf0]  ;;  %v6705_v24 = vld [vmem:[#allocation12 + $0xa4] sm:$0xf] }
 0x151   : > { %v731_v63 = vsel %vm10126_vm0, %v10055_v18, %v727_v36  ;;  %1113 = vmatpush.bf16.msrb.mxu2 %v6088_v39  ;;  %v717_v37 = vmul.f32 %v10070_v28, %v716_v38  ;;  %v594_v18 = vmul.f32 %v10118_v30, %v593_v22  ;;  %v6104_v36 = vor.u32 %v6710_v40, %v6101_v20  ;;  %v6047_v60 = vld [vmem:[#allocation12 + $0x58] sm:$0xf]  ;;  %v6698_v22 = vld [vmem:[#allocation12 + $0x68] sm:$0xf0]  ;;  %v6049_v44 = vld [vmem:[#allocation12 + $0x6c] sm:$0xf0] }
 0x152   : > { %v747_v17 = vmul.f32 %v731_v63, %v9849_v48  ;;  %v687_v33 = vmul.f32 %v10079_v15, %v686_v56  ;;  %v10156_v39 = vpop.eup %8079  ;;  %v643_v56 = vmul.f32 %v10143_v61, %v10077_v26  ;;  %1208 = vmatpush.bf16.msrb.mxu0 %v6156_v29  ;;  %v742_v40 = vmul.f32 %v681_v41, %v9834_v53  ;;  %v6714_v48 = vld [vmem:[#allocation12 + $0xe8] sm:$0xf0]  ;;  %v6061_v53 = vld [vmem:[#allocation12 + $0x8c] sm:$0xf0] }
 0x153   : > { %v721_v63 = vsel %vm10150_vm3, %v10070_v28, %v717_v37  ;;  %1063 = vmatpush.bf16.msrb.mxu1 %v6104_v36  ;;  %v633_v28 = vmul.f32 %v10156_v39, %v10086_v55  ;;  %v595_v37 = vmul.f32 0.5, %v594_v18  ;;  %v6072_v36 = vor.u32 %v6701_v25, %v6069_v16 }
 0x154   : > { %v746_v20 = vmul.f32 %v721_v63, %v9843_v52  ;;  %v691_v38 = vsel %vm690_vm4, %v10079_v15, %v687_v33  ;;  %v644_v29 = vmul.f32 %v10143_v61, %v643_v56  ;;  %v6136_v15 = vor.u32 %v6719_v43, %v6135_v46  ;;  %v6700_v52 = vld [vmem:[#allocation12 + $0x7c] sm:$0xf]  ;;  %v6693_v56 = vld [vmem:[#allocation12 + $0x40] sm:$0xf0]  ;;  %v6691_v43 = vld [vmem:[#allocation12 + $0x34] sm:$0xf] }
 0x155   : > { %1114 = vmatpush.bf16.msrb.mxu2 %v6068_v19  ;;  %v743_v32 = vmul.f32 %v691_v38, %v9846_v57  ;;  %v634_v63 = vmul.f32 %v10156_v39, %v633_v28  ;;  %v6084_v33 = vor.u32 %v6705_v24, %v6081_v27  ;;  %vm648_vm5 = vweird.f32 %v10077_v26  ;;  %1163 = vmatpush.bf16.msrb.mxu3 %v6072_v36  ;;  %v6027_v38 = vld [vmem:[#allocation12 + $0x30] sm:$0xf]  ;;  %v6029_v24 = vld [vmem:[#allocation12 + $0x44] sm:$0xf0] }
 0x156   : > { %v10174_v41 = vpack.c.bf16 %v747_v17, %v746_v20  ;;  %v645_v59 = vmul.f32 0.5, %v644_v29  ;;  %v6048_v18 = vor.u32 %v6698_v22, %v6047_v60  ;;  %v10180_v25 = vpop.eup %8081  ;;  %vm649_vm6 = vweird.f32 %v10143_v61  ;;  %1209 = vmatpush.bf16.msrb.mxu0 %v6136_v15  ;;  %v6095_v28 = vld [vmem:[#allocation12 + $0xb0] sm:$0xf]  ;;  %v6709_v22 = vld [vmem:[#allocation12 + $0xc0] sm:$0xf0] }
 0x157   : > { %v10177_v19 = vpack.c.bf16 %v743_v32, %v742_v40  ;;  %v635_v16 = vmul.f32 0.5, %v634_v63  ;;  %v6052_v46 = vor.u32 %v6696_v31, %v6049_v44  ;;  %v6116_v17 = vor.u32 %v6714_v48, %v6115_v45  ;;  %1064 = vmatpush.bf16.msrb.mxu1 %v6084_v33  ;;  %v6695_v31 = vld [vmem:[#allocation12 + $0x54] sm:$0xf]  ;;  %v6041_v48 = vld [vmem:[#allocation12 + $0x64] sm:$0xf0]  ;;  %vm650_vm10 = vmor %vm648_vm5, %vm649_vm6 }
 0x158   : > { %1055 = vmatmul.bf16.gmra.mxu3 %v10174_v41  ;;  %v596_v27 = vsub.f32 1.5, %v595_v37  ;;  %v646_v40 = vsub.f32 1.5, %v645_v59  ;;  %v603_v20 = vmul.f32 %v10180_v25, %v10138_v23  ;;  %v6064_v60 = vor.u32 %v6700_v52, %v6061_v53  ;;  %v6007_v36 = vld [vmem:[#allocation12 + $0x8] sm:$0xf]  ;;  %v6688_v45 = vld [vmem:[#allocation12 + $0x18] sm:$0xf0] }
 0x159   : > { %1045 = vmatmul.bf16.gmra.mxu2 %v10177_v19  ;;  %v636_v32 = vsub.f32 1.5, %v635_v16  ;;  %vm639_vm7 = vweird.f32 %v10156_v39  ;;  %v6028_v29 = vor.u32 %v6693_v56, %v6027_v38  ;;  %vm598_vm8 = vweird.f32 %v10065_v49  ;;  %1164 = vmatpush.bf16.msrb.mxu3 %v6052_v46  ;;  %v6686_v63 = vld [vmem:[#allocation12 + $0xc] sm:$0xf]  ;;  %v6009_v15 = vld [vmem:[#allocation12 + $0x1c] sm:$0xf0] }
 0x15a   : > { %1115 = vmatpush.bf16.msrb.mxu2 %v6048_v18  ;;  %v647_v59 = vmul.f32 %v10143_v61, %v646_v40  ;;  %v604_v44 = vmul.f32 %v10180_v25, %v603_v20  ;;  %v6032_v37 = vor.u32 %v6691_v43, %v6029_v24  ;;  %vm599_vm9 = vweird.f32 %v10118_v30  ;;  %1210 = vmatpush.bf16.msrb.mxu0 %v6116_v17  ;;  %v6075_v26 = vld [vmem:[#allocation12 + $0x88] sm:$0xf]  ;;  %v6704_v16 = vld [vmem:[#allocation12 + $0x98] sm:$0xf0]  ;;  %v6690_v43 = vld [vmem:[#allocation12 + $0x2c] sm:$0xf] }
 0x15b   : > { %v637_v53 = vmul.f32 %v10156_v39, %v636_v32  ;;  %vm638_vm11 = vweird.f32 %v10086_v55  ;;  %v6096_v52 = vor.u32 %v6709_v22, %v6095_v28  ;;  %v597_v33 = vmul.f32 %v10118_v30, %v596_v27  ;;  %1065 = vmatpush.bf16.msrb.mxu1 %v6064_v60  ;;  %v6021_v24 = vld [vmem:[#allocation12 + $0x3c] sm:$0xf0]  ;;  %vm10210_vm14 = vmor %vm598_vm8, %vm599_vm9 }
 0x15c   : > { %v651_v18 = vsel %vm650_vm10, %v10143_v61, %v647_v59  ;;  %vm640_vm12 = vmor %vm638_vm11, %vm639_vm7  ;;  %v605_v38 = vmul.f32 0.5, %v604_v44  ;;  %v6044_v56 = vor.u32 %v6695_v31, %v6041_v48  ;;  %v6008_v17 = vor.u32 %v6688_v45, %v6007_v36  ;;  %v6055_v49 = vld [vmem:[#allocation12 + $0x60] sm:$0xf]  ;;  %v6001_v48 = vld [vmem:[#allocation12 + $0x14] sm:$0xf0] }
 0x15d   : > { %v739_v46 = vmul.f32 %v651_v18, %v9858_v50  ;;  %v641_v55 = vsel %vm640_vm12, %v10156_v39, %v637_v53  ;;  %vm609_vm13 = vweird.f32 %v10180_v25  ;;  %1165 = vmatpush.bf16.msrb.mxu3 %v6032_v37  ;;  %v6012_v61 = vor.u32 %v6686_v63, %v6009_v15  ;;  %v6035_v45 = vld [vmem:[#allocation12 + $0x38] sm:$0xf]  ;;  %v6694_v53 = vld [vmem:[#allocation12 + $0x48] sm:$0xf0]  ;;  %v6689_v63 = vld [vmem:[#allocation12 + $0x20] sm:$0xf0] }
 0x15e   : > { %1116 = vmatpush.bf16.msrb.mxu2 %v6028_v29  ;;  %v738_v27 = vmul.f32 %v641_v55, %v9861_v51  ;;  %v606_v40 = vsub.f32 1.5, %v605_v38  ;;  %vm608_vm15 = vweird.f32 %v10138_v23  ;;  %1211 = vmatpush.bf16.msrb.mxu0 %v6096_v52  ;;  %v6076_v39 = vor.u32 %v6704_v16, %v6075_v26  ;;  %v6699_v29 = vld [vmem:[#allocation12 + $0x70] sm:$0xf0]  ;;  %v6685_v23 = vld [vmem:[#allocation12 + $0x4] sm:$0xf]  ;;  %v1259_v16 = vld [vmem:[%s9647_s9 + $0x10] sm:$0xff] }
 0x15f   : > { %v601_v60 = vsel %vm10210_vm14, %v10118_v30, %v597_v33  ;;  %1066 = vmatpush.bf16.msrb.mxu1 %v6044_v56  ;;  %v6024_v32 = vor.u32 %v6690_v43, %v6021_v24  ;;  %vm610_vm0 = vmor %vm608_vm15, %vm609_vm13  ;;  %v6056_v30 = vor.u32 %v6699_v29, %v6055_v49  ;;  %v6004_v36 = vor.u32 %v6685_v23, %v6001_v48  ;;  %v6015_v52 = vld [vmem:[#allocation12 + $0x10] sm:$0xf]  ;;  %v1257_v33 = vld [vmem:[%s9647_s9] sm:$0xff] }
 0x160   : > { %v751_v28 = vpack.c.bf16 %v739_v46, %v738_v27  ;;  %v607_v22 = vmul.f32 %v10180_v25, %v606_v40  ;;  %v734_v59 = vmul.f32 %v601_v60, %v9864_v54  ;;  %v6016_v15 = vor.u32 %v6689_v63, %v6015_v52  ;;  %v10265_v24 = vld [vmem:[%s9647_s9 + $0x60] sm:$0xff]  ;;  %v10289_v29 = vld [vmem:[%s9647_s9 + $0x30] sm:$0xff]  ;;  %v1258_v23 = vld [vmem:[%s9647_s9 + $0x8] sm:$0xff] }
 0x161   : > { %1166 = vmatpush.bf16.msrb.mxu3 %v6012_v61  ;;  %v10274_v20 = vld [vmem:[%s9647_s9 + $0x20] sm:$0xff]  ;;  %v1262_v51 = vld [vmem:[%s9647_s9 + $0x28] sm:$0xff] }
 0x162   : > { %1117 = vmatpush.bf16.msrb.mxu2 %v6008_v17  ;;  %v611_v31 = vsel %vm610_vm0, %v10180_v25, %v607_v22  ;;  %1035 = vmatmul.bf16.gmra.mxu1 %v751_v28  ;;  %v6036_v25 = vor.u32 %v6694_v53, %v6035_v45  ;;  %v1260_v45 = vld [vmem:[%s9647_s9 + $0x18] sm:$0xff] }
 0x163   : > { %v735_v44 = vmul.f32 %v611_v31, %v9873_v47  ;;  %1212 = vmatpush.bf16.msrb.mxu0 %v6076_v39  ;;  %1067 = vmatpush.bf16.msrb.mxu1 %v6024_v32 }
 0x165   : > { %v749_v37 = vpack.c.bf16 %v735_v44, %v734_v59 }
 0x167   : > { %1025 = vmatmul.bf16.gmra.mxu0 %v749_v37  ;;  %1068 = vmatpush.bf16.msrb.mxu1 %v6004_v36 }
 0x168   : > { %1167 = vmatmul.bf16.vlgmr.msrb.gmra.mxu3 %v10120_v35  ;;  %1213 = vmatpush.bf16.msrb.mxu0 %v6056_v30 }
 0x169   : > { %1118 = vmatmul.bf16.vlgmr.msrb.gmra.mxu2 %v10120_v35 }
 0x16c   : > { %1214 = vmatpush.bf16.msrb.mxu0 %v6036_v25 }
 0x170   : > { %1215 = vmatpush.bf16.msrb.mxu0 %v6016_v15 }
 0x172   : > { %1069 = vmatmul.bf16.vlgmr.msrb.gmra.mxu1 %v10120_v35 }
 0x177   : > { %1216 = vmatmul.bf16.vlgmr.msrb.gmra.mxu0 %v10120_v35 }
 0x178   : > { %1172 = vmatmul.bf16.gmra.mxu3 %v749_v37 }
 0x179   : > { %1123 = vmatmul.bf16.gmra.mxu2 %v749_v37 }
 0x182   : > { %1074 = vmatmul.bf16.gmra.mxu1 %v749_v37 }
 0x187   : > { %1221 = vmatmul.bf16.gmra.mxu0 %v749_v37  ;;  %v1385_v37 = vld [vmem:[#allocation10] sm:$0xf] }
 0x188   : > { %1177 = vmatmul.bf16.gmra.mxu3 %v10045_v34  ;;  %v10297_v53 = vperm.slane %v1385_v37, 0  ;;  %v10299_v25 = vperm.slane %v1385_v37, 1  ;;  %v10301_v15 = vperm.slane %v1385_v37, 2 }
 0x189   : > { %1128 = vmatmul.bf16.gmra.mxu2 %v10045_v34 }
 0x18a   : > { %13863 = vst [vmem:[#allocation108_spill] sm:$0xff] %v10297_v53 }
 0x18b   : > { %13864 = vst [vmem:[#allocation109_spill] sm:$0xff] %v10299_v25 }
 0x18c   : > { %13865 = vst [vmem:[#allocation110_spill] sm:$0xff] %v10301_v15 }
 0x192   : > { %1079 = vmatmul.bf16.gmra.mxu1 %v10045_v34 }
 0x197   : > { %1226 = vmatmul.bf16.gmra.mxu0 %v10045_v34 }
 0x198   : > { %1182 = vmatmul.bf16.gmra.mxu3 %v751_v28 }
 0x199   : > { %1133 = vmatmul.bf16.gmra.mxu2 %v751_v28 }
 0x1a2   : > { %1084 = vmatmul.bf16.gmra.mxu1 %v751_v28 }
 0x1a7   : > { %1231 = vmatmul.bf16.gmra.mxu0 %v751_v28  ;;  %v10282_v28 = vld [vmem:[%s9647_s9 + $0x70] sm:$0xff] }
 0x1a8   : > { %1187 = vmatmul.bf16.gmra.mxu3 %v10039_v21 }
 0x1a9   : > { %1138 = vmatmul.bf16.gmra.mxu2 %v10039_v21 }
 0x1b2   : > { %1089 = vmatmul.bf16.gmra.mxu1 %v10039_v21 }
 0x1b7   : > { %1236 = vmatmul.bf16.gmra.mxu0 %v10039_v21 }
 0x1b8   : > { %1192 = vmatmul.bf16.gmra.mxu3 %v10177_v19 }
 0x1b9   : > { %1143 = vmatmul.bf16.gmra.mxu2 %v10177_v19 }
 0x1c2   : > { %1094 = vmatmul.bf16.gmra.mxu1 %v10177_v19 }
 0x1c3   : > { %v10245_v38 = vpop.f32.mrf.mxu1 }
 0x1c5   : > { %v10237_v34 = vpop.f32.mrf.mxu3 }
 0x1c6   : > { %v10241_v35 = vpop.f32.mrf.mxu2 }
 0x1c7   : > { %1241 = vmatmul.bf16.gmra.mxu0 %v10177_v19 }
 0x1c8   : > { %1197 = vmatmul.bf16.gmra.mxu3 %v10034_v42 }
 0x1c9   : > { %1148 = vmatmul.bf16.gmra.mxu2 %v10034_v42 }
 0x1cb   : > { %v10255_v55 = vpop.f32.mrf.mxu1 }
 0x1cd   : > { %v1021_v18 = vpop.f32.mrf.mxu0  ;;  %v10247_v56 = vpop.f32.mrf.mxu3 }
 0x1ce   : > { %v1289_v21 = vmul.f32 %v1257_v33, %v1021_v18  ;;  %v10249_v26 = vpop.f32.mrf.mxu2 }
 0x1d2   : > { %1099 = vmatmul.bf16.gmra.mxu1 %v10034_v42 }
 0x1d5   : > { %v1023_v46 = vpop.f32.mrf.mxu0 }
 0x1d6   : > { %v10253_v19 = vmul.f32 %v1259_v16, %v1023_v46 }
 0x1d7   : > { %1246 = vmatmul.bf16.gmra.mxu0 %v10034_v42 }
 0x1d8   : > { %1202 = vmatmul.bf16.gmra.mxu3 %v10174_v41 }
 0x1d9   : > { %1153 = vmatmul.bf16.gmra.mxu2 %v10174_v41 }
 0x1db   : > { %v10260_v17 = vpop.f32.mrf.mxu3 }
 0x1dc   : > { %v10262_v43 = vpop.f32.mrf.mxu2 }
 0x1df   : > { %v1036_v27 = vpop.f32.mrf.mxu1 }
 0x1e0   : > { %v10268_v40 = vmul.f32 %v10265_v24, %v1036_v27 }
 0x1e2   : > { %1104 = vmatmul.bf16.gmra.mxu1 %v10174_v41 }
 0x1e3   : > { %v10271_v61 = vpop.f32.mrf.mxu3 }
 0x1e4   : > { %v10276_v42 = vpop.f32.mrf.mxu2  ;;  %v1026_v39 = vpop.f32.mrf.mxu0 }
 0x1e5   : > { %v10279_v60 = vmul.f32 %v10274_v20, %v1026_v39 }
 0x1e7   : > { %v1038_v22 = vpop.f32.mrf.mxu1  ;;  %1251 = vmatmul.bf16.gmra.mxu0 %v10174_v41 }
 0x1e8   : > { %v10286_v32 = vmul.f32 %v10282_v28, %v1038_v22  ;;  %v10306_v22 = vperm.slane %v1385_v37, 3 }
 0x1ea   : > { %13866 = vst [vmem:[#allocation111_spill] sm:$0xff] %v10306_v22 }
 0x1eb   : > { %v1168_v49 = vpop.f32.mrf.mxu3 }
 0x1ec   : > { %v1119_v31 = vpop.f32.mrf.mxu2  ;;  %v1028_v48 = vpop.f32.mrf.mxu0  ;;  %v1353_v30 = vmul.f32 %v1258_v23, %v1168_v49 }
 0x1ed   : > { %v10293_v59 = vmul.f32 %v10289_v29, %v1028_v48  ;;  %v1337_v44 = vmul.f32 %v1257_v33, %v1119_v31 }
 0x1ef   : > { %v1070_v36 = vpop.f32.mrf.mxu1  ;;  %v1369_v63 = vadd.f32 %v1353_v30, %v1337_v44 }
 0x1f0   : > { %v1305_v41 = vmul.f32 %v1258_v23, %v1070_v36 }
 0x1f1   : > { %v1388_v31 = vmul.f32 %v10297_v53, %v1369_v63  ;;  %v1405_v23 = vmul.f32 %v10299_v25, %v1369_v63  ;;  %v1422_v48 = vmul.f32 %v10301_v15, %v1369_v63  ;;  %v1439_v36 = vmul.f32 %v10306_v22, %v1369_v63 }
 0x1f2   : > { %v1321_v18 = vadd.f32 %v1305_v41, %v1289_v21 }
 0x1f3   : > { %v1170_v52 = vpop.f32.mrf.mxu3 }
 0x1f4   : > { %v1121_v46 = vpop.f32.mrf.mxu2  ;;  %v1354_v27 = vmul.f32 %v1260_v45, %v1170_v52  ;;  %v1217_v39 = vpop.f32.mrf.mxu0  ;;  %v1781_v54 = vmul.f32 0.17677669, %v1321_v18 }
 0x1f5   : > { %v1338_v33 = vmul.f32 %v1259_v16, %v1121_v46  ;;  %v1471_v63 = vmul.f32 %v10299_v25, %v1217_v39 }
 0x1f7   : > { %v1370_v49 = vadd.f32 %v1354_v27, %v1338_v33  ;;  %v1072_v21 = vpop.f32.mrf.mxu1 }
 0x1f8   : > { %v1306_v41 = vmul.f32 %v1260_v45, %v1072_v21  ;;  %v1455_v45 = vmul.f32 %v10297_v53, %v1217_v39  ;;  %v1503_v21 = vmul.f32 %v10306_v22, %v1217_v39 }
 0x1f9   : > { %v1389_v44 = vmul.f32 %v10297_v53, %v1370_v49  ;;  %v1406_v30 = vmul.f32 %v10299_v25, %v1370_v49  ;;  %v1423_v16 = vmul.f32 %v10301_v15, %v1370_v49  ;;  %v1440_v37 = vmul.f32 %v10306_v22, %v1370_v49 }
 0x1fa   : > { %v1322_v50 = vadd.f32 %v1306_v41, %v10253_v19  ;;  %v1487_v49 = vmul.f32 %v10301_v15, %v1217_v39 }
 0x1fb   : > { %v6849_v52 = vpack.c.bf16 %v1389_v44, %v1388_v31  ;;  %v6889_v46 = vpack.c.bf16 %v1406_v30, %v1405_v23  ;;  %v6929_v27 = vpack.c.bf16 %v1423_v16, %v1422_v48  ;;  %v1173_v33 = vpop.f32.mrf.mxu3  ;;  %v6969_v57 = vpack.c.bf16 %v1440_v37, %v1439_v36 }
 0x1fc   : > { %v1124_v47 = vpop.f32.mrf.mxu2  ;;  %v1219_v31 = vpop.f32.mrf.mxu0  ;;  %v1782_v19 = vmul.f32 0.17677669, %v1322_v50  ;;  %v1355_v30 = vmul.f32 %v1262_v51, %v1173_v33 }
 0x1fd   : > { %6850 = vst [vmem:[%s10321_s16] sm:$0xff] %v6849_v52   ;;  %v1456_v18 = vmul.f32 %v10297_v53, %v1219_v31  ;;  %v1472_v23 = vmul.f32 %v10299_v25, %v1219_v31  ;;  %v1488_v48 = vmul.f32 %v10301_v15, %v1219_v31  ;;  %v1339_v44 = vmul.f32 %v10274_v20, %v1124_v47 }
 0x1fe   : > { %7173 = vst [vmem:[%s10321_s16 + $0x40] sm:$0xff] %v6889_v46   ;;  %v1504_v16 = vmul.f32 %v10306_v22, %v1219_v31  ;;  %v10336_v37 = vpack.c.bf16 %v1782_v19, %v1781_v54  ;;  %v1264_v46 = vld [vmem:[%s9647_s9 + $0x38] sm:$0xff] }
 0x1ff   : > { %7181 = vst [vmem:[%s10321_s16 + $0x80] sm:$0xff] %v6929_v27   ;;  %v1075_v36 = vpop.f32.mrf.mxu1  ;;  %v7009_v50 = vpack.c.bf16 %v1456_v18, %v1455_v45  ;;  %v7049_v41 = vpack.c.bf16 %v1472_v23, %v1471_v63  ;;  %v7089_v52 = vpack.c.bf16 %v1488_v48, %v1487_v49 }
 0x200   : > { %7189 = vst [vmem:[%s10321_s16 + $0xc0] sm:$0xff] %v6969_v57   ;;  %v1307_v58 = vmul.f32 %v1262_v51, %v1075_v36  ;;  %v7129_v47 = vpack.c.bf16 %v1504_v16, %v1503_v21  ;;  %v1371_v57 = vadd.f32 %v1355_v30, %v1339_v44 }
 0x201   : > { %13867 = vst [vmem:[#allocation112_spill] sm:$0xff] %v10336_v37 }
 0x202   : > { %7010 = vst [vmem:[%s10341_s15] sm:$0xff] %v7009_v50   ;;  %v1323_v54 = vadd.f32 %v1307_v58, %v10279_v60  ;;  %v1390_v63 = vmul.f32 %v10297_v53, %v1371_v57  ;;  %v1407_v49 = vmul.f32 %v10299_v25, %v1371_v57  ;;  %v1424_v31 = vmul.f32 %v10301_v15, %v1371_v57 }
 0x203   : > { %7204 = vst [vmem:[%s10341_s15 + $0x40] sm:$0xff] %v7049_v41   ;;  %v1175_v20 = vpop.f32.mrf.mxu3 }
 0x204   : > { %7212 = vst [vmem:[%s10341_s15 + $0x80] sm:$0xff] %v7089_v52   ;;  %v1126_v39 = vpop.f32.mrf.mxu2  ;;  %v1356_v27 = vmul.f32 %v1264_v46, %v1175_v20  ;;  %v1222_v33 = vpop.f32.mrf.mxu0  ;;  %v1266_v52 = vld [vmem:[%s9647_s9 + $0x48] sm:$0xff] }
 0x205   : > { %7220 = vst [vmem:[%s10341_s15 + $0xc0] sm:$0xff] %v7129_v47   ;;  %v1340_v51 = vmul.f32 %v10289_v29, %v1126_v39  ;;  %v1441_v29 = vmul.f32 %v10306_v22, %v1371_v57  ;;  %v1783_v47 = vmul.f32 0.17677669, %v1323_v54  ;;  %v1457_v20 = vmul.f32 %v10297_v53, %v1222_v33 }
 0x206   : > { %v1473_v57 = vmul.f32 %v10299_v25, %v1222_v33 }
 0x207   : > { %v1372_v45 = vadd.f32 %v1356_v27, %v1340_v51  ;;  %v1077_v19 = vpop.f32.mrf.mxu1  ;;  %v1265_v27 = vld [vmem:[%s9647_s9 + $0x40] sm:$0xff] }
 0x208   : > { %v1308_v48 = vmul.f32 %v1264_v46, %v1077_v19  ;;  %v1489_v46 = vmul.f32 %v10301_v15, %v1222_v33 }
 0x209   : > { %v1391_v18 = vmul.f32 %v10297_v53, %v1372_v45  ;;  %v1408_v58 = vmul.f32 %v10299_v25, %v1372_v45  ;;  %v1425_v60 = vmul.f32 %v10301_v15, %v1372_v45  ;;  %v1442_v23 = vmul.f32 %v10306_v22, %v1372_v45 }
 0x20a   : > { %v1324_v50 = vadd.f32 %v1308_v48, %v10293_v59  ;;  %v1268_v48 = vld [vmem:[%s9647_s9 + $0x58] sm:$0xff] }
 0x20b   : > { %v6854_v21 = vpack.c.bf16 %v1391_v18, %v1390_v63  ;;  %v6894_v44 = vpack.c.bf16 %v1408_v58, %v1407_v49  ;;  %v6934_v30 = vpack.c.bf16 %v1425_v60, %v1424_v31  ;;  %v1178_v16 = vpop.f32.mrf.mxu3  ;;  %v6974_v36 = vpack.c.bf16 %v1442_v23, %v1441_v29 }
 0x20c   : > { %v1129_v41 = vpop.f32.mrf.mxu2  ;;  %v1224_v39 = vpop.f32.mrf.mxu0  ;;  %v1784_v51 = vmul.f32 0.17677669, %v1324_v50  ;;  %v1505_v63 = vmul.f32 %v10306_v22, %v1222_v33  ;;  %v1357_v31 = vmul.f32 %v1266_v52, %v1178_v16  ;;  %v1267_v16 = vld [vmem:[%s9647_s9 + $0x50] sm:$0xff] }
 0x20d   : > { %7166 = vst [vmem:[%s10321_s16 + $0x8] sm:$0xff] %v6854_v21   ;;  %v1458_v45 = vmul.f32 %v10297_v53, %v1224_v39  ;;  %v1474_v59 = vmul.f32 %v10299_v25, %v1224_v39  ;;  %v1490_v54 = vmul.f32 %v10301_v15, %v1224_v39  ;;  %v1341_v49 = vmul.f32 %v1265_v27, %v1129_v41 }
 0x20e   : > { %7174 = vst [vmem:[%s10321_s16 + $0x48] sm:$0xff] %v6894_v44   ;;  %v1506_v19 = vmul.f32 %v10306_v22, %v1224_v39  ;;  %v10372_v18 = vpack.c.bf16 %v1784_v51, %v1783_v47  ;;  %v1293_v21 = vmul.f32 %v1265_v27, %v10245_v38 }
 0x20f   : > { %7182 = vst [vmem:[%s10321_s16 + $0x88] sm:$0xff] %v6934_v30   ;;  %v1080_v58 = vpop.f32.mrf.mxu1  ;;  %v7014_v60 = vpack.c.bf16 %v1458_v45, %v1457_v20  ;;  %v7054_v23 = vpack.c.bf16 %v1474_v59, %v1473_v57  ;;  %v7094_v29 = vpack.c.bf16 %v1490_v54, %v1489_v46  ;;  %v1373_v50 = vadd.f32 %v1357_v31, %v1341_v49 }
 0x210   : > { %7190 = vst [vmem:[%s10321_s16 + $0xc8] sm:$0xff] %v6974_v36   ;;  %v1309_v44 = vmul.f32 %v1266_v52, %v1080_v58  ;;  %v7134_v33 = vpack.c.bf16 %v1506_v19, %v1505_v63  ;;  %v1294_v63 = vmul.f32 %v1267_v16, %v10255_v55 }
 0x211   : > { %13868 = vst [vmem:[#allocation113_spill] sm:$0xff] %v10372_v18  ;;  %v1392_v57 = vmul.f32 %v10297_v53, %v1373_v50  ;;  %v1409_v46 = vmul.f32 %v10299_v25, %v1373_v50  ;;  %v1426_v38 = vmul.f32 %v10301_v15, %v1373_v50  ;;  %v1443_v49 = vmul.f32 %v10306_v22, %v1373_v50 }
 0x212   : > { %7197 = vst [vmem:[%s10341_s15 + $0x8] sm:$0xff] %v7014_v60   ;;  %v1325_v41 = vadd.f32 %v1309_v44, %v1293_v21 }
 0x213   : > { %7205 = vst [vmem:[%s10341_s15 + $0x48] sm:$0xff] %v7054_v23   ;;  %v1180_v30 = vpop.f32.mrf.mxu3 }
 0x214   : > { %7213 = vst [vmem:[%s10341_s15 + $0x88] sm:$0xff] %v7094_v29   ;;  %v1131_v36 = vpop.f32.mrf.mxu2  ;;  %v1358_v47 = vmul.f32 %v1268_v48, %v1180_v30  ;;  %v1227_v20 = vpop.f32.mrf.mxu0  ;;  %v1785_v30 = vmul.f32 0.17677669, %v1325_v41 }
 0x215   : > { %7221 = vst [vmem:[%s10341_s15 + $0xc8] sm:$0xff] %v7134_v33   ;;  %v1342_v39 = vmul.f32 %v1267_v16, %v1131_v36  ;;  %v1270_v33 = vld [vmem:[%s9647_s9 + $0x68] sm:$0xff]  ;;  %v1459_v36 = vmul.f32 %v10297_v53, %v1227_v20  ;;  %v1475_v55 = vmul.f32 %v10299_v25, %v1227_v20  ;;  %v1491_v16 = vmul.f32 %v10301_v15, %v1227_v20 }
 0x216   : > { %v1507_v41 = vmul.f32 %v10306_v22, %v1227_v20 }
 0x217   : > { %v1374_v51 = vadd.f32 %v1358_v47, %v1342_v39  ;;  %v1082_v52 = vpop.f32.mrf.mxu1 }
 0x218   : > { %v1310_v31 = vmul.f32 %v1268_v48, %v1082_v52 }
 0x219   : > { %v1393_v27 = vmul.f32 %v10297_v53, %v1374_v51  ;;  %v1410_v45 = vmul.f32 %v10299_v25, %v1374_v51  ;;  %v1427_v59 = vmul.f32 %v10301_v15, %v1374_v51  ;;  %v1444_v54 = vmul.f32 %v10306_v22, %v1374_v51 }
 0x21a   : > { %v1326_v21 = vadd.f32 %v1310_v31, %v1294_v63  ;;  %v1272_v63 = vld [vmem:[%s9647_s9 + $0x78] sm:$0xff] }
 0x21b   : > { %v6859_v19 = vpack.c.bf16 %v1393_v27, %v1392_v57  ;;  %v6899_v58 = vpack.c.bf16 %v1410_v45, %v1409_v46  ;;  %v6939_v60 = vpack.c.bf16 %v1427_v59, %v1426_v38  ;;  %v1183_v23 = vpop.f32.mrf.mxu3  ;;  %v6979_v29 = vpack.c.bf16 %v1444_v54, %v1443_v49 }
 0x21c   : > { %v1134_v44 = vpop.f32.mrf.mxu2  ;;  %v1229_v50 = vpop.f32.mrf.mxu0  ;;  %v1786_v48 = vmul.f32 0.17677669, %v1326_v21  ;;  %v1359_v46 = vmul.f32 %v1270_v33, %v1183_v23 }
 0x21d   : > { %7167 = vst [vmem:[%s10321_s16 + $0x10] sm:$0xff] %v6859_v19   ;;  %v1460_v47 = vmul.f32 %v10297_v53, %v1229_v50  ;;  %v1476_v39 = vmul.f32 %v10299_v25, %v1229_v50  ;;  %v1492_v51 = vmul.f32 %v10301_v15, %v1229_v50  ;;  %v1343_v57 = vmul.f32 %v10265_v24, %v1134_v44 }
 0x21e   : > { %7175 = vst [vmem:[%s10321_s16 + $0x50] sm:$0xff] %v6899_v58   ;;  %v1508_v38 = vmul.f32 %v10306_v22, %v1229_v50  ;;  %v10404_v52 = vpack.c.bf16 %v1786_v48, %v1785_v30 }
 0x21f   : > { %7183 = vst [vmem:[%s10321_s16 + $0x90] sm:$0xff] %v6939_v60   ;;  %v1085_v27 = vpop.f32.mrf.mxu1  ;;  %v7019_v45 = vpack.c.bf16 %v1460_v47, %v1459_v36  ;;  %v7059_v59 = vpack.c.bf16 %v1476_v39, %v1475_v55  ;;  %v7099_v54 = vpack.c.bf16 %v1492_v51, %v1491_v16  ;;  %v1375_v19 = vadd.f32 %v1359_v46, %v1343_v57 }
 0x220   : > { %7191 = vst [vmem:[%s10321_s16 + $0xd0] sm:$0xff] %v6979_v29   ;;  %v1311_v49 = vmul.f32 %v1270_v33, %v1085_v27  ;;  %v7139_v31 = vpack.c.bf16 %v1508_v38, %v1507_v41  ;;  %v1274_v27 = vld [vmem:[%s9647_s9 + $0x88] sm:$0xff] }
 0x221   : > { %13869 = vst [vmem:[#allocation114_spill] sm:$0xff] %v10404_v52  ;;  %v1394_v44 = vmul.f32 %v10297_v53, %v1375_v19  ;;  %v1411_v30 = vmul.f32 %v10299_v25, %v1375_v19  ;;  %v1428_v33 = vmul.f32 %v10301_v15, %v1375_v19 }
 0x222   : > { %7198 = vst [vmem:[%s10341_s15 + $0x10] sm:$0xff] %v7019_v45   ;;  %v1327_v24 = vadd.f32 %v1311_v49, %v10268_v40 }
 0x223   : > { %7206 = vst [vmem:[%s10341_s15 + $0x50] sm:$0xff] %v7059_v59   ;;  %v1185_v20 = vpop.f32.mrf.mxu3 }
 0x224   : > { %7214 = vst [vmem:[%s10341_s15 + $0x90] sm:$0xff] %v7099_v54   ;;  %v1136_v58 = vpop.f32.mrf.mxu2  ;;  %v1360_v60 = vmul.f32 %v1272_v63, %v1185_v20  ;;  %v1232_v29 = vpop.f32.mrf.mxu0  ;;  %v1787_v45 = vmul.f32 0.17677669, %v1327_v24 }
 0x225   : > { %7222 = vst [vmem:[%s10341_s15 + $0xd0] sm:$0xff] %v7139_v31   ;;  %v1344_v23 = vmul.f32 %v10282_v28, %v1136_v58  ;;  %v1445_v28 = vmul.f32 %v10306_v22, %v1375_v19  ;;  %v1461_v59 = vmul.f32 %v10297_v53, %v1232_v29  ;;  %v1477_v54 = vmul.f32 %v10299_v25, %v1232_v29  ;;  %v1273_v31 = vld [vmem:[%s9647_s9 + $0x80] sm:$0xff] }
 0x226   : > { %v1509_v58 = vmul.f32 %v10306_v22, %v1232_v29 }
 0x227   : > { %v1376_v21 = vadd.f32 %v1360_v60, %v1344_v23  ;;  %v1087_v36 = vpop.f32.mrf.mxu1 }
 0x228   : > { %v1312_v48 = vmul.f32 %v1272_v63, %v1087_v36  ;;  %v1493_v63 = vmul.f32 %v10301_v15, %v1232_v29 }
 0x229   : > { %v1395_v55 = vmul.f32 %v10297_v53, %v1376_v21  ;;  %v1412_v40 = vmul.f32 %v10299_v25, %v1376_v21  ;;  %v1429_v16 = vmul.f32 %v10301_v15, %v1376_v21  ;;  %v1446_v50 = vmul.f32 %v10306_v22, %v1376_v21 }
 0x22a   : > { %v1328_v46 = vadd.f32 %v1312_v48, %v10286_v32 }
 0x22b   : > { %v6864_v47 = vpack.c.bf16 %v1395_v55, %v1394_v44  ;;  %v6904_v39 = vpack.c.bf16 %v1412_v40, %v1411_v30  ;;  %v6944_v51 = vpack.c.bf16 %v1429_v16, %v1428_v33  ;;  %v1188_v41 = vpop.f32.mrf.mxu3  ;;  %v6984_v57 = vpack.c.bf16 %v1446_v50, %v1445_v28  ;;  %v1276_v40 = vld [vmem:[%s9647_s9 + $0x98] sm:$0xff]  ;;  %v1275_v28 = vld [vmem:[%s9647_s9 + $0x90] sm:$0xff] }
 0x22c   : > { %v1139_v38 = vpop.f32.mrf.mxu2  ;;  %v1234_v49 = vpop.f32.mrf.mxu0  ;;  %v1788_v20 = vmul.f32 0.17677669, %v1328_v46  ;;  %v1361_v23 = vmul.f32 %v1274_v27, %v1188_v41 }
 0x22d   : > { %7168 = vst [vmem:[%s10321_s16 + $0x18] sm:$0xff] %v6864_v47   ;;  %v1462_v19 = vmul.f32 %v10297_v53, %v1234_v49  ;;  %v1478_v32 = vmul.f32 %v10299_v25, %v1234_v49  ;;  %v1494_v24 = vmul.f32 %v10301_v15, %v1234_v49  ;;  %v1345_v60 = vmul.f32 %v1273_v31, %v1139_v38 }
 0x22e   : > { %7176 = vst [vmem:[%s10321_s16 + $0x58] sm:$0xff] %v6904_v39   ;;  %v1510_v21 = vmul.f32 %v10306_v22, %v1234_v49  ;;  %v10436_v44 = vpack.c.bf16 %v1788_v20, %v1787_v45 }
 0x22f   : > { %7184 = vst [vmem:[%s10321_s16 + $0x98] sm:$0xff] %v6944_v51   ;;  %v1090_v30 = vpop.f32.mrf.mxu1  ;;  %v7024_v33 = vpack.c.bf16 %v1462_v19, %v1461_v59  ;;  %v7064_v36 = vpack.c.bf16 %v1478_v32, %v1477_v54  ;;  %v7104_v55 = vpack.c.bf16 %v1494_v24, %v1493_v63  ;;  %v1377_v29 = vadd.f32 %v1361_v23, %v1345_v60 }
 0x230   : > { %7192 = vst [vmem:[%s10321_s16 + $0xd8] sm:$0xff] %v6984_v57   ;;  %v7144_v16 = vpack.c.bf16 %v1510_v21, %v1509_v58  ;;  %v1313_v48 = vmul.f32 %v1274_v27, %v1090_v30  ;;  %v1297_v57 = vmul.f32 %v1273_v31, %v10241_v35  ;;  %v1298_v35 = vmul.f32 %v1275_v28, %v10249_v26 }
 0x231   : > { %13870 = vst [vmem:[#allocation115_spill] sm:$0xff] %v10436_v44  ;;  %v1396_v38 = vmul.f32 %v10297_v53, %v1377_v29  ;;  %v1413_v45 = vmul.f32 %v10299_v25, %v1377_v29  ;;  %v1430_v59 = vmul.f32 %v10301_v15, %v1377_v29  ;;  %v1447_v31 = vmul.f32 %v10306_v22, %v1377_v29 }
 0x232   : > { %7199 = vst [vmem:[%s10341_s15 + $0x18] sm:$0xff] %v7024_v33   ;;  %v1329_v54 = vadd.f32 %v1313_v48, %v1297_v57 }
 0x233   : > { %7207 = vst [vmem:[%s10341_s15 + $0x58] sm:$0xff] %v7064_v36   ;;  %v1190_v50 = vpop.f32.mrf.mxu3  ;;  %v1278_v36 = vld [vmem:[%s9647_s9 + $0xa8] sm:$0xff] }
 0x234   : > { %7215 = vst [vmem:[%s10341_s15 + $0x98] sm:$0xff] %v7104_v55   ;;  %v1141_v47 = vpop.f32.mrf.mxu2  ;;  %v1362_v39 = vmul.f32 %v1276_v40, %v1190_v50  ;;  %v1237_v41 = vpop.f32.mrf.mxu0  ;;  %v1789_v55 = vmul.f32 0.17677669, %v1329_v54 }
 0x235   : > { %7223 = vst [vmem:[%s10341_s15 + $0xd8] sm:$0xff] %v7144_v16   ;;  %v1346_v51 = vmul.f32 %v1275_v28, %v1141_v47  ;;  %v1463_v16 = vmul.f32 %v10297_v53, %v1237_v41  ;;  %v1479_v26 = vmul.f32 %v10299_v25, %v1237_v41  ;;  %v1495_v50 = vmul.f32 %v10301_v15, %v1237_v41  ;;  %v1277_v28 = vld [vmem:[%s9647_s9 + $0xa0] sm:$0xff] }
 0x237   : > { %v1378_v46 = vadd.f32 %v1362_v39, %v1346_v51  ;;  %v1092_v63 = vpop.f32.mrf.mxu1  ;;  %v1511_v51 = vmul.f32 %v10306_v22, %v1237_v41 }
 0x238   : > { %v1314_v32 = vmul.f32 %v1276_v40, %v1092_v63 }
 0x239   : > { %v1397_v27 = vmul.f32 %v10297_v53, %v1378_v46  ;;  %v1414_v49 = vmul.f32 %v10299_v25, %v1378_v46  ;;  %v1431_v20 = vmul.f32 %v10301_v15, %v1378_v46  ;;  %v1448_v19 = vmul.f32 %v10306_v22, %v1378_v46 }
 0x23a   : > { %v1330_v30 = vadd.f32 %v1314_v32, %v1298_v35  ;;  %v1279_v35 = vld [vmem:[%s9647_s9 + $0xb0] sm:$0xff] }
 0x23b   : > { %v6869_v24 = vpack.c.bf16 %v1397_v27, %v1396_v38  ;;  %v6909_v58 = vpack.c.bf16 %v1414_v49, %v1413_v45  ;;  %v6949_v60 = vpack.c.bf16 %v1431_v20, %v1430_v59  ;;  %v1193_v23 = vpop.f32.mrf.mxu3  ;;  %v6989_v21 = vpack.c.bf16 %v1448_v19, %v1447_v31  ;;  %v1280_v49 = vld [vmem:[%s9647_s9 + $0xb8] sm:$0xff] }
 0x23c   : > { %v1144_v33 = vpop.f32.mrf.mxu2  ;;  %v1239_v40 = vpop.f32.mrf.mxu0  ;;  %v1790_v29 = vmul.f32 0.17677669, %v1330_v30  ;;  %v1363_v46 = vmul.f32 %v1278_v36, %v1193_v23  ;;  %v1299_v23 = vmul.f32 %v1277_v28, %v10262_v43  ;;  %v1300_v43 = vmul.f32 %v1279_v35, %v10276_v42 }
 0x23d   : > { %7169 = vst [vmem:[%s10321_s16 + $0x20] sm:$0xff] %v6869_v24   ;;  %v1464_v48 = vmul.f32 %v10297_v53, %v1239_v40  ;;  %v1480_v47 = vmul.f32 %v10299_v25, %v1239_v40  ;;  %v1496_v39 = vmul.f32 %v10301_v15, %v1239_v40  ;;  %v1347_v57 = vmul.f32 %v1277_v28, %v1144_v33 }
 0x23e   : > { %7177 = vst [vmem:[%s10321_s16 + $0x60] sm:$0xff] %v6909_v58   ;;  %v1512_v38 = vmul.f32 %v10306_v22, %v1239_v40  ;;  %v10468_v45 = vpack.c.bf16 %v1790_v29, %v1789_v55 }
 0x23f   : > { %7185 = vst [vmem:[%s10321_s16 + $0xa0] sm:$0xff] %v6949_v60   ;;  %v1095_v59 = vpop.f32.mrf.mxu1  ;;  %v7029_v54 = vpack.c.bf16 %v1464_v48, %v1463_v16  ;;  %v7069_v63 = vpack.c.bf16 %v1480_v47, %v1479_v26  ;;  %v7109_v27 = vpack.c.bf16 %v1496_v39, %v1495_v50  ;;  %v1379_v41 = vadd.f32 %v1363_v46, %v1347_v57 }
 0x240   : > { %7193 = vst [vmem:[%s10321_s16 + $0xe0] sm:$0xff] %v6989_v21   ;;  %v7149_v20 = vpack.c.bf16 %v1512_v38, %v1511_v51  ;;  %v1315_v31 = vmul.f32 %v1278_v36, %v1095_v59 }
 0x241   : > { %13871 = vst [vmem:[#allocation116_spill] sm:$0xff] %v10468_v45  ;;  %v1398_v30 = vmul.f32 %v10297_v53, %v1379_v41  ;;  %v1415_v33 = vmul.f32 %v10299_v25, %v1379_v41  ;;  %v1432_v55 = vmul.f32 %v10301_v15, %v1379_v41  ;;  %v1449_v28 = vmul.f32 %v10306_v22, %v1379_v41 }
 0x242   : > { %7200 = vst [vmem:[%s10341_s15 + $0x20] sm:$0xff] %v7029_v54   ;;  %v1331_v16 = vadd.f32 %v1315_v31, %v1299_v23  ;;  %v1282_v54 = vld [vmem:[%s9647_s9 + $0xc8] sm:$0xff] }
 0x243   : > { %7208 = vst [vmem:[%s10341_s15 + $0x60] sm:$0xff] %v7069_v63   ;;  %v1195_v19 = vpop.f32.mrf.mxu3 }
 0x244   : > { %7216 = vst [vmem:[%s10341_s15 + $0xa0] sm:$0xff] %v7109_v27   ;;  %v1146_v32 = vpop.f32.mrf.mxu2  ;;  %v1364_v24 = vmul.f32 %v1280_v49, %v1195_v19  ;;  %v1242_v60 = vpop.f32.mrf.mxu0  ;;  %v1791_v63 = vmul.f32 0.17677669, %v1331_v16  ;;  %v1281_v19 = vld [vmem:[%s9647_s9 + $0xc0] sm:$0xff] }
 0x245   : > { %7224 = vst [vmem:[%s10341_s15 + $0xe0] sm:$0xff] %v7149_v20   ;;  %v1348_v58 = vmul.f32 %v1279_v35, %v1146_v32  ;;  %v1465_v27 = vmul.f32 %v10297_v53, %v1242_v60  ;;  %v1481_v42 = vmul.f32 %v10299_v25, %v1242_v60  ;;  %v1497_v20 = vmul.f32 %v10301_v15, %v1242_v60 }
 0x247   : > { %v1380_v21 = vadd.f32 %v1364_v24, %v1348_v58  ;;  %v1097_v26 = vpop.f32.mrf.mxu1  ;;  %v1513_v24 = vmul.f32 %v10306_v22, %v1242_v60 }
 0x248   : > { %v1316_v48 = vmul.f32 %v1280_v49, %v1097_v26 }
 0x249   : > { %v1399_v36 = vmul.f32 %v10297_v53, %v1380_v21  ;;  %v1416_v50 = vmul.f32 %v10299_v25, %v1380_v21  ;;  %v1433_v40 = vmul.f32 %v10301_v15, %v1380_v21  ;;  %v1450_v29 = vmul.f32 %v10306_v22, %v1380_v21 }
 0x24a   : > { %v1332_v38 = vadd.f32 %v1316_v48, %v1300_v43 }
 0x24b   : > { %v6874_v47 = vpack.c.bf16 %v1399_v36, %v1398_v30  ;;  %v6914_v39 = vpack.c.bf16 %v1416_v50, %v1415_v33  ;;  %v6954_v51 = vpack.c.bf16 %v1433_v40, %v1432_v55  ;;  %v1198_v57 = vpop.f32.mrf.mxu3  ;;  %v6994_v46 = vpack.c.bf16 %v1450_v29, %v1449_v28  ;;  %v1284_v36 = vld [vmem:[%s9647_s9 + $0xd8] sm:$0xff]  ;;  %v1283_v29 = vld [vmem:[%s9647_s9 + $0xd0] sm:$0xff] }
 0x24c   : > { %v1149_v59 = vpop.f32.mrf.mxu2  ;;  %v1244_v49 = vpop.f32.mrf.mxu0  ;;  %v1792_v35 = vmul.f32 0.17677669, %v1332_v38  ;;  %v1365_v23 = vmul.f32 %v1282_v54, %v1198_v57 }
 0x24d   : > { %7170 = vst [vmem:[%s10321_s16 + $0x28] sm:$0xff] %v6874_v47   ;;  %v1466_v41 = vmul.f32 %v10297_v53, %v1244_v49  ;;  %v1482_v31 = vmul.f32 %v10299_v25, %v1244_v49  ;;  %v1498_v32 = vmul.f32 %v10301_v15, %v1244_v49  ;;  %v1349_v58 = vmul.f32 %v1281_v19, %v1149_v59 }
 0x24e   : > { %7178 = vst [vmem:[%s10321_s16 + $0x68] sm:$0xff] %v6914_v39   ;;  %v1514_v21 = vmul.f32 %v10306_v22, %v1244_v49  ;;  %v10500_v30 = vpack.c.bf16 %v1792_v35, %v1791_v63 }
 0x24f   : > { %7186 = vst [vmem:[%s10321_s16 + $0xa8] sm:$0xff] %v6954_v51   ;;  %v1100_v33 = vpop.f32.mrf.mxu1  ;;  %v7034_v55 = vpack.c.bf16 %v1466_v41, %v1465_v27  ;;  %v7074_v16 = vpack.c.bf16 %v1482_v31, %v1481_v42  ;;  %v7114_v26 = vpack.c.bf16 %v1498_v32, %v1497_v20  ;;  %v1381_v60 = vadd.f32 %v1365_v23, %v1349_v58 }
 0x250   : > { %7194 = vst [vmem:[%s10321_s16 + $0xe8] sm:$0xff] %v6994_v46   ;;  %v7154_v50 = vpack.c.bf16 %v1514_v21, %v1513_v24  ;;  %v1317_v43 = vmul.f32 %v1282_v54, %v1100_v33  ;;  %v1301_v51 = vmul.f32 %v1281_v19, %v10237_v34  ;;  %v1302_v34 = vmul.f32 %v1283_v29, %v10247_v56  ;;  %v1286_v33 = vld [vmem:[%s9647_s9 + $0xe8] sm:$0xff] }
 0x251   : > { %13872 = vst [vmem:[#allocation117_spill] sm:$0xff] %v10500_v30  ;;  %v1400_v46 = vmul.f32 %v10297_v53, %v1381_v60  ;;  %v1417_v38 = vmul.f32 %v10299_v25, %v1381_v60  ;;  %v1434_v59 = vmul.f32 %v10301_v15, %v1381_v60  ;;  %v1451_v19 = vmul.f32 %v10306_v22, %v1381_v60 }
 0x252   : > { %7201 = vst [vmem:[%s10341_s15 + $0x28] sm:$0xff] %v7034_v55   ;;  %v1333_v63 = vadd.f32 %v1317_v43, %v1301_v51 }
 0x253   : > { %7209 = vst [vmem:[%s10341_s15 + $0x68] sm:$0xff] %v7074_v16   ;;  %v1200_v40 = vpop.f32.mrf.mxu3 }
 0x254   : > { %7217 = vst [vmem:[%s10341_s15 + $0xa8] sm:$0xff] %v7114_v26   ;;  %v1151_v28 = vpop.f32.mrf.mxu2  ;;  %v1366_v48 = vmul.f32 %v1284_v36, %v1200_v40  ;;  %v1247_v39 = vpop.f32.mrf.mxu0  ;;  %v1793_v55 = vmul.f32 0.17677669, %v1333_v63 }
 0x255   : > { %7225 = vst [vmem:[%s10341_s15 + $0xe8] sm:$0xff] %v7154_v50   ;;  %v1350_v47 = vmul.f32 %v1283_v29, %v1151_v28  ;;  %v1467_v16 = vmul.f32 %v10297_v53, %v1247_v39  ;;  %v1483_v56 = vmul.f32 %v10299_v25, %v1247_v39  ;;  %v1499_v26 = vmul.f32 %v10301_v15, %v1247_v39  ;;  %v1285_v50 = vld [vmem:[%s9647_s9 + $0xe0] sm:$0xff] }
 0x256   : > { %v1515_v28 = vmul.f32 %v10306_v22, %v1247_v39 }
 0x257   : > { %v1382_v57 = vadd.f32 %v1366_v48, %v1350_v47  ;;  %v1102_v27 = vpop.f32.mrf.mxu1 }
 0x258   : > { %v1318_v35 = vmul.f32 %v1284_v36, %v1102_v27  ;;  %v1288_v27 = vld [vmem:[%s9647_s9 + $0xf8] sm:$0xff] }
 0x259   : > { %v1401_v54 = vmul.f32 %v10297_v53, %v1382_v57  ;;  %v1418_v42 = vmul.f32 %v10299_v25, %v1382_v57  ;;  %v1435_v20 = vmul.f32 %v10301_v15, %v1382_v57  ;;  %v1452_v49 = vmul.f32 %v10306_v22, %v1382_v57 }
 0x25a   : > { %v1334_v23 = vadd.f32 %v1318_v35, %v1302_v34 }
 0x25b   : > { %v6879_v41 = vpack.c.bf16 %v1401_v54, %v1400_v46  ;;  %v6919_v31 = vpack.c.bf16 %v1418_v42, %v1417_v38  ;;  %v6959_v32 = vpack.c.bf16 %v1435_v20, %v1434_v59  ;;  %v1203_v24 = vpop.f32.mrf.mxu3  ;;  %v6999_v58 = vpack.c.bf16 %v1452_v49, %v1451_v19  ;;  %v1287_v20 = vld [vmem:[%s9647_s9 + $0xf0] sm:$0xff] }
 0x25c   : > { %v1154_v21 = vpop.f32.mrf.mxu2  ;;  %v1249_v36 = vpop.f32.mrf.mxu0  ;;  %v1794_v40 = vmul.f32 0.17677669, %v1334_v23  ;;  %v1367_v47 = vmul.f32 %v1286_v33, %v1203_v24 }
 0x25d   : > { %7171 = vst [vmem:[%s10321_s16 + $0x30] sm:$0xff] %v6879_v41   ;;  %v1468_v29 = vmul.f32 %v10297_v53, %v1249_v36  ;;  %v1484_v60 = vmul.f32 %v10299_v25, %v1249_v36  ;;  %v1500_v43 = vmul.f32 %v10301_v15, %v1249_v36  ;;  %v1351_v48 = vmul.f32 %v1285_v50, %v1154_v21 }
 0x25e   : > { %7179 = vst [vmem:[%s10321_s16 + $0x70] sm:$0xff] %v6919_v31   ;;  %v1516_v51 = vmul.f32 %v10306_v22, %v1249_v36  ;;  %v10532_v57 = vpack.c.bf16 %v1794_v40, %v1793_v55  ;;  %v1303_v31 = vmul.f32 %v1285_v50, %v10260_v17  ;;  %v1304_v17 = vmul.f32 %v1287_v20, %v10271_v61 }
 0x25f   : > { %7187 = vst [vmem:[%s10321_s16 + $0xb0] sm:$0xff] %v6959_v32   ;;  %v1105_v46 = vpop.f32.mrf.mxu1  ;;  %v7039_v38 = vpack.c.bf16 %v1468_v29, %v1467_v16  ;;  %v7079_v59 = vpack.c.bf16 %v1484_v60, %v1483_v56  ;;  %v7119_v63 = vpack.c.bf16 %v1500_v43, %v1499_v26  ;;  %v1383_v39 = vadd.f32 %v1367_v47, %v1351_v48 }
 0x260   : > { %7195 = vst [vmem:[%s10321_s16 + $0xf0] sm:$0xff] %v6999_v58   ;;  %v7159_v54 = vpack.c.bf16 %v1516_v51, %v1515_v28  ;;  %v1319_v49 = vmul.f32 %v1286_v33, %v1105_v46 }
 0x261   : > { %13873 = vst [vmem:[#allocation118_spill] sm:$0xff] %v10532_v57  ;;  %v1402_v24 = vmul.f32 %v10297_v53, %v1383_v39  ;;  %v1419_v58 = vmul.f32 %v10299_v25, %v1383_v39  ;;  %v1436_v23 = vmul.f32 %v10301_v15, %v1383_v39  ;;  %v1453_v36 = vmul.f32 %v10306_v22, %v1383_v39 }
 0x262   : > { %7202 = vst [vmem:[%s10341_s15 + $0x30] sm:$0xff] %v7039_v38   ;;  %v1335_v21 = vadd.f32 %v1319_v49, %v1303_v31  ;;  %v10582_v31 = vmov 0.0  }
 0x263   : > { %7210 = vst [vmem:[%s10341_s15 + $0x70] sm:$0xff] %v7079_v59   ;;  %v1205_v42 = vpop.f32.mrf.mxu3 }
 0x264   : > { %7218 = vst [vmem:[%s10341_s15 + $0xb0] sm:$0xff] %v7119_v63   ;;  %v1156_v34 = vpop.f32.mrf.mxu2  ;;  %v1368_v19 = vmul.f32 %v1288_v27, %v1205_v42  ;;  %v1252_v41 = vpop.f32.mrf.mxu0  ;;  %v1795_v48 = vmul.f32 0.17677669, %v1335_v21  ;;  %v10592_v21 = vmov 0.0  }
 0x265   : > { %7226 = vst [vmem:[%s10341_s15 + $0xf0] sm:$0xff] %v7159_v54   ;;  %v1352_v35 = vmul.f32 %v1287_v20, %v1156_v34  ;;  %v1469_v47 = vmul.f32 %v10297_v53, %v1252_v41  ;;  %v1485_v51 = vmul.f32 %v10299_v25, %v1252_v41  ;;  %v1501_v46 = vmul.f32 %v10301_v15, %v1252_v41 }
 0x266   : > { %v1517_v54 = vmul.f32 %v10306_v22, %v1252_v41  ;;  %v10580_v41 = vmov 0.0  }
 0x267   : > { %v1384_v32 = vadd.f32 %v1368_v19, %v1352_v35  ;;  %v1107_v55 = vpop.f32.mrf.mxu1  ;;  %v10578_v35 = vmov 0.0  }
 0x268   : > { %v1320_v50 = vmul.f32 %v1288_v27, %v1107_v55  ;;  %v10594_v55 = vmov 0.0  }
 0x269   : > { %v1403_v33 = vmul.f32 %v10297_v53, %v1384_v32  ;;  %v1420_v16 = vmul.f32 %v10299_v25, %v1384_v32  ;;  %v1437_v56 = vmul.f32 %v10301_v15, %v1384_v32  ;;  %v1454_v26 = vmul.f32 %v10306_v22, %v1384_v32 }
 0x26a   : > { %v1336_v28 = vadd.f32 %v1320_v50, %v1304_v17  ;;  %v10584_v32 = vmov 0.0   ;;  %v10604_v17 = vmov 0.0   ;;  %v10608_v50 = vmov 0.0  }
 0x26b   : > { %v6884_v40 = vpack.c.bf16 %v1403_v33, %v1402_v24  ;;  %v6924_v29 = vpack.c.bf16 %v1420_v16, %v1419_v58  ;;  %v6964_v60 = vpack.c.bf16 %v1437_v56, %v1436_v23  ;;  %v7004_v43 = vpack.c.bf16 %v1454_v26, %v1453_v36 }
 0x26c   : > { %v1254_v61 = vpop.f32.mrf.mxu0  ;;  %v1796_v38 = vmul.f32 0.17677669, %v1336_v28  ;;  %v10586_v24 = vmov 0.0   ;;  %v10588_v58 = vmov 0.0   ;;  %v10590_v23 = vmov 0.0  }
 0x26d   : > { %7172 = vst [vmem:[%s10321_s16 + $0x38] sm:$0xff] %v6884_v40   ;;  %v1470_v59 = vmul.f32 %v10297_v53, %v1254_v61  ;;  %v1486_v63 = vmul.f32 %v10299_v25, %v1254_v61  ;;  %v1502_v27 = vmul.f32 %v10301_v15, %v1254_v61  ;;  %v1518_v42 = vmul.f32 %v10306_v22, %v1254_v61 }
 0x26e   : > { %7180 = vst [vmem:[%s10321_s16 + $0x78] sm:$0xff] %v6924_v29   ;;  %v10562_v20 = vpack.c.bf16 %v1796_v38, %v1795_v48  ;;  %v10596_v33 = vmov 0.0   ;;  %v10598_v16 = vmov 0.0   ;;  %v10600_v56 = vmov 0.0  }
 0x26f   : > { %7188 = vst [vmem:[%s10321_s16 + $0xb8] sm:$0xff] %v6964_v60   ;;  %v7044_v39 = vpack.c.bf16 %v1470_v59, %v1469_v47  ;;  %v7084_v49 = vpack.c.bf16 %v1486_v63, %v1485_v51  ;;  %v7124_v34 = vpack.c.bf16 %v1502_v27, %v1501_v46  ;;  %v7164_v19 = vpack.c.bf16 %v1518_v42, %v1517_v54 }
 0x270   : > { %7196 = vst [vmem:[%s10321_s16 + $0xf8] sm:$0xff] %v7004_v43   ;;  %v10602_v26 = vmov 0.0   ;;  %v10606_v36 = vmov 0.0   ;;  %v10610_v40 = vmov 0.0   ;;  %v10612_v29 = vmov 0.0  }
 0x271   : > { %13874 = vst [vmem:[#allocation119_spill] sm:$0xff] %v10562_v20  ;;  %v10614_v60 = vmov 0.0   ;;  %v10616_v43 = vmov 0.0   ;;  %v10618_v28 = vmov 0.0   ;;  %v10620_v48 = vmov 0.0   ;;  %5785 = sbr.rel (%p10574_p1) target bundleno = 1287 (0x507), region = 139 }
 0x272   : > { %7203 = vst [vmem:[%s10341_s15 + $0x38] sm:$0xff] %v7044_v39   ;;  %v10622_v47 = vmov 0.0   ;;  %v10624_v51 = vmov 0.0   ;;  %v10626_v46 = vmov 0.0   ;;  %v10628_v61 = vmov 0.0  }
 0x273   : > { %7211 = vst [vmem:[%s10341_s15 + $0x78] sm:$0xff] %v7084_v49   ;;  %v10630_v38 = vmov 0.0   ;;  %v10632_v59 = vmov 0.0   ;;  %v10634_v63 = vmov 0.0   ;;  %v10636_v27 = vmov 0.0  }
 0x274   : > { %7219 = vst [vmem:[%s10341_s15 + $0xb8] sm:$0xff] %v7124_v34   ;;  %v10638_v54 = vmov 0.0   ;;  %v10640_v42 = vmov 0.0  }
 0x275   : > { %7227 = vst [vmem:[%s10341_s15 + $0xf8] sm:$0xff] %v7164_v19  }
 0x276   : > { %v10644_v39 = vmov 0.0   ;;  %v10646_v49 = vmov 0.0   ;;  %v10648_v34 = vmov 0.0   ;;  %v10650_v19 = vmov 0.0   ;;  %s10740_s20 = smov 0  }
 0x277   : > { %13876 = vst [vmem:[#allocation120_spill] sm:$0xff] %v10650_v19  ;;  %v10652_v62 = vmov 0.0   ;;  %v10654_v22 = vmov 0.0   ;;  %v10656_v15 = vmov 0.0   ;;  %v10658_v53 = vmov 0.0  }
 0x278   : > { %v10660_v25 = vmov 0.0   ;;  %v10662_v14 = vmov 0.0   ;;  %v10664_v35 = vmov 0.0   ;;  %v10666_v41 = vmov 0.0  }
 0x279   : > { %13877 = vst [vmem:[#allocation121_spill] sm:$0xff] %v10660_v25  ;;  %v10668_v31 = vmov 0.0   ;;  %v10670_v32 = vmov 0.0   ;;  %v10672_v24 = vmov 0.0   ;;  %v10674_v58 = vmov 0.0  }
 0x27a   : > { %v10676_v23 = vmov 0.0   ;;  %v10678_v21 = vmov 0.0   ;;  %v10680_v55 = vmov 0.0   ;;  %v10682_v33 = vmov 0.0  }
 0x27b   : > { %v10684_v16 = vmov 0.0   ;;  %v10686_v56 = vmov 0.0   ;;  %v10688_v26 = vmov 0.0   ;;  %v10690_v17 = vmov 0.0  }
 0x27c   : > { %v10692_v36 = vmov 0.0   ;;  %v10694_v50 = vmov 0.0   ;;  %v10696_v40 = vmov 0.0   ;;  %v10698_v29 = vmov 0.0  }
 0x27d   : > { %v10700_v60 = vmov 0.0   ;;  %v10702_v43 = vmov 0.0   ;;  %v10704_v28 = vmov 0.0   ;;  %v10706_v48 = vmov 0.0  }
 0x27e   : > { %v10708_v47 = vmov -1e+30   ;;  %v10710_v51 = vmov -1e+30   ;;  %v10712_v46 = vmov -1e+30  }
 0x27f   : > { %v10714_v61 = vmov -1e+30   ;;  %v10716_v38 = vmov -1e+30   ;;  %v10718_v59 = vmov -1e+30  }
 0x280   : > { %v10720_v63 = vmov -1e+30   ;;  %v10722_v27 = vmov -1e+30   ;;  %v10724_v54 = vmov -1e+30  }
 0x281   : > { %v10726_v42 = vmov -1e+30   ;;  %v10728_v12 = vmov -1e+30   ;;  %v10730_v13 = vmov -1e+30  }
 0x282   : > { %v10732_v11 = vmov -1e+30   ;;  %v10734_v10 = vmov -1e+30   ;;  %v10736_v8 = vmov -1e+30  }
 0x283   : > { %v10738_v9 = vmov -1e+30  }
 0x284 LB: >> { %v13880_v57 = vld [vmem:[#allocation118_spill] sm:$0xff]  ;;  %v13882_v45 = vld [vmem:[#allocation116_spill] sm:$0xff]  ;;  %v13883_v44 = vld [vmem:[#allocation115_spill] sm:$0xff]  ;;  %13888 = vst [vmem:[#allocation122_spill] sm:$0xff] %v9089_v39  ;;  %s6161_s22 = sshll.u32 %s9281_s20, 9  ;;  %s2447_s0 = ssub.s32 %s9281_s20, %s9499_s12  ;;  %v9117_v53 = vphi %v10658_v53, %v14169_v53   ;;  %v9113_v15 = vphi %v10656_v15, %v14168_v15   ;;  %v9109_v22 = vphi %v10654_v22, %v14167_v22   ;;  %v9105_v62 = vphi %v10652_v62, %v14166_v62   ;;  %v9097_v34 = vphi %v10648_v34, %v14164_v34   ;;  %v9093_v49 = vphi %v10646_v49, %v14163_v49   ;;  %v9089_v39 = vphi %v10644_v39, %v14162_v39   ;;  %s9281_s20 = sphi %s10740_s20, %s14208_s20   ;;  %v9277_v9 = vphi %v10738_v9, %v14207_v9   ;;  %v9273_v8 = vphi %v10736_v8, %v14206_v8   ;;  %v9269_v10 = vphi %v10734_v10, %v14205_v10   ;;  %v9265_v11 = vphi %v10732_v11, %v14204_v11   ;;  %v9261_v13 = vphi %v10730_v13, %v14203_v13   ;;  %v9257_v12 = vphi %v10728_v12, %v14202_v12   ;;  %v9253_v42 = vphi %v10726_v42, %v14201_v42   ;;  %v9249_v54 = vphi %v10724_v54, %v14200_v54   ;;  %v9245_v27 = vphi %v10722_v27, %v14199_v27   ;;  %v9241_v63 = vphi %v10720_v63, %v14198_v63   ;;  %v9237_v59 = vphi %v10718_v59, %v14197_v59   ;;  %v9233_v38 = vphi %v10716_v38, %v14196_v38   ;;  %v9229_v61 = vphi %v10714_v61, %v14195_v61   ;;  %v9225_v46 = vphi %v10712_v46, %v14194_v46   ;;  %v9221_v51 = vphi %v10710_v51, %v14142_v51   ;;  %v9217_v47 = vphi %v10708_v47, %v14147_v47   ;;  %v9213_v48 = vphi %v10706_v48, %v14193_v48   ;;  %v9209_v28 = vphi %v10704_v28, %v14192_v28   ;;  %v9205_v43 = vphi %v10702_v43, %v14191_v43   ;;  %v9201_v60 = vphi %v10700_v60, %v14190_v60   ;;  %v9197_v29 = vphi %v10698_v29, %v14189_v29   ;;  %v9193_v40 = vphi %v10696_v40, %v14188_v40   ;;  %v9189_v50 = vphi %v10694_v50, %v14187_v50   ;;  %v9185_v36 = vphi %v10692_v36, %v14186_v36   ;;  %v9181_v17 = vphi %v10690_v17, %v14185_v17   ;;  %v9177_v26 = vphi %v10688_v26, %v14184_v26   ;;  %v9173_v56 = vphi %v10686_v56, %v14183_v56   ;;  %v9169_v16 = vphi %v10684_v16, %v14182_v16   ;;  %v9165_v33 = vphi %v10682_v33, %v14181_v33   ;;  %v9161_v55 = vphi %v10680_v55, %v14180_v55   ;;  %v9157_v21 = vphi %v10678_v21, %v14179_v21   ;;  %v9153_v23 = vphi %v10676_v23, %v14178_v23   ;;  %v9149_v58 = vphi %v10674_v58, %v14177_v58   ;;  %v9145_v24 = vphi %v10672_v24, %v14176_v24   ;;  %v9141_v32 = vphi %v10670_v32, %v14175_v32   ;;  %v9137_v31 = vphi %v10668_v31, %v14174_v31   ;;  %v9133_v41 = vphi %v10666_v41, %v14173_v41   ;;  %v9129_v35 = vphi %v10664_v35, %v14172_v35   ;;  %v9125_v14 = vphi %v10662_v14, %v14171_v14  }
 0x285   : >> { %v13881_v52 = vld [vmem:[#allocation114_spill] sm:$0xff]  ;;  %v13884_v37 = vld [vmem:[#allocation112_spill] sm:$0xff]  ;;  %v13885_v30 = vld [vmem:[#allocation117_spill] sm:$0xff]  ;;  %13889 = vst [vmem:[#allocation123_spill] sm:$0xff] %v9093_v49  ;;  %s10890_s7 = sshra.s32 %s6161_s22, 3  ;;  %s6292_s24 = sshll.u32 %s2447_s0, 7 }
 0x286   : >> { %v13886_v20 = vld [vmem:[#allocation119_spill] sm:$0xff]  ;;  %v13887_v18 = vld [vmem:[#allocation113_spill] sm:$0xff]  ;;  %13890 = vst [vmem:[#allocation124_spill] sm:$0xff] %v9097_v34  ;;  %v13891_v19 = vld [vmem:[#allocation120_spill] sm:$0xff]  ;;  %s6162_s2 = sshll.u32 %s10890_s7, 2  ;;  %s1873_s13 = sadd.s32 1, %s9281_s20  }
 0x287   : >> { %13892 = vst [vmem:[#allocation120_spill] sm:$0xff] %v13891_v19  ;;  %v13897_v25 = vld [vmem:[#allocation121_spill] sm:$0xff]  ;;  %s10895_s6 = scalar_lea.vmem [#allocation2], %s6162_s2  ;;  %v13929_v0 = vld [vmem:[#allocation27_spill] sm:$0xff]  ;;  %v13930_v1 = vld [vmem:[#allocation28_spill] sm:$0xff]  ;;  %s10997_s25 = scalar_lea.vmem [#allocation3], %s6162_s2 }
 0x288   : >> { %13893 = vst [vmem:[#allocation125_spill] sm:$0xff] %v9105_v62  ;;  %v6756_v39 = vld [vmem:[%s10895_s6 + $0xf8] sm:$0xff]  ;;  %v6731_v49 = vld [vmem:[%s10895_s6 + $0x30] sm:$0xff]  ;;  %v6730_v19 = vld [vmem:[%s10895_s6 + $0x28] sm:$0xff]  ;;  %p11870_p3 = scmp.ge.s32.totalorder %s1873_s13, %s1869_s4  ;;  %s14208_s20 = smov %s1873_s13 }
 0x289   : >> { %13894 = vst [vmem:[#allocation126_spill] sm:$0xff] %v9109_v22  ;;  %2398 = vmatpush.bf16.xpose.msra.mxu3 %v6756_v39  ;;  %v6747_v34 = vld [vmem:[%s10895_s6 + $0xb0] sm:$0xff]  ;;  %v6738_v62 = vld [vmem:[%s10895_s6 + $0x68] sm:$0xff]  ;;  %v6729_v39 = vld [vmem:[%s10895_s6 + $0x20] sm:$0xff] }
 0x28a   : >> { %13895 = vst [vmem:[#allocation127_spill] sm:$0xff] %v9113_v15  ;;  %v6750_v22 = vld [vmem:[%s10895_s6 + $0xc8] sm:$0xff]  ;;  %v13931_v2 = vld [vmem:[#allocation29_spill] sm:$0xff]  ;;  %v13932_v3 = vld [vmem:[#allocation30_spill] sm:$0xff] }
 0x28b   : >> { %13896 = vst [vmem:[#allocation128_spill] sm:$0xff] %v9117_v53  ;;  %v13933_v4 = vld [vmem:[#allocation31_spill] sm:$0xff]  ;;  %v13934_v5 = vld [vmem:[#allocation32_spill] sm:$0xff]  ;;  %v13935_v6 = vld [vmem:[#allocation33_spill] sm:$0xff] }
 0x28c   : >> { %13898 = vst [vmem:[#allocation121_spill] sm:$0xff] %v13897_v25  ;;  %v13936_v7 = vld [vmem:[#allocation34_spill] sm:$0xff] }
 0x28d   : >> { %13899 = vst [vmem:[#allocation129_spill] sm:$0xff] %v9125_v14 }
 0x28e   : >> { %13900 = vst [vmem:[#allocation130_spill] sm:$0xff] %v9129_v35 }
 0x28f   : >> { %13901 = vst [vmem:[#allocation131_spill] sm:$0xff] %v9133_v41  ;;  %v6770_v41 = vld [vmem:[%s10997_s25 + $0x68] sm:$0xff] }
 0x290   : >> { %13902 = vst [vmem:[#allocation132_spill] sm:$0xff] %v9137_v31 }
 0x291   : >> { %13903 = vst [vmem:[#allocation133_spill] sm:$0xff] %v9141_v32 }
 0x292   : >> { %13904 = vst [vmem:[#allocation134_spill] sm:$0xff] %v9145_v24  ;;  %v6761_v24 = vld [vmem:[%s10997_s25 + $0x20] sm:$0xff] }
 0x293   : >> { %13905 = vst [vmem:[#allocation135_spill] sm:$0xff] %v9149_v58 }
 0x294   : >> { %13906 = vst [vmem:[#allocation136_spill] sm:$0xff] %v9153_v23  ;;  %v6732_v23 = vld [vmem:[%s10895_s6 + $0x38] sm:$0xff] }
 0x295   : >> { %13907 = vst [vmem:[#allocation137_spill] sm:$0xff] %v9157_v21  ;;  %v6748_v21 = vld [vmem:[%s10895_s6 + $0xb8] sm:$0xff]  ;;  %2251 = vmatpush.bf16.xpose.msra.mxu0 %v6732_v23  ;;  %v6746_v23 = vld [vmem:[%s10895_s6 + $0xa8] sm:$0xff] }
 0x296   : >> { %13908 = vst [vmem:[#allocation138_spill] sm:$0xff] %v9161_v55  ;;  %v6740_v55 = vld [vmem:[%s10895_s6 + $0x78] sm:$0xff]  ;;  %2349 = vmatpush.bf16.xpose.msra.mxu2 %v6748_v21  ;;  %v6754_v21 = vld [vmem:[%s10895_s6 + $0xe8] sm:$0xff] }
 0x297   : >> { %13909 = vst [vmem:[#allocation139_spill] sm:$0xff] %v9165_v33  ;;  %2300 = vmatpush.bf16.xpose.msra.mxu1 %v6740_v55  ;;  %v6739_v33 = vld [vmem:[%s10895_s6 + $0x70] sm:$0xff]  ;;  %v6737_v55 = vld [vmem:[%s10895_s6 + $0x60] sm:$0xff] }
 0x298   : >> { %13910 = vst [vmem:[#allocation140_spill] sm:$0xff] %v9169_v16  ;;  %v6755_v16 = vld [vmem:[%s10895_s6 + $0xf0] sm:$0xff] }
 0x299   : >> { %13911 = vst [vmem:[#allocation141_spill] sm:$0xff] %v9173_v56  ;;  %2399 = vmatpush.bf16.xpose.msra.mxu3 %v6755_v16  ;;  %v6736_v16 = vld [vmem:[%s10895_s6 + $0x58] sm:$0xff]  ;;  %v6742_v56 = vld [vmem:[%s10895_s6 + $0x88] sm:$0xff] }
 0x29a   : >> { %13912 = vst [vmem:[#allocation142_spill] sm:$0xff] %v9177_v26 }
 0x29b   : >> { %13913 = vst [vmem:[#allocation143_spill] sm:$0xff] %v9181_v17  ;;  %v6771_v17 = vld [vmem:[%s10997_s25 + $0x70] sm:$0xff] }
 0x29c   : >> { %13914 = vst [vmem:[#allocation144_spill] sm:$0xff] %v9185_v36 }
 0x29d   : >> { %13915 = vst [vmem:[#allocation145_spill] sm:$0xff] %v9189_v50  ;;  %2252 = vmatpush.bf16.xpose.msra.mxu0 %v6731_v49  ;;  %v6745_v49 = vld [vmem:[%s10895_s6 + $0xa0] sm:$0xff]  ;;  %v6762_v50 = vld [vmem:[%s10997_s25 + $0x28] sm:$0xff] }
 0x29e   : >> { %13916 = vst [vmem:[#allocation146_spill] sm:$0xff] %v9193_v40  ;;  %2350 = vmatpush.bf16.xpose.msra.mxu2 %v6747_v34  ;;  %v6753_v34 = vld [vmem:[%s10895_s6 + $0xe0] sm:$0xff] }
 0x29f   : >> { %13917 = vst [vmem:[#allocation147_spill] sm:$0xff] %v9197_v29  ;;  %2301 = vmatpush.bf16.xpose.msra.mxu1 %v6739_v33  ;;  %v6728_v33 = vld [vmem:[%s10895_s6 + $0x18] sm:$0xff] }
 0x2a0   : >> { %13918 = vst [vmem:[#allocation148_spill] sm:$0xff] %v9201_v60 }
 0x2a1   : >> { %13919 = vst [vmem:[#allocation149_spill] sm:$0xff] %v9205_v43  ;;  %2400 = vmatpush.bf16.xpose.msra.mxu3 %v6754_v21  ;;  %v6735_v21 = vld [vmem:[%s10895_s6 + $0x50] sm:$0xff] }
 0x2a2   : >> { %13920 = vst [vmem:[#allocation150_spill] sm:$0xff] %v9209_v28  ;;  %v6769_v28 = vld [vmem:[%s10997_s25 + $0x60] sm:$0xff] }
 0x2a3   : >> { %13921 = vst [vmem:[#allocation151_spill] sm:$0xff] %v9213_v48 }
 0x2a4   : >> { %13922 = vst [vmem:[#allocation152_spill] sm:$0xff] %v9217_v47 }
 0x2a5   : >> { %13923 = vst [vmem:[#allocation153_spill] sm:$0xff] %v9221_v51  ;;  %2253 = vmatpush.bf16.xpose.msra.mxu0 %v6730_v19  ;;  %v6744_v19 = vld [vmem:[%s10895_s6 + $0x98] sm:$0xff] }
 0x2a6   : >> { %13924 = vst [vmem:[#allocation154_spill] sm:$0xff] %v9225_v46  ;;  %2351 = vmatpush.bf16.xpose.msra.mxu2 %v6746_v23  ;;  %v6727_v23 = vld [vmem:[%s10895_s6 + $0x10] sm:$0xff] }
 0x2a7   : >> { %13925 = vst [vmem:[#allocation155_spill] sm:$0xff] %v9229_v61  ;;  %2302 = vmatpush.bf16.xpose.msra.mxu1 %v6738_v62  ;;  %v6752_v62 = vld [vmem:[%s10895_s6 + $0xd8] sm:$0xff] }
 0x2a8   : >> { %13926 = vst [vmem:[#allocation156_spill] sm:$0xff] %v9233_v38  ;;  %v6760_v61 = vld [vmem:[%s10997_s25 + $0x18] sm:$0xff] }
 0x2a9   : >> { %13927 = vst [vmem:[#allocation157_spill] sm:$0xff] %v9237_v59  ;;  %2401 = vmatpush.bf16.xpose.msra.mxu3 %v6753_v34  ;;  %v6734_v34 = vld [vmem:[%s10895_s6 + $0x48] sm:$0xff] }
 0x2aa   : >> { %13928 = vst [vmem:[#allocation158_spill] sm:$0xff] %v9269_v10 }
 0x2ad   : >> { %2254 = vmatpush.bf16.xpose.msra.mxu0 %v6729_v39  ;;  %v6743_v39 = vld [vmem:[%s10895_s6 + $0x90] sm:$0xff] }
 0x2ae   : >> { %2352 = vmatpush.bf16.xpose.msra.mxu2 %v6745_v49  ;;  %v6726_v49 = vld [vmem:[%s10895_s6 + $0x8] sm:$0xff] }
 0x2af   : >> { %2303 = vmatpush.bf16.xpose.msra.mxu1 %v6737_v55  ;;  %v6751_v55 = vld [vmem:[%s10895_s6 + $0xd0] sm:$0xff] }
 0x2b1   : >> { %2402 = vmatpush.bf16.xpose.msra.mxu3 %v6752_v62  ;;  %v6749_v62 = vld [vmem:[%s10895_s6 + $0xc0] sm:$0xff] }
 0x2b5   : >> { %2255 = vmatpush.bf16.xpose.msra.mxu0 %v6728_v33  ;;  %v6725_v33 = vld [vmem:[%s10895_s6] sm:$0xff] }
 0x2b6   : >> { %2353 = vmatpush.bf16.xpose.msra.mxu2 %v6744_v19  ;;  %v6741_v19 = vld [vmem:[%s10895_s6 + $0x80] sm:$0xff] }
 0x2b7   : >> { %2304 = vmatpush.bf16.xpose.msra.mxu1 %v6736_v16  ;;  %v6733_v16 = vld [vmem:[%s10895_s6 + $0x40] sm:$0xff] }
 0x2b9   : >> { %2403 = vmatpush.bf16.xpose.msra.mxu3 %v6751_v55 }
 0x2bd   : >> { %2256 = vmatpush.bf16.xpose.msra.mxu0 %v6727_v23 }
 0x2be   : >> { %2354 = vmatpush.bf16.xpose.msra.mxu2 %v6743_v39 }
 0x2bf   : >> { %2305 = vmatpush.bf16.xpose.msra.mxu1 %v6735_v21 }
 0x2c1   : >> { %2404 = vmatpush.bf16.xpose.msra.mxu3 %v6750_v22  ;;  %v10963_v22 = vstv %s6292_s24 }
 0x2c2   : >> { %vm2450_vm1 = vcmp.ge.s32.totalorder %v13929_v0, %v10963_v22  ;;  %vm2451_vm2 = vcmp.ge.s32.totalorder %v13930_v1, %v10963_v22  ;;  %vm2452_vm3 = vcmp.ge.s32.totalorder %v13931_v2, %v10963_v22  ;;  %vm2453_vm4 = vcmp.ge.s32.totalorder %v13932_v3, %v10963_v22 }
 0x2c3   : >> { %vm2454_vm5 = vcmp.ge.s32.totalorder %v13933_v4, %v10963_v22  ;;  %vm2455_vm6 = vcmp.ge.s32.totalorder %v13934_v5, %v10963_v22  ;;  %vm2456_vm7 = vcmp.ge.s32.totalorder %v13935_v6, %v10963_v22  ;;  %vm2457_vm8 = vcmp.ge.s32.totalorder %v13936_v7, %v10963_v22  ;;  %v6788_v6 = vld [vmem:[%s10997_s25 + $0xf8] sm:$0xff] }
 0x2c4   : >> { %v6764_v7 = vld [vmem:[%s10997_s25 + $0x38] sm:$0xff] }
 0x2c5   : >> { %2257 = vmatpush.bf16.xpose.msra.mxu0 %v6726_v49 }
 0x2c6   : >> { %2355 = vmatpush.bf16.xpose.msra.mxu2 %v6742_v56 }
 0x2c7   : >> { %2306 = vmatpush.bf16.xpose.msra.mxu1 %v6734_v34 }
 0x2c9   : >> { %2405 = vmatpush.bf16.xpose.msra.mxu3 %v6749_v62 }
 0x2cd   : >> { %2258 = vmatpush.bf16.xpose.msra.mxu0 %v6725_v33 }
 0x2ce   : >> { %2356 = vmatpush.bf16.xpose.msra.mxu2 %v6741_v19 }
 0x2cf   : >> { %2307 = vmatpush.bf16.xpose.msra.mxu1 %v6733_v16 }
 0x2d0   : >> { %2406 = vmatmul.bf16.vlgmr.msra.gmra.mxu3 %v13884_v37 }
 0x2d1   : >> { %3285 = vmatpush.bf16.msrb.mxu3 %v6788_v6 }
 0x2d4   : >> { %2259 = vmatmul.bf16.vlgmr.msra.gmra.mxu0 %v13884_v37 }
 0x2d5   : >> { %2357 = vmatmul.bf16.vlgmr.msra.gmra.mxu2 %v13884_v37  ;;  %3138 = vmatpush.bf16.msrb.mxu0 %v6764_v7 }
 0x2d6   : >> { %2308 = vmatmul.bf16.vlgmr.msra.gmra.mxu1 %v13884_v37 }
 0x2e0   : >> { %2411 = vmatmul.bf16.gmra.mxu3 %v13887_v18 }
 0x2e4   : >> { %2264 = vmatmul.bf16.gmra.mxu0 %v13887_v18 }
 0x2e5   : >> { %2362 = vmatmul.bf16.gmra.mxu2 %v13887_v18 }
 0x2e6   : >> { %2313 = vmatmul.bf16.gmra.mxu1 %v13887_v18 }
 0x2f0   : >> { %2416 = vmatmul.bf16.gmra.mxu3 %v13881_v52 }
 0x2f4   : >> { %2269 = vmatmul.bf16.gmra.mxu0 %v13881_v52 }
 0x2f5   : >> { %2367 = vmatmul.bf16.gmra.mxu2 %v13881_v52 }
 0x2f6   : >> { %2318 = vmatmul.bf16.gmra.mxu1 %v13881_v52 }
 0x300   : >> { %2421 = vmatmul.bf16.gmra.mxu3 %v13883_v44 }
 0x304   : >> { %2274 = vmatmul.bf16.gmra.mxu0 %v13883_v44 }
 0x305   : >> { %2372 = vmatmul.bf16.gmra.mxu2 %v13883_v44 }
 0x306   : >> { %2323 = vmatmul.bf16.gmra.mxu1 %v13883_v44 }
 0x310   : >> { %2426 = vmatmul.bf16.gmra.mxu3 %v13882_v45 }
 0x314   : >> { %2279 = vmatmul.bf16.gmra.mxu0 %v13882_v45 }
 0x315   : >> { %2377 = vmatmul.bf16.gmra.mxu2 %v13882_v45 }
 0x316   : >> { %2328 = vmatmul.bf16.gmra.mxu1 %v13882_v45 }
 0x320   : >> { %2431 = vmatmul.bf16.gmra.mxu3 %v13885_v30 }
 0x324   : >> { %2284 = vmatmul.bf16.gmra.mxu0 %v13885_v30 }
 0x325   : >> { %2382 = vmatmul.bf16.gmra.mxu2 %v13885_v30 }
 0x326   : >> { %2333 = vmatmul.bf16.gmra.mxu1 %v13885_v30  ;;  %v6772_v30 = vld [vmem:[%s10997_s25 + $0x78] sm:$0xff] }
 0x327   : >> { %3187 = vmatpush.bf16.msrb.mxu1 %v6772_v30 }
 0x32b   : >> { %3188 = vmatpush.bf16.msrb.mxu1 %v6771_v17 }
 0x32f   : >> { %3189 = vmatpush.bf16.msrb.mxu1 %v6770_v41 }
 0x330   : >> { %2436 = vmatmul.bf16.gmra.mxu3 %v13880_v57 }
 0x333   : >> { %3190 = vmatpush.bf16.msrb.mxu1 %v6769_v28 }
 0x334   : >> { %2289 = vmatmul.bf16.gmra.mxu0 %v13880_v57 }
 0x335   : >> { %2387 = vmatmul.bf16.gmra.mxu2 %v13880_v57 }
 0x336   : >> { %2338 = vmatmul.bf16.gmra.mxu1 %v13880_v57  ;;  %v6763_v57 = vld [vmem:[%s10997_s25 + $0x30] sm:$0xff] }
 0x337   : >> { %3139 = vmatpush.bf16.msrb.mxu0 %v6763_v57 }
 0x33b   : >> { %3140 = vmatpush.bf16.msrb.mxu0 %v6762_v50 }
 0x33f   : >> { %3141 = vmatpush.bf16.msrb.mxu0 %v6761_v24 }
 0x340   : >> { %2441 = vmatmul.bf16.gmra.mxu3 %v13886_v20 }
 0x343   : >> { %3142 = vmatpush.bf16.msrb.mxu0 %v6760_v61 }
 0x344   : >> { %2294 = vmatmul.bf16.gmra.mxu0 %v13886_v20 }
 0x345   : >> { %2392 = vmatmul.bf16.gmra.mxu2 %v13886_v20 }
 0x346   : >> { %2343 = vmatmul.bf16.gmra.mxu1 %v13886_v20 }
 0x351   : >> { %v2260_v56 = vpop.f32.mrf.mxu0 }
 0x352   : >> { %v10969_v21 = vsel %vm2450_vm1, %v2260_v56, -1e+30 }
 0x353   : >> { %v2309_v23 = vpop.f32.mrf.mxu1  ;;  %v2407_v34 = vpop.f32.mrf.mxu3 }
 0x354   : >> { %v10971_v39 = vsel %vm2451_vm2, %v2309_v23, -1e+30  ;;  %v10981_v16 = vsel %vm2453_vm4, %v2407_v34, -1e+30 }
 0x355   : >> { %v2578_v55 = vmax.f32 %v10969_v21, %v10971_v39 }
 0x358   : >> { %v2358_v49 = vpop.f32.mrf.mxu2 }
 0x359   : >> { %v10979_v33 = vsel %vm2452_vm3, %v2358_v49, -1e+30  ;;  %v2262_v19 = vpop.f32.mrf.mxu0 }
 0x35a   : >> { %v2579_v56 = vmax.f32 %v2578_v55, %v10979_v33  ;;  %v10989_v0 = vsel %vm2454_vm5, %v2262_v19, -1e+30  ;;  %v6780_v55 = vld [vmem:[%s10997_s25 + $0xb8] sm:$0xff] }
 0x35b   : >> { %v2311_v62 = vpop.f32.mrf.mxu1  ;;  %v2409_v19 = vpop.f32.mrf.mxu3  ;;  %3236 = vmatpush.bf16.msrb.mxu2 %v6780_v55 }
 0x35c   : >> { %v2580_v23 = vmax.f32 %v2579_v56, %v10981_v16  ;;  %v10991_v1 = vsel %vm2455_vm6, %v2311_v62, -1e+30  ;;  %v13937_v62 = vld [vmem:[#allocation36_spill] sm:$0xff]  ;;  %v13938_v56 = vld [vmem:[#allocation35_spill] sm:$0xff]  ;;  %v11011_v5 = vsel %vm2457_vm8, %v2409_v19, -1e+30 }
 0x35d   : >> { %v2583_v49 = vmax.f32 %v10989_v0, %v10991_v1  ;;  %vm2459_vm9 = vcmp.ge.s32.totalorder %v13937_v62, %v10963_v22  ;;  %vm2458_vm10 = vcmp.ge.s32.totalorder %v13938_v56, %v10963_v22  ;;  %v13941_v19 = vld [vmem:[#allocation40_spill] sm:$0xff] }
 0x35e   : >> { %2581 = vmax.xlane.f32.xlu0 %v2580_v23  ;;  %vm2463_vm13 = vcmp.ge.s32.totalorder %v13941_v19, %v10963_v22 }
 0x360   : >> { %v2360_v34 = vpop.f32.mrf.mxu2 }
 0x361   : >> { %v11008_v23 = vsel %vm2456_vm7, %v2360_v34, -1e+30  ;;  %v2265_v3 = vpop.f32.mrf.mxu0  ;;  %v13940_v34 = vld [vmem:[#allocation38_spill] sm:$0xff] }
 0x362   : >> { %v2584_v4 = vmax.f32 %v2583_v49, %v11008_v23  ;;  %v11017_v20 = vsel %vm2458_vm10, %v2265_v3, -1e+30  ;;  %v13939_v49 = vld [vmem:[#allocation37_spill] sm:$0xff]  ;;  %vm2461_vm12 = vcmp.ge.s32.totalorder %v13940_v34, %v10963_v22 }
 0x363   : >> { %v2314_v2 = vpop.f32.mrf.mxu1  ;;  %vm2460_vm11 = vcmp.ge.s32.totalorder %v13939_v49, %v10963_v22  ;;  %v2412_v3 = vpop.f32.mrf.mxu3 }
 0x364   : >> { %v11015_v18 = vsel %vm2459_vm9, %v2314_v2, -1e+30  ;;  %v2585_v62 = vmax.f32 %v2584_v4, %v11011_v5  ;;  %v13942_v4 = vld [vmem:[#allocation39_spill] sm:$0xff]  ;;  %v11033_v7 = vsel %vm2461_vm12, %v2412_v3, -1e+30  ;;  %v13944_v3 = vld [vmem:[#allocation42_spill] sm:$0xff] }
 0x365   : >> { %v2588_v55 = vmax.f32 %v11017_v20, %v11015_v18  ;;  %vm2462_vm14 = vcmp.ge.s32.totalorder %v13942_v4, %v10963_v22  ;;  %vm2465_vm0 = vcmp.ge.s32.totalorder %v13944_v3, %v10963_v22  ;;  %v6787_v3 = vld [vmem:[%s10997_s25 + $0xf0] sm:$0xff] }
 0x366   : >> { %2586 = vmax.xlane.f32.xlu0 %v2585_v62  ;;  %3286 = vmatpush.bf16.msrb.mxu3 %v6787_v3 }
 0x368   : >> { %v2363_v2 = vpop.f32.mrf.mxu2 }
 0x369   : >> { %v11031_v6 = vsel %vm2460_vm11, %v2363_v2, -1e+30  ;;  %v2267_v56 = vpop.f32.mrf.mxu0  ;;  %v13943_v2 = vld [vmem:[#allocation41_spill] sm:$0xff] }
 0x36a   : >> { %v2589_v62 = vmax.f32 %v2588_v55, %v11031_v6  ;;  %v11038_v34 = vsel %vm2462_vm14, %v2267_v56, -1e+30  ;;  %vm2464_vm15 = vcmp.ge.s32.totalorder %v13943_v2, %v10963_v22  ;;  %v6779_v55 = vld [vmem:[%s10997_s25 + $0xb0] sm:$0xff] }
 0x36b   : >> { %v2316_v30 = vpop.f32.mrf.mxu1  ;;  %v13945_v56 = vld [vmem:[#allocation44_spill] sm:$0xff]  ;;  %3237 = vmatpush.bf16.msrb.mxu2 %v6779_v55 }
 0x36c   : >> { %v11036_v49 = vsel %vm2463_vm13, %v2316_v30, -1e+30  ;;  %v2590_v37 = vmax.f32 %v2589_v62, %v11033_v7  ;;  %v2414_v30 = vpop.f32.mrf.mxu3  ;;  %vm2467_vm1 = vcmp.ge.s32.totalorder %v13945_v56, %v10963_v22  ;;  %v13946_v62 = vld [vmem:[#allocation43_spill] sm:$0xff] }
 0x36d   : >> { %v2593_v19 = vmax.f32 %v11038_v34, %v11036_v49  ;;  %vm2466_vm2 = vcmp.ge.s32.totalorder %v13946_v62, %v10963_v22  ;;  %v11054_v44 = vsel %vm2465_vm0, %v2414_v30, -1e+30  ;;  %v13949_v62 = vld [vmem:[#allocation48_spill] sm:$0xff] }
 0x36e   : >> { %2591 = vmax.xlane.f32.xlu1 %v2590_v37  ;;  %vm2471_vm5 = vcmp.ge.s32.totalorder %v13949_v62, %v10963_v22 }
 0x370   : >> { %v2365_v4 = vpop.f32.mrf.mxu2 }
 0x371   : >> { %v11052_v37 = vsel %vm2464_vm15, %v2365_v4, -1e+30  ;;  %v2270_v2 = vpop.f32.mrf.mxu0  ;;  %v13947_v4 = vld [vmem:[#allocation45_spill] sm:$0xff] }
 0x372   : >> { %v2594_v52 = vmax.f32 %v2593_v19, %v11052_v37  ;;  %v11061_v15 = vsel %vm2466_vm2, %v2270_v2, -1e+30  ;;  %vm2468_vm3 = vcmp.ge.s32.totalorder %v13947_v4, %v10963_v22  ;;  %v13948_v19 = vld [vmem:[#allocation46_spill] sm:$0xff] }
 0x373   : >> { %v2319_v45 = vpop.f32.mrf.mxu1  ;;  %vm2469_vm4 = vcmp.ge.s32.totalorder %v13948_v19, %v10963_v22 }
 0x374   : >> { %v11059_v26 = vsel %vm2467_vm1, %v2319_v45, -1e+30  ;;  %v2595_v56 = vmax.f32 %v2594_v52, %v11054_v44  ;;  %v2417_v30 = vpop.f32.mrf.mxu3  ;;  %v13950_v52 = vld [vmem:[#allocation47_spill] sm:$0xff] }
 0x375   : >> { %v2598_v55 = vmax.f32 %v11061_v15, %v11059_v26  ;;  %vm2470_vm6 = vcmp.ge.s32.totalorder %v13950_v52, %v10963_v22  ;;  %v11077_v17 = vsel %vm2469_vm4, %v2417_v30, -1e+30  ;;  %v13952_v30 = vld [vmem:[#allocation50_spill] sm:$0xff] }
 0x376   : >> { %2596 = vmax.xlane.f32.xlu1 %v2595_v56  ;;  %vm2473_vm8 = vcmp.ge.s32.totalorder %v13952_v30, %v10963_v22  ;;  %v6786_v30 = vld [vmem:[%s10997_s25 + $0xe8] sm:$0xff] }
 0x377   : >> { %3287 = vmatpush.bf16.msrb.mxu3 %v6786_v30 }
 0x378   : >> { %v2368_v45 = vpop.f32.mrf.mxu2 }
 0x379   : >> { %v11075_v57 = vsel %vm2468_vm3, %v2368_v45, -1e+30  ;;  %v2272_v3 = vpop.f32.mrf.mxu0  ;;  %v13951_v45 = vld [vmem:[#allocation49_spill] sm:$0xff] }
 0x37a   : >> { %v2599_v56 = vmax.f32 %v2598_v55, %v11075_v57  ;;  %v11082_v19 = vsel %vm2470_vm6, %v2272_v3, -1e+30  ;;  %vm2472_vm7 = vcmp.ge.s32.totalorder %v13951_v45, %v10963_v22  ;;  %v6778_v55 = vld [vmem:[%s10997_s25 + $0xa8] sm:$0xff] }
 0x37b   : >> { %v2321_v2 = vpop.f32.mrf.mxu1  ;;  %v13953_v3 = vld [vmem:[#allocation52_spill] sm:$0xff]  ;;  %3238 = vmatpush.bf16.msrb.mxu2 %v6778_v55 }
 0x37c   : >> { %v11080_v4 = vsel %vm2471_vm5, %v2321_v2, -1e+30  ;;  %v2600_v53 = vmax.f32 %v2599_v56, %v11077_v17  ;;  %v2419_v2 = vpop.f32.mrf.mxu3  ;;  %vm2475_vm9 = vcmp.ge.s32.totalorder %v13953_v3, %v10963_v22  ;;  %v13954_v56 = vld [vmem:[#allocation51_spill] sm:$0xff] }
 0x37d   : >> { %v2603_v62 = vmax.f32 %v11082_v19, %v11080_v4  ;;  %vm2474_vm10 = vcmp.ge.s32.totalorder %v13954_v56, %v10963_v22  ;;  %v11098_v25 = vsel %vm2473_vm8, %v2419_v2, -1e+30  ;;  %v13957_v56 = vld [vmem:[#allocation56_spill] sm:$0xff] }
 0x37e   : >> { %2601 = vmax.xlane.f32.xlu2 %v2600_v53  ;;  %vm2479_vm13 = vcmp.ge.s32.totalorder %v13957_v56, %v10963_v22 }
 0x380   : >> { %v2370_v52 = vpop.f32.mrf.mxu2 }
 0x381   : >> { %v11096_v53 = vsel %vm2472_vm7, %v2370_v52, -1e+30  ;;  %v2275_v45 = vpop.f32.mrf.mxu0  ;;  %v13955_v52 = vld [vmem:[#allocation53_spill] sm:$0xff] }
 0x382   : >> { %v2604_v14 = vmax.f32 %v2603_v62, %v11096_v53  ;;  %v11105_v40 = vsel %vm2474_vm10, %v2275_v45, -1e+30  ;;  %vm2476_vm11 = vcmp.ge.s32.totalorder %v13955_v52, %v10963_v22  ;;  %v13956_v62 = vld [vmem:[#allocation54_spill] sm:$0xff] }
 0x383   : >> { %v2324_v36 = vpop.f32.mrf.mxu1  ;;  %vm2477_vm12 = vcmp.ge.s32.totalorder %v13956_v62, %v10963_v22 }
 0x384   : >> { %v11103_v35 = vsel %vm2475_vm9, %v2324_v36, -1e+30  ;;  %v2605_v3 = vmax.f32 %v2604_v14, %v11098_v25  ;;  %v2422_v2 = vpop.f32.mrf.mxu3  ;;  %v13958_v14 = vld [vmem:[#allocation55_spill] sm:$0xff] }
 0x385   : >> { %v2608_v55 = vmax.f32 %v11105_v40, %v11103_v35  ;;  %vm2478_vm14 = vcmp.ge.s32.totalorder %v13958_v14, %v10963_v22  ;;  %v11121_v50 = vsel %vm2477_vm12, %v2422_v2, -1e+30  ;;  %v13961_v2 = vld [vmem:[#allocation58_spill] sm:$0xff] }
 0x386   : >> { %2606 = vmax.xlane.f32.xlu2 %v2605_v3  ;;  %vm2481_vm0 = vcmp.ge.s32.totalorder %v13961_v2, %v10963_v22  ;;  %v6785_v2 = vld [vmem:[%s10997_s25 + $0xe0] sm:$0xff] }
 0x387   : >> { %3288 = vmatpush.bf16.msrb.mxu3 %v6785_v2 }
 0x388   : >> { %v2373_v36 = vpop.f32.mrf.mxu2 }
 0x389   : >> { %v11119_v41 = vsel %vm2476_vm11, %v2373_v36, -1e+30  ;;  %v2277_v30 = vpop.f32.mrf.mxu0  ;;  %v13960_v36 = vld [vmem:[#allocation57_spill] sm:$0xff] }
 0x38a   : >> { %v2609_v3 = vmax.f32 %v2608_v55, %v11119_v41  ;;  %v11126_v62 = vsel %vm2478_vm14, %v2277_v30, -1e+30  ;;  %vm2480_vm15 = vcmp.ge.s32.totalorder %v13960_v36, %v10963_v22  ;;  %v6777_v55 = vld [vmem:[%s10997_s25 + $0xa0] sm:$0xff]  ;;  %v13962_v30 = vld [vmem:[#allocation60_spill] sm:$0xff] }
 0x38b   : >> { %v2326_v45 = vpop.f32.mrf.mxu1  ;;  %vm2483_vm1 = vcmp.ge.s32.totalorder %v13962_v30, %v10963_v22  ;;  %3239 = vmatpush.bf16.msrb.mxu2 %v6777_v55 }
 0x38c   : >> { %v11124_v52 = vsel %vm2479_vm13, %v2326_v45, -1e+30  ;;  %v2610_v29 = vmax.f32 %v2609_v3, %v11121_v50  ;;  %v2424_v45 = vpop.f32.mrf.mxu3  ;;  %v13963_v3 = vld [vmem:[#allocation59_spill] sm:$0xff] }
 0x38d   : >> { %13959 = vst [vmem:[#allocation159_spill] sm:$0xff] %v11124_v52  ;;  %v2613_v56 = vmax.f32 %v11126_v62, %v11124_v52  ;;  %vm2482_vm2 = vcmp.ge.s32.totalorder %v13963_v3, %v10963_v22  ;;  %v11142_v31 = vsel %vm2481_vm0, %v2424_v45, -1e+30  ;;  %v13966_v3 = vld [vmem:[#allocation64_spill] sm:$0xff] }
 0x38e   : >> { %2611 = vmax.xlane.f32.xlu0 %v2610_v29  ;;  %vm2487_vm5 = vcmp.ge.s32.totalorder %v13966_v3, %v10963_v22 }
 0x390   : >> { %v2375_v14 = vpop.f32.mrf.mxu2 }
 0x391   : >> { %v11140_v29 = vsel %vm2480_vm15, %v2375_v14, -1e+30  ;;  %v2280_v36 = vpop.f32.mrf.mxu0  ;;  %v13964_v14 = vld [vmem:[#allocation61_spill] sm:$0xff] }
 0x392   : >> { %v2614_v60 = vmax.f32 %v2613_v56, %v11140_v29  ;;  %v11149_v58 = vsel %vm2482_vm2, %v2280_v36, -1e+30  ;;  %vm2484_vm3 = vcmp.ge.s32.totalorder %v13964_v14, %v10963_v22  ;;  %v13965_v56 = vld [vmem:[#allocation62_spill] sm:$0xff] }
 0x393   : >> { %v2329_v32 = vpop.f32.mrf.mxu1  ;;  %vm2485_vm4 = vcmp.ge.s32.totalorder %v13965_v56, %v10963_v22 }
 0x394   : >> { %v11147_v43 = vsel %vm2483_vm1, %v2329_v32, -1e+30  ;;  %v2615_v30 = vmax.f32 %v2614_v60, %v11142_v31  ;;  %v2427_v45 = vpop.f32.mrf.mxu3  ;;  %v13967_v60 = vld [vmem:[#allocation63_spill] sm:$0xff] }
 0x395   : >> { %v2618_v55 = vmax.f32 %v11149_v58, %v11147_v43  ;;  %vm2486_vm6 = vcmp.ge.s32.totalorder %v13967_v60, %v10963_v22  ;;  %v11165_v28 = vsel %vm2485_vm4, %v2427_v45, -1e+30  ;;  %v13970_v45 = vld [vmem:[#allocation66_spill] sm:$0xff] }
 0x396   : >> { %2616 = vmax.xlane.f32.xlu1 %v2615_v30  ;;  %vm2489_vm8 = vcmp.ge.s32.totalorder %v13970_v45, %v10963_v22  ;;  %v6784_v45 = vld [vmem:[%s10997_s25 + $0xd8] sm:$0xff] }
 0x397   : >> { %3289 = vmatpush.bf16.msrb.mxu3 %v6784_v45 }
 0x398   : >> { %v2378_v32 = vpop.f32.mrf.mxu2 }
 0x399   : >> { %v11163_v24 = vsel %vm2484_vm3, %v2378_v32, -1e+30  ;;  %v2282_v2 = vpop.f32.mrf.mxu0  ;;  %v13969_v32 = vld [vmem:[#allocation65_spill] sm:$0xff] }
 0x39a   : >> { %v2619_v30 = vmax.f32 %v2618_v55, %v11163_v24  ;;  %v11170_v56 = vsel %vm2486_vm6, %v2282_v2, -1e+30  ;;  %vm2488_vm7 = vcmp.ge.s32.totalorder %v13969_v32, %v10963_v22  ;;  %v6776_v55 = vld [vmem:[%s10997_s25 + $0x98] sm:$0xff]  ;;  %v13971_v2 = vld [vmem:[#allocation68_spill] sm:$0xff] }
 0x39b   : >> { %v2331_v36 = vpop.f32.mrf.mxu1  ;;  %vm2491_vm9 = vcmp.ge.s32.totalorder %v13971_v2, %v10963_v22  ;;  %3240 = vmatpush.bf16.msrb.mxu2 %v6776_v55 }
 0x39c   : >> { %v11168_v14 = vsel %vm2487_vm5, %v2331_v36, -1e+30  ;;  %v2620_v48 = vmax.f32 %v2619_v30, %v11165_v28  ;;  %v2429_v36 = vpop.f32.mrf.mxu3  ;;  %v13972_v30 = vld [vmem:[#allocation67_spill] sm:$0xff] }
 0x39d   : >> { %13968 = vst [vmem:[#allocation160_spill] sm:$0xff] %v11168_v14  ;;  %v2623_v3 = vmax.f32 %v11170_v56, %v11168_v14  ;;  %vm2490_vm10 = vcmp.ge.s32.totalorder %v13972_v30, %v10963_v22  ;;  %v11186_v47 = vsel %vm2489_vm8, %v2429_v36, -1e+30  ;;  %v6768_v14 = vld [vmem:[%s10997_s25 + $0x58] sm:$0xff]  ;;  %v13979_v30 = vld [vmem:[#allocation72_spill] sm:$0xff] }
 0x39e   : >> { %2621 = vmax.xlane.f32.xlu2 %v2620_v48  ;;  %13974 = vst [vmem:[#allocation162_spill] sm:$0xff] %v11186_v47  ;;  %3191 = vmatpush.bf16.msrb.mxu1 %v6768_v14  ;;  %vm2495_vm13 = vcmp.ge.s32.totalorder %v13979_v30, %v10963_v22 }
 0x3a0   : >> { %v2380_v60 = vpop.f32.mrf.mxu2 }
 0x3a1   : >> { %v11184_v48 = vsel %vm2488_vm7, %v2380_v60, -1e+30  ;;  %v2285_v32 = vpop.f32.mrf.mxu0  ;;  %v13977_v60 = vld [vmem:[#allocation69_spill] sm:$0xff] }
 0x3a2   : >> { %13973 = vst [vmem:[#allocation161_spill] sm:$0xff] %v11184_v48  ;;  %v2624_v46 = vmax.f32 %v2623_v3, %v11184_v48  ;;  %v11193_v59 = vsel %vm2490_vm10, %v2285_v32, -1e+30  ;;  %vm2492_vm11 = vcmp.ge.s32.totalorder %v13977_v60, %v10963_v22  ;;  %v13978_v3 = vld [vmem:[#allocation70_spill] sm:$0xff] }
 0x3a3   : >> { %v2334_v51 = vpop.f32.mrf.mxu1  ;;  %13976 = vst [vmem:[#allocation164_spill] sm:$0xff] %v11193_v59  ;;  %vm2493_vm12 = vcmp.ge.s32.totalorder %v13978_v3, %v10963_v22 }
 0x3a4   : >> { %v11191_v38 = vsel %vm2491_vm9, %v2334_v51, -1e+30  ;;  %v2625_v2 = vmax.f32 %v2624_v46, %v11186_v47  ;;  %v2432_v36 = vpop.f32.mrf.mxu3  ;;  %v13980_v46 = vld [vmem:[#allocation71_spill] sm:$0xff] }
 0x3a5   : >> { %13975 = vst [vmem:[#allocation163_spill] sm:$0xff] %v11191_v38  ;;  %v2628_v55 = vmax.f32 %v11193_v59, %v11191_v38  ;;  %vm2494_vm14 = vcmp.ge.s32.totalorder %v13980_v46, %v10963_v22  ;;  %v11209_v14 = vsel %vm2493_vm12, %v2432_v36, -1e+30  ;;  %v13986_v36 = vld [vmem:[#allocation74_spill] sm:$0xff]  ;;  %v6775_v46 = vld [vmem:[%s10997_s25 + $0x90] sm:$0xff] }
 0x3a6   : >> { %2626 = vmax.xlane.f32.xlu0 %v2625_v2  ;;  %13982 = vst [vmem:[#allocation166_spill] sm:$0xff] %v11209_v14  ;;  %vm2497_vm0 = vcmp.ge.s32.totalorder %v13986_v36, %v10963_v22  ;;  %3241 = vmatpush.bf16.msrb.mxu2 %v6775_v46  ;;  %v13993_v46 = vld [vmem:[#allocation77_spill] sm:$0xff] }
 0x3a7   : >> { %vm2500_vm3 = vcmp.ge.s32.totalorder %v13993_v46, %v10963_v22 }
 0x3a8   : >> { %v2383_v51 = vpop.f32.mrf.mxu2 }
 0x3a9   : >> { %v11207_v61 = vsel %vm2492_vm11, %v2383_v51, -1e+30  ;;  %v2287_v45 = vpop.f32.mrf.mxu0  ;;  %v13985_v51 = vld [vmem:[#allocation73_spill] sm:$0xff] }
 0x3aa   : >> { %13981 = vst [vmem:[#allocation165_spill] sm:$0xff] %v11207_v61  ;;  %v2629_v2 = vmax.f32 %v2628_v55, %v11207_v61  ;;  %v11214_v3 = vsel %vm2494_vm14, %v2287_v45, -1e+30  ;;  %vm2496_vm15 = vcmp.ge.s32.totalorder %v13985_v51, %v10963_v22  ;;  %v13988_v45 = vld [vmem:[#allocation75_spill] sm:$0xff] }
 0x3ab   : >> { %v2336_v32 = vpop.f32.mrf.mxu1  ;;  %13984 = vst [vmem:[#allocation168_spill] sm:$0xff] %v11214_v3  ;;  %vm2498_vm2 = vcmp.ge.s32.totalorder %v13988_v45, %v10963_v22 }
 0x3ac   : >> { %v11212_v60 = vsel %vm2495_vm13, %v2336_v32, -1e+30  ;;  %v2630_v38 = vmax.f32 %v2629_v2, %v11209_v14  ;;  %v2434_v55 = vpop.f32.mrf.mxu3  ;;  %v13987_v32 = vld [vmem:[#allocation76_spill] sm:$0xff] }
 0x3ad   : >> { %13983 = vst [vmem:[#allocation167_spill] sm:$0xff] %v11212_v60  ;;  %v2633_v30 = vmax.f32 %v11214_v3, %v11212_v60  ;;  %vm2499_vm1 = vcmp.ge.s32.totalorder %v13987_v32, %v10963_v22  ;;  %v11230_v2 = vsel %vm2497_vm0, %v2434_v55, -1e+30  ;;  %v6783_v3 = vld [vmem:[%s10997_s25 + $0xd0] sm:$0xff]  ;;  %v13994_v55 = vld [vmem:[#allocation78_spill] sm:$0xff] }
 0x3ae   : >> { %2631 = vmax.xlane.f32.xlu1 %v2630_v38  ;;  %13990 = vst [vmem:[#allocation170_spill] sm:$0xff] %v11230_v2  ;;  %3290 = vmatpush.bf16.msrb.mxu3 %v6783_v3  ;;  %vm2501_vm4 = vcmp.ge.s32.totalorder %v13994_v55, %v10963_v22  ;;  %v6767_v3 = vld [vmem:[%s10997_s25 + $0x50] sm:$0xff] }
 0x3af   : >> { %3192 = vmatpush.bf16.msrb.mxu1 %v6767_v3  ;;  %v6774_v3 = vld [vmem:[%s10997_s25 + $0x88] sm:$0xff] }
 0x3b0   : >> { %v2385_v59 = vpop.f32.mrf.mxu2  ;;  %3242 = vmatpush.bf16.msrb.mxu2 %v6774_v3  ;;  %v6757_v3 = vld [vmem:[%s10997_s25] sm:$0xff] }
 0x3b1   : >> { %v11228_v38 = vsel %vm2496_vm15, %v2385_v59, -1e+30  ;;  %v2290_v51 = vpop.f32.mrf.mxu0 }
 0x3b2   : >> { %13989 = vst [vmem:[#allocation169_spill] sm:$0xff] %v11228_v38  ;;  %v2634_v36 = vmax.f32 %v2633_v30, %v11228_v38  ;;  %v11236_v61 = vsel %vm2498_vm2, %v2290_v51, -1e+30  ;;  %v13996_v51 = vld [vmem:[#allocation79_spill] sm:$0xff] }
 0x3b3   : >> { %v2339_v60 = vpop.f32.mrf.mxu1  ;;  %13992 = vst [vmem:[#allocation172_spill] sm:$0xff] %v11236_v61  ;;  %vm2502_vm6 = vcmp.ge.s32.totalorder %v13996_v51, %v10963_v22  ;;  %v14002_v51 = vld [vmem:[#allocation82_spill] sm:$0xff] }
 0x3b4   : >> { %v11234_v14 = vsel %vm2499_vm1, %v2339_v60, -1e+30  ;;  %v2635_v32 = vmax.f32 %v2634_v36, %v11230_v2  ;;  %v2437_v30 = vpop.f32.mrf.mxu3  ;;  %v13995_v60 = vld [vmem:[#allocation80_spill] sm:$0xff]  ;;  %vm2505_vm8 = vcmp.ge.s32.totalorder %v14002_v51, %v10963_v22 }
 0x3b5   : >> { %13991 = vst [vmem:[#allocation171_spill] sm:$0xff] %v11234_v14  ;;  %v2638_v59 = vmax.f32 %v11236_v61, %v11234_v14  ;;  %vm2503_vm5 = vcmp.ge.s32.totalorder %v13995_v60, %v10963_v22  ;;  %v6759_v36 = vld [vmem:[%s10997_s25 + $0x10] sm:$0xff]  ;;  %v11253_v2 = vsel %vm2501_vm4, %v2437_v30, -1e+30  ;;  %v6782_v51 = vld [vmem:[%s10997_s25 + $0xc8] sm:$0xff] }
 0x3b6   : >> { %2636 = vmax.xlane.f32.xlu2 %v2635_v32  ;;  %13998 = vst [vmem:[#allocation174_spill] sm:$0xff] %v11253_v2  ;;  %3143 = vmatpush.bf16.msrb.mxu0 %v6759_v36  ;;  %v14001_v30 = vld [vmem:[#allocation81_spill] sm:$0xff]  ;;  %v14003_v36 = vld [vmem:[#allocation84_spill] sm:$0xff] }
 0x3b7   : >> { %vm2504_vm7 = vcmp.ge.s32.totalorder %v14001_v30, %v10963_v22  ;;  %vm2507_vm9 = vcmp.ge.s32.totalorder %v14003_v36, %v10963_v22  ;;  %3291 = vmatpush.bf16.msrb.mxu3 %v6782_v51  ;;  %v6781_v51 = vld [vmem:[%s10997_s25 + $0xc0] sm:$0xff] }
 0x3b8   : >> { %v2388_v45 = vpop.f32.mrf.mxu2 }
 0x3b9   : >> { %v11251_v32 = vsel %vm2500_vm3, %v2388_v45, -1e+30  ;;  %v2292_v46 = vpop.f32.mrf.mxu0 }
 0x3ba   : >> { %13997 = vst [vmem:[#allocation173_spill] sm:$0xff] %v11251_v32  ;;  %v2639_v61 = vmax.f32 %v2638_v59, %v11251_v32  ;;  %v11258_v38 = vsel %vm2502_vm6, %v2292_v46, -1e+30  ;;  %v6758_v32 = vld [vmem:[%s10997_s25 + $0x8] sm:$0xff] }
 0x3bb   : >> { %v2341_v14 = vpop.f32.mrf.mxu1  ;;  %14000 = vst [vmem:[#allocation176_spill] sm:$0xff] %v11258_v38  ;;  %3144 = vmatpush.bf16.msrb.mxu0 %v6758_v32  ;;  %v14012_v32 = vld [vmem:[#allocation87_spill] sm:$0xff]  ;;  %3292 = vmatpush.bf16.msrb.mxu3 %v6781_v51 }
 0x3bc   : >> { %v11256_v55 = vsel %vm2503_vm5, %v2341_v14, -1e+30  ;;  %v2640_v60 = vmax.f32 %v2639_v61, %v11253_v2  ;;  %v2439_v14 = vpop.f32.mrf.mxu3  ;;  %v14004_v61 = vld [vmem:[#allocation83_spill] sm:$0xff]  ;;  %vm2510_vm14 = vcmp.ge.s32.totalorder %v14012_v32, %v10963_v22 }
 0x3bd   : >> { %13999 = vst [vmem:[#allocation175_spill] sm:$0xff] %v11256_v55  ;;  %v2643_v45 = vmax.f32 %v11258_v38, %v11256_v55  ;;  %vm2506_vm10 = vcmp.ge.s32.totalorder %v14004_v61, %v10963_v22  ;;  %v6766_v61 = vld [vmem:[%s10997_s25 + $0x48] sm:$0xff] }
 0x3be   : >> { %2641 = vmax.xlane.f32.xlu0 %v2640_v60  ;;  %v11274_v60 = vsel %vm2505_vm8, %v2439_v14, -1e+30  ;;  %3193 = vmatpush.bf16.msrb.mxu1 %v6766_v61  ;;  %v14009_v14 = vld [vmem:[#allocation85_spill] sm:$0xff] }
 0x3bf   : >> { %14006 = vst [vmem:[#allocation178_spill] sm:$0xff] %v11274_v60  ;;  %vm2508_vm11 = vcmp.ge.s32.totalorder %v14009_v14, %v10963_v22  ;;  %3145 = vmatpush.bf16.msrb.mxu0 %v6757_v3  ;;  %v14014_v3 = vld [vmem:[#allocation90_spill] sm:$0xff] }
 0x3c0   : >> { %v2390_v59 = vpop.f32.mrf.mxu2  ;;  %vm2513_vm0 = vcmp.ge.s32.totalorder %v14014_v3, %v10963_v22 }
 0x3c1   : >> { %v11272_v46 = vsel %vm2504_vm7, %v2390_v59, -1e+30  ;;  %v2295_v30 = vpop.f32.mrf.mxu0 }
 0x3c2   : >> { %14005 = vst [vmem:[#allocation177_spill] sm:$0xff] %v11272_v46  ;;  %v2644_v38 = vmax.f32 %v2643_v45, %v11272_v46  ;;  %v11280_v36 = vsel %vm2506_vm10, %v2295_v30, -1e+30  ;;  %v6765_v30 = vld [vmem:[%s10997_s25 + $0x40] sm:$0xff] }
 0x3c3   : >> { %v2344_v55 = vpop.f32.mrf.mxu1  ;;  %14008 = vst [vmem:[#allocation180_spill] sm:$0xff] %v11280_v36  ;;  %v6773_v46 = vld [vmem:[%s10997_s25 + $0x80] sm:$0xff]  ;;  %3194 = vmatpush.bf16.msrb.mxu1 %v6765_v30 }
 0x3c4   : >> { %v11278_v2 = vsel %vm2507_vm9, %v2344_v55, -1e+30  ;;  %v2645_v59 = vmax.f32 %v2644_v38, %v11274_v60  ;;  %v14010_v55 = vld [vmem:[#allocation86_spill] sm:$0xff]  ;;  %v2442_v48 = vpop.f32.mrf.mxu3  ;;  %v14011_v38 = vld [vmem:[#allocation88_spill] sm:$0xff]  ;;  %3243 = vmatpush.bf16.msrb.mxu2 %v6773_v46 }
 0x3c5   : >> { %14007 = vst [vmem:[#allocation179_spill] sm:$0xff] %v11278_v2  ;;  %v2648_v45 = vmax.f32 %v11280_v36, %v11278_v2  ;;  %vm2509_vm12 = vcmp.ge.s32.totalorder %v14010_v55, %v10963_v22  ;;  %vm2511_vm13 = vcmp.ge.s32.totalorder %v14011_v38, %v10963_v22 }
 0x3c6   : >> { %2646 = vmax.xlane.f32.xlu1 %v2645_v59  ;;  %v11301_v59 = vsel %vm2509_vm12, %v2442_v48, -1e+30  ;;  %v14013_v48 = vld [vmem:[#allocation89_spill] sm:$0xff] }
 0x3c7   : >> { %vm2512_vm15 = vcmp.ge.s32.totalorder %v14013_v48, %v10963_v22 }
 0x3c8   : >> { %v2393_v47 = vpop.f32.mrf.mxu2 }
 0x3c9   : >> { %v11299_v61 = vsel %vm2508_vm11, %v2393_v47, -1e+30  ;;  %v2297_v2 = vpop.f32.mrf.mxu0 }
 0x3ca   : >> { %v2649_v55 = vmax.f32 %v2648_v45, %v11299_v61  ;;  %v11306_v60 = vsel %vm2510_vm14, %v2297_v2, -1e+30 }
 0x3cb   : >> { %v2346_v14 = vpop.f32.mrf.mxu1 }
 0x3cc   : >> { %v11304_v36 = vsel %vm2511_vm13, %v2346_v14, -1e+30  ;;  %v2650_v38 = vmax.f32 %v2649_v55, %v11301_v59  ;;  %v2444_v45 = vpop.f32.mrf.mxu3 }
 0x3cd   : >> { %v2653_v47 = vmax.f32 %v11306_v60, %v11304_v36  ;;  %v11317_v51 = vsel %vm2513_vm0, %v2444_v45, -1e+30 }
 0x3ce   : >> { %2651 = vmax.xlane.f32.xlu2 %v2650_v38 }
 0x3d0   : >> { %v2395_v30 = vpop.f32.mrf.mxu2 }
 0x3d1   : >> { %v11315_v46 = vsel %vm2512_vm15, %v2395_v30, -1e+30  ;;  %v2582_v32 = vpop.xlane.xlu0 %2581 }
 0x3d2   : >> { %v2654_v2 = vmax.f32 %v2653_v47, %v11315_v46  ;;  %v11321_v14 = vmax.f32 %v9277_v9, %v2582_v32  }
 0x3d4   : >> { %14015 = vst [vmem:[#allocation181_spill] sm:$0xff] %v11321_v14  ;;  %v14016_v52 = vmov %v11321_v14  ;;  %v2655_v38 = vmax.f32 %v2654_v2, %v11317_v51 }
 0x3d5   : >> { %v2724_v22 = vsub.f32 %v10979_v33, %v14016_v52  ;;  %v2723_v48 = vsub.f32 %v10971_v39, %v14016_v52  ;;  %v2722_v3 = vsub.f32 %v10969_v21, %v14016_v52  ;;  %v2725_v32 = vsub.f32 %v10981_v16, %v14016_v52 }
 0x3d6   : >> { %2656 = vmax.xlane.f32.xlu0 %v2655_v38 }
 0x3d7   : >> { %v2790_v30 = vmul.f32 1.442695, %v2724_v22  ;;  %v2788_v47 = vmul.f32 1.442695, %v2723_v48  ;;  %v2786_v45 = vmul.f32 1.442695, %v2722_v3 }
 0x3d8   : >> { %v2792_v33 = vmul.f32 1.442695, %v2725_v32 }
 0x3d9   : >> { %v2587_v14 = vpop.xlane.xlu0 %2586  ;;  %8083 = vpow2.f32 %v2790_v30 }
 0x3da   : >> { %v11335_v2 = vmax.f32 %v9273_v8, %v2587_v14   ;;  %8085 = vpow2.f32 %v2788_v47 }
 0x3db   : >> { %8087 = vpow2.f32 %v2786_v45 }
 0x3dc   : >> { %14017 = vst [vmem:[#allocation182_spill] sm:$0xff] %v11335_v2  ;;  %v2727_v21 = vsub.f32 %v10991_v1, %v11335_v2  ;;  %v2726_v38 = vsub.f32 %v10989_v0, %v11335_v2  ;;  %v2728_v16 = vsub.f32 %v11008_v23, %v11335_v2  ;;  %v2729_v22 = vsub.f32 %v11011_v5, %v11335_v2 }
 0x3dd   : >> { %8089 = vpow2.f32 %v2792_v33 }
 0x3de   : >> { %v2796_v48 = vmul.f32 1.442695, %v2727_v21  ;;  %v2794_v3 = vmul.f32 1.442695, %v2726_v38  ;;  %v2798_v47 = vmul.f32 1.442695, %v2728_v16 }
 0x3df   : >> { %v8084_v30 = vpop.eup %8083  ;;  %v2800_v32 = vmul.f32 1.442695, %v2729_v22 }
 0x3e0   : >> { %v8086_v45 = vpop.eup %8085  ;;  %3462 = vadd.xlane.f32.xlu0 %v8084_v30  ;;  %8091 = vpow2.f32 %v2796_v48 }
 0x3e1   : >> { %v8088_v14 = vpop.eup %8087  ;;  %3398 = vadd.xlane.f32.xlu2 %v8086_v45  ;;  %v2592_v1 = vpop.xlane.xlu1 %2591  ;;  %8093 = vpow2.f32 %v2794_v3 }
 0x3e2   : >> { %3334 = vadd.xlane.f32.xlu1 %v8088_v14  ;;  %v11348_v0 = vmax.f32 %v9269_v10, %v2592_v1   ;;  %8095 = vpow2.f32 %v2798_v47 }
 0x3e3   : >> { %8097 = vpow2.f32 %v2800_v32  ;;  %v8090_v21 = vpop.eup %8089 }
 0x3e4   : >> { %14018 = vst [vmem:[#allocation183_spill] sm:$0xff] %v11348_v0  ;;  %v2730_v23 = vsub.f32 %v11017_v20, %v11348_v0  ;;  %v2732_v38 = vsub.f32 %v11031_v6, %v11348_v0  ;;  %v2731_v22 = vsub.f32 %v11015_v18, %v11348_v0  ;;  %v2733_v47 = vsub.f32 %v11033_v7, %v11348_v0 }
 0x3e6   : >> { %v2802_v33 = vmul.f32 1.442695, %v2730_v23  ;;  %v8092_v16 = vpop.eup %8091  ;;  %v2806_v55 = vmul.f32 1.442695, %v2732_v38  ;;  %v2804_v10 = vmul.f32 1.442695, %v2731_v22 }
 0x3e7   : >> { %v8094_v48 = vpop.eup %8093  ;;  %v2915_v3 = vpack.c.bf16 %v8092_v16, %v8086_v45  ;;  %v2808_v7 = vmul.f32 1.442695, %v2733_v47 }
 0x3e8   : >> { %3400 = vadd.xlane.f32.xlu0 %v8092_v16  ;;  %v8096_v1 = vpop.eup %8095  ;;  %v2914_v5 = vpack.c.bf16 %v8094_v48, %v8088_v14  ;;  %8099 = vpow2.f32 %v2802_v33 }
 0x3e9   : >> { %3336 = vadd.xlane.f32.xlu2 %v8094_v48  ;;  %v2597_v32 = vpop.xlane.xlu1 %2596  ;;  %v8098_v20 = vpop.eup %8097  ;;  %3195 = vmatmul.bf16.vlgmr.msrb.gmra.mxu1 %v2915_v3  ;;  %v2916_v39 = vpack.c.bf16 %v8096_v1, %v8084_v30  ;;  %8101 = vpow2.f32 %v2806_v55 }
 0x3ea   : >> { %3526 = vadd.xlane.f32.xlu1 %v8090_v21  ;;  %v11361_v23 = vmax.f32 %v9265_v11, %v2597_v32   ;;  %3146 = vmatmul.bf16.vlgmr.msrb.gmra.mxu0 %v2914_v5  ;;  %v2917_v18 = vpack.c.bf16 %v8098_v20, %v8090_v21  ;;  %8103 = vpow2.f32 %v2804_v10 }
 0x3eb   : >> { %3244 = vmatmul.bf16.vlgmr.msrb.gmra.mxu2 %v2916_v39  ;;  %8105 = vpow2.f32 %v2808_v7 }
 0x3ec   : >> { %14019 = vst [vmem:[#allocation184_spill] sm:$0xff] %v11361_v23  ;;  %v14020_v6 = vmov %v11361_v23  ;;  %3293 = vmatmul.bf16.vlgmr.msrb.gmra.mxu3 %v2917_v18 }
 0x3ed   : >> { %v2734_v14 = vsub.f32 %v11038_v34, %v14020_v6  ;;  %v2735_v33 = vsub.f32 %v11036_v49, %v14020_v6  ;;  %v2736_v16 = vsub.f32 %v11052_v37, %v14020_v6  ;;  %v2737_v30 = vsub.f32 %v11054_v44, %v14020_v6 }
 0x3ee   : >> { %v8100_v38 = vpop.eup %8099 }
 0x3ef   : >> { %v2810_v5 = vmul.f32 1.442695, %v2734_v14  ;;  %v2812_v21 = vmul.f32 1.442695, %v2735_v33  ;;  %v2814_v39 = vmul.f32 1.442695, %v2736_v16  ;;  %v8102_v37 = vpop.eup %8101 }
 0x3f0   : >> { %3338 = vadd.xlane.f32.xlu0 %v8100_v38  ;;  %v2816_v22 = vmul.f32 1.442695, %v2737_v30  ;;  %v8104_v55 = vpop.eup %8103 }
 0x3f1   : >> { %3528 = vadd.xlane.f32.xlu2 %v8098_v20  ;;  %v2602_v34 = vpop.xlane.xlu2 %2601  ;;  %8107 = vpow2.f32 %v2810_v5  ;;  %v8106_v48 = vpop.eup %8105 }
 0x3f2   : >> { %3464 = vadd.xlane.f32.xlu1 %v8096_v1  ;;  %v11374_v49 = vmax.f32 %v9261_v13, %v2602_v34   ;;  %8109 = vpow2.f32 %v2812_v21 }
 0x3f3   : >> { %8111 = vpow2.f32 %v2814_v39 }
 0x3f4   : >> { %14021 = vst [vmem:[#allocation185_spill] sm:$0xff] %v11374_v49  ;;  %v14022_v3 = vmov %v11374_v49  ;;  %8113 = vpow2.f32 %v2816_v22 }
 0x3f5   : >> { %v2739_v10 = vsub.f32 %v11059_v26, %v14022_v3  ;;  %v2738_v47 = vsub.f32 %v11061_v15, %v14022_v3  ;;  %v2740_v1 = vsub.f32 %v11075_v57, %v14022_v3  ;;  %v2741_v20 = vsub.f32 %v11077_v17, %v14022_v3 }
 0x3f7   : >> { %v8108_v32 = vpop.eup %8107  ;;  %v2820_v16 = vmul.f32 1.442695, %v2739_v10  ;;  %v2818_v5 = vmul.f32 1.442695, %v2738_v47  ;;  %v2822_v21 = vmul.f32 1.442695, %v2740_v1 }
 0x3f8   : >> { %v8110_v23 = vpop.eup %8109  ;;  %3530 = vadd.xlane.f32.xlu0 %v8106_v48  ;;  %v2918_v18 = vpack.c.bf16 %v8108_v32, %v8100_v38  ;;  %v2824_v17 = vmul.f32 1.442695, %v2741_v20 }
 0x3f9   : >> { %v8112_v7 = vpop.eup %8111  ;;  %3466 = vadd.xlane.f32.xlu2 %v8102_v37  ;;  %v2607_v14 = vpop.xlane.xlu2 %2606  ;;  %v2919_v33 = vpack.c.bf16 %v8110_v23, %v8104_v55  ;;  %8115 = vpow2.f32 %v2820_v16 }
 0x3fa   : >> { %v8114_v26 = vpop.eup %8113  ;;  %3402 = vadd.xlane.f32.xlu1 %v8104_v55  ;;  %v11387_v30 = vmax.f32 %v9257_v12, %v2607_v14   ;;  %v2920_v15 = vpack.c.bf16 %v8112_v7, %v8102_v37  ;;  %3151 = vmatmul.bf16.gmra.mxu0 %v2918_v18  ;;  %8117 = vpow2.f32 %v2818_v5 }
 0x3fb   : >> { %3200 = vmatmul.bf16.gmra.mxu1 %v2919_v33  ;;  %v2921_v57 = vpack.c.bf16 %v8114_v26, %v8106_v48  ;;  %8119 = vpow2.f32 %v2822_v21 }
 0x3fc   : >> { %14023 = vst [vmem:[#allocation186_spill] sm:$0xff] %v11387_v30  ;;  %3249 = vmatmul.bf16.gmra.mxu2 %v2920_v15  ;;  %v2742_v39 = vsub.f32 %v11082_v19, %v11387_v30  ;;  %v2743_v22 = vsub.f32 %v11080_v4, %v11387_v30  ;;  %v2744_v34 = vsub.f32 %v11096_v53, %v11387_v30  ;;  %8121 = vpow2.f32 %v2824_v17 }
 0x3fd   : >> { %3298 = vmatmul.bf16.gmra.mxu3 %v2921_v57  ;;  %v2745_v49 = vsub.f32 %v11098_v25, %v11387_v30 }
 0x3fe   : >> { %v2826_v37 = vmul.f32 1.442695, %v2742_v39  ;;  %v2828_v55 = vmul.f32 1.442695, %v2743_v22  ;;  %v2830_v10 = vmul.f32 1.442695, %v2744_v34 }
 0x3ff   : >> { %v2832_v48 = vmul.f32 1.442695, %v2745_v49  ;;  %v8116_v53 = vpop.eup %8115  ;;  %v14059_v34 = vld [vmem:[#allocation177_spill] sm:$0xff] }
 0x400   : >> { %3468 = vadd.xlane.f32.xlu0 %v8112_v7  ;;  %8123 = vpow2.f32 %v2826_v37  ;;  %v8118_v47 = vpop.eup %8117 }
 0x401   : >> { %3404 = vadd.xlane.f32.xlu2 %v8110_v23  ;;  %v2612_v19 = vpop.xlane.xlu0 %2611  ;;  %8125 = vpow2.f32 %v2828_v55  ;;  %v8120_v1 = vpop.eup %8119  ;;  %v14027_v55 = vld [vmem:[#allocation159_spill] sm:$0xff] }
 0x402   : >> { %3340 = vadd.xlane.f32.xlu1 %v8108_v32  ;;  %v11400_v4 = vmax.f32 %v9253_v42, %v2612_v19   ;;  %8127 = vpow2.f32 %v2830_v10  ;;  %v8122_v18 = vpop.eup %8121 }
 0x403   : >> { %8129 = vpow2.f32 %v2832_v48 }
 0x404   : >> { %14024 = vst [vmem:[#allocation187_spill] sm:$0xff] %v11400_v4  ;;  %v2746_v20 = vsub.f32 %v11105_v40, %v11400_v4  ;;  %v2747_v23 = vsub.f32 %v11103_v35, %v11400_v4  ;;  %v2748_v7 = vsub.f32 %v11119_v41, %v11400_v4  ;;  %v2749_v14 = vsub.f32 %v11121_v50, %v11400_v4 }
 0x406   : >> { %v8124_v32 = vpop.eup %8123  ;;  %v2834_v21 = vmul.f32 1.442695, %v2746_v20  ;;  %v2836_v39 = vmul.f32 1.442695, %v2747_v23  ;;  %v2838_v22 = vmul.f32 1.442695, %v2748_v7 }
 0x407   : >> { %v8126_v33 = vpop.eup %8125  ;;  %v2922_v16 = vpack.c.bf16 %v8124_v32, %v8118_v47  ;;  %v2840_v50 = vmul.f32 1.442695, %v2749_v14 }
 0x408   : >> { %3406 = vadd.xlane.f32.xlu0 %v8116_v53  ;;  %v8128_v15 = vpop.eup %8127  ;;  %v2923_v57 = vpack.c.bf16 %v8126_v33, %v8116_v53  ;;  %8131 = vpow2.f32 %v2834_v21 }
 0x409   : >> { %3342 = vadd.xlane.f32.xlu2 %v8118_v47  ;;  %v2617_v5 = vpop.xlane.xlu1 %2616  ;;  %v8130_v40 = vpop.eup %8129  ;;  %v2924_v35 = vpack.c.bf16 %v8128_v15, %v8120_v1  ;;  %8133 = vpow2.f32 %v2836_v39 }
 0x40a   : >> { %3532 = vadd.xlane.f32.xlu1 %v8114_v26  ;;  %v11413_v17 = vmax.f32 %v9249_v54, %v2617_v5   ;;  %3156 = vmatmul.bf16.gmra.mxu0 %v2922_v16  ;;  %v2925_v41 = vpack.c.bf16 %v8130_v40, %v8122_v18  ;;  %8135 = vpow2.f32 %v2838_v22 }
 0x40b   : >> { %3205 = vmatmul.bf16.gmra.mxu1 %v2923_v57  ;;  %8137 = vpow2.f32 %v2840_v50 }
 0x40c   : >> { %14025 = vst [vmem:[#allocation188_spill] sm:$0xff] %v11413_v17  ;;  %v14026_v37 = vmov %v11413_v17  ;;  %3254 = vmatmul.bf16.gmra.mxu2 %v2924_v35 }
 0x40d   : >> { %v2750_v49 = vsub.f32 %v11126_v62, %v14026_v37  ;;  %v2751_v26 = vsub.f32 %v14027_v55, %v14026_v37  ;;  %v2752_v10 = vsub.f32 %v11140_v29, %v14026_v37  ;;  %3303 = vmatmul.bf16.gmra.mxu3 %v2925_v41  ;;  %v2753_v48 = vsub.f32 %v11142_v31, %v14026_v37 }
 0x40e   : >> { %v8132_v29 = vpop.eup %8131 }
 0x40f   : >> { %v2842_v19 = vmul.f32 1.442695, %v2750_v49  ;;  %v2844_v53 = vmul.f32 1.442695, %v2751_v26  ;;  %v2846_v47 = vmul.f32 1.442695, %v2752_v10  ;;  %v8134_v14 = vpop.eup %8133 }
 0x410   : >> { %3344 = vadd.xlane.f32.xlu0 %v8124_v32  ;;  %v2848_v20 = vmul.f32 1.442695, %v2753_v48  ;;  %v8136_v16 = vpop.eup %8135  ;;  %v14031_v26 = vld [vmem:[#allocation160_spill] sm:$0xff] }
 0x411   : >> { %3534 = vadd.xlane.f32.xlu2 %v8122_v18  ;;  %v2622_v62 = vpop.xlane.xlu2 %2621  ;;  %8139 = vpow2.f32 %v2842_v19  ;;  %v11432_v5 = vpop.eup %8137  ;;  %v14032_v19 = vld [vmem:[#allocation161_spill] sm:$0xff] }
 0x412   : >> { %3470 = vadd.xlane.f32.xlu1 %v8120_v1  ;;  %v11426_v23 = vmax.f32 %v9245_v27, %v2622_v62   ;;  %8141 = vpow2.f32 %v2844_v53 }
 0x413   : >> { %8143 = vpow2.f32 %v2846_v47  ;;  %v14033_v47 = vld [vmem:[#allocation162_spill] sm:$0xff] }
 0x414   : >> { %14028 = vst [vmem:[#allocation189_spill] sm:$0xff] %v11426_v23  ;;  %v14029_v7 = vmov %v11426_v23  ;;  %8145 = vpow2.f32 %v2848_v20 }
 0x415   : >> { %v2754_v32 = vsub.f32 %v11149_v58, %v14029_v7  ;;  %v2755_v1 = vsub.f32 %v11147_v43, %v14029_v7  ;;  %v2756_v57 = vsub.f32 %v11163_v24, %v14029_v7  ;;  %v2757_v21 = vsub.f32 %v11165_v28, %v14029_v7 }
 0x417   : >> { %v8140_v18 = vpop.eup %8139  ;;  %v2850_v22 = vmul.f32 1.442695, %v2754_v32  ;;  %v2852_v49 = vmul.f32 1.442695, %v2755_v1  ;;  %v2856_v55 = vmul.f32 1.442695, %v2757_v21 }
 0x418   : >> { %v8142_v17 = vpop.eup %8141  ;;  %3536 = vadd.xlane.f32.xlu0 %v8130_v40  ;;  %v2926_v35 = vpack.c.bf16 %v8140_v18, %v8132_v29  ;;  %v2854_v40 = vmul.f32 1.442695, %v2756_v57  ;;  %v14034_v57 = vld [vmem:[#allocation157_spill] sm:$0xff] }
 0x419   : >> { %v11440_v39 = vpop.eup %8143  ;;  %3472 = vadd.xlane.f32.xlu2 %v8128_v15  ;;  %v2627_v41 = vpop.xlane.xlu0 %2626  ;;  %v2927_v58 = vpack.c.bf16 %v8142_v17, %v8134_v14  ;;  %8147 = vpow2.f32 %v2850_v22 }
 0x41a   : >> { %v11442_v50 = vpop.eup %8145  ;;  %3408 = vadd.xlane.f32.xlu1 %v8126_v33  ;;  %v11445_v43 = vmax.f32 %v9241_v63, %v2627_v41   ;;  %v2928_v24 = vpack.c.bf16 %v11440_v39, %v8136_v16  ;;  %3161 = vmatmul.bf16.gmra.mxu0 %v2926_v35  ;;  %8149 = vpow2.f32 %v2852_v49 }
 0x41b   : >> { %3210 = vmatmul.bf16.gmra.mxu1 %v2927_v58  ;;  %v2929_v28 = vpack.c.bf16 %v11442_v50, %v11432_v5  ;;  %8151 = vpow2.f32 %v2854_v40 }
 0x41c   : >> { %v14030_v10 = vmov %v11445_v43  ;;  %3259 = vmatmul.bf16.gmra.mxu2 %v2928_v24  ;;  %8153 = vpow2.f32 %v2856_v55  ;;  %v14038_v24 = vld [vmem:[#allocation163_spill] sm:$0xff]  ;;  %v14040_v55 = vld [vmem:[#allocation166_spill] sm:$0xff] }
 0x41d   : >> { %v2758_v33 = vsub.f32 %v11170_v56, %v14030_v10  ;;  %v2759_v48 = vsub.f32 %v14031_v26, %v14030_v10  ;;  %v2760_v53 = vsub.f32 %v14032_v19, %v14030_v10  ;;  %3308 = vmatmul.bf16.gmra.mxu3 %v2929_v28  ;;  %v2761_v20 = vsub.f32 %v14033_v47, %v14030_v10  ;;  %v14039_v28 = vld [vmem:[#allocation165_spill] sm:$0xff] }
 0x41f   : >> { %v2858_v62 = vmul.f32 1.442695, %v2758_v33  ;;  %v2860_v23 = vmul.f32 1.442695, %v2759_v48  ;;  %v2862_v32 = vmul.f32 1.442695, %v2760_v53  ;;  %v8148_v35 = vpop.eup %8147 }
 0x420   : >> { %3474 = vadd.xlane.f32.xlu0 %v8136_v16  ;;  %v2864_v1 = vmul.f32 1.442695, %v2761_v20  ;;  %v11463_v41 = vpop.eup %8149  ;;  %v14037_v16 = vld [vmem:[#allocation164_spill] sm:$0xff] }
 0x421   : >> { %3410 = vadd.xlane.f32.xlu2 %v8134_v14  ;;  %v2632_v56 = vpop.xlane.xlu1 %2631  ;;  %8155 = vpow2.f32 %v2858_v62  ;;  %v8152_v22 = vpop.eup %8151 }
 0x422   : >> { %3346 = vadd.xlane.f32.xlu1 %v8132_v29  ;;  %v11461_v21 = vmax.f32 %v14034_v57, %v2632_v56   ;;  %8157 = vpow2.f32 %v2860_v23  ;;  %v8154_v14 = vpop.eup %8153  ;;  %v14041_v23 = vld [vmem:[#allocation156_spill] sm:$0xff] }
 0x423   : >> { %8159 = vpow2.f32 %v2862_v32 }
 0x424   : >> { %14035 = vst [vmem:[#allocation190_spill] sm:$0xff] %v11461_v21  ;;  %v14036_v44 = vmov %v11461_v21  ;;  %8161 = vpow2.f32 %v2864_v1 }
 0x425   : >> { %v2762_v43 = vsub.f32 %v14037_v16, %v14036_v44  ;;  %v2763_v29 = vsub.f32 %v14038_v24, %v14036_v44  ;;  %v2764_v40 = vsub.f32 %v14039_v28, %v14036_v44  ;;  %v2765_v33 = vsub.f32 %v14040_v55, %v14036_v44 }
 0x427   : >> { %v11471_v49 = vpop.eup %8155  ;;  %v2866_v20 = vmul.f32 1.442695, %v2762_v43  ;;  %v2872_v16 = vmul.f32 1.442695, %v2765_v33  ;;  %v14044_v43 = vld [vmem:[#allocation168_spill] sm:$0xff] }
 0x428   : >> { %v11477_v26 = vpop.eup %8157  ;;  %3412 = vadd.xlane.f32.xlu0 %v8142_v17  ;;  %v2930_v48 = vpack.c.bf16 %v11471_v49, %v8148_v35  ;;  %v2868_v17 = vmul.f32 1.442695, %v2763_v29  ;;  %v14047_v29 = vld [vmem:[#allocation170_spill] sm:$0xff] }
 0x429   : >> { %v11480_v19 = vpop.eup %8159  ;;  %3348 = vadd.xlane.f32.xlu2 %v8140_v18  ;;  %v2637_v53 = vpop.xlane.xlu2 %2636  ;;  %v2931_v47 = vpack.c.bf16 %v11477_v26, %v11463_v41  ;;  %v2870_v18 = vmul.f32 1.442695, %v2764_v40  ;;  %8163 = vpow2.f32 %v2866_v20 }
 0x42a   : >> { %v11484_v62 = vpop.eup %8161  ;;  %3538 = vadd.xlane.f32.xlu1 %v11432_v5  ;;  %v11488_v32 = vmax.f32 %v14041_v23, %v2637_v53   ;;  %v2932_v56 = vpack.c.bf16 %v11480_v19, %v8152_v22  ;;  %3166 = vmatmul.bf16.gmra.mxu0 %v2930_v48  ;;  %v14045_v5 = vld [vmem:[#allocation167_spill] sm:$0xff]  ;;  %v14046_v53 = vld [vmem:[#allocation169_spill] sm:$0xff]  ;;  %8165 = vpow2.f32 %v2868_v17 }
 0x42b   : >> { %3215 = vmatmul.bf16.gmra.mxu1 %v2931_v47  ;;  %v2933_v21 = vpack.c.bf16 %v11484_v62, %v8154_v14  ;;  %8167 = vpow2.f32 %v2870_v18 }
 0x42c   : >> { %14042 = vst [vmem:[#allocation191_spill] sm:$0xff] %v11488_v32  ;;  %v14043_v1 = vmov %v11488_v32  ;;  %3264 = vmatmul.bf16.gmra.mxu2 %v2932_v56  ;;  %8169 = vpow2.f32 %v2872_v16 }
 0x42d   : >> { %v2766_v28 = vsub.f32 %v14044_v43, %v14043_v1  ;;  %v2767_v55 = vsub.f32 %v14045_v5, %v14043_v1  ;;  %v2768_v32 = vsub.f32 %v14046_v53, %v14043_v1  ;;  %3313 = vmatmul.bf16.gmra.mxu3 %v2933_v21  ;;  %v2769_v48 = vsub.f32 %v14047_v29, %v14043_v1  ;;  %v14048_v5 = vld [vmem:[#allocation155_spill] sm:$0xff]  ;;  %v14053_v29 = vld [vmem:[#allocation173_spill] sm:$0xff] }
 0x42f   : >> { %v2874_v40 = vmul.f32 1.442695, %v2766_v28  ;;  %v2876_v33 = vmul.f32 1.442695, %v2767_v55  ;;  %v2878_v47 = vmul.f32 1.442695, %v2768_v32  ;;  %v11507_v53 = vpop.eup %8163 }
 0x430   : >> { %3350 = vadd.xlane.f32.xlu0 %v8148_v35  ;;  %v2880_v56 = vmul.f32 1.442695, %v2769_v48  ;;  %v8166_v17 = vpop.eup %8165 }
 0x431   : >> { %3540 = vadd.xlane.f32.xlu2 %v11442_v50  ;;  %v2642_v43 = vpop.xlane.xlu0 %2641  ;;  %8171 = vpow2.f32 %v2874_v40  ;;  %v11511_v35 = vpop.eup %8167  ;;  %v14051_v50 = vld [vmem:[#allocation172_spill] sm:$0xff]  ;;  %v14054_v40 = vld [vmem:[#allocation174_spill] sm:$0xff] }
 0x432   : >> { %3476 = vadd.xlane.f32.xlu1 %v11440_v39  ;;  %v11505_v21 = vmax.f32 %v14048_v5, %v2642_v43   ;;  %8173 = vpow2.f32 %v2876_v33  ;;  %v11515_v28 = vpop.eup %8169  ;;  %v14052_v39 = vld [vmem:[#allocation171_spill] sm:$0xff] }
 0x433   : >> { %8175 = vpow2.f32 %v2878_v47 }
 0x434   : >> { %14049 = vst [vmem:[#allocation159_spill] sm:$0xff] %v11505_v21  ;;  %v14050_v20 = vmov %v11505_v21  ;;  %8177 = vpow2.f32 %v2880_v56 }
 0x435   : >> { %v2770_v16 = vsub.f32 %v14051_v50, %v14050_v20  ;;  %v2771_v55 = vsub.f32 %v14052_v39, %v14050_v20  ;;  %v2772_v48 = vsub.f32 %v14053_v29, %v14050_v20  ;;  %v2773_v33 = vsub.f32 %v14054_v40, %v14050_v20  ;;  %v14055_v29 = vld [vmem:[#allocation154_spill] sm:$0xff] }
 0x437   : >> { %v11519_v32 = vpop.eup %8171  ;;  %v2882_v39 = vmul.f32 1.442695, %v2770_v16  ;;  %v2884_v40 = vmul.f32 1.442695, %v2771_v55  ;;  %v2886_v58 = vmul.f32 1.442695, %v2772_v48 }
 0x438   : >> { %v11525_v47 = vpop.eup %8173  ;;  %3542 = vadd.xlane.f32.xlu0 %v8154_v14  ;;  %v2934_v56 = vpack.c.bf16 %v11519_v32, %v11507_v53  ;;  %v2888_v15 = vmul.f32 1.442695, %v2773_v33 }
 0x439   : >> { %v11529_v43 = vpop.eup %8175  ;;  %3478 = vadd.xlane.f32.xlu2 %v8152_v22  ;;  %v2647_v21 = vpop.xlane.xlu1 %2646  ;;  %v2935_v50 = vpack.c.bf16 %v11525_v47, %v8166_v17  ;;  %8179 = vpow2.f32 %v2882_v39 }
 0x43a   : >> { %v11532_v18 = vpop.eup %8177  ;;  %3414 = vadd.xlane.f32.xlu1 %v11463_v41  ;;  %v11536_v24 = vmax.f32 %v14055_v29, %v2647_v21   ;;  %v2936_v14 = vpack.c.bf16 %v11529_v43, %v11511_v35  ;;  %3171 = vmatmul.bf16.gmra.mxu0 %v2934_v56  ;;  %v14057_v41 = vld [vmem:[#allocation176_spill] sm:$0xff]  ;;  %v14060_v56 = vld [vmem:[#allocation178_spill] sm:$0xff]  ;;  %8181 = vpow2.f32 %v2884_v40 }
 0x43b   : >> { %3220 = vmatmul.bf16.gmra.mxu1 %v2935_v50  ;;  %v2937_v22 = vpack.c.bf16 %v11532_v18, %v11515_v28  ;;  %8183 = vpow2.f32 %v2886_v58 }
 0x43c   : >> { %v14056_v38 = vmov %v11536_v24  ;;  %3269 = vmatmul.bf16.gmra.mxu2 %v2936_v14  ;;  %v14058_v24 = vld [vmem:[#allocation175_spill] sm:$0xff]  ;;  %8185 = vpow2.f32 %v2888_v15 }
 0x43d   : >> { %v2774_v31 = vsub.f32 %v14057_v41, %v14056_v38  ;;  %v2775_v21 = vsub.f32 %v14058_v24, %v14056_v38  ;;  %v2776_v55 = vsub.f32 %v14059_v34, %v14056_v38  ;;  %3318 = vmatmul.bf16.gmra.mxu3 %v2937_v22  ;;  %v2777_v50 = vsub.f32 %v14060_v56, %v14056_v38  ;;  %v14061_v34 = vld [vmem:[#allocation153_spill] sm:$0xff] }
 0x43f   : >> { %v2890_v48 = vmul.f32 1.442695, %v2774_v31  ;;  %v2892_v33 = vmul.f32 1.442695, %v2775_v21  ;;  %v2894_v16 = vmul.f32 1.442695, %v2776_v55  ;;  %v11558_v22 = vpop.eup %8179 }
 0x440   : >> { %3480 = vadd.xlane.f32.xlu0 %v11480_v19  ;;  %v2896_v14 = vmul.f32 1.442695, %v2777_v50  ;;  %v11560_v31 = vpop.eup %8181 }
 0x441   : >> { %3416 = vadd.xlane.f32.xlu2 %v11477_v26  ;;  %v2652_v41 = vpop.xlane.xlu2 %2651  ;;  %8187 = vpow2.f32 %v2890_v48  ;;  %v11564_v15 = vpop.eup %8183  ;;  %v14064_v26 = vld [vmem:[#allocation180_spill] sm:$0xff] }
 0x442   : >> { %3352 = vadd.xlane.f32.xlu1 %v11471_v49  ;;  %v11556_v39 = vmax.f32 %v14061_v34, %v2652_v41   ;;  %8189 = vpow2.f32 %v2892_v33  ;;  %v11568_v40 = vpop.eup %8185  ;;  %v14065_v49 = vld [vmem:[#allocation179_spill] sm:$0xff] }
 0x443   : >> { %8191 = vpow2.f32 %v2894_v16 }
 0x444   : >> { %14062 = vst [vmem:[#allocation160_spill] sm:$0xff] %v11556_v39  ;;  %v14063_v45 = vmov %v11556_v39  ;;  %8193 = vpow2.f32 %v2896_v14 }
 0x445   : >> { %v2778_v19 = vsub.f32 %v14064_v26, %v14063_v45  ;;  %v2779_v24 = vsub.f32 %v14065_v49, %v14063_v45  ;;  %v2780_v16 = vsub.f32 %v11299_v61, %v14063_v45  ;;  %v2781_v55 = vsub.f32 %v11301_v59, %v14063_v45  ;;  %v14066_v61 = vld [vmem:[#allocation152_spill] sm:$0xff] }
 0x447   : >> { %v11572_v21 = vpop.eup %8187  ;;  %v2898_v41 = vmul.f32 1.442695, %v2778_v19  ;;  %v2900_v26 = vmul.f32 1.442695, %v2779_v24  ;;  %v2902_v49 = vmul.f32 1.442695, %v2780_v16 }
 0x448   : >> { %v11578_v56 = vpop.eup %8189  ;;  %3418 = vadd.xlane.f32.xlu0 %v8166_v17  ;;  %v2938_v50 = vpack.c.bf16 %v11572_v21, %v11558_v22  ;;  %v2904_v58 = vmul.f32 1.442695, %v2781_v55 }
 0x449   : >> { %v11582_v48 = vpop.eup %8191  ;;  %3354 = vadd.xlane.f32.xlu2 %v11507_v53  ;;  %v2657_v33 = vpop.xlane.xlu0 %2656  ;;  %v2939_v14 = vpack.c.bf16 %v11578_v56, %v11560_v31  ;;  %8195 = vpow2.f32 %v2898_v41 }
 0x44a   : >> { %v11587_v39 = vpop.eup %8193  ;;  %3544 = vadd.xlane.f32.xlu1 %v11484_v62  ;;  %v11591_v59 = vmax.f32 %v14066_v61, %v2657_v33   ;;  %v2940_v17 = vpack.c.bf16 %v11582_v48, %v11564_v15  ;;  %3176 = vmatmul.bf16.gmra.mxu0 %v2938_v50  ;;  %8197 = vpow2.f32 %v2900_v26 }
 0x44b   : >> { %3225 = vmatmul.bf16.gmra.mxu1 %v2939_v14  ;;  %v2941_v53 = vpack.c.bf16 %v11587_v39, %v11568_v40  ;;  %8199 = vpow2.f32 %v2902_v49 }
 0x44c   : >> { %14067 = vst [vmem:[#allocation161_spill] sm:$0xff] %v11591_v59  ;;  %3274 = vmatmul.bf16.gmra.mxu2 %v2940_v17  ;;  %v2782_v62 = vsub.f32 %v11306_v60, %v11591_v59  ;;  %v2783_v33 = vsub.f32 %v11304_v36, %v11591_v59  ;;  %v2784_v24 = vsub.f32 %v11315_v46, %v11591_v59  ;;  %8201 = vpow2.f32 %v2904_v58  ;;  %v14069_v58 = vld [vmem:[#allocation109_spill] sm:$0xff] }
 0x44d   : >> { %3323 = vmatmul.bf16.gmra.mxu3 %v2941_v53  ;;  %v2785_v50 = vsub.f32 %v11317_v51, %v11591_v59  ;;  %v14068_v46 = vsub.f32 %v9277_v9, %v14016_v52  ;;  %v14070_v25 = vmov %v14069_v58 }
 0x44e   : >> { %v2906_v16 = vmul.f32 1.442695, %v2782_v62  ;;  %v2908_v55 = vmul.f32 1.442695, %v2783_v33  ;;  %v2910_v14 = vmul.f32 1.442695, %v2784_v24 }
 0x44f   : >> { %v2912_v60 = vmul.f32 1.442695, %v2785_v50  ;;  %v11610_v36 = vpop.eup %8195  ;;  %v2690_v51 = vmul.f32 1.442695, %v14068_v46  ;;  %v14073_v24 = vld [vmem:[#allocation110_spill] sm:$0xff] }
 0x450   : >> { %3356 = vadd.xlane.f32.xlu0 %v11519_v32  ;;  %8203 = vpow2.f32 %v2906_v16  ;;  %v11615_v17 = vpop.eup %8197  ;;  %v14074_v52 = vmov %v14073_v24 }
 0x451   : >> { %3546 = vadd.xlane.f32.xlu2 %v11515_v28  ;;  %8205 = vpow2.f32 %v2908_v55  ;;  %v11617_v32 = vpop.eup %8199 }
 0x452   : >> { %3482 = vadd.xlane.f32.xlu1 %v11511_v35  ;;  %8207 = vpow2.f32 %v2910_v14  ;;  %v11620_v49 = vpop.eup %8201  ;;  %v14071_v35 = vld [vmem:[#allocation108_spill] sm:$0xff] }
 0x453   : >> { %v3463_v41 = vpop.xlane.xlu0 %3462  ;;  %8209 = vpow2.f32 %v2912_v60  ;;  %v14072_v19 = vmov %v14071_v35 }
 0x454   : >> { %v3399_v26 = vpop.xlane.xlu2 %3398  ;;  %8211 = vpow2.f32 %v2690_v51  ;;  %v3494_v50 = vmul.f32 %v3463_v41, %v14073_v24  ;;  %v14076_v24 = vld [vmem:[#allocation111_spill] sm:$0xff] }
 0x455   : >> { %v3430_v28 = vmul.f32 %v3399_v26, %v14069_v58  ;;  %v3335_v53 = vpop.xlane.xlu1 %3334  ;;  %v14077_v45 = vmov %v14076_v24 }
 0x456   : >> { %v3366_v62 = vmul.f32 %v3335_v53, %v14071_v35  ;;  %v11623_v33 = vpop.eup %8203  ;;  %v14075_v53 = vsub.f32 %v9273_v8, %v11335_v2 }
 0x457   : >> { %v11625_v9 = vpop.eup %8205  ;;  %v2942_v55 = vpack.c.bf16 %v11623_v33, %v11610_v36 }
 0x458   : >> { %v3446_v16 = vadd.f32 %v3430_v28, %v3366_v62  ;;  %3548 = vadd.xlane.f32.xlu0 %v11532_v18  ;;  %v11631_v14 = vpop.eup %8207  ;;  %v2943_v60 = vpack.c.bf16 %v11625_v9, %v11615_v17  ;;  %v2692_v35 = vmul.f32 1.442695, %v14075_v53 }
 0x459   : >> { %3484 = vadd.xlane.f32.xlu2 %v11529_v43  ;;  %v11636_v46 = vpop.eup %8209  ;;  %v2944_v51 = vpack.c.bf16 %v11631_v14, %v11617_v32 }
 0x45a   : >> { %3420 = vadd.xlane.f32.xlu1 %v11525_v47  ;;  %v3510_v41 = vadd.f32 %v3494_v50, %v3446_v16  ;;  %3181 = vmatmul.bf16.gmra.mxu0 %v2942_v55  ;;  %v2945_v18 = vpack.c.bf16 %v11636_v46, %v11620_v49  ;;  %v8212_v28 = vpop.eup %8211  ;;  %8213 = vpow2.f32 %v2692_v35 }
 0x45b   : >> { %3230 = vmatmul.bf16.gmra.mxu1 %v2943_v60  ;;  %v3401_v26 = vpop.xlane.xlu0 %3400  ;;  %v14078_v60 = vld [vmem:[#allocation151_spill] sm:$0xff] }
 0x45c   : >> { %3279 = vmatmul.bf16.gmra.mxu2 %v2944_v51  ;;  %v3431_v43 = vmul.f32 %v3401_v26, %v14070_v25  ;;  %v3337_v58 = vpop.xlane.xlu2 %3336  ;;  %v3590_v59 = vmul.f32 %v14078_v60, %v8212_v28 }
 0x45d   : >> { %3328 = vmatmul.bf16.gmra.mxu3 %v2945_v18  ;;  %v3527_v47 = vpop.xlane.xlu1 %3526  ;;  %v3367_v62 = vmul.f32 %v3337_v58, %v14072_v19 }
 0x45e   : >> { %v3558_v50 = vmul.f32 %v3527_v47, %v14076_v24  ;;  %v14080_v47 = vld [vmem:[#allocation158_spill] sm:$0xff] }
 0x45f   : >> { %v3447_v16 = vadd.f32 %v3431_v43, %v3367_v62 }
 0x460   : >> { %v3574_v55 = vadd.f32 %v3558_v50, %v3510_v41  ;;  %3486 = vadd.xlane.f32.xlu0 %v11564_v15  ;;  %v8214_v53 = vpop.eup %8213  ;;  %v14081_v41 = vsub.f32 %v14080_v47, %v11348_v0 }
 0x461   : >> { %3422 = vadd.xlane.f32.xlu2 %v11560_v31 }
 0x462   : >> { %v11652_v51 = vadd.f32 %v3590_v59, %v3574_v55   ;;  %3358 = vadd.xlane.f32.xlu1 %v11558_v22  ;;  %v2694_v43 = vmul.f32 1.442695, %v14081_v41  ;;  %v14082_v59 = vld [vmem:[#allocation150_spill] sm:$0xff] }
 0x463   : >> { %v3339_v8 = vpop.xlane.xlu0 %3338  ;;  %v3591_v50 = vmul.f32 %v14082_v59, %v8214_v53 }
 0x464   : >> { %14079 = vst [vmem:[#allocation192_spill] sm:$0xff] %v11652_v51  ;;  %v3529_v18 = vpop.xlane.xlu2 %3528  ;;  %8215 = vpow2.f32 %v2694_v43 }
 0x465   : >> { %v3465_v26 = vpop.xlane.xlu1 %3464  ;;  %v3559_v15 = vmul.f32 %v3529_v18, %v14077_v45 }
 0x466   : >> { %v3495_v58 = vmul.f32 %v3465_v26, %v14074_v52  ;;  %v3196_v62 = vpop.f32.mrf.mxu1 }
 0x467   : >> { %v3147_v35 = vpop.f32.mrf.mxu0 }
 0x468   : >> { %v3511_v24 = vadd.f32 %v3495_v58, %v3447_v16  ;;  %3424 = vadd.xlane.f32.xlu0 %v11578_v56  ;;  %v3197_v31 = vadd.f32 %v3196_v62, %v3147_v35  ;;  %v3368_v16 = vmul.f32 %v3339_v8, %v14072_v19 }
 0x469   : >> { %3360 = vadd.xlane.f32.xlu2 %v11572_v21 }
 0x46a   : >> { %v3575_v22 = vadd.f32 %v3559_v15, %v3511_v24  ;;  %3550 = vadd.xlane.f32.xlu1 %v11568_v40  ;;  %v8216_v40 = vpop.eup %8215 }
 0x46b   : >> { %v3531_v55 = vpop.xlane.xlu0 %3530 }
 0x46c   : >> { %v11664_v60 = vadd.f32 %v3591_v50, %v3575_v22   ;;  %v3467_v51 = vpop.xlane.xlu2 %3466  ;;  %v3560_v35 = vmul.f32 %v3531_v55, %v14077_v45  ;;  %v14084_v22 = vld [vmem:[#allocation135_spill] sm:$0xff]  ;;  %v14085_v50 = vsub.f32 %v9265_v11, %v14020_v6 }
 0x46d   : >> { %v3403_v26 = vpop.xlane.xlu1 %3402  ;;  %v3496_v47 = vmul.f32 %v3467_v51, %v14074_v52  ;;  %v3622_v59 = vmul.f32 %v14084_v22, %v8212_v28 }
 0x46e   : >> { %14083 = vst [vmem:[#allocation193_spill] sm:$0xff] %v11664_v60  ;;  %v3432_v18 = vmul.f32 %v3403_v26, %v14070_v25  ;;  %v3245_v58 = vpop.f32.mrf.mxu2  ;;  %v3198_v56 = vpop.f32.mrf.mxu1  ;;  %v14086_v26 = vld [vmem:[#allocation149_spill] sm:$0xff] }
 0x46f   : >> { %v3246_v41 = vadd.f32 %v3245_v58, %v3197_v31  ;;  %v3294_v62 = vpop.f32.mrf.mxu3  ;;  %v3149_v24 = vpop.f32.mrf.mxu0  ;;  %v2696_v31 = vmul.f32 1.442695, %v14085_v50 }
 0x470   : >> { %v3448_v21 = vadd.f32 %v3432_v18, %v3368_v16  ;;  %3362 = vadd.xlane.f32.xlu0 %v11610_v36  ;;  %v3199_v43 = vadd.f32 %v3198_v56, %v3149_v24  ;;  %v3592_v36 = vmul.f32 %v14086_v26, %v8216_v40 }
 0x471   : >> { %3490 = vadd.xlane.f32.xlu2 %v11617_v32  ;;  %v3295_v8 = vadd.f32 %v3294_v62, %v3246_v41  ;;  %8217 = vpow2.f32 %v2696_v31 }
 0x472   : >> { %v3512_v15 = vadd.f32 %v3496_v47, %v3448_v21  ;;  %3488 = vadd.xlane.f32.xlu1 %v11582_v48 }
 0x473   : >> { %v3469_v60 = vpop.xlane.xlu0 %3468  ;;  %v11678_v58 = vadd.f32 %v3622_v59, %v3295_v8  }
 0x474   : >> { %v3576_v51 = vadd.f32 %v3560_v35, %v3512_v15  ;;  %v3405_v16 = vpop.xlane.xlu2 %3404  ;;  %v3497_v47 = vmul.f32 %v3469_v60, %v14074_v52  ;;  %v14089_v15 = vld [vmem:[#allocation134_spill] sm:$0xff] }
 0x475   : >> { %14087 = vst [vmem:[#allocation194_spill] sm:$0xff] %v11678_v58  ;;  %v3433_v32 = vmul.f32 %v3405_v16, %v14070_v25  ;;  %v3341_v56 = vpop.xlane.xlu1 %3340  ;;  %v3623_v35 = vmul.f32 %v14089_v15, %v8214_v53  ;;  %v14092_v16 = vld [vmem:[#allocation148_spill] sm:$0xff]  ;;  %v14096_v15 = vsub.f32 %v9257_v12, %v11387_v30 }
 0x476   : >> { %v11681_v55 = vadd.f32 %v3592_v36, %v3576_v51   ;;  %v3369_v28 = vmul.f32 %v3341_v56, %v14072_v19  ;;  %v3247_v48 = vpop.f32.mrf.mxu2 }
 0x477   : >> { %v3248_v21 = vadd.f32 %v3247_v48, %v3199_v43  ;;  %v3296_v41 = vpop.f32.mrf.mxu3  ;;  %v3152_v62 = vpop.f32.mrf.mxu0 }
 0x478   : >> { %14088 = vst [vmem:[#allocation195_spill] sm:$0xff] %v11681_v55  ;;  %v3449_v11 = vadd.f32 %v3433_v32, %v3369_v28  ;;  %3492 = vadd.xlane.f32.xlu0 %v11631_v14  ;;  %v3201_v24 = vpop.f32.mrf.mxu1  ;;  %v8218_v31 = vpop.eup %8217  ;;  %v14091_v14 = vsub.f32 %v9261_v13, %v14022_v3 }
 0x479   : >> { %3428 = vadd.xlane.f32.xlu2 %v11625_v9  ;;  %v3297_v58 = vadd.f32 %v3296_v41, %v3248_v21  ;;  %v3202_v8 = vadd.f32 %v3201_v24, %v3152_v62  ;;  %v3593_v32 = vmul.f32 %v14092_v16, %v8218_v31 }
 0x47a   : >> { %3426 = vadd.xlane.f32.xlu1 %v11615_v17  ;;  %v3513_v22 = vadd.f32 %v3497_v47, %v3449_v11  ;;  %v2698_v60 = vmul.f32 1.442695, %v14091_v14  ;;  %v14094_v47 = vld [vmem:[#allocation133_spill] sm:$0xff] }
 0x47b   : >> { %v3407_v59 = vpop.xlane.xlu0 %3406  ;;  %v11689_v24 = vadd.f32 %v3623_v35, %v3297_v58   ;;  %v3624_v11 = vmul.f32 %v14094_v47, %v8216_v40 }
 0x47c   : >> { %v3434_v50 = vmul.f32 %v3407_v59, %v14070_v25  ;;  %v3343_v43 = vpop.xlane.xlu2 %3342  ;;  %8219 = vpow2.f32 %v2698_v60 }
 0x47d   : >> { %14090 = vst [vmem:[#allocation196_spill] sm:$0xff] %v11689_v24  ;;  %v3533_v51 = vpop.xlane.xlu1 %3532  ;;  %v3370_v9 = vmul.f32 %v3343_v43, %v14072_v19 }
 0x47e   : >> { %v3561_v53 = vmul.f32 %v3533_v51, %v14077_v45  ;;  %v14098_v51 = vld [vmem:[#allocation147_spill] sm:$0xff] }
 0x47f   : >> { %v3450_v26 = vadd.f32 %v3434_v50, %v3370_v9  ;;  %v3250_v36 = vpop.f32.mrf.mxu2  ;;  %v3154_v28 = vpop.f32.mrf.mxu0 }
 0x480   : >> { %v3577_v17 = vadd.f32 %v3561_v53, %v3513_v22  ;;  %v3251_v56 = vadd.f32 %v3250_v36, %v3202_v8  ;;  %v3299_v55 = vpop.f32.mrf.mxu3  ;;  %3554 = vadd.xlane.f32.xlu0 %v11620_v49  ;;  %v3203_v48 = vpop.f32.mrf.mxu1 }
 0x481   : >> { %3552 = vadd.xlane.f32.xlu2 %v11587_v39  ;;  %v3204_v21 = vadd.f32 %v3203_v48, %v3154_v28  ;;  %v2700_v39 = vmul.f32 1.442695, %v14096_v15 }
 0x482   : >> { %v11700_v60 = vadd.f32 %v3593_v32, %v3577_v17   ;;  %v3300_v13 = vadd.f32 %v3299_v55, %v3251_v56  ;;  %3364 = vadd.xlane.f32.xlu1 %v11623_v33  ;;  %v8220_v49 = vpop.eup %8219  ;;  %v14097_v33 = vld [vmem:[#allocation132_spill] sm:$0xff] }
 0x483   : >> { %v3345_v41 = vpop.xlane.xlu0 %3344  ;;  %v3625_v43 = vmul.f32 %v14097_v33, %v8218_v31  ;;  %v3594_v9 = vmul.f32 %v14098_v51, %v8220_v49  ;;  %8221 = vpow2.f32 %v2700_v39 }
 0x484   : >> { %14093 = vst [vmem:[#allocation197_spill] sm:$0xff] %v11700_v60  ;;  %v11704_v32 = vadd.f32 %v3624_v11, %v3300_v13   ;;  %v3535_v62 = vpop.xlane.xlu2 %3534 }
 0x485   : >> { %v3471_v24 = vpop.xlane.xlu1 %3470  ;;  %v3562_v22 = vmul.f32 %v3535_v62, %v14077_v45 }
 0x486   : >> { %14095 = vst [vmem:[#allocation198_spill] sm:$0xff] %v11704_v32  ;;  %v3498_v58 = vmul.f32 %v3471_v24, %v14074_v52  ;;  %v3371_v32 = vmul.f32 %v3345_v41, %v14072_v19  ;;  %v14102_v41 = vsub.f32 %v9253_v42, %v11400_v4 }
 0x487   : >> { %v3252_v35 = vpop.f32.mrf.mxu2  ;;  %v3157_v50 = vpop.f32.mrf.mxu0 }
 0x488   : >> { %v3514_v8 = vadd.f32 %v3498_v58, %v3450_v26  ;;  %v3253_v40 = vadd.f32 %v3252_v35, %v3204_v21  ;;  %v3301_v59 = vpop.f32.mrf.mxu3  ;;  %v3206_v14 = vpop.f32.mrf.mxu1  ;;  %v14101_v21 = vld [vmem:[#allocation131_spill] sm:$0xff]  ;;  %v2702_v35 = vmul.f32 1.442695, %v14102_v41 }
 0x489   : >> { %v3207_v36 = vadd.f32 %v3206_v14, %v3157_v50  ;;  %v3626_v62 = vmul.f32 %v14101_v21, %v8220_v49 }
 0x48a   : >> { %v3578_v60 = vadd.f32 %v3562_v22, %v3514_v8  ;;  %v3302_v53 = vadd.f32 %v3301_v59, %v3253_v40  ;;  %3556 = vadd.xlane.f32.xlu1 %v11636_v46  ;;  %v8222_v46 = vpop.eup %8221  ;;  %v14103_v40 = vld [vmem:[#allocation146_spill] sm:$0xff]  ;;  %8223 = vpow2.f32 %v2702_v35 }
 0x48b   : >> { %v3537_v12 = vpop.xlane.xlu0 %3536  ;;  %v3595_v59 = vmul.f32 %v14103_v40, %v8222_v46 }
 0x48c   : >> { %v11714_v17 = vadd.f32 %v3594_v9, %v3578_v60   ;;  %v11716_v31 = vadd.f32 %v3625_v43, %v3302_v53   ;;  %v3473_v26 = vpop.xlane.xlu2 %3472 }
 0x48d   : >> { %v3409_v16 = vpop.xlane.xlu1 %3408  ;;  %v3499_v28 = vmul.f32 %v3473_v26, %v14074_v52 }
 0x48e   : >> { %14099 = vst [vmem:[#allocation199_spill] sm:$0xff] %v11714_v17  ;;  %v3435_v56 = vmul.f32 %v3409_v16, %v14070_v25  ;;  %v14106_v17 = vld [vmem:[#allocation130_spill] sm:$0xff] }
 0x48f   : >> { %14100 = vst [vmem:[#allocation200_spill] sm:$0xff] %v11716_v31  ;;  %v3255_v55 = vpop.f32.mrf.mxu2  ;;  %v3159_v11 = vpop.f32.mrf.mxu0  ;;  %v3563_v31 = vmul.f32 %v3537_v12, %v14077_v45  ;;  %v3627_v26 = vmul.f32 %v14106_v17, %v8222_v46 }
 0x490   : >> { %v3451_v48 = vadd.f32 %v3435_v56, %v3371_v32  ;;  %v3256_v13 = vadd.f32 %v3255_v55, %v3207_v36  ;;  %v3304_v47 = vpop.f32.mrf.mxu3  ;;  %v3208_v24 = vpop.f32.mrf.mxu1 }
 0x491   : >> { %v3209_v39 = vadd.f32 %v3208_v24, %v3159_v11 }
 0x492   : >> { %v3515_v58 = vadd.f32 %v3499_v28, %v3451_v48  ;;  %v3305_v15 = vadd.f32 %v3304_v47, %v3256_v13  ;;  %v8224_v48 = vpop.eup %8223  ;;  %v14108_v13 = vsub.f32 %v9249_v54, %v14026_v37  ;;  %v14111_v54 = vld [vmem:[#allocation129_spill] sm:$0xff] }
 0x493   : >> { %v3475_v8 = vpop.xlane.xlu0 %3474 }
 0x494   : >> { %v3579_v22 = vadd.f32 %v3563_v31, %v3515_v58  ;;  %v11727_v41 = vadd.f32 %v3626_v62, %v3305_v15   ;;  %v3411_v50 = vpop.xlane.xlu2 %3410  ;;  %v3500_v60 = vmul.f32 %v3475_v8, %v14074_v52  ;;  %v2704_v47 = vmul.f32 1.442695, %v14108_v13  ;;  %v14109_v31 = vld [vmem:[#allocation145_spill] sm:$0xff] }
 0x495   : >> { %v3436_v33 = vmul.f32 %v3411_v50, %v14070_v25  ;;  %v3347_v49 = vpop.xlane.xlu1 %3346  ;;  %v3596_v15 = vmul.f32 %v14109_v31, %v8224_v48 }
 0x496   : >> { %v14104_v0 = vmov %v11727_v41  ;;  %v11730_v40 = vadd.f32 %v3595_v59, %v3579_v22   ;;  %v3372_v43 = vmul.f32 %v3347_v49, %v14072_v19  ;;  %8225 = vpow2.f32 %v2704_v47 }
 0x497   : >> { %v3257_v14 = vpop.f32.mrf.mxu2  ;;  %v3162_v53 = vpop.f32.mrf.mxu0  ;;  %v14118_v47 = vsub.f32 %v9241_v63, %v14030_v10 }
 0x498   : >> { %14105 = vst [vmem:[#allocation201_spill] sm:$0xff] %v11730_v40  ;;  %v3452_v42 = vadd.f32 %v3436_v33, %v3372_v43  ;;  %v3258_v51 = vadd.f32 %v3257_v14, %v3209_v39  ;;  %v3306_v9 = vpop.f32.mrf.mxu3  ;;  %v3211_v36 = vpop.f32.mrf.mxu1  ;;  %v3628_v40 = vmul.f32 %v14111_v54, %v8224_v48  ;;  %v14113_v43 = vsub.f32 %v9245_v27, %v14029_v7 }
 0x499   : >> { %v3212_v16 = vadd.f32 %v3211_v36, %v3162_v53 }
 0x49a   : >> { %v3307_v12 = vadd.f32 %v3306_v9, %v3258_v51  ;;  %v3516_v32 = vadd.f32 %v3500_v60, %v3452_v42  ;;  %v2706_v60 = vmul.f32 1.442695, %v14113_v43  ;;  %v14120_v43 = vsub.f32 %v14034_v57, %v14036_v44 }
 0x49b   : >> { %v3413_v56 = vpop.xlane.xlu0 %3412 }
 0x49c   : >> { %v11735_v35 = vadd.f32 %v3627_v26, %v3307_v12   ;;  %v3437_v55 = vmul.f32 %v3413_v56, %v14070_v25  ;;  %v3349_v28 = vpop.xlane.xlu2 %3348  ;;  %v8226_v9 = vpop.eup %8225  ;;  %8227 = vpow2.f32 %v2706_v60  ;;  %v2710_v60 = vmul.f32 1.442695, %v14120_v43 }
 0x49d   : >> { %v3539_v11 = vpop.xlane.xlu1 %3538  ;;  %v3373_v21 = vmul.f32 %v3349_v28, %v14072_v19  ;;  %v14115_v28 = vld [vmem:[#allocation121_spill] sm:$0xff] }
 0x49e   : >> { %v14107_v4 = vmov %v11735_v35  ;;  %v3564_v62 = vmul.f32 %v3539_v11, %v14077_v45  ;;  %v3629_v27 = vmul.f32 %v14115_v28, %v8226_v9  ;;  %v2708_v11 = vmul.f32 1.442695, %v14118_v47 }
 0x49f   : >> { %v3453_v24 = vadd.f32 %v3437_v55, %v3373_v21  ;;  %v3260_v46 = vpop.f32.mrf.mxu2  ;;  %v3164_v35 = vpop.f32.mrf.mxu0 }
 0x4a0   : >> { %v3580_v58 = vadd.f32 %v3564_v62, %v3516_v32  ;;  %v3261_v39 = vadd.f32 %v3260_v46, %v3212_v16  ;;  %v3309_v41 = vpop.f32.mrf.mxu3  ;;  %v3213_v8 = vpop.f32.mrf.mxu1  ;;  %8229 = vpow2.f32 %v2708_v11 }
 0x4a1   : >> { %v3214_v59 = vadd.f32 %v3213_v8, %v3164_v35  ;;  %8231 = vpow2.f32 %v2710_v60 }
 0x4a2   : >> { %v11744_v50 = vadd.f32 %v3596_v15, %v3580_v58   ;;  %v3310_v22 = vadd.f32 %v3309_v41, %v3261_v39  ;;  %v8228_v58 = vpop.eup %8227 }
 0x4a3   : >> { %v3351_v33 = vpop.xlane.xlu0 %3350 }
 0x4a4   : >> { %14110 = vst [vmem:[#allocation202_spill] sm:$0xff] %v11744_v50  ;;  %v11747_v14 = vadd.f32 %v3628_v40, %v3310_v22   ;;  %v3541_v49 = vpop.xlane.xlu2 %3540  ;;  %v3374_v62 = vmul.f32 %v3351_v33, %v14072_v19 }
 0x4a5   : >> { %v3477_v42 = vpop.xlane.xlu1 %3476  ;;  %v3565_v50 = vmul.f32 %v3541_v49, %v14077_v45 }
 0x4a6   : >> { %v14112_v37 = vmov %v11747_v14  ;;  %v3501_v51 = vmul.f32 %v3477_v42, %v14074_v52  ;;  %v14114_v14 = vld [vmem:[#allocation144_spill] sm:$0xff] }
 0x4a7   : >> { %v3262_v53 = vpop.f32.mrf.mxu2  ;;  %v3167_v26 = vpop.f32.mrf.mxu0  ;;  %v3597_v56 = vmul.f32 %v14114_v14, %v8226_v9 }
 0x4a8   : >> { %v3517_v36 = vadd.f32 %v3501_v51, %v3453_v24  ;;  %v3263_v12 = vadd.f32 %v3262_v53, %v3214_v59  ;;  %v3311_v17 = vpop.f32.mrf.mxu3  ;;  %v3216_v16 = vpop.f32.mrf.mxu1  ;;  %v14119_v59 = vld [vmem:[#allocation128_spill] sm:$0xff]  ;;  %v14121_v51 = vld [vmem:[#allocation143_spill] sm:$0xff] }
 0x4a9   : >> { %v3217_v24 = vadd.f32 %v3216_v16, %v3167_v26  ;;  %v3630_v49 = vmul.f32 %v14119_v59, %v8228_v58  ;;  %v3598_v9 = vmul.f32 %v14121_v51, %v8228_v58  ;;  %v14131_v51 = vmov %v14050_v20 }
 0x4aa   : >> { %v3581_v32 = vadd.f32 %v3565_v50, %v3517_v36  ;;  %v3312_v55 = vadd.f32 %v3311_v17, %v3263_v12 }
 0x4ab   : >> { %v3543_v48 = vpop.xlane.xlu0 %3542 }
 0x4ac   : >> { %v11756_v36 = vadd.f32 %v3597_v56, %v3581_v32   ;;  %v11758_v55 = vadd.f32 %v3629_v27, %v3312_v55   ;;  %v3479_v13 = vpop.xlane.xlu2 %3478  ;;  %v3566_v63 = vmul.f32 %v3543_v48, %v14077_v45  ;;  %v8230_v32 = vpop.eup %8229 }
 0x4ad   : >> { %v3415_v21 = vpop.xlane.xlu1 %3414  ;;  %v3502_v15 = vmul.f32 %v3479_v13, %v14074_v52  ;;  %v14124_v13 = vld [vmem:[#allocation127_spill] sm:$0xff] }
 0x4ae   : >> { %14116 = vst [vmem:[#allocation203_spill] sm:$0xff] %v11756_v36  ;;  %v14117_v3 = vmov %v11758_v55  ;;  %v3438_v46 = vmul.f32 %v3415_v21, %v14070_v25  ;;  %v14126_v21 = vsub.f32 %v14041_v23, %v14043_v1 }
 0x4af   : >> { %v3265_v31 = vpop.f32.mrf.mxu2  ;;  %v3169_v8 = vpop.f32.mrf.mxu0  ;;  %14170 = vst [vmem:[#allocation121_spill] sm:$0xff] %v14117_v3 }
 0x4b0   : >> { %v3454_v39 = vadd.f32 %v3438_v46, %v3374_v62  ;;  %v3266_v41 = vadd.f32 %v3265_v31, %v3217_v24  ;;  %v3314_v35 = vpop.f32.mrf.mxu3  ;;  %v3218_v22 = vpop.f32.mrf.mxu1  ;;  %v2712_v62 = vmul.f32 1.442695, %v14126_v21  ;;  %v14135_v21 = vld [vmem:[#allocation125_spill] sm:$0xff] }
 0x4b1   : >> { %v3219_v12 = vadd.f32 %v3218_v22, %v3169_v8  ;;  %v8232_v46 = vpop.eup %8231  ;;  %v14127_v8 = vld [vmem:[#allocation142_spill] sm:$0xff] }
 0x4b2   : >> { %v3518_v54 = vadd.f32 %v3502_v15, %v3454_v39  ;;  %v3315_v40 = vadd.f32 %v3314_v35, %v3266_v41  ;;  %v3599_v22 = vmul.f32 %v14127_v8, %v8230_v32  ;;  %8233 = vpow2.f32 %v2712_v62 }
 0x4b3   : >> { %v3481_v33 = vpop.xlane.xlu0 %3480 }
 0x4b4   : >> { %v3582_v42 = vadd.f32 %v3566_v63, %v3518_v54  ;;  %v11772_v53 = vadd.f32 %v3630_v49, %v3315_v40   ;;  %v3417_v36 = vpop.xlane.xlu2 %3416  ;;  %v3503_v11 = vmul.f32 %v3481_v33, %v14074_v52 }
 0x4b5   : >> { %v3353_v50 = vpop.xlane.xlu1 %3352  ;;  %v3439_v26 = vmul.f32 %v3417_v36, %v14070_v25  ;;  %v14133_v36 = vsub.f32 %v14048_v5, %v14131_v51 }
 0x4b6   : >> { %v14122_v30 = vmov %v11772_v53  ;;  %v11774_v17 = vadd.f32 %v3598_v9, %v3582_v42   ;;  %v3375_v16 = vmul.f32 %v3353_v50, %v14072_v19  ;;  %v3631_v53 = vmul.f32 %v14124_v13, %v8230_v32 }
 0x4b7   : >> { %v3267_v14 = vpop.f32.mrf.mxu2  ;;  %v3172_v55 = vpop.f32.mrf.mxu0  ;;  %v14132_v9 = vmov %v14131_v51  ;;  %v2714_v50 = vmul.f32 1.442695, %v14133_v36  ;;  %v14139_v51 = vld [vmem:[#allocation120_spill] sm:$0xff] }
 0x4b8   : >> { %14123 = vst [vmem:[#allocation204_spill] sm:$0xff] %v11774_v17  ;;  %v3268_v56 = vadd.f32 %v3267_v14, %v3219_v12  ;;  %v3316_v57 = vpop.f32.mrf.mxu3  ;;  %v3221_v28 = vpop.f32.mrf.mxu1  ;;  %v3455_v27 = vadd.f32 %v3439_v26, %v3375_v16 }
 0x4b9   : >> { %v3222_v58 = vadd.f32 %v3221_v28, %v3172_v55  ;;  %8235 = vpow2.f32 %v2714_v50 }
 0x4ba   : >> { %v3317_v48 = vadd.f32 %v3316_v57, %v3268_v56  ;;  %v3519_v31 = vadd.f32 %v3503_v11, %v3455_v27  ;;  %v8234_v56 = vpop.eup %8233  ;;  %v14134_v11 = vld [vmem:[#allocation141_spill] sm:$0xff] }
 0x4bb   : >> { %v3419_v47 = vpop.xlane.xlu0 %3418  ;;  %v3633_v62 = vmul.f32 %v14135_v21, %v8234_v56 }
 0x4bc   : >> { %v11780_v15 = vadd.f32 %v3631_v53, %v3317_v48   ;;  %v3355_v17 = vpop.xlane.xlu2 %3354  ;;  %v3440_v23 = vmul.f32 %v3419_v47, %v14070_v25 }
 0x4bd   : >> { %v3545_v24 = vpop.xlane.xlu1 %3544  ;;  %v3376_v33 = vmul.f32 %v3355_v17, %v14072_v19  ;;  %v3600_v17 = vmul.f32 %v14134_v11, %v8232_v46 }
 0x4be   : >> { %v14125_v44 = vmov %v11780_v15  ;;  %v3567_v39 = vmul.f32 %v3545_v24, %v14077_v45  ;;  %v14128_v15 = vld [vmem:[#allocation126_spill] sm:$0xff] }
 0x4bf   : >> { %v3270_v41 = vpop.f32.mrf.mxu2  ;;  %v3174_v40 = vpop.f32.mrf.mxu0  ;;  %v3632_v59 = vmul.f32 %v14128_v15, %v8232_v46  ;;  %v3456_v16 = vadd.f32 %v3440_v23, %v3376_v33 }
 0x4c0   : >> { %v3583_v35 = vadd.f32 %v3567_v39, %v3519_v31  ;;  %v3271_v54 = vadd.f32 %v3270_v41, %v3222_v58  ;;  %v3319_v63 = vpop.f32.mrf.mxu3  ;;  %v3223_v49 = vpop.f32.mrf.mxu1  ;;  %v14138_v39 = vsub.f32 %v14055_v29, %v14056_v38 }
 0x4c1   : >> { %v3224_v32 = vadd.f32 %v3223_v49, %v3174_v40  ;;  %v8236_v46 = vpop.eup %8235 }
 0x4c2   : >> { %v11788_v26 = vadd.f32 %v3599_v22, %v3583_v35   ;;  %v3320_v43 = vadd.f32 %v3319_v63, %v3271_v54  ;;  %v2716_v41 = vmul.f32 1.442695, %v14138_v39  ;;  %v3634_v36 = vmul.f32 %v14139_v51, %v8236_v46  ;;  %v14142_v51 = vld [vmem:[#allocation160_spill] sm:$0xff] }
 0x4c3   : >> { %v3357_v60 = vpop.xlane.xlu0 %3356 }
 0x4c4   : >> { %14129 = vst [vmem:[#allocation205_spill] sm:$0xff] %v11788_v26  ;;  %v11792_v22 = vadd.f32 %v3632_v59, %v3320_v43   ;;  %v3547_v42 = vpop.xlane.xlu2 %3546  ;;  %v3377_v8 = vmul.f32 %v3357_v60, %v14072_v19  ;;  %8237 = vpow2.f32 %v2716_v41 }
 0x4c5   : >> { %v3483_v12 = vpop.xlane.xlu1 %3482  ;;  %v3568_v28 = vmul.f32 %v3547_v42, %v14077_v45 }
 0x4c6   : >> { %v14130_v1 = vmov %v11792_v22  ;;  %v3504_v14 = vmul.f32 %v3483_v12, %v14074_v52  ;;  %v14140_v12 = vld [vmem:[#allocation140_spill] sm:$0xff] }
 0x4c7   : >> { %v3272_v26 = vpop.f32.mrf.mxu2  ;;  %v3177_v13 = vpop.f32.mrf.mxu0 }
 0x4c8   : >> { %v3520_v55 = vadd.f32 %v3504_v14, %v3456_v16  ;;  %v3273_v27 = vadd.f32 %v3272_v26, %v3224_v32  ;;  %v3321_v48 = vpop.f32.mrf.mxu3  ;;  %v3226_v53 = vpop.f32.mrf.mxu1  ;;  %v3601_v16 = vmul.f32 %v14140_v12, %v8234_v56  ;;  %v14143_v26 = vsub.f32 %v14061_v34, %v14142_v51  ;;  %v14145_v34 = vld [vmem:[#allocation124_spill] sm:$0xff]  ;;  %v14232_v51 = vld [vmem:[#allocation204_spill] sm:$0xff] (%p11870_p3) }
 0x4c9   : >> { %v3227_v22 = vadd.f32 %v3226_v53, %v3177_v13 }
 0x4ca   : >> { %v3584_v47 = vadd.f32 %v3568_v28, %v3520_v55  ;;  %v3322_v5 = vadd.f32 %v3321_v48, %v3273_v27  ;;  %v2718_v55 = vmul.f32 1.442695, %v14143_v26  ;;  %v11823_v53 = vpop.eup %8237 }
 0x4cb   : >> { %v3549_v24 = vpop.xlane.xlu0 %3548 }
 0x4cc   : >> { %v11801_v58 = vadd.f32 %v3600_v17, %v3584_v47   ;;  %v11803_v62 = vadd.f32 %v3633_v62, %v3322_v5   ;;  %v3485_v31 = vpop.xlane.xlu2 %3484  ;;  %v3569_v29 = vmul.f32 %v3549_v24, %v14077_v45  ;;  %8239 = vpow2.f32 %v2718_v55 }
 0x4cd   : >> { %v3421_v35 = vpop.xlane.xlu1 %3420  ;;  %v3505_v40 = vmul.f32 %v3485_v31, %v14074_v52  ;;  %v3635_v24 = vmul.f32 %v14145_v34, %v11823_v53 }
 0x4ce   : >> { %14136 = vst [vmem:[#allocation206_spill] sm:$0xff] %v11801_v58  ;;  %v14137_v57 = vmov %v11803_v62  ;;  %v3441_v54 = vmul.f32 %v3421_v35, %v14070_v25 }
 0x4cf   : >> { %v3275_v63 = vpop.f32.mrf.mxu2  ;;  %v3179_v23 = vpop.f32.mrf.mxu0 }
 0x4d0   : >> { %v3457_v15 = vadd.f32 %v3441_v54, %v3377_v8  ;;  %v3276_v59 = vadd.f32 %v3275_v63, %v3227_v22  ;;  %v3324_v49 = vpop.f32.mrf.mxu3  ;;  %v3228_v33 = vpop.f32.mrf.mxu1 }
 0x4d1   : >> { %v3229_v27 = vadd.f32 %v3228_v33, %v3179_v23 }
 0x4d2   : >> { %v3521_v43 = vadd.f32 %v3505_v40, %v3457_v15  ;;  %v3325_v42 = vadd.f32 %v3324_v49, %v3276_v59  ;;  %v8240_v40 = vpop.eup %8239  ;;  %v14149_v49 = vld [vmem:[#allocation139_spill] sm:$0xff] }
 0x4d3   : >> { %v3487_v60 = vpop.xlane.xlu0 %3486  ;;  %v3602_v23 = vmul.f32 %v14149_v49, %v8236_v46 }
 0x4d4   : >> { %v3585_v50 = vadd.f32 %v3569_v29, %v3521_v43  ;;  %v11814_v32 = vadd.f32 %v3634_v36, %v3325_v42   ;;  %v3423_v14 = vpop.xlane.xlu2 %3422  ;;  %v3506_v31 = vmul.f32 %v3487_v60, %v14074_v52  ;;  %v14151_v36 = vld [vmem:[#allocation123_spill] sm:$0xff] }
 0x4d5   : >> { %v3359_v28 = vpop.xlane.xlu1 %3358  ;;  %v3442_v48 = vmul.f32 %v3423_v14, %v14070_v25  ;;  %v3636_v60 = vmul.f32 %v14151_v36, %v8240_v40  ;;  %v14156_v36 = vld [vmem:[#allocation138_spill] sm:$0xff] }
 0x4d6   : >> { %v14141_v5 = vmov %v11814_v32  ;;  %v11819_v16 = vadd.f32 %v3601_v16, %v3585_v50   ;;  %v3378_v13 = vmul.f32 %v3359_v28, %v14072_v19 }
 0x4d7   : >> { %v3277_v47 = vpop.f32.mrf.mxu2  ;;  %v3182_v17 = vpop.f32.mrf.mxu0  ;;  %14165 = vst [vmem:[#allocation120_spill] sm:$0xff] %v14141_v5 }
 0x4d8   : >> { %14144 = vst [vmem:[#allocation207_spill] sm:$0xff] %v11819_v16  ;;  %v3278_v11 = vadd.f32 %v3277_v47, %v3229_v27  ;;  %v3326_v56 = vpop.f32.mrf.mxu3  ;;  %v3231_v32 = vpop.f32.mrf.mxu1  ;;  %v3458_v21 = vadd.f32 %v3442_v48, %v3378_v13  ;;  %v14147_v47 = vld [vmem:[#allocation161_spill] sm:$0xff]  ;;  %v14153_v13 = vld [vmem:[#allocation122_spill] sm:$0xff] }
 0x4d9   : >> { %v14148_v41 = vsub.f32 %v14066_v61, %v14147_v47  ;;  %v3232_v22 = vadd.f32 %v3231_v32, %v3182_v17  ;;  %v14231_v47 = vld [vmem:[#allocation205_spill] sm:$0xff] (%p11870_p3) }
 0x4da   : >> { %v3327_v62 = vadd.f32 %v3326_v56, %v3278_v11  ;;  %v3522_v54 = vadd.f32 %v3506_v31, %v3458_v21 }
 0x4db   : >> { %v3425_v58 = vpop.xlane.xlu0 %3424  ;;  %v2720_v35 = vmul.f32 1.442695, %v14148_v41 }
 0x4dc   : >> { %v11828_v34 = vadd.f32 %v3635_v24, %v3327_v62   ;;  %v3361_v39 = vpop.xlane.xlu2 %3360  ;;  %v3443_v24 = vmul.f32 %v3425_v58, %v14070_v25 }
 0x4dd   : >> { %v3551_v8 = vpop.xlane.xlu1 %3550  ;;  %8241 = vpow2.f32 %v2720_v35  ;;  %v3379_v31 = vmul.f32 %v3361_v39, %v14072_v19 }
 0x4de   : >> { %v14146_v7 = vmov %v11828_v34  ;;  %v3570_v63 = vmul.f32 %v3551_v8, %v14077_v45 }
 0x4df   : >> { %v3280_v15 = vpop.f32.mrf.mxu2  ;;  %v3184_v61 = vpop.f32.mrf.mxu0 }
 0x4e0   : >> { %v3586_v59 = vadd.f32 %v3570_v63, %v3522_v54  ;;  %v3281_v33 = vadd.f32 %v3280_v15, %v3232_v22  ;;  %v3329_v43 = vpop.f32.mrf.mxu3  ;;  %v3233_v50 = vpop.f32.mrf.mxu1  ;;  %v3459_v22 = vadd.f32 %v3443_v24, %v3379_v31  ;;  %v14174_v31 = vld [vmem:[#allocation200_spill] sm:$0xff] }
 0x4e1   : >> { %v3234_v26 = vadd.f32 %v3233_v50, %v3184_v61  ;;  %v14176_v24 = vld [vmem:[#allocation196_spill] sm:$0xff]  ;;  %v14211_v31 = vmov (%p11870_p3), %v14146_v7 }
 0x4e2   : >> { %v11835_v29 = vadd.f32 %v3602_v23, %v3586_v59   ;;  %v3330_v42 = vadd.f32 %v3329_v43, %v3281_v33  ;;  %v14213_v24 = vmov (%p11870_p3), %v14137_v57 }
 0x4e3   : >> { %v3363_v12 = vpop.xlane.xlu0 %3362  ;;  %v8242_v55 = vpop.eup %8241 }
 0x4e4   : >> { %14150 = vst [vmem:[#allocation208_spill] sm:$0xff] %v11835_v29  ;;  %v11838_v49 = vadd.f32 %v3636_v60, %v3330_v42   ;;  %v3491_v16 = vpop.xlane.xlu2 %3490  ;;  %v3637_v11 = vmul.f32 %v14153_v13, %v8242_v55  ;;  %v3380_v62 = vmul.f32 %v3363_v12, %v14072_v19  ;;  %v14155_v29 = vld [vmem:[#allocation137_spill] sm:$0xff]  ;;  %v3603_v60 = vmul.f32 %v14156_v36, %v11823_v53  ;;  %v14186_v36 = vld [vmem:[#allocation203_spill] sm:$0xff]  ;;  %v14203_v13 = vld [vmem:[#allocation185_spill] sm:$0xff] }
 0x4e5   : >> { %v3489_v14 = vpop.xlane.xlu1 %3488  ;;  %v3508_v8 = vmul.f32 %v3491_v16, %v14074_v52  ;;  %v3604_v58 = vmul.f32 %v14155_v29, %v8240_v40  ;;  %v14169_v53 = vmov %v14122_v30  ;;  %v14189_v29 = vld [vmem:[#allocation199_spill] sm:$0xff]  ;;  %v14223_v36 = vld [vmem:[#allocation196_spill] sm:$0xff] (%p11870_p3) }
 0x4e6   : >> { %v14152_v6 = vmov %v11838_v49  ;;  %v3507_v35 = vmul.f32 %v3489_v14, %v14074_v52 }
 0x4e7   : >> { %v3282_v28 = vpop.f32.mrf.mxu2 }
 0x4e8   : >> { %v3283_v27 = vadd.f32 %v3282_v28, %v3234_v26  ;;  %v3331_v46 = vpop.f32.mrf.mxu3  ;;  %v3523_v49 = vadd.f32 %v3507_v35, %v3459_v22  ;;  %v14167_v22 = vmov %v14130_v1  ;;  %v14172_v35 = vmov %v14107_v4 }
 0x4ea   : >> { %v3332_v48 = vadd.f32 %v3331_v46, %v3283_v27  ;;  %v14159_v27 = vld [vmem:[#allocation136_spill] sm:$0xff] }
 0x4eb   : >> { %v3493_v56 = vpop.xlane.xlu0 %3492  ;;  %v3605_v46 = vmul.f32 %v14159_v27, %v8242_v55  ;;  %v14199_v27 = vld [vmem:[#allocation189_spill] sm:$0xff] }
 0x4ec   : >> { %v11841_v17 = vadd.f32 %v3637_v11, %v3332_v48   ;;  %v3429_v32 = vpop.xlane.xlu2 %3428  ;;  %v3509_v16 = vmul.f32 %v3493_v56, %v14074_v52  ;;  %v14183_v56 = vld [vmem:[#allocation206_spill] sm:$0xff]  ;;  %v14193_v48 = vld [vmem:[#allocation192_spill] sm:$0xff]  ;;  %v14238_v27 = vld [vmem:[#allocation195_spill] sm:$0xff] (%p11870_p3) }
 0x4ed   : >> { %v3427_v21 = vpop.xlane.xlu1 %3426  ;;  %v3445_v61 = vmul.f32 %v3429_v32, %v14070_v25  ;;  %v14175_v32 = vld [vmem:[#allocation198_spill] sm:$0xff]  ;;  %v14204_v11 = vld [vmem:[#allocation184_spill] sm:$0xff]  ;;  %v14220_v56 = vmov (%p11870_p3), %v14104_v0 }
 0x4ee   : >> { %v14154_v18 = vmov %v11841_v17  ;;  %v3444_v34 = vmul.f32 %v3427_v21, %v14070_v25  ;;  %v14185_v17 = vld [vmem:[#allocation204_spill] sm:$0xff]  ;;  %v14212_v32 = vmov (%p11870_p3), %v14141_v5  ;;  %v14230_v48 = vld [vmem:[#allocation206_spill] sm:$0xff] (%p11870_p3) }
 0x4ef   : > { %v14209_v35 = vmov (%p11870_p3), %v14154_v18  ;;  %v14222_v17 = vld [vmem:[#allocation198_spill] sm:$0xff] (%p11870_p3) }
 0x4f0   : >> { %v3460_v41 = vadd.f32 %v3444_v34, %v3380_v62  ;;  %v14164_v34 = vmov %v14146_v7  ;;  %v14166_v62 = vmov %v14137_v57 }
 0x4f2   : >> { %v3524_v63 = vadd.f32 %v3508_v8, %v3460_v41  ;;  %v14173_v41 = vmov %v14104_v0  ;;  %v14206_v8 = vld [vmem:[#allocation182_spill] sm:$0xff] }
 0x4f3   : >> { %v3555_v54 = vpop.xlane.xlu0 %3554  ;;  %v14210_v41 = vmov (%p11870_p3), %v14152_v6 }
 0x4f4   : >> { %v3572_v15 = vmul.f32 %v3555_v54, %v14077_v45  ;;  %v3553_v59 = vpop.xlane.xlu2 %3552  ;;  %v14200_v54 = vld [vmem:[#allocation188_spill] sm:$0xff] }
 0x4f5   : >> { %v3571_v23 = vmul.f32 %v3553_v59, %v14077_v45  ;;  %v3365_v33 = vpop.xlane.xlu1 %3364  ;;  %v14197_v59 = vld [vmem:[#allocation190_spill] sm:$0xff]  ;;  %v14239_v54 = vld [vmem:[#allocation193_spill] sm:$0xff] (%p11870_p3) }
 0x4f6   : >> { %v3588_v43 = vadd.f32 %v3572_v15, %v3524_v63  ;;  %v3381_v39 = vmul.f32 %v3365_v33, %v14072_v19  ;;  %v14168_v15 = vmov %v14125_v44  ;;  %v14181_v33 = vld [vmem:[#allocation208_spill] sm:$0xff]  ;;  %v14198_v63 = vmov %v14030_v10  ;;  %v14205_v10 = vld [vmem:[#allocation183_spill] sm:$0xff] }
 0x4f7   : >> { %v3587_v42 = vadd.f32 %v3571_v23, %v3523_v49  ;;  %v14163_v49 = vmov %v14152_v6  ;;  %v14218_v33 = vmov (%p11870_p3), %v14112_v37  ;;  %v14236_v59 = vld [vmem:[#allocation199_spill] sm:$0xff] (%p11870_p3)  ;;  %v14237_v63 = vld [vmem:[#allocation197_spill] sm:$0xff] (%p11870_p3) }
 0x4f8   : >> { %v11856_v21 = vadd.f32 %v3604_v58, %v3588_v43   ;;  %v3461_v12 = vadd.f32 %v3445_v61, %v3381_v39  ;;  %v14162_v39 = vmov %v14154_v18  ;;  %v14177_v58 = vld [vmem:[#allocation194_spill] sm:$0xff]  ;;  %v14191_v43 = vld [vmem:[#allocation195_spill] sm:$0xff]  ;;  %v14195_v61 = vmov %v14132_v9  ;;  %v14207_v9 = vld [vmem:[#allocation181_spill] sm:$0xff] }
 0x4f9   : >> { %v11858_v50 = vadd.f32 %v3603_v60, %v3587_v42   ;;  %v14190_v60 = vld [vmem:[#allocation197_spill] sm:$0xff]  ;;  %v14201_v42 = vld [vmem:[#allocation187_spill] sm:$0xff]  ;;  %v14214_v58 = vmov (%p11870_p3), %v14130_v1  ;;  %v14228_v43 = vld [vmem:[#allocation208_spill] sm:$0xff] (%p11870_p3) }
 0x4fa   : >> { %v14157_v20 = vmov %v11856_v21  ;;  %v3525_v26 = vadd.f32 %v3509_v16, %v3461_v12  ;;  %v14182_v16 = vld [vmem:[#allocation207_spill] sm:$0xff]  ;;  %v14202_v12 = vld [vmem:[#allocation186_spill] sm:$0xff]  ;;  %v14240_v42 = vld [vmem:[#allocation192_spill] sm:$0xff] (%p11870_p3) }
 0x4fb   : >> { %v14158_v2 = vmov %v11858_v50  ;;  %v14179_v21 = vmov %v14157_v20  ;;  %v14187_v50 = vld [vmem:[#allocation202_spill] sm:$0xff]  ;;  %v14219_v16 = vmov (%p11870_p3), %v14107_v4  ;;  %v14226_v29 = vmov (%p11870_p3), %v14157_v20 }
 0x4fc   : >> { %v14180_v55 = vmov %v14158_v2  ;;  %v14216_v21 = vmov (%p11870_p3), %v14122_v30  ;;  %v14224_v50 = vld [vmem:[#allocation194_spill] sm:$0xff] (%p11870_p3)  ;;  %v14227_v60 = vmov (%p11870_p3), %v14158_v2 }
 0x4fd   : >> { %v3557_v14 = vpop.xlane.xlu1 %3556  ;;  %v14217_v55 = vmov (%p11870_p3), %v14117_v3  ;;  %v14234_v61 = vld [vmem:[#allocation202_spill] sm:$0xff] (%p11870_p3) }
 0x4fe   : >> { %v3573_v28 = vmul.f32 %v3557_v14, %v14077_v45  ;;  %v14171_v14 = vmov %v14112_v37 }
 0x500   : >> { %v3589_v40 = vadd.f32 %v3573_v28, %v3525_v26  ;;  %v14184_v26 = vld [vmem:[#allocation205_spill] sm:$0xff] }
 0x501   : >> { %v14192_v28 = vld [vmem:[#allocation193_spill] sm:$0xff]  ;;  %1875 = sbr.rel (!%p11870_p3) target bundleno = 644 (0x284), region = 145  ;;  %v14221_v26 = vld [vmem:[#allocation200_spill] sm:$0xff] (%p11870_p3) }
 0x502   : >> { %v11863_v23 = vadd.f32 %v3605_v46, %v3589_v40   ;;  %v14188_v40 = vld [vmem:[#allocation201_spill] sm:$0xff]  ;;  %v14194_v46 = vmov %v14056_v38  ;;  %v14196_v38 = vld [vmem:[#allocation191_spill] sm:$0xff] }
 0x503   : > { %v14229_v28 = vld [vmem:[#allocation207_spill] sm:$0xff] (%p11870_p3)  ;;  %v14235_v38 = vld [vmem:[#allocation201_spill] sm:$0xff] (%p11870_p3) }
 0x504   : >> { %v14160_v19 = vmov %v11863_v23  ;;  %v14233_v46 = vld [vmem:[#allocation203_spill] sm:$0xff] (%p11870_p3) }
 0x505   : >> { %v14178_v23 = vmov %v14160_v19  ;;  %v14225_v40 = vmov (%p11870_p3), %v14160_v19 }
 0x506   : > { %v14215_v23 = vmov %v14125_v44 }
 0x507 PF: > { %v6796_v52 = vld [vmem:[#allocation13 + $0x38] sm:$0xff]  ;;  %v12204_v2 = vmax.f32 %v9409_v42, 1e-30  ;;  %v12206_v0 = vmax.f32 %v9405_v54, 1e-30  ;;  %v6795_v6 = vld [vmem:[#allocation13 + $0x30] sm:$0xff]  ;;  %v9409_v42 = vphi %v10640_v42, %v14240_v42   ;;  %v9405_v54 = vphi %v10638_v54, %v14239_v54   ;;  %v9401_v27 = vphi %v10636_v27, %v14238_v27   ;;  %v9397_v63 = vphi %v10634_v63, %v14237_v63   ;;  %v9393_v59 = vphi %v10632_v59, %v14236_v59   ;;  %v9389_v38 = vphi %v10630_v38, %v14235_v38   ;;  %v9385_v61 = vphi %v10628_v61, %v14234_v61   ;;  %v9381_v46 = vphi %v10626_v46, %v14233_v46   ;;  %v9377_v51 = vphi %v10624_v51, %v14232_v51   ;;  %v9373_v47 = vphi %v10622_v47, %v14231_v47   ;;  %v9369_v48 = vphi %v10620_v48, %v14230_v48   ;;  %v9365_v28 = vphi %v10618_v28, %v14229_v28   ;;  %v9361_v43 = vphi %v10616_v43, %v14228_v43   ;;  %v9357_v60 = vphi %v10614_v60, %v14227_v60   ;;  %v9353_v29 = vphi %v10612_v29, %v14226_v29   ;;  %v9349_v40 = vphi %v10610_v40, %v14225_v40   ;;  %v9345_v50 = vphi %v10608_v50, %v14224_v50   ;;  %v9341_v36 = vphi %v10606_v36, %v14223_v36   ;;  %v9337_v17 = vphi %v10604_v17, %v14222_v17   ;;  %v9333_v26 = vphi %v10602_v26, %v14221_v26   ;;  %v9329_v56 = vphi %v10600_v56, %v14220_v56   ;;  %v9325_v16 = vphi %v10598_v16, %v14219_v16   ;;  %v9321_v33 = vphi %v10596_v33, %v14218_v33   ;;  %v9317_v55 = vphi %v10594_v55, %v14217_v55   ;;  %v9313_v21 = vphi %v10592_v21, %v14216_v21   ;;  %v9309_v23 = vphi %v10590_v23, %v14215_v23   ;;  %v9305_v58 = vphi %v10588_v58, %v14214_v58   ;;  %v9301_v24 = vphi %v10586_v24, %v14213_v24   ;;  %v9297_v32 = vphi %v10584_v32, %v14212_v32   ;;  %v9293_v31 = vphi %v10582_v31, %v14211_v31   ;;  %v9289_v41 = vphi %v10580_v41, %v14210_v41   ;;  %v9285_v35 = vphi %v10578_v35, %v14209_v35  }
 0x508   : > { %3982 = vmatpush.bf16.msra.mxu0 %v6796_v52  ;;  %7252 = vmatpush.bf16.msra.mxu3 %v6796_v52  ;;  %v12210_v45 = vmax.f32 %v9393_v59, 1e-30  ;;  %v12212_v3 = vmax.f32 %v9389_v38, 1e-30  ;;  %v12214_v44 = vmax.f32 %v9401_v27, 1e-30 }
 0x509   : > { %8243 = vrcp.f32 %v12204_v2  ;;  %v6794_v30 = vld [vmem:[#allocation13 + $0x28] sm:$0xff]  ;;  %v3679_v4 = vand.u32 2147483647, %v12204_v2  ;;  %v12219_v25 = vmax.f32 %v9397_v63, 1e-30  ;;  %vm3675_vm1 = vweird.f32 %v12204_v2  ;;  %v6793_v1 = vld [vmem:[#allocation13 + $0x20] sm:$0xff] }
 0x50a   : > { %8245 = vrcp.f32 %v12206_v0  ;;  %v3681_v10 = vand.u32 2147483648, %v12204_v2  ;;  %vm3690_vm2 = vweird.f32 %v12206_v0  ;;  %v3694_v19 = vand.u32 2147483647, %v12206_v0  ;;  %v6792_v54 = vld [vmem:[#allocation13 + $0x18] sm:$0xff]  ;;  %s6845_s14 = sshll.u32 %s9499_s12, 7  ;;  %s5658_s4 = sshll.u32 %s10570_s3, 4  ;;  %s5659_s4 = int_to_ptr.vmem [resolvable:$true] %s5658_s4 }
 0x50b   : > { %8247 = vrcp.f32 %v12210_v45  ;;  %v3696_v18 = vand.u32 2147483648, %v12206_v0  ;;  %vm12235_vm3 = vcmp.eq.f32.partialorder %v3679_v4, 8.507059e+37  ;;  %vm3735_vm4 = vweird.f32 %v12210_v45  ;;  %s5657_s11 = scalar_lea.hbm %s13648_s8, %s6845_s14  ;;  %s5646_s16 = scalar_lea.sflag [#allocation6], %s9633_s26 }
 0x50c   : > { %3983 = vmatpush.bf16.msra.mxu0 %v6795_v6  ;;  %7253 = vmatpush.bf16.msra.mxu3 %v6795_v6  ;;  %8249 = vrcp.f32 %v12212_v3  ;;  %v3739_v13 = vand.u32 2147483647, %v12210_v45  ;;  %v3741_v11 = vand.u32 2147483648, %v12210_v45  ;;  %vm3750_vm7 = vweird.f32 %v12212_v3  ;;  %s5660_s5 = sshll.u32 %s5657_s11, 4  ;;  %s8695_s22 = scalar_lea.hbm %s13648_s8, 256  ;;  %s5661_s5 = int_to_ptr.hbm [resolvable:$true] %s5660_s5 }
 0x50d   : > { %8251 = vrcp.f32 %v12214_v44  ;;  %v3754_v59 = vand.u32 2147483647, %v12212_v3  ;;  %v3756_v49 = vand.u32 2147483648, %v12212_v3  ;;  %v12275_v6 = vmax.f32 %v9385_v61, 1e-30  ;;  %s8689_s12 = sshra.s32 %s5661_s5, 4  ;;  %s8690_s12 = int_to_ptr.hbm [resolvable:$true] %s8689_s12 }
 0x50e   : > { %8253 = vrcp.f32 %v12219_v25  ;;  %v3682_v4 = vor.u32 1.1754944e-38, %v3681_v10  ;;  %vm12279_vm12 = vcmp.eq.f32.partialorder %v3694_v19, 8.507059e+37  ;;  %vm12293_vm14 = vcmp.eq.f32.partialorder %v3739_v13, 8.507059e+37  ;;  %s8691_s15 = scalar_lea.hbm %s8690_s12, 128  ;;  %p8696_p5 = scmp.lt.s32.totalorder %s8690_s12, %s13648_s8 }
 0x50f   : > { %v12221_v37 = vpop.eup %8243  ;;  %v3742_v19 = vor.u32 1.1754944e-38, %v3741_v11  ;;  %vm3755_vm0 = vcmp.eq.f32.partialorder %v3754_v59, 8.507059e+37  ;;  %8255 = vrcp.f32 %v12275_v6  ;;  %v3709_v42 = vand.u32 2147483647, %v12214_v44  ;;  %p8692_p12 = scmp.ne.s32.totalorder %s8690_s12, %s8691_s15  ;;  %p8697_p8 = scmp.lt.s32.totalorder %s8695_s22, %s8691_s15 }
 0x510   : > { %v12224_v7 = vpop.eup %8245  ;;  %v3671_v38 = vmul.f32 %v12221_v37, %v12204_v2  ;;  %3984 = vmatpush.bf16.msra.mxu0 %v6794_v30  ;;  %7254 = vmatpush.bf16.msra.mxu3 %v6794_v30  ;;  %vm3676_vm5 = vweird.f32 %v12221_v37 }
 0x511   : > { %v3686_v20 = vmul.f32 %v12224_v7, %v12206_v0  ;;  %v8248_v5 = vpop.eup %8247  ;;  %vm3691_vm6 = vweird.f32 %v12224_v7  ;;  %vm12259_vm8 = vmor %vm3675_vm1, %vm3676_vm5  ;;  %vm3705_vm1 = vweird.f32 %v12214_v44  ;;  %vm3765_vm5 = vweird.f32 %v12275_v6  ;;  %p8693_p7 = pnand %p8692_p12, %p9577_p4  ;;  %p8698_p10 = por %p8697_p8, %p8696_p5 }
 0x512   : > { %v3672_v57 = vsub.f32 1.0, %v3671_v38  ;;  %v8250_v62 = vpop.eup %8249  ;;  %v3731_v8 = vmul.f32 %v8248_v5, %v12210_v45  ;;  %vm3736_vm9 = vweird.f32 %v8248_v5  ;;  %vm12268_vm11 = vmor %vm3690_vm2, %vm3691_vm6  ;;  %vm3720_vm2 = vweird.f32 %v12219_v25 }
 0x513   : > { %v3687_v53 = vsub.f32 1.0, %v3686_v20  ;;  %v12248_v22 = vpop.eup %8251  ;;  %v3746_v15 = vmul.f32 %v8250_v62, %v12212_v3  ;;  %vm3751_vm10 = vweird.f32 %v8250_v62  ;;  %v6791_v20 = vld [vmem:[#allocation13 + $0x10] sm:$0xff]  ;;  %vm12289_vm13 = vmor %vm3735_vm4, %vm3736_vm9  ;;  %v12315_v3 = vmax.f32 %v9381_v46, 1e-30  ;;  %p8694_p9 = pneg %p8693_p7 }
 0x514   : > { %v3673_v34 = vmul.f32 %v12221_v37, %v3672_v57  ;;  %3985 = vmatpush.bf16.msra.mxu0 %v6793_v1  ;;  %7255 = vmatpush.bf16.msra.mxu3 %v6793_v1  ;;  %v3732_v12 = vsub.f32 1.0, %v3731_v8  ;;  %v3701_v2 = vmul.f32 %v12248_v22, %v12214_v44  ;;  %v12277_v30 = vpop.eup %8253  ;;  %v3697_v1 = vor.u32 1.1754944e-38, %v3696_v18  ;;  %vm12303_vm15 = vmor %vm3750_vm7, %vm3751_vm10 }
 0x515   : > { %v3688_v63 = vmul.f32 %v12224_v7, %v3687_v53  ;;  %v3747_v52 = vsub.f32 1.0, %v3746_v15  ;;  %v3716_v11 = vmul.f32 %v12277_v30, %v12219_v25  ;;  %8257 = vrcp.f32 %v12315_v3  ;;  %p8699_p13 = pnand %p8698_p10, %p8694_p9 }
 0x516   : > { %v3674_v39 = vadd.f32 %v12221_v37, %v3673_v34  ;;  %v3733_v0 = vmul.f32 %v8248_v5, %v3732_v12  ;;  %v3702_v8 = vsub.f32 1.0, %v3701_v2  ;;  %v12328_v12 = vmax.f32 %v9377_v51, 1e-30  ;;  %v6789_v2 = vld [vmem:[#allocation13] sm:$0xff] }
 0x517   : > { %v3689_v14 = vadd.f32 %v12224_v7, %v3688_v63  ;;  %v3748_v18 = vmul.f32 %v8250_v62, %v3747_v52  ;;  %v6790_v63 = vld [vmem:[#allocation13 + $0x8] sm:$0xff]  ;;  %v3726_v51 = vand.u32 2147483648, %v12219_v25  ;;  %vm3721_vm4 = vweird.f32 %v12277_v30 }
 0x518   : > { %3986 = vmatpush.bf16.msra.mxu0 %v6792_v54  ;;  %7256 = vmatpush.bf16.msra.mxu3 %v6792_v54  ;;  %v3678_v57 = vsel %vm12259_vm8, %v12221_v37, %v3674_v39  ;;  %v3734_v34 = vadd.f32 %v8248_v5, %v3733_v0  ;;  %v3757_v37 = vor.u32 1.1754944e-38, %v3756_v49  ;;  %v3717_v39 = vsub.f32 1.0, %v3716_v11  ;;  %vm12365_vm9 = vmor %vm3720_vm2, %vm3721_vm4 }
 0x519   : > { %v3693_v53 = vsel %vm12268_vm11, %v12224_v7, %v3689_v14  ;;  %v3749_v13 = vadd.f32 %v8250_v62, %v3748_v18  ;;  %v3683_v7 = vsel %vm12235_vm3, %v3682_v4, %v3678_v57  ;;  %v3703_v46 = vmul.f32 %v12248_v22, %v3702_v8 }
 0x51a   : > { %v3738_v54 = vsel %vm12289_vm13, %v8248_v5, %v3734_v34  ;;  %v3698_v15 = vsel %vm12279_vm12, %v3697_v1, %v3693_v53  ;;  %v3684_v5 = vmul.f32 %v9345_v50, %v3683_v7  ;;  %v3711_v50 = vand.u32 2147483648, %v12214_v44 }
 0x51b   : > { %v3743_v59 = vsel %vm12293_vm14, %v3742_v19, %v3738_v54  ;;  %v3753_v49 = vsel %vm12303_vm15, %v8250_v62, %v3749_v13  ;;  %v3699_v14 = vmul.f32 %v9341_v36, %v3698_v15  ;;  %v8256_v62 = vpop.eup %8255  ;;  %v3724_v4 = vand.u32 2147483647, %v12219_v25 }
 0x51c   : > { %3987 = vmatpush.bf16.msra.mxu0 %v6791_v20  ;;  %7257 = vmatpush.bf16.msra.mxu3 %v6791_v20  ;;  %v3758_v9 = vsel %vm3755_vm0, %v3757_v37, %v3753_v49  ;;  %v3744_v27 = vmul.f32 %v9329_v56, %v3743_v59  ;;  %vm3706_vm3 = vweird.f32 %v12248_v22  ;;  %v3718_v56 = vmul.f32 %v12277_v30, %v3717_v39  ;;  %v8258_v61 = vpop.eup %8257 }
 0x51d   : > { %v3759_v52 = vmul.f32 %v9325_v16, %v3758_v9  ;;  %v3761_v36 = vmul.f32 %v8256_v62, %v12275_v6  ;;  %v12342_v16 = vmax.f32 %v9373_v47, 1e-30  ;;  %v3704_v38 = vadd.f32 %v12248_v22, %v3703_v46  ;;  %vm12350_vm7 = vmor %vm3705_vm1, %vm3706_vm3 }
 0x51e   : > { %8259 = vrcp.f32 %v12328_v12  ;;  %v3910_v1 = vpack.c.bf16 %v3699_v14, %v3684_v5  ;;  %vm3766_vm6 = vweird.f32 %v8256_v62  ;;  %v3771_v47 = vand.u32 2147483648, %v12275_v6 }
 0x51f   : > { %v3912_v0 = vpack.c.bf16 %v3759_v52, %v3744_v27  ;;  %v3762_v20 = vsub.f32 1.0, %v3761_v36  ;;  %8261 = vrcp.f32 %v12342_v16  ;;  %vm12356_vm8 = vcmp.eq.f32.partialorder %v3709_v42, 8.507059e+37  ;;  %vm12377_vm11 = vmor %vm3765_vm5, %vm3766_vm6 }
 0x520   : > { %3988 = vmatpush.bf16.msra.mxu0 %v6790_v63  ;;  %7258 = vmatpush.bf16.msra.mxu3 %v6790_v63  ;;  %v3719_v19 = vadd.f32 %v12277_v30, %v3718_v56  ;;  %v3769_v53 = vand.u32 2147483647, %v12275_v6  ;;  %v3712_v34 = vor.u32 1.1754944e-38, %v3711_v50  ;;  %vm12370_vm10 = vcmp.eq.f32.partialorder %v3724_v4, 8.507059e+37 }
 0x521   : > { %v3763_v18 = vmul.f32 %v8256_v62, %v3762_v20  ;;  %v3727_v37 = vor.u32 1.1754944e-38, %v3726_v51  ;;  %v3776_v25 = vmul.f32 %v8258_v61, %v12315_v3  ;;  %v3708_v8 = vsel %vm12350_vm7, %v12248_v22, %v3704_v38 }
 0x522   : > { %v3784_v7 = vand.u32 2147483647, %v12315_v3  ;;  %v3786_v54 = vand.u32 2147483648, %v12315_v3  ;;  %v3772_v15 = vor.u32 1.1754944e-38, %v3771_v47  ;;  %vm3780_vm12 = vweird.f32 %v12315_v3 }
 0x523   : > { %v3764_v11 = vadd.f32 %v8256_v62, %v3763_v18  ;;  %v3777_v6 = vsub.f32 1.0, %v3776_v25  ;;  %vm3781_vm13 = vweird.f32 %v8258_v61  ;;  %v3723_v59 = vsel %vm12365_vm9, %v12277_v30, %v3719_v19 }
 0x524   : > { %3989 = vmatpush.bf16.msra.mxu0 %v6789_v2  ;;  %7259 = vmatpush.bf16.msra.mxu3 %v6789_v2  ;;  %v8260_v63 = vpop.eup %8259  ;;  %vm3770_vm14 = vcmp.eq.f32.partialorder %v3769_v53, 8.507059e+37  ;;  %v3713_v39 = vsel %vm12356_vm8, %v3712_v34, %v3708_v8  ;;  %vm12396_vm15 = vmor %vm3780_vm12, %vm3781_vm13  ;;  %vm3785_vm0 = vcmp.eq.f32.partialorder %v3784_v7, 8.507059e+37  ;;  %v3787_v3 = vor.u32 1.1754944e-38, %v3786_v54 }
 0x525   : > { %v3768_v49 = vsel %vm12377_vm11, %v8256_v62, %v3764_v11  ;;  %v3791_v22 = vmul.f32 %v8260_v63, %v12328_v12  ;;  %v8262_v9 = vpop.eup %8261  ;;  %v3778_v5 = vmul.f32 %v8258_v61, %v3777_v6  ;;  %v12402_v30 = vmax.f32 %v9369_v48, 1e-30 }
 0x526   : > { %v3806_v42 = vmul.f32 %v8262_v9, %v12342_v16  ;;  %v3728_v14 = vsel %vm12370_vm10, %v3727_v37, %v3723_v59  ;;  %v3773_v27 = vsel %vm3770_vm14, %v3772_v15, %v3768_v49  ;;  %v12407_v62 = vmax.f32 %v9365_v28, 1e-30 }
 0x527   : > { %3990 = vmatmul.bf16.vlgmr.msra.gmra.mxu0 %v3910_v1  ;;  %4000 = vmatmul.bf16.vlgmr.msra.gmra.mxu3 %v3912_v0  ;;  %v3779_v52 = vadd.f32 %v8258_v61, %v3778_v5  ;;  %v3792_v2 = vsub.f32 1.0, %v3791_v22  ;;  %v3714_v4 = vmul.f32 %v9337_v17, %v3713_v39  ;;  %v3729_v56 = vmul.f32 %v9333_v26, %v3728_v14 }
 0x528   : > { %v3807_v50 = vsub.f32 1.0, %v3806_v42  ;;  %v3774_v48 = vmul.f32 %v9321_v33, %v3773_v27  ;;  %8263 = vrcp.f32 %v12402_v30  ;;  %vm3795_vm1 = vweird.f32 %v12328_v12 }
 0x529   : > { %v3783_v51 = vsel %vm12396_vm15, %v8258_v61, %v3779_v52  ;;  %8265 = vrcp.f32 %v12407_v62  ;;  %v3793_v28 = vmul.f32 %v8260_v63, %v3792_v2  ;;  %vm3796_vm2 = vweird.f32 %v8260_v63 }
 0x52a   : > { %v3788_v36 = vsel %vm3785_vm0, %v3787_v3, %v3783_v51  ;;  %v3808_v1 = vmul.f32 %v8262_v9, %v3807_v50  ;;  %v3911_v17 = vpack.c.bf16 %v3729_v56, %v3714_v4  ;;  %vm3810_vm3 = vweird.f32 %v12342_v16  ;;  %vm12423_vm5 = vmor %vm3795_vm1, %vm3796_vm2 }
 0x52b   : > { %v3789_v38 = vmul.f32 %v9317_v55, %v3788_v36  ;;  %vm3811_vm4 = vweird.f32 %v8262_v9  ;;  %v3799_v26 = vand.u32 2147483647, %v12328_v12  ;;  %v3801_v33 = vand.u32 2147483648, %v12328_v12 }
 0x52c   : > { %v3814_v20 = vand.u32 2147483647, %v12342_v16  ;;  %v3816_v55 = vand.u32 2147483648, %v12342_v16  ;;  %v3794_v47 = vadd.f32 %v8260_v63, %v3793_v28  ;;  %v3809_v10 = vadd.f32 %v8262_v9, %v3808_v1  ;;  %vm3812_vm6 = vmor %vm3810_vm3, %vm3811_vm4 }
 0x52d   : > { %v3913_v0 = vpack.c.bf16 %v3789_v38, %v3774_v48  ;;  %vm3800_vm7 = vcmp.eq.f32.partialorder %v3799_v26, 8.507059e+37  ;;  %v3802_v44 = vor.u32 1.1754944e-38, %v3801_v33  ;;  %v12432_v45 = vmax.f32 %v9361_v43, 1e-30 }
 0x52e   : > { %v8264_v57 = vpop.eup %8263  ;;  %vm3815_vm8 = vcmp.eq.f32.partialorder %v3814_v20, 8.507059e+37  ;;  %v3817_v18 = vor.u32 1.1754944e-38, %v3816_v55  ;;  %v3798_v12 = vsel %vm12423_vm5, %v8260_v63, %v3794_v47  ;;  %v3813_v53 = vsel %vm3812_vm6, %v8262_v9, %v3809_v10 }
 0x52f   : > { %v8266_v19 = vpop.eup %8265  ;;  %v3821_v16 = vmul.f32 %v8264_v57, %v12402_v30  ;;  %v3803_v37 = vsel %vm3800_vm7, %v3802_v44, %v3798_v12  ;;  %v12435_v25 = vmax.f32 %v9357_v60, 1e-30  ;;  %8267 = vrcp.f32 %v12432_v45 }
 0x530   : > { %v3836_v34 = vmul.f32 %v8266_v19, %v12407_v62  ;;  %v3818_v13 = vsel %vm3815_vm8, %v3817_v18, %v3813_v53  ;;  %v3804_v7 = vmul.f32 %v9313_v21, %v3803_v37  ;;  %vm3825_vm9 = vweird.f32 %v12402_v30 }
 0x531   : > { %v3822_v8 = vsub.f32 1.0, %v3821_v16  ;;  %v3819_v54 = vmul.f32 %v9309_v23, %v3818_v13  ;;  %8269 = vrcp.f32 %v12435_v25  ;;  %vm3826_vm10 = vweird.f32 %v8264_v57 }
 0x532   : > { %v3837_v11 = vsub.f32 1.0, %v3836_v34  ;;  %vm3840_vm11 = vweird.f32 %v12407_v62  ;;  %vm3841_vm12 = vweird.f32 %v8266_v19  ;;  %v3829_v60 = vand.u32 2147483647, %v12402_v30  ;;  %vm3827_vm13 = vmor %vm3825_vm9, %vm3826_vm10 }
 0x533   : > { %v3823_v63 = vmul.f32 %v8264_v57, %v3822_v8  ;;  %v3914_v43 = vpack.c.bf16 %v3819_v54, %v3804_v7  ;;  %v3831_v6 = vand.u32 2147483648, %v12402_v30  ;;  %v3844_v21 = vand.u32 2147483647, %v12407_v62  ;;  %vm3842_vm14 = vmor %vm3840_vm11, %vm3841_vm12 }
 0x534   : > { %v3838_v15 = vmul.f32 %v8266_v19, %v3837_v11  ;;  %v3846_v23 = vand.u32 2147483648, %v12407_v62  ;;  %vm3830_vm15 = vcmp.eq.f32.partialorder %v3829_v60, 8.507059e+37  ;;  %v3668_v14 = vmax.f32 %v9353_v29, 1e-30 }
 0x535   : > { %v8268_v59 = vpop.eup %8267  ;;  %v3824_v49 = vadd.f32 %v8264_v57, %v3823_v63  ;;  %v3832_v39 = vor.u32 1.1754944e-38, %v3831_v6  ;;  %vm3845_vm0 = vcmp.eq.f32.partialorder %v3844_v21, 8.507059e+37  ;;  %v3669_v62 = vmax.f32 %v9349_v40, 1e-30  ;;  %v14269_v21 = vld [vmem:[#allocation98_spill] sm:$0xff] }
 0x536   : > { %v3839_v22 = vadd.f32 %v8266_v19, %v3838_v15  ;;  %v3847_v5 = vor.u32 1.1754944e-38, %v3846_v23  ;;  %v3851_v42 = vmul.f32 %v8268_v59, %v12432_v45  ;;  %8271 = vrcp.f32 %v3668_v14 }
 0x537   : > { %3995 = vmatmul.bf16.gmra.mxu0 %v3911_v17  ;;  %4005 = vmatmul.bf16.gmra.mxu3 %v3913_v0  ;;  %v8270_v9 = vpop.eup %8269  ;;  %v3828_v46 = vsel %vm3827_vm13, %v8264_v57, %v3824_v49  ;;  %8273 = vrcp.f32 %v3669_v62  ;;  %vm3855_vm1 = vweird.f32 %v12432_v45  ;;  %vm3856_vm2 = vweird.f32 %v8268_v59 }
 0x538   : > { %v3843_v3 = vsel %vm3842_vm14, %v8266_v19, %v3839_v22  ;;  %v3866_v30 = vmul.f32 %v8270_v9, %v12435_v25  ;;  %v3833_v27 = vsel %vm3830_vm15, %v3832_v39, %v3828_v46  ;;  %v3852_v2 = vsub.f32 1.0, %v3851_v42  ;;  %vm3857_vm5 = vmor %vm3855_vm1, %vm3856_vm2  ;;  %v14270_v22 = vld [vmem:[#allocation93_spill] sm:$0xff]  ;;  %v14273_v42 = vld [vmem:[#allocation96_spill] sm:$0xff] }
 0x539   : > { %v3848_v52 = vsel %vm3845_vm0, %v3847_v5, %v3843_v3  ;;  %v3834_v4 = vmul.f32 %v9305_v58, %v3833_v27  ;;  %vm3870_vm3 = vweird.f32 %v12435_v25  ;;  %vm3871_vm4 = vweird.f32 %v8270_v9  ;;  %v14272_v5 = vld [vmem:[#allocation97_spill] sm:$0xff] }
 0x53a   : > { %v3867_v50 = vsub.f32 1.0, %v3866_v30  ;;  %v3849_v51 = vmul.f32 %v9301_v24, %v3848_v52  ;;  %v3853_v56 = vmul.f32 %v8268_v59, %v3852_v2  ;;  %v3859_v29 = vand.u32 2147483647, %v12432_v45  ;;  %vm3872_vm6 = vmor %vm3870_vm3, %vm3871_vm4  ;;  %v14275_v27 = vld [vmem:[#allocation105_spill] sm:$0xff] }
 0x53b   : > { %v3861_v40 = vand.u32 2147483648, %v12432_v45  ;;  %v3874_v38 = vand.u32 2147483647, %v12435_v25  ;;  %v3876_v58 = vand.u32 2147483648, %v12435_v25  ;;  %vm3885_vm9 = vweird.f32 %v3668_v14 }
 0x53c   : > { %v3868_v48 = vmul.f32 %v8270_v9, %v3867_v50  ;;  %v3915_v36 = vpack.c.bf16 %v3849_v51, %v3834_v4  ;;  %v8272_v24 = vpop.eup %8271  ;;  %v3854_v28 = vadd.f32 %v8268_v59, %v3853_v56  ;;  %vm3860_vm7 = vcmp.eq.f32.partialorder %v3859_v29, 8.507059e+37  ;;  %v14276_v4 = vld [vmem:[#allocation104_spill] sm:$0xff] }
 0x53d   : > { %v8274_v17 = vpop.eup %8273  ;;  %v3862_v0 = vor.u32 1.1754944e-38, %v3861_v40  ;;  %vm3875_vm8 = vcmp.eq.f32.partialorder %v3874_v38, 8.507059e+37  ;;  %v3877_v26 = vor.u32 1.1754944e-38, %v3876_v58  ;;  %v3881_v55 = vmul.f32 %v8272_v24, %v3668_v14  ;;  %v14279_v58 = vld [vmem:[#allocation103_spill] sm:$0xff] }
 0x53e   : > { %v3869_v1 = vadd.f32 %v8270_v9, %v3868_v48  ;;  %v3858_v33 = vsel %vm3857_vm5, %v8268_v59, %v3854_v28  ;;  %v3896_v57 = vmul.f32 %v8274_v17, %v3669_v62  ;;  %vm3886_vm10 = vweird.f32 %v8272_v24  ;;  %v14278_v48 = vld [vmem:[#allocation106_spill] sm:$0xff] }
 0x53f   : > { %v3863_v47 = vsel %vm3860_vm7, %v3862_v0, %v3858_v33  ;;  %v3882_v10 = vsub.f32 1.0, %v3881_v55  ;;  %vm3900_vm11 = vweird.f32 %v3669_v62  ;;  %vm3901_vm12 = vweird.f32 %v8274_v17  ;;  %vm3887_vm13 = vmor %vm3885_vm9, %vm3886_vm10 }
 0x540   : > { %v3873_v20 = vsel %vm3872_vm6, %v8270_v9, %v3869_v1  ;;  %v3897_v19 = vsub.f32 1.0, %v3896_v57  ;;  %v3864_v44 = vmul.f32 %v9297_v32, %v3863_v47  ;;  %v3891_v34 = vand.u32 2147483648, %v3668_v14  ;;  %vm3902_vm14 = vmor %vm3900_vm11, %vm3901_vm12 }
 0x541   : > { %v3878_v61 = vsel %vm3875_vm8, %v3877_v26, %v3873_v20  ;;  %v3883_v12 = vmul.f32 %v8272_v24, %v3882_v10  ;;  %v3906_v45 = vand.u32 2147483648, %v3669_v62  ;;  %v3889_v13 = vand.u32 2147483647, %v3668_v14  ;;  %v14283_v20 = vld [vmem:[#allocation95_spill] sm:$0xff] }
 0x542   : > { %v3879_v18 = vmul.f32 %v9293_v31, %v3878_v61  ;;  %v3898_v53 = vmul.f32 %v8274_v17, %v3897_v19  ;;  %v3904_v8 = vand.u32 2147483647, %v3669_v62  ;;  %v3892_v11 = vor.u32 1.1754944e-38, %v3891_v34  ;;  %v14285_v61 = vld [vmem:[#allocation99_spill] sm:$0xff] }
 0x543   : > { %v3884_v37 = vadd.f32 %v8272_v24, %v3883_v12  ;;  %v3907_v32 = vor.u32 1.1754944e-38, %v3906_v45  ;;  %vm3890_vm15 = vcmp.eq.f32.partialorder %v3889_v13, 8.507059e+37  ;;  %v14289_v34 = vld [vmem:[#allocation91_spill] sm:$0xff] }
 0x544   : > { %v3916_v16 = vpack.c.bf16 %v3879_v18, %v3864_v44  ;;  %v3899_v25 = vadd.f32 %v8274_v17, %v3898_v53  ;;  %vm3905_vm0 = vcmp.eq.f32.partialorder %v3904_v8, 8.507059e+37  ;;  %v14287_v18 = vld [vmem:[#allocation101_spill] sm:$0xff] }
 0x545   : > { %v3888_v7 = vsel %vm3887_vm13, %v8272_v24, %v3884_v37 }
 0x546   : > { %v3903_v31 = vsel %vm3902_vm14, %v8274_v17, %v3899_v25  ;;  %v3893_v54 = vsel %vm3890_vm15, %v3892_v11, %v3888_v7  ;;  %v14281_v17 = vld [vmem:[#allocation92_spill] sm:$0xff]  ;;  %v14291_v25 = vld [vmem:[#allocation94_spill] sm:$0xff] }
 0x547   : > { %4010 = vmatmul.bf16.gmra.mxu3 %v3914_v43  ;;  %v3908_v63 = vsel %vm3905_vm0, %v3907_v32, %v3903_v31  ;;  %v3894_v15 = vmul.f32 %v9289_v41, %v3893_v54  ;;  %v14293_v7 = vld [vmem:[#allocation100_spill] sm:$0xff] }
 0x548   : > { %v3909_v43 = vmul.f32 %v9285_v35, %v3908_v63  ;;  %v6567_v63 = vld [vmem:[#allocation15 + $0xe0] sm:$0xf] }
 0x54a   : > { %v3917_v60 = vpack.c.bf16 %v3909_v43, %v3894_v15  ;;  %v6827_v15 = vld [vmem:[#allocation15 + $0xec] sm:$0xf0]  ;;  %v6575_v43 = vld [vmem:[#allocation15 + $0xe8] sm:$0xf] }
 0x557   : > { %4015 = vmatmul.bf16.gmra.mxu3 %v3915_v36 }
 0x567   : > { %4020 = vmatmul.bf16.gmra.mxu3 %v3916_v16 }
 0x577   : > { %4025 = vmatmul.bf16.gmra.mxu3 %v3917_v60  ;;  %v6568_v60 = vor.u32 %v6827_v15, %v6567_v63  ;;  %v6808_v15 = vld [vmem:[#allocation15 + $0x54] sm:$0xf0] }
 0x579   : > { %4503 = vmatpush.bf16.msrb.mxu0 %v6568_v60  ;;  %7260 = vmatpush.bf16.msra.mxu1 %v6568_v60  ;;  %v6809_v60 = vld [vmem:[#allocation15 + $0x64] sm:$0xf] }
 0x5a4   : > { %v3991_v6 = vpop.f32.mrf.mxu0 }
 0x5a5   : > { %v12464_v23 = vadd.f32 %v3991_v6, %v14269_v21  ;;  %v6828_v6 = vld [vmem:[#allocation15 + $0xf4] sm:$0xf0] }
 0x5a6   : > { %v6576_v21 = vor.u32 %v6828_v6, %v6575_v43  ;;  %v6505_v6 = vld [vmem:[#allocation15 + $0x70] sm:$0xf0] }
 0x5a7   : > { %v4047_v59 = vmul.f32 %v12464_v23, %v12464_v23 }
 0x5a8   : > { %4601 = vmatpush.bf16.msrb.mxu3 %v6576_v21  ;;  %v6508_v21 = vor.u32 %v6809_v60, %v6505_v6 }
 0x5a9   : > { %4063 = vadd.xlane.f32.xlu0 %v4047_v59  ;;  %v6551_v59 = vld [vmem:[#allocation15 + $0xc0] sm:$0xf] }
 0x5aa   : > { %v4001_v49 = vpop.f32.mrf.mxu3 }
 0x5ab   : > { %v12469_v9 = vadd.f32 %v4001_v49, %v14270_v22  ;;  %v6823_v49 = vld [vmem:[#allocation15 + $0xcc] sm:$0xf0]  ;;  %v6559_v22 = vld [vmem:[#allocation15 + $0xc8] sm:$0xf] }
 0x5ac   : > { %v3993_v39 = vpop.f32.mrf.mxu0 }
 0x5ad   : > { %14271 = vst [vmem:[#allocation27_spill] sm:$0xff] %v12469_v9  ;;  %v12472_v46 = vadd.f32 %v3993_v39, %v14272_v5  ;;  %v4051_v41 = vmul.f32 %v12469_v9, %v12469_v9  ;;  %v6552_v5 = vor.u32 %v6823_v49, %v6551_v59  ;;  %v6471_v59 = vld [vmem:[#allocation15 + $0x20] sm:$0xf]  ;;  %v6803_v49 = vld [vmem:[#allocation15 + $0x2c] sm:$0xf0] }
 0x5af   : > { %4071 = vadd.xlane.f32.xlu2 %v4051_v41  ;;  %v4048_v35 = vmul.f32 %v12472_v46, %v12472_v46  ;;  %v6824_v41 = vld [vmem:[#allocation15 + $0xd4] sm:$0xf0]  ;;  %4504 = vmatpush.bf16.msrb.mxu0 %v6552_v5 }
 0x5b0   : > { %7261 = vmatpush.bf16.msra.mxu1 %v6552_v5  ;;  %v6804_v5 = vld [vmem:[#allocation15 + $0x34] sm:$0xf0] }
 0x5b1   : > { %4065 = vadd.xlane.f32.xlu0 %v4048_v35  ;;  %v14295_v35 = vld [vmem:[#allocation102_spill] sm:$0xff] }
 0x5b2   : > { %v4003_v3 = vpop.f32.mrf.mxu3 }
 0x5b3   : > { %v12479_v30 = vadd.f32 %v4003_v3, %v14273_v42  ;;  %v6560_v42 = vor.u32 %v6824_v41, %v6559_v22  ;;  %v6479_v22 = vld [vmem:[#allocation15 + $0x28] sm:$0xf] }
 0x5b4   : > { %v3996_v14 = vpop.f32.mrf.mxu0  ;;  %v6480_v41 = vor.u32 %v6804_v5, %v6479_v22 }
 0x5b5   : > { %14274 = vst [vmem:[#allocation28_spill] sm:$0xff] %v12479_v30  ;;  %v12482_v52 = vadd.f32 %v3996_v14, %v14275_v27  ;;  %v4052_v62 = vmul.f32 %v12479_v30, %v12479_v30  ;;  %v6825_v14 = vld [vmem:[#allocation15 + $0xe4] sm:$0xf]  ;;  %v6569_v27 = vld [vmem:[#allocation15 + $0xf0] sm:$0xf0]  ;;  %4602 = vmatpush.bf16.msrb.mxu3 %v6560_v42 }
 0x5b6   : > { %v6489_v42 = vld [vmem:[#allocation15 + $0x50] sm:$0xf0] }
 0x5b7   : > { %4073 = vadd.xlane.f32.xlu2 %v4052_v62  ;;  %v4049_v2 = vmul.f32 %v12482_v52, %v12482_v52  ;;  %v12541_v62 = vor.u32 %v6825_v14, %v6569_v27  ;;  %v6455_v27 = vld [vmem:[#allocation15] sm:$0xf] }
 0x5b9   : > { %4067 = vadd.xlane.f32.xlu1 %v4049_v2  ;;  %7268 = vmatpush.bf16.msra.mxu2 %v12541_v62 }
 0x5ba   : > { %v4006_v50 = vpop.f32.mrf.mxu3 }
 0x5bb   : > { %v12489_v51 = vadd.f32 %v4006_v50, %v14276_v4  ;;  %v6535_v50 = vld [vmem:[#allocation15 + $0xa0] sm:$0xf]  ;;  %v6819_v4 = vld [vmem:[#allocation15 + $0xac] sm:$0xf0] }
 0x5bc   : > { %v3998_v56 = vpop.f32.mrf.mxu0 }
 0x5bd   : > { %14277 = vst [vmem:[#allocation29_spill] sm:$0xff] %v12489_v51  ;;  %v12492_v36 = vadd.f32 %v3998_v56, %v14278_v48  ;;  %v4053_v29 = vmul.f32 %v12489_v51, %v12489_v51  ;;  %v6543_v56 = vld [vmem:[#allocation15 + $0xa8] sm:$0xf]  ;;  %v6536_v48 = vor.u32 %v6819_v4, %v6535_v50 }
 0x5be   : > { %v6463_v50 = vld [vmem:[#allocation15 + $0x8] sm:$0xf] }
 0x5bf   : > { %4075 = vadd.xlane.f32.xlu0 %v4053_v29  ;;  %v4050_v40 = vmul.f32 %v12492_v36, %v12492_v36  ;;  %v6820_v29 = vld [vmem:[#allocation15 + $0xb4] sm:$0xf0]  ;;  %4505 = vmatpush.bf16.msrb.mxu0 %v6536_v48 }
 0x5c0   : > { %7262 = vmatpush.bf16.msra.mxu1 %v6536_v48 }
 0x5c1   : > { %4069 = vadd.xlane.f32.xlu1 %v4050_v40  ;;  %v6544_v40 = vor.u32 %v6820_v29, %v6543_v56  ;;  %v6800_v56 = vld [vmem:[#allocation15 + $0x14] sm:$0xf0] }
 0x5c2   : > { %v4008_v38 = vpop.f32.mrf.mxu3  ;;  %v6464_v29 = vor.u32 %v6800_v56, %v6463_v50 }
 0x5c3   : > { %v12499_v24 = vadd.f32 %v4008_v38, %v14279_v58  ;;  %v6821_v38 = vld [vmem:[#allocation15 + $0xc4] sm:$0xf]  ;;  %v6553_v58 = vld [vmem:[#allocation15 + $0xd0] sm:$0xf0]  ;;  %4603 = vmatpush.bf16.msrb.mxu3 %v6544_v40 }
 0x5c4   : > { %v6801_v40 = vld [vmem:[#allocation15 + $0x24] sm:$0xf] }
 0x5c5   : > { %14280 = vst [vmem:[#allocation30_spill] sm:$0xff] %v12499_v24  ;;  %v4054_v28 = vmul.f32 %v12499_v24, %v12499_v24 }
 0x5c9   : > { %4077 = vadd.xlane.f32.xlu1 %v4054_v28  ;;  %v12546_v28 = vor.u32 %v6821_v38, %v6553_v58  ;;  %v6473_v38 = vld [vmem:[#allocation15 + $0x30] sm:$0xf0]  ;;  %v14297_v58 = vld [vmem:[#allocation107_spill] sm:$0xff] }
 0x5ca   : > { %v4011_v1 = vpop.f32.mrf.mxu3 }
 0x5cb   : > { %v12504_v0 = vadd.f32 %v4011_v1, %v14281_v17  ;;  %v6519_v1 = vld [vmem:[#allocation15 + $0x80] sm:$0xf]  ;;  %v6815_v17 = vld [vmem:[#allocation15 + $0x8c] sm:$0xf0]  ;;  %7269 = vmatpush.bf16.msra.mxu2 %v12546_v28 }
 0x5cd   : > { %14282 = vst [vmem:[#allocation31_spill] sm:$0xff] %v12504_v0  ;;  %v4055_v26 = vmul.f32 %v12504_v0, %v12504_v0 }
 0x5cf   : > { %4079 = vadd.xlane.f32.xlu2 %v4055_v26  ;;  %v6527_v26 = vld [vmem:[#allocation15 + $0x88] sm:$0xf] }
 0x5d2   : > { %v4013_v33 = vpop.f32.mrf.mxu3 }
 0x5d3   : > { %v12509_v55 = vadd.f32 %v4013_v33, %v14283_v20  ;;  %v6520_v33 = vor.u32 %v6815_v17, %v6519_v1  ;;  %v6816_v20 = vld [vmem:[#allocation15 + $0x94] sm:$0xf0]  ;;  %v6476_v17 = vor.u32 %v6801_v40, %v6473_v38 }
 0x5d5   : > { %14284 = vst [vmem:[#allocation32_spill] sm:$0xff] %v12509_v55  ;;  %v4056_v57 = vmul.f32 %v12509_v55, %v12509_v55  ;;  %4506 = vmatpush.bf16.msrb.mxu0 %v6520_v33  ;;  %7263 = vmatpush.bf16.msra.mxu1 %v6520_v33  ;;  %v6797_v33 = vld [vmem:[#allocation15 + $0x4] sm:$0xf] }
 0x5d7   : > { %4081 = vadd.xlane.f32.xlu0 %v4056_v57  ;;  %v6528_v57 = vor.u32 %v6816_v20, %v6527_v26  ;;  %v6457_v20 = vld [vmem:[#allocation15 + $0x10] sm:$0xf0] }
 0x5d9   : > { %4604 = vmatpush.bf16.msrb.mxu3 %v6528_v57  ;;  %v12557_v57 = vor.u32 %v6797_v33, %v6457_v20 }
 0x5da   : > { %v4016_v47 = vpop.f32.mrf.mxu3 }
 0x5db   : > { %v12514_v10 = vadd.f32 %v4016_v47, %v14285_v61  ;;  %v6817_v47 = vld [vmem:[#allocation15 + $0xa4] sm:$0xf]  ;;  %v6537_v61 = vld [vmem:[#allocation15 + $0xb0] sm:$0xf0] }
 0x5dd   : > { %14286 = vst [vmem:[#allocation33_spill] sm:$0xff] %v12514_v10  ;;  %v4057_v19 = vmul.f32 %v12514_v10, %v12514_v10 }
 0x5df   : > { %4083 = vadd.xlane.f32.xlu1 %v4057_v19  ;;  %v12549_v19 = vor.u32 %v6817_v47, %v6537_v61 }
 0x5e1   : > { %7270 = vmatpush.bf16.msra.mxu2 %v12549_v19 }
 0x5e2   : > { %v4018_v44 = vpop.f32.mrf.mxu3 }
 0x5e3   : > { %v12519_v12 = vadd.f32 %v4018_v44, %v14287_v18  ;;  %v6503_v44 = vld [vmem:[#allocation15 + $0x60] sm:$0xf]  ;;  %v6811_v18 = vld [vmem:[#allocation15 + $0x6c] sm:$0xf0] }
 0x5e5   : > { %14288 = vst [vmem:[#allocation34_spill] sm:$0xff] %v12519_v12  ;;  %v4058_v53 = vmul.f32 %v12519_v12, %v12519_v12 }
 0x5e7   : > { %4085 = vadd.xlane.f32.xlu2 %v4058_v53  ;;  %v6511_v53 = vld [vmem:[#allocation15 + $0x68] sm:$0xf] }
 0x5ea   : > { %v4021_v16 = vpop.f32.mrf.mxu3 }
 0x5eb   : > { %v12524_v45 = vadd.f32 %v4021_v16, %v14289_v34  ;;  %v6504_v16 = vor.u32 %v6811_v18, %v6503_v44  ;;  %v6812_v34 = vld [vmem:[#allocation15 + $0x74] sm:$0xf0] }
 0x5ed   : > { %14290 = vst [vmem:[#allocation35_spill] sm:$0xff] %v12524_v45  ;;  %v4059_v37 = vmul.f32 %v12524_v45, %v12524_v45  ;;  %4507 = vmatpush.bf16.msrb.mxu0 %v6504_v16  ;;  %7264 = vmatpush.bf16.msra.mxu1 %v6504_v16 }
 0x5ef   : > { %4087 = vadd.xlane.f32.xlu0 %v4059_v37  ;;  %v6512_v37 = vor.u32 %v6812_v34, %v6511_v53 }
 0x5f1   : > { %4605 = vmatpush.bf16.msrb.mxu3 %v6512_v37 }
 0x5f2   : > { %v4023_v13 = vpop.f32.mrf.mxu3 }
 0x5f3   : > { %v12529_v8 = vadd.f32 %v4023_v13, %v14291_v25  ;;  %v6813_v13 = vld [vmem:[#allocation15 + $0x84] sm:$0xf]  ;;  %v6521_v25 = vld [vmem:[#allocation15 + $0x90] sm:$0xf0] }
 0x5f5   : > { %14292 = vst [vmem:[#allocation36_spill] sm:$0xff] %v12529_v8  ;;  %v4060_v11 = vmul.f32 %v12529_v8, %v12529_v8 }
 0x5f7   : > { %4089 = vadd.xlane.f32.xlu1 %v4060_v11  ;;  %v12552_v11 = vor.u32 %v6813_v13, %v6521_v25 }
 0x5f9   : > { %7271 = vmatpush.bf16.msra.mxu2 %v12552_v11 }
 0x5fa   : > { %v4026_v32 = vpop.f32.mrf.mxu3 }
 0x5fb   : > { %v12534_v31 = vadd.f32 %v4026_v32, %v14293_v7  ;;  %v6487_v32 = vld [vmem:[#allocation15 + $0x40] sm:$0xf]  ;;  %v6807_v7 = vld [vmem:[#allocation15 + $0x4c] sm:$0xf0] }
 0x5fc   : > { %v6488_v63 = vor.u32 %v6807_v7, %v6487_v32 }
 0x5fd   : > { %14294 = vst [vmem:[#allocation37_spill] sm:$0xff] %v12534_v31  ;;  %v4061_v54 = vmul.f32 %v12534_v31, %v12534_v31  ;;  %7272 = vmatpush.bf16.msra.mxu2 %v6508_v21 }
 0x5fe   : > { %4508 = vmatpush.bf16.msrb.mxu0 %v6488_v63  ;;  %7265 = vmatpush.bf16.msra.mxu1 %v6488_v63 }
 0x5ff   : > { %4091 = vadd.xlane.f32.xlu2 %v4061_v54  ;;  %v6495_v54 = vld [vmem:[#allocation15 + $0x48] sm:$0xf] }
 0x600   : > { %v6496_v43 = vor.u32 %v6808_v15, %v6495_v54 }
 0x602   : > { %v4028_v39 = vpop.f32.mrf.mxu3  ;;  %4606 = vmatpush.bf16.msrb.mxu3 %v6496_v43 }
 0x603   : > { %v12539_v3 = vadd.f32 %v4028_v39, %v14295_v35  ;;  %v6472_v39 = vor.u32 %v6803_v49, %v6471_v59  ;;  %v6805_v35 = vld [vmem:[#allocation15 + $0x44] sm:$0xf] }
 0x604   : > { %v6492_v14 = vor.u32 %v6805_v35, %v6489_v42 }
 0x605   : > { %14296 = vst [vmem:[#allocation38_spill] sm:$0xff] %v12539_v3  ;;  %v4062_v2 = vmul.f32 %v12539_v3, %v12539_v3  ;;  %4509 = vmatpush.bf16.msrb.mxu0 %v6472_v39  ;;  %7266 = vmatpush.bf16.msra.mxu1 %v6472_v39 }
 0x606   : > { %4607 = vmatpush.bf16.msrb.mxu3 %v6480_v41  ;;  %7273 = vmatpush.bf16.msra.mxu2 %v6492_v14 }
 0x607   : > { %4093 = vadd.xlane.f32.xlu0 %v4062_v2  ;;  %v6799_v2 = vld [vmem:[#allocation15 + $0xc] sm:$0xf0] }
 0x608   : > { %v6456_v4 = vor.u32 %v6799_v2, %v6455_v27 }
 0x60a   : > { %4510 = vmatpush.bf16.msrb.mxu0 %v6456_v4  ;;  %7267 = vmatpush.bf16.msra.mxu1 %v6456_v4 }
 0x60b   : > { %4608 = vmatpush.bf16.msrb.mxu3 %v6464_v29  ;;  %7274 = vmatpush.bf16.msra.mxu2 %v6476_v17 }
 0x60e   : > { %4552 = vmatpush.bf16.msra.mxu0 %v12541_v62 }
 0x60f   : > { %7275 = vmatpush.bf16.msra.mxu2 %v12557_v57 }
 0x612   : > { %4553 = vmatpush.bf16.msra.mxu0 %v12546_v28 }
 0x616   : > { %4554 = vmatpush.bf16.msra.mxu0 %v12549_v19 }
 0x61a   : > { %4555 = vmatpush.bf16.msra.mxu0 %v12552_v11 }
 0x61c   : > { %v4064_v48 = vpop.xlane.xlu0 %4063 }
 0x61d   : > { %v4095_v1 = vmul.f32 %v4064_v48, %v14297_v58 }
 0x61e   : > { %4556 = vmatpush.bf16.msra.mxu0 %v6508_v21 }
 0x61f   : > { %v4111_v26 = vadd.f32 1e-05, %v4095_v1 }
 0x621   : > { %8275 = vrsqrt.f32 %v4111_v26  ;;  %vm4133_vm2 = vweird.f32 %v4111_v26 }
 0x622   : > { %v4072_v47 = vpop.xlane.xlu2 %4071  ;;  %4557 = vmatpush.bf16.msra.mxu0 %v6492_v14 }
 0x623   : > { %v4099_v61 = vmul.f32 %v4072_v47, %v14297_v58 }
 0x624   : > { %v4066_v44 = vpop.xlane.xlu0 %4065 }
 0x625   : > { %v12562_v18 = vadd.f32 1e-05, %v4099_v61  ;;  %v4096_v53 = vmul.f32 %v4066_v44, %v14297_v58 }
 0x626   : > { %4558 = vmatpush.bf16.msra.mxu0 %v6476_v17 }
 0x627   : > { %v12566_v62 = vpop.eup %8275  ;;  %8277 = vrsqrt.f32 %v12562_v18  ;;  %v4112_v16 = vadd.f32 1e-05, %v4096_v53  ;;  %vm4173_vm3 = vweird.f32 %v12562_v18 }
 0x628   : > { %v4128_v34 = vmul.f32 %v12566_v62, %v4111_v26  ;;  %vm4134_vm1 = vweird.f32 %v12566_v62 }
 0x629   : > { %8279 = vrsqrt.f32 %v4112_v16  ;;  %vm12591_vm5 = vmor %vm4133_vm2, %vm4134_vm1  ;;  %vm4143_vm7 = vweird.f32 %v4112_v16 }
 0x62a   : > { %v4129_v28 = vmul.f32 %v12566_v62, %v4128_v34  ;;  %v4074_v37 = vpop.xlane.xlu2 %4073  ;;  %4559 = vmatpush.bf16.msra.mxu0 %v12557_v57 }
 0x62b   : > { %v4100_v13 = vmul.f32 %v4074_v37, %v14297_v58 }
 0x62c   : > { %v4130_v25 = vmul.f32 0.5, %v4129_v28  ;;  %v4068_v32 = vpop.xlane.xlu1 %4067 }
 0x62d   : > { %v12573_v7 = vpop.eup %8277  ;;  %v4116_v19 = vadd.f32 1e-05, %v4100_v13  ;;  %v4097_v54 = vmul.f32 %v4068_v32, %v14297_v58  ;;  %v6826_v32 = vld [vmem:[#allocation15 + $0xec] sm:$0xf] }
 0x62e   : > { %v4168_v63 = vmul.f32 %v12573_v7, %v12562_v18  ;;  %v4131_v60 = vsub.f32 1.5, %v4130_v25  ;;  %vm4174_vm6 = vweird.f32 %v12573_v7 }
 0x62f   : > { %v8280_v15 = vpop.eup %8279  ;;  %8281 = vrsqrt.f32 %v4116_v19  ;;  %v12578_v43 = vadd.f32 1e-05, %v4097_v54  ;;  %vm4183_vm9 = vweird.f32 %v4116_v19  ;;  %vm12612_vm11 = vmor %vm4173_vm3, %vm4174_vm6 }
 0x630   : > { %v4169_v11 = vmul.f32 %v12573_v7, %v4168_v63  ;;  %v4138_v6 = vmul.f32 %v8280_v15, %v4112_v16  ;;  %v4132_v5 = vmul.f32 %v12566_v62, %v4131_v60  ;;  %vm4144_vm4 = vweird.f32 %v8280_v15 }
 0x631   : > { %8283 = vrsqrt.f32 %v12578_v43  ;;  %vm4145_vm8 = vmor %vm4143_vm7, %vm4144_vm4  ;;  %vm4153_vm14 = vweird.f32 %v12578_v43 }
 0x632   : > { %v4170_v59 = vmul.f32 0.5, %v4169_v11  ;;  %v4139_v49 = vmul.f32 %v8280_v15, %v4138_v6  ;;  %v4076_v22 = vpop.xlane.xlu0 %4075  ;;  %v4136_v29 = vsel %vm12591_vm5, %v12566_v62, %v4132_v5  ;;  %v6822_v5 = vld [vmem:[#allocation15 + $0xcc] sm:$0xf] }
 0x633   : > { %v4101_v39 = vmul.f32 %v4076_v22, %v14297_v58  ;;  %v4287_v61 = vmul.f32 %v4136_v29, %v12464_v23 }
 0x634   : > { %v4140_v21 = vmul.f32 0.5, %v4139_v49  ;;  %v4070_v41 = vpop.xlane.xlu1 %4069  ;;  %v4171_v42 = vsub.f32 1.5, %v4170_v59 }
 0x635   : > { %v8282_v35 = vpop.eup %8281  ;;  %v12585_v27 = vadd.f32 1e-05, %v4101_v39  ;;  %v4098_v2 = vmul.f32 %v4070_v41, %v14297_v58 }
 0x636   : > { %v4141_v50 = vsub.f32 1.5, %v4140_v21  ;;  %v4178_v14 = vmul.f32 %v8282_v35, %v4116_v19  ;;  %v4172_v17 = vmul.f32 %v12573_v7, %v4171_v42  ;;  %vm4184_vm10 = vweird.f32 %v8282_v35  ;;  %v6577_v19 = vld [vmem:[#allocation15 + $0xf8] sm:$0xf0] }
 0x637   : > { %v12589_v4 = vpop.eup %8283  ;;  %8285 = vrsqrt.f32 %v12585_v27  ;;  %v12597_v48 = vadd.f32 1e-05, %v4098_v2  ;;  %vm12620_vm12 = vmor %vm4183_vm9, %vm4184_vm10  ;;  %v6561_v21 = vld [vmem:[#allocation15 + $0xd8] sm:$0xf0]  ;;  %vm4193_vm3 = vweird.f32 %v12585_v27 }
 0x638   : > { %v4142_v40 = vmul.f32 %v8280_v15, %v4141_v50  ;;  %v4179_v38 = vmul.f32 %v8282_v35, %v4178_v14  ;;  %v4148_v1 = vmul.f32 %v12589_v4, %v12578_v43  ;;  %v4176_v37 = vsel %vm12612_vm11, %v12573_v7, %v4172_v17 }
 0x639   : > { %8287 = vrsqrt.f32 %v12597_v48  ;;  %v4291_v59 = vmul.f32 %v4176_v37, %v12469_v9  ;;  %vm4154_vm13 = vweird.f32 %v12589_v4  ;;  %vm4163_vm1 = vweird.f32 %v12597_v48 }
 0x63a   : > { %v4146_v26 = vsel %vm4145_vm8, %v8280_v15, %v4142_v40  ;;  %v4180_v33 = vmul.f32 0.5, %v4179_v38  ;;  %v4149_v20 = vmul.f32 %v12589_v4, %v4148_v1  ;;  %v6580_v15 = vor.u32 %v6826_v32, %v6577_v19  ;;  %v6818_v40 = vld [vmem:[#allocation15 + $0xac] sm:$0xf]  ;;  %v6545_v38 = vld [vmem:[#allocation15 + $0xb8] sm:$0xf0]  ;;  %vm12653_vm0 = vmor %vm4153_vm14, %vm4154_vm13 }
 0x63b   : > { %v4288_v44 = vmul.f32 %v4146_v26, %v12472_v46  ;;  %v6548_v26 = vor.u32 %v6818_v40, %v6545_v38  ;;  %v6802_v38 = vld [vmem:[#allocation15 + $0x2c] sm:$0xf] }
 0x63c   : > { %v4181_v53 = vsub.f32 1.5, %v4180_v33  ;;  %v4150_v62 = vmul.f32 0.5, %v4149_v20  ;;  %v4078_v16 = vpop.xlane.xlu1 %4077 }
 0x63d   : > { %v12618_v34 = vpop.eup %8285  ;;  %v4102_v57 = vmul.f32 %v4078_v16, %v14297_v58  ;;  %v12625_v18 = vpack.c.bf16 %v4288_v44, %v4287_v61 }
 0x63e   : > { %v4182_v13 = vmul.f32 %v8282_v35, %v4181_v53  ;;  %v4188_v25 = vmul.f32 %v12618_v34, %v12585_v27  ;;  %v4151_v11 = vsub.f32 1.5, %v4150_v62  ;;  %vm4194_vm4 = vweird.f32 %v12618_v34  ;;  %v6529_v62 = vld [vmem:[#allocation15 + $0x98] sm:$0xf0] }
 0x63f   : > { %v8288_v54 = vpop.eup %8287  ;;  %v12632_v63 = vadd.f32 1e-05, %v4102_v57  ;;  %4511 = vmatmul.bf16.vlgmr.msrb.gmra.mxu0 %v12625_v18  ;;  %4609 = vmatmul.bf16.vlgmr.msrb.gmra.mxu3 %v12625_v18  ;;  %vm12676_vm7 = vmor %vm4193_vm3, %vm4194_vm4 }
 0x640   : > { %v4186_v60 = vsel %vm12620_vm12, %v8282_v35, %v4182_v13  ;;  %v4189_v7 = vmul.f32 %v12618_v34, %v4188_v25  ;;  %v4158_v6 = vmul.f32 %v8288_v54, %v12597_v48  ;;  %4650 = vmatpush.bf16.msrb.mxu0 %v6580_v15  ;;  %v6564_v35 = vor.u32 %v6822_v5, %v6561_v21  ;;  %v6814_v48 = vld [vmem:[#allocation15 + $0x8c] sm:$0xf]  ;;  %v6497_v5 = vld [vmem:[#allocation15 + $0x58] sm:$0xf0] }
 0x641   : > { %8289 = vrsqrt.f32 %v12632_v63  ;;  %v4292_v49 = vmul.f32 %v4186_v60, %v12479_v30  ;;  %v4152_v2 = vmul.f32 %v12589_v4, %v4151_v11  ;;  %vm4164_vm15 = vweird.f32 %v8288_v54  ;;  %v6513_v11 = vld [vmem:[#allocation15 + $0x78] sm:$0xf0] }
 0x642   : > { %v4159_v22 = vmul.f32 %v8288_v54, %v4158_v6  ;;  %v4080_v39 = vpop.xlane.xlu2 %4079  ;;  %v4190_v50 = vmul.f32 0.5, %v4189_v7  ;;  %vm4165_vm2 = vmor %vm4163_vm1, %vm4164_vm15  ;;  %v6532_v57 = vor.u32 %v6814_v48, %v6529_v62  ;;  %vm4203_vm5 = vweird.f32 %v12632_v63 }
 0x643   : > { %v4103_v41 = vmul.f32 %v4080_v39, %v14297_v58  ;;  %v12644_v42 = vpack.c.bf16 %v4292_v49, %v4291_v59  ;;  %v4156_v33 = vsel %vm12653_vm0, %v12589_v4, %v4152_v2  ;;  %v6806_v39 = vld [vmem:[#allocation15 + $0x4c] sm:$0xf] }
 0x644   : > { %v4160_v14 = vmul.f32 0.5, %v4159_v22  ;;  %4651 = vmatpush.bf16.msrb.mxu0 %v6564_v35  ;;  %v4191_v43 = vsub.f32 1.5, %v4190_v50  ;;  %v4289_v28 = vmul.f32 %v4156_v33, %v12482_v52  ;;  %v6500_v2 = vor.u32 %v6806_v39, %v6497_v5 }
 0x645   : > { %v12648_v56 = vadd.f32 1e-05, %v4103_v41  ;;  %4521 = vmatmul.bf16.vlgmr.msra.gmra.mxu1 %v12644_v42  ;;  %4570 = vmatmul.bf16.vlgmr.msra.gmra.mxu2 %v12644_v42 }
 0x646   : > { %v4161_v29 = vsub.f32 1.5, %v4160_v14  ;;  %v4192_v37 = vmul.f32 %v12618_v34, %v4191_v43 }
 0x647   : > { %v8290_v1 = vpop.eup %8289  ;;  %8291 = vrsqrt.f32 %v12648_v56  ;;  %vm4213_vm9 = vweird.f32 %v12648_v56 }
 0x648   : > { %v4162_v20 = vmul.f32 %v8288_v54, %v4161_v29  ;;  %v4198_v47 = vmul.f32 %v8290_v1, %v12632_v63  ;;  %4652 = vmatpush.bf16.msrb.mxu0 %v6548_v26  ;;  %vm4204_vm6 = vweird.f32 %v8290_v1  ;;  %v6810_v63 = vld [vmem:[#allocation15 + $0x6c] sm:$0xf]  ;;  %v4196_v7 = vsel %vm12676_vm7, %v12618_v34, %v4192_v37 }
 0x649   : > { %vm4205_vm8 = vmor %vm4203_vm5, %vm4204_vm6  ;;  %v6516_v27 = vor.u32 %v6810_v63, %v6513_v11  ;;  %v4293_v41 = vmul.f32 %v4196_v7, %v12489_v51 }
 0x64a   : > { %v4166_v61 = vsel %vm4165_vm2, %v8288_v54, %v4162_v20  ;;  %v4199_v44 = vmul.f32 %v8290_v1, %v4198_v47  ;;  %v4082_v53 = vpop.xlane.xlu0 %4081  ;;  %v6798_v47 = vld [vmem:[#allocation15 + $0xc] sm:$0xf] }
 0x64b   : > { %v4104_v16 = vmul.f32 %v4082_v53, %v14297_v58  ;;  %v4290_v4 = vmul.f32 %v4166_v61, %v12492_v36  ;;  %v6465_v61 = vld [vmem:[#allocation15 + $0x18] sm:$0xf0] }
 0x64c   : > { %v4200_v13 = vmul.f32 0.5, %v4199_v44  ;;  %4653 = vmatpush.bf16.msrb.mxu0 %v6532_v57  ;;  %v6468_v53 = vor.u32 %v6798_v47, %v6465_v61 }
 0x64d   : > { %v12670_v25 = vpop.eup %8291  ;;  %v4120_v19 = vadd.f32 1e-05, %v4104_v16  ;;  %v12680_v54 = vpack.c.bf16 %v4290_v4, %v4289_v28 }
 0x64e   : > { %v4201_v15 = vsub.f32 1.5, %v4200_v13  ;;  %v4208_v60 = vmul.f32 %v12670_v25, %v12648_v56  ;;  %vm4214_vm10 = vweird.f32 %v12670_v25 }
 0x64f   : > { %8293 = vrsqrt.f32 %v4120_v19  ;;  %4516 = vmatmul.bf16.gmra.mxu0 %v12680_v54  ;;  %4614 = vmatmul.bf16.gmra.mxu3 %v12680_v54  ;;  %vm4223_vm11 = vweird.f32 %v4120_v19  ;;  %vm12701_vm13 = vmor %vm4213_vm9, %vm4214_vm10 }
 0x650   : > { %v4202_v6 = vmul.f32 %v8290_v1, %v4201_v15  ;;  %v4209_v59 = vmul.f32 %v12670_v25, %v4208_v60  ;;  %4654 = vmatpush.bf16.msrb.mxu0 %v6516_v27 }
 0x652   : > { %v4206_v49 = vsel %vm4205_vm8, %v8290_v1, %v4202_v6  ;;  %v4084_v22 = vpop.xlane.xlu1 %4083  ;;  %v4210_v50 = vmul.f32 0.5, %v4209_v59  ;;  %v6481_v1 = vld [vmem:[#allocation15 + $0x38] sm:$0xf0] }
 0x653   : > { %v4105_v21 = vmul.f32 %v4084_v22, %v14297_v58  ;;  %v4294_v35 = vmul.f32 %v4206_v49, %v12499_v24  ;;  %v6484_v17 = vor.u32 %v6802_v38, %v6481_v1 }
 0x654   : > { %4655 = vmatpush.bf16.msrb.mxu0 %v6500_v2  ;;  %v4211_v26 = vsub.f32 1.5, %v4210_v50 }
 0x655   : > { %v8294_v14 = vpop.eup %8293  ;;  %v4121_v29 = vadd.f32 1e-05, %v4105_v21  ;;  %v12693_v40 = vpack.c.bf16 %v4294_v35, %v4293_v41 }
 0x656   : > { %v4218_v34 = vmul.f32 %v8294_v14, %v4120_v19  ;;  %vm4224_vm12 = vweird.f32 %v8294_v14  ;;  %v4212_v48 = vmul.f32 %v12670_v25, %v4211_v26 }
 0x657   : > { %8295 = vrsqrt.f32 %v4121_v29  ;;  %4526 = vmatmul.bf16.gmra.mxu1 %v12693_v40  ;;  %4575 = vmatmul.bf16.gmra.mxu2 %v12693_v40  ;;  %vm4225_vm14 = vmor %vm4223_vm11, %vm4224_vm12  ;;  %vm4233_vm15 = vweird.f32 %v4121_v29 }
 0x658   : > { %v4219_v33 = vmul.f32 %v8294_v14, %v4218_v34  ;;  %4656 = vmatpush.bf16.msrb.mxu0 %v6484_v17  ;;  %v4216_v37 = vsel %vm12701_vm13, %v12670_v25, %v4212_v48 }
 0x659   : > { %v4295_v63 = vmul.f32 %v4216_v37, %v12504_v0 }
 0x65a   : > { %v4220_v43 = vmul.f32 0.5, %v4219_v33  ;;  %v4086_v20 = vpop.xlane.xlu2 %4085 }
 0x65b   : > { %v4106_v44 = vmul.f32 %v4086_v20, %v14297_v58 }
 0x65c   : > { %v4221_v16 = vsub.f32 1.5, %v4220_v43  ;;  %4657 = vmatpush.bf16.msrb.mxu0 %v6468_v53 }
 0x65d   : > { %v8296_v56 = vpop.eup %8295  ;;  %v4122_v28 = vadd.f32 1e-05, %v4106_v44 }
 0x65e   : > { %v4222_v4 = vmul.f32 %v8294_v14, %v4221_v16  ;;  %v4228_v57 = vmul.f32 %v8296_v56, %v4121_v29  ;;  %vm4234_vm0 = vweird.f32 %v8296_v56 }
 0x65f   : > { %8297 = vrsqrt.f32 %v4122_v28  ;;  %4560 = vmatmul.bf16.vlgmr.msra.gmra.mxu0 %v12625_v18  ;;  %4619 = vmatmul.bf16.gmra.mxu3 %v12644_v42  ;;  %vm4243_vm1 = vweird.f32 %v4122_v28  ;;  %vm12718_vm3 = vmor %vm4233_vm15, %vm4234_vm0 }
 0x660   : > { %v4226_v13 = vsel %vm4225_vm14, %v8294_v14, %v4222_v4  ;;  %v4229_v32 = vmul.f32 %v8296_v56, %v4228_v57 }
 0x661   : > { %v4296_v19 = vmul.f32 %v4226_v13, %v12509_v55 }
 0x662   : > { %v4088_v15 = vpop.xlane.xlu0 %4087  ;;  %v4230_v11 = vmul.f32 0.5, %v4229_v32 }
 0x663   : > { %v4107_v60 = vmul.f32 %v4088_v15, %v14297_v58  ;;  %v12713_v6 = vpack.c.bf16 %v4296_v19, %v4295_v63 }
 0x664   : > { %v4231_v25 = vsub.f32 1.5, %v4230_v11 }
 0x665   : > { %v8298_v27 = vpop.eup %8297  ;;  %v4123_v7 = vadd.f32 1e-05, %v4107_v60  ;;  %v6844_v60 = vld [vmem:[#allocation16 + $0x78] sm:$0xff] }
 0x666   : > { %v4238_v59 = vmul.f32 %v8298_v27, %v4122_v28  ;;  %vm4244_vm2 = vweird.f32 %v8298_v27  ;;  %v4232_v21 = vmul.f32 %v8296_v56, %v4231_v25  ;;  %5564 = vmatpush.bf16.msrb.mxu2 %v6844_v60 }
 0x667   : > { %8299 = vrsqrt.f32 %v4123_v7  ;;  %4531 = vmatmul.bf16.gmra.mxu1 %v12713_v6  ;;  %4580 = vmatmul.bf16.gmra.mxu2 %v12713_v6  ;;  %vm4245_vm4 = vmor %vm4243_vm1, %vm4244_vm2  ;;  %vm4253_vm5 = vweird.f32 %v4123_v7 }
 0x668   : > { %v4239_v49 = vmul.f32 %v8298_v27, %v4238_v59  ;;  %v4236_v29 = vsel %vm12718_vm3, %v8296_v56, %v4232_v21 }
 0x669   : > { %v4297_v43 = vmul.f32 %v4236_v29, %v12514_v10 }
 0x66a   : > { %v4240_v22 = vmul.f32 0.5, %v4239_v49  ;;  %v4090_v39 = vpop.xlane.xlu1 %4089 }
 0x66b   : > { %v4108_v5 = vmul.f32 %v4090_v39, %v14297_v58 }
 0x66c   : > { %v4241_v35 = vsub.f32 1.5, %v4240_v22 }
 0x66d   : > { %v8300_v2 = vpop.eup %8299  ;;  %v4124_v50 = vadd.f32 1e-05, %v4108_v5 }
 0x66e   : > { %v4242_v14 = vmul.f32 %v8298_v27, %v4241_v35  ;;  %v4248_v34 = vmul.f32 %v8300_v2, %v4123_v7  ;;  %vm4254_vm6 = vweird.f32 %v8300_v2 }
 0x66f   : > { %8301 = vrsqrt.f32 %v4124_v50  ;;  %4565 = vmatmul.bf16.gmra.mxu0 %v12680_v54  ;;  %4624 = vmatmul.bf16.gmra.mxu3 %v12693_v40  ;;  %vm4263_vm7 = vweird.f32 %v4124_v50  ;;  %vm12734_vm9 = vmor %vm4253_vm5, %vm4254_vm6 }
 0x670   : > { %v4246_v38 = vsel %vm4245_vm4, %v8298_v27, %v4242_v14  ;;  %v4249_v1 = vmul.f32 %v8300_v2, %v4248_v34 }
 0x671   : > { %v4298_v17 = vmul.f32 %v4246_v38, %v12519_v12  ;;  %v6835_v38 = vld [vmem:[#allocation16 + $0x30] sm:$0xff] }
 0x672   : > { %v4092_v26 = vpop.xlane.xlu2 %4091  ;;  %v4250_v20 = vmul.f32 0.5, %v4249_v1 }
 0x673   : > { %v4109_v33 = vmul.f32 %v4092_v26, %v14297_v58  ;;  %v12729_v44 = vpack.c.bf16 %v4298_v17, %v4297_v43  ;;  %v6833_v26 = vld [vmem:[#allocation16 + $0x20] sm:$0xff] }
 0x674   : > { %v4251_v48 = vsub.f32 1.5, %v4250_v20 }
 0x675   : > { %v8302_v47 = vpop.eup %8301  ;;  %v4125_v61 = vadd.f32 1e-05, %v4109_v33  ;;  %v6842_v33 = vld [vmem:[#allocation16 + $0x68] sm:$0xff] }
 0x676   : > { %v4258_v53 = vmul.f32 %v8302_v47, %v4124_v50  ;;  %vm4264_vm8 = vweird.f32 %v8302_v47  ;;  %v4252_v4 = vmul.f32 %v8300_v2, %v4251_v48  ;;  %v6843_v50 = vld [vmem:[#allocation16 + $0x70] sm:$0xff]  ;;  %v6830_v48 = vld [vmem:[#allocation16 + $0x8] sm:$0xff] }
 0x677   : > { %8303 = vrsqrt.f32 %v4125_v61  ;;  %4536 = vmatmul.bf16.gmra.mxu1 %v12729_v44  ;;  %4585 = vmatmul.bf16.gmra.mxu2 %v12729_v44  ;;  %vm4265_vm10 = vmor %vm4263_vm7, %vm4264_vm8  ;;  %vm4273_vm11 = vweird.f32 %v4125_v61 }
 0x678   : > { %v4259_v62 = vmul.f32 %v8302_v47, %v4258_v53  ;;  %5565 = vmatpush.bf16.msrb.mxu2 %v6843_v50 }
 0x67a   : > { %v4260_v16 = vmul.f32 0.5, %v4259_v62  ;;  %v4094_v56 = vpop.xlane.xlu0 %4093 }
 0x67b   : > { %v4110_v28 = vmul.f32 %v4094_v56, %v14297_v58  ;;  %v4256_v58 = vsel %vm12734_vm9, %v8300_v2, %v4252_v4  ;;  %v6836_v2 = vld [vmem:[#allocation16 + $0x38] sm:$0xff] }
 0x67c   : > { %v4261_v37 = vsub.f32 1.5, %v4260_v16  ;;  %v4299_v7 = vmul.f32 %v4256_v58, %v12524_v45  ;;  %5515 = vmatpush.bf16.msrb.mxu1 %v6836_v2  ;;  %5566 = vmatpush.bf16.msrb.mxu2 %v6842_v33  ;;  %v6841_v16 = vld [vmem:[#allocation16 + $0x60] sm:$0xff] }
 0x67d   : > { %v8304_v13 = vpop.eup %8303  ;;  %v4126_v32 = vadd.f32 1e-05, %v4110_v28 }
 0x67e   : > { %v4262_v19 = vmul.f32 %v8302_v47, %v4261_v37  ;;  %v4268_v15 = vmul.f32 %v8304_v13, %v4125_v61  ;;  %vm4274_vm12 = vweird.f32 %v8304_v13 }
 0x67f   : > { %8305 = vrsqrt.f32 %v4126_v32  ;;  %4629 = vmatmul.bf16.gmra.mxu3 %v12713_v6  ;;  %4658 = vmatmul.bf16.vlgmr.msrb.gmra.mxu0 %v12625_v18  ;;  %vm4283_vm13 = vweird.f32 %v4126_v32  ;;  %vm4275_vm15 = vmor %vm4273_vm11, %vm4274_vm12 }
 0x680   : > { %v4266_v63 = vsel %vm4265_vm10, %v8302_v47, %v4262_v19  ;;  %v4269_v11 = vmul.f32 %v8304_v13, %v4268_v15  ;;  %5516 = vmatpush.bf16.msrb.mxu1 %v6835_v38  ;;  %v6832_v47 = vld [vmem:[#allocation16 + $0x18] sm:$0xff]  ;;  %5567 = vmatpush.bf16.msrb.mxu2 %v6841_v16 }
 0x681   : > { %v4300_v27 = vmul.f32 %v4266_v63, %v12529_v8 }
 0x682   : > { %v4270_v59 = vmul.f32 0.5, %v4269_v11 }
 0x683   : > { %v12744_v49 = vpack.c.bf16 %v4300_v27, %v4299_v7 }
 0x684   : > { %v4271_v18 = vsub.f32 1.5, %v4270_v59 }
 0x685   : > { %v8306_v25 = vpop.eup %8305 }
 0x686   : > { %v4278_v22 = vmul.f32 %v8306_v25, %v4126_v32  ;;  %vm4284_vm14 = vweird.f32 %v8306_v25  ;;  %v4272_v21 = vmul.f32 %v8304_v13, %v4271_v18 }
 0x687   : > { %4541 = vmatmul.bf16.gmra.mxu1 %v12744_v49  ;;  %4590 = vmatmul.bf16.gmra.mxu2 %v12744_v49  ;;  %vm4285_vm0 = vmor %vm4283_vm13, %vm4284_vm14 }
 0x688   : > { %v4279_v39 = vmul.f32 %v8306_v25, %v4278_v22  ;;  %v4276_v14 = vsel %vm4275_vm15, %v8304_v13, %v4272_v21  ;;  %v6829_v13 = vld [vmem:[#allocation16] sm:$0xff] }
 0x689   : > { %v4301_v1 = vmul.f32 %v4276_v14, %v12534_v31  ;;  %v6837_v31 = vld [vmem:[#allocation16 + $0x40] sm:$0xff] }
 0x68a   : > { %v4280_v5 = vmul.f32 0.5, %v4279_v39 }
 0x68c   : > { %v4281_v41 = vsub.f32 1.5, %v4280_v5 }
 0x68e   : > { %v4282_v35 = vmul.f32 %v8306_v25, %v4281_v41 }
 0x68f   : > { %4634 = vmatmul.bf16.gmra.mxu3 %v12729_v44  ;;  %4663 = vmatmul.bf16.gmra.mxu0 %v12680_v54  ;;  %v6834_v54 = vld [vmem:[#allocation16 + $0x28] sm:$0xff] }
 0x690   : > { %v4286_v34 = vsel %vm4285_vm0, %v8306_v25, %v4282_v35  ;;  %5517 = vmatpush.bf16.msrb.mxu1 %v6834_v54  ;;  %v6840_v25 = vld [vmem:[#allocation16 + $0x58] sm:$0xff] }
 0x691   : > { %v4302_v29 = vmul.f32 %v4286_v34, %v12539_v3  ;;  %5568 = vmatpush.bf16.msrb.mxu2 %v6840_v25 }
 0x693   : > { %v12752_v17 = vpack.c.bf16 %v4302_v29, %v4301_v1 }
 0x694   : > { %5518 = vmatpush.bf16.msrb.mxu1 %v6833_v26 }
 0x697   : > { %4546 = vmatmul.bf16.gmra.mxu1 %v12752_v17  ;;  %4595 = vmatmul.bf16.gmra.mxu2 %v12752_v17 }
 0x698   : > { %5519 = vmatpush.bf16.msrb.mxu1 %v6832_v47 }
 0x69f   : > { %4639 = vmatmul.bf16.gmra.mxu3 %v12744_v49  ;;  %4668 = vmatmul.bf16.gmra.mxu0 %v12644_v42  ;;  %v6831_v42 = vld [vmem:[#allocation16 + $0x10] sm:$0xff] }
 0x6a0   : > { %5520 = vmatpush.bf16.msrb.mxu1 %v6831_v42 }
 0x6a4   : > { %5521 = vmatpush.bf16.msrb.mxu1 %v6830_v48 }
 0x6a8   : > { %5522 = vmatpush.bf16.msrb.mxu1 %v6829_v13 }
 0x6af   : > { %4644 = vmatmul.bf16.gmra.mxu3 %v12752_v17  ;;  %4673 = vmatmul.bf16.gmra.mxu0 %v12693_v40 }
 0x6bc   : > { %v12760_v43 = vpop.f32.mrf.mxu0 }
 0x6bd   : > { %v6581_v20 = vmul.f32 -1.442695, %v12760_v43 }
 0x6bf   : > { %8307 = vpow2.f32 %v6581_v20  ;;  %4678 = vmatmul.bf16.gmra.mxu0 %v12713_v6 }
 0x6c2   : > { %v12771_v15 = vpop.f32.mrf.mxu1  ;;  %v4610_v22 = vpop.f32.mrf.mxu3 }
 0x6c3   : > { %v6589_v26 = vmul.f32 -1.442695, %v12771_v15 }
 0x6c4   : > { %v12764_v61 = vpop.f32.mrf.mxu0 }
 0x6c5   : > { %v8308_v40 = vpop.eup %8307  ;;  %v6583_v53 = vmul.f32 -1.442695, %v12764_v61 }
 0x6c6   : > { %v4795_v62 = vadd.f32 1.0, %v8308_v40 }
 0x6c7   : > { %8309 = vpow2.f32 %v6583_v53 }
 0x6c8   : > { %8311 = vrcp.f32 %v4795_v62  ;;  %v4838_v27 = vand.u32 2147483648, %v4795_v62  ;;  %vm4832_vm2 = vweird.f32 %v4795_v62  ;;  %v4836_v59 = vand.u32 2147483647, %v4795_v62 }
 0x6ca   : > { %v4839_v21 = vor.u32 1.1754944e-38, %v4838_v27  ;;  %vm4837_vm4 = vcmp.eq.f32.partialorder %v4836_v59, 8.507059e+37  ;;  %v12778_v14 = vpop.f32.mrf.mxu1  ;;  %v4612_v42 = vpop.f32.mrf.mxu3 }
 0x6cb   : > { %v6591_v13 = vmul.f32 -1.442695, %v12778_v14 }
 0x6cc   : > { %v12767_v56 = vpop.f32.mrf.mxu0 }
 0x6cd   : > { %v8310_v28 = vpop.eup %8309  ;;  %v6585_v6 = vmul.f32 -1.442695, %v12767_v56 }
 0x6ce   : > { %v8312_v4 = vpop.eup %8311  ;;  %v4797_v37 = vadd.f32 1.0, %v8310_v28 }
 0x6cf   : > { %v4828_v57 = vmul.f32 %v8312_v4, %v4795_v62  ;;  %4683 = vmatmul.bf16.gmra.mxu0 %v12729_v44  ;;  %8313 = vpow2.f32 %v6585_v6  ;;  %vm4833_vm1 = vweird.f32 %v8312_v4  ;;  %v6839_v6 = vld [vmem:[#allocation16 + $0x50] sm:$0xff] }
 0x6d0   : > { %8315 = vrcp.f32 %v4797_v37  ;;  %vm4834_vm3 = vmor %vm4832_vm2, %vm4833_vm1  ;;  %v4868_v41 = vand.u32 2147483648, %v4797_v37  ;;  %v4866_v2 = vand.u32 2147483647, %v4797_v37  ;;  %vm4862_vm6 = vweird.f32 %v4797_v37  ;;  %5569 = vmatpush.bf16.msrb.mxu2 %v6839_v6 }
 0x6d1   : > { %v4829_v32 = vsub.f32 1.0, %v4828_v57 }
 0x6d2   : > { %v4869_v29 = vor.u32 1.1754944e-38, %v4868_v41  ;;  %vm4867_vm8 = vcmp.eq.f32.partialorder %v4866_v2, 8.507059e+37 }
 0x6d3   : > { %v4830_v19 = vmul.f32 %v8312_v4, %v4829_v32  ;;  %v4615_v32 = vpop.f32.mrf.mxu3 }
 0x6d4   : > { %v12773_v60 = vpop.f32.mrf.mxu0 }
 0x6d5   : > { %v8314_v58 = vpop.eup %8313  ;;  %v4831_v63 = vadd.f32 %v8312_v4, %v4830_v19  ;;  %v6587_v7 = vmul.f32 -1.442695, %v12773_v60 }
 0x6d6   : > { %v8316_v11 = vpop.eup %8315  ;;  %v12776_v5 = vadd.f32 1.0, %v8314_v58 }
 0x6d7   : > { %v4858_v44 = vmul.f32 %v8316_v11, %v4797_v37  ;;  %v4835_v18 = vsel %vm4834_vm3, %v8312_v4, %v4831_v63  ;;  %8317 = vpow2.f32 %v6587_v7  ;;  %vm4863_vm5 = vweird.f32 %v8316_v11 }
 0x6d8   : > { %v4840_v50 = vsel %vm4837_vm4, %v4839_v21, %v4835_v18  ;;  %8319 = vrcp.f32 %v12776_v5  ;;  %vm4864_vm7 = vmor %vm4862_vm6, %vm4863_vm5  ;;  %v4898_v21 = vand.u32 2147483648, %v12776_v5  ;;  %vm4892_vm13 = vweird.f32 %v12776_v5 }
 0x6d9   : > { %v4859_v39 = vsub.f32 1.0, %v4858_v44  ;;  %v5307_v1 = vmul.f32 %v4840_v50, %v12760_v43 }
 0x6db   : > { %v4860_v35 = vmul.f32 %v8316_v11, %v4859_v39  ;;  %v5339_v53 = vmul.f32 %v5307_v1, %v4610_v22  ;;  %v12801_v22 = vpop.f32.mrf.mxu2 }
 0x6dc   : > { %v12785_v62 = vpop.f32.mrf.mxu0  ;;  %v6590_v2 = vmul.f32 -1.442695, %v12801_v22 }
 0x6dd   : > { %v4861_v34 = vadd.f32 %v8316_v11, %v4860_v35  ;;  %v8318_v38 = vpop.eup %8317  ;;  %v6582_v7 = vmul.f32 -1.442695, %v12785_v62 }
 0x6de   : > { %v4801_v20 = vadd.f32 1.0, %v8318_v38  ;;  %v8320_v40 = vpop.eup %8319 }
 0x6df   : > { %4688 = vmatmul.bf16.gmra.mxu0 %v12744_v49  ;;  %v4865_v54 = vsel %vm4864_vm7, %v8316_v11, %v4861_v34  ;;  %v12787_v49 = vpop.f32.mrf.mxu1  ;;  %v4888_v43 = vmul.f32 %v8320_v40, %v12776_v5  ;;  %vm4893_vm10 = vweird.f32 %v8320_v40 }
 0x6e0   : > { %v4870_v33 = vsel %vm4867_vm8, %v4869_v29, %v4865_v54  ;;  %8321 = vrcp.f32 %v4801_v20  ;;  %v4928_v25 = vand.u32 2147483648, %v4801_v20  ;;  %vm4922_vm11 = vweird.f32 %v4801_v20  ;;  %vm12813_vm14 = vmor %vm4892_vm13, %vm4893_vm10  ;;  %v4617_v54 = vpop.f32.mrf.mxu3 }
 0x6e1   : > { %v5309_v47 = vmul.f32 %v4870_v33, %v12764_v61  ;;  %8323 = vpow2.f32 %v6589_v26  ;;  %v4889_v37 = vsub.f32 1.0, %v4888_v43  ;;  %v4926_v39 = vand.u32 2147483647, %v4801_v20 }
 0x6e2   : > { %8325 = vpow2.f32 %v6591_v13  ;;  %v4929_v34 = vor.u32 1.1754944e-38, %v4928_v25  ;;  %v6593_v1 = vmul.f32 -1.442695, %v12787_v49  ;;  %v4899_v26 = vor.u32 1.1754944e-38, %v4898_v21 }
 0x6e3   : > { %v5341_v48 = vmul.f32 %v5309_v47, %v4612_v42  ;;  %v4890_v11 = vmul.f32 %v8320_v40, %v4889_v37  ;;  %vm4927_vm15 = vcmp.eq.f32.partialorder %v4926_v39, 8.507059e+37  ;;  %v6838_v37 = vld [vmem:[#allocation16 + $0x48] sm:$0xff] }
 0x6e4   : > { %v12793_v63 = vpop.f32.mrf.mxu0  ;;  %5570 = vmatpush.bf16.msrb.mxu2 %v6838_v37 }
 0x6e5   : > { %v5371_v16 = vpack.c.bf16 %v5341_v48, %v5339_v53  ;;  %v6584_v44 = vmul.f32 -1.442695, %v12793_v63  ;;  %v4891_v18 = vadd.f32 %v8320_v40, %v4890_v11 }
 0x6e6   : > { %v8322_v28 = vpop.eup %8321 }
 0x6e7   : > { %5523 = vmatmul.bf16.vlgmr.msrb.gmra.mxu1 %v5371_v16  ;;  %v4918_v4 = vmul.f32 %v8322_v28, %v4801_v20  ;;  %v8324_v57 = vpop.eup %8323  ;;  %v12795_v27 = vpop.f32.mrf.mxu1  ;;  %vm4923_vm9 = vweird.f32 %v8322_v28  ;;  %v4895_v38 = vsel %vm12813_vm14, %v8320_v40, %v4891_v18 }
 0x6e8   : > { %v12791_v19 = vadd.f32 1.0, %v8324_v57  ;;  %vm12804_vm12 = vmor %vm4922_vm11, %vm4923_vm9  ;;  %v8326_v29 = vpop.eup %8325  ;;  %v6595_v43 = vmul.f32 -1.442695, %v12795_v27  ;;  %5571 = vmatpush.bf16.msrb.mxu2 %v6837_v31 }
 0x6e9   : > { %v4919_v61 = vsub.f32 1.0, %v4918_v4  ;;  %v12826_v53 = vadd.f32 1.0, %v8326_v29 }
 0x6ea   : > { %8327 = vrcp.f32 %v12791_v19  ;;  %vm4952_vm2 = vweird.f32 %v12791_v19 }
 0x6eb   : > { %v4920_v58 = vmul.f32 %v8322_v28, %v4919_v61  ;;  %8329 = vpow2.f32 %v6582_v7  ;;  %v12839_v7 = vpop.f32.mrf.mxu3  ;;  %vm4982_vm7 = vweird.f32 %v12826_v53 }
 0x6ec   : > { %8331 = vpow2.f32 %v6584_v44  ;;  %v12822_v20 = vpop.f32.mrf.mxu0  ;;  %v12842_v44 = vpop.f32.mrf.mxu2 }
 0x6ed   : > { %v4921_v59 = vadd.f32 %v8322_v28, %v4920_v58  ;;  %8333 = vpow2.f32 %v6590_v2 }
 0x6ee   : > { %8335 = vpow2.f32 %v6593_v1  ;;  %v4958_v1 = vand.u32 2147483648, %v12791_v19 }
 0x6ef   : > { %4693 = vmatmul.bf16.gmra.mxu0 %v12752_v17  ;;  %v4896_v17 = vand.u32 2147483647, %v12776_v5  ;;  %v4925_v35 = vsel %vm12804_vm12, %v8322_v28, %v4921_v59  ;;  %v12824_v42 = vpop.f32.mrf.mxu1  ;;  %8337 = vrcp.f32 %v12826_v53  ;;  %v6586_v59 = vmul.f32 -1.442695, %v12822_v20 }
 0x6f0   : > { %v12820_v5 = vpop.eup %8327  ;;  %v4930_v33 = vsel %vm4927_vm15, %v4929_v34, %v4925_v35  ;;  %8339 = vpow2.f32 %v6595_v43 }
 0x6f1   : > { %v8330_v47 = vpop.eup %8329  ;;  %vm4897_vm0 = vcmp.eq.f32.partialorder %v4896_v17, 8.507059e+37  ;;  %v5313_v40 = vmul.f32 %v4930_v33, %v12773_v60  ;;  %v4948_v28 = vmul.f32 %v12820_v5, %v12791_v19  ;;  %vm4953_vm1 = vweird.f32 %v12820_v5 }
 0x6f2   : > { %v4900_v48 = vsel %vm4897_vm0, %v4899_v26, %v4895_v38  ;;  %v8332_v16 = vpop.eup %8331  ;;  %v12832_v6 = vadd.f32 1.0, %v8330_v47  ;;  %v4956_v33 = vand.u32 2147483647, %v12791_v19  ;;  %v6592_v47 = vmul.f32 -1.442695, %v12842_v44  ;;  %vm12877_vm3 = vmor %vm4952_vm2, %vm4953_vm1 }
 0x6f3   : > { %v5311_v4 = vmul.f32 %v4900_v48, %v12767_v56  ;;  %v12836_v57 = vadd.f32 1.0, %v8332_v16  ;;  %v5345_v61 = vmul.f32 %v5313_v40, %v4617_v54  ;;  %v8334_v13 = vpop.eup %8333  ;;  %v4949_v58 = vsub.f32 1.0, %v4948_v28  ;;  %v12883_v43 = vpop.f32.mrf.mxu3 }
 0x6f4   : > { %8341 = vrcp.f32 %v12832_v6  ;;  %v8336_v60 = vpop.eup %8335  ;;  %v12845_v56 = vpop.f32.mrf.mxu0  ;;  %v12847_v25 = vadd.f32 1.0, %v8334_v13  ;;  %vm4957_vm4 = vcmp.eq.f32.partialorder %v4956_v33, 8.507059e+37  ;;  %vm4847_vm8 = vweird.f32 %v12832_v6 }
 0x6f5   : > { %v5343_v11 = vmul.f32 %v5311_v4, %v4615_v32  ;;  %8343 = vrcp.f32 %v12836_v57  ;;  %v12851_v21 = vpop.eup %8337  ;;  %v4950_v32 = vmul.f32 %v12820_v5, %v4949_v58  ;;  %v12854_v41 = vadd.f32 1.0, %v8336_v60  ;;  %v12875_v48 = vpop.f32.mrf.mxu2 }
 0x6f6   : > { %8345 = vpow2.f32 %v6586_v59  ;;  %v8340_v17 = vpop.eup %8339  ;;  %v6588_v35 = vmul.f32 -1.442695, %v12845_v56  ;;  %v4978_v50 = vmul.f32 %v12851_v21, %v12826_v53  ;;  %v6594_v13 = vmul.f32 -1.442695, %v12875_v48 }
 0x6f7   : > { %v12849_v18 = vpop.f32.mrf.mxu1  ;;  %v5373_v39 = vpack.c.bf16 %v5345_v61, %v5343_v11  ;;  %8347 = vrcp.f32 %v12847_v25  ;;  %v4951_v29 = vadd.f32 %v12820_v5, %v4950_v32  ;;  %v12868_v54 = vadd.f32 1.0, %v8340_v17 }
 0x6f8   : > { %8349 = vrcp.f32 %v12854_v41  ;;  %v4979_v28 = vsub.f32 1.0, %v4978_v50  ;;  %v4959_v61 = vor.u32 1.1754944e-38, %v4958_v1  ;;  %v6599_v59 = vmul.f32 -1.442695, %v12849_v18 }
 0x6f9   : > { %5528 = vmatmul.bf16.gmra.mxu1 %v5373_v39  ;;  %8351 = vpow2.f32 %v6588_v35  ;;  %v4955_v4 = vsel %vm12877_vm3, %v12820_v5, %v4951_v29  ;;  %v6597_v32 = vmul.f32 -1.442695, %v12824_v42  ;;  %vm4983_vm5 = vweird.f32 %v12851_v21 }
 0x6fa   : > { %v12857_v2 = vpop.eup %8341  ;;  %8353 = vrcp.f32 %v12868_v54  ;;  %v4960_v5 = vsel %vm4957_vm4, %v4959_v61, %v4955_v4  ;;  %v4980_v35 = vmul.f32 %v12851_v21, %v4979_v28  ;;  %v4986_v61 = vand.u32 2147483647, %v12826_v53  ;;  %vm12942_vm9 = vmor %vm4982_vm7, %vm4983_vm5 }
 0x6fb   : > { %v12862_v34 = vpop.eup %8343  ;;  %v4843_v26 = vmul.f32 %v12857_v2, %v12832_v6  ;;  %8355 = vpow2.f32 %v6592_v47  ;;  %v5315_v1 = vmul.f32 %v4960_v5, %v12771_v15  ;;  %vm4848_vm6 = vweird.f32 %v12857_v2 }
 0x6fc   : > { %v8346_v38 = vpop.eup %8345  ;;  %v4873_v40 = vmul.f32 %v12862_v34, %v12836_v57  ;;  %v12901_v50 = vpop.f32.mrf.mxu0  ;;  %v4853_v5 = vand.u32 2147483648, %v12832_v6  ;;  %vm4878_vm10 = vweird.f32 %v12862_v34  ;;  %v5018_v45 = vand.u32 2147483648, %v12854_v41  ;;  %vm12960_vm11 = vmor %vm4847_vm8, %vm4848_vm6 }
 0x6fd   : > { %v12888_v37 = vadd.f32 1.0, %v8346_v38  ;;  %v12890_v19 = vpop.eup %8347  ;;  %v4844_v58 = vsub.f32 1.0, %v4843_v26  ;;  %v12923_v15 = vmul.f32 %v5315_v1, %v12839_v7  ;;  %v4851_v7 = vand.u32 2147483647, %v12832_v6 }
 0x6fe   : > { %v12896_v11 = vpop.eup %8349  ;;  %v4874_v17 = vsub.f32 1.0, %v4873_v40  ;;  %v12906_v29 = vmul.f32 %v12890_v19, %v12847_v25  ;;  %v4981_v40 = vadd.f32 %v12851_v21, %v4980_v35  ;;  %vm4987_vm12 = vcmp.eq.f32.partialorder %v4986_v61, 8.507059e+37 }
 0x6ff   : > { %v12894_v60 = vpop.f32.mrf.mxu1  ;;  %v8352_v39 = vpop.eup %8351  ;;  %8357 = vrcp.f32 %v12888_v37  ;;  %v4845_v38 = vmul.f32 %v12857_v2, %v4844_v58  ;;  %v5008_v26 = vmul.f32 %v12896_v11, %v12854_v41  ;;  %vm4877_vm13 = vweird.f32 %v12836_v57 }
 0x700   : > { %8359 = vpow2.f32 %v6594_v13  ;;  %v12912_v33 = vadd.f32 1.0, %v8352_v39  ;;  %v12914_v47 = vpop.eup %8353  ;;  %v4875_v16 = vmul.f32 %v12862_v34, %v4874_v17  ;;  %v4988_v13 = vand.u32 2147483648, %v12826_v53  ;;  %vm12976_vm14 = vmor %vm4877_vm13, %vm4878_vm10 }
 0x701   : > { %8361 = vpow2.f32 %v6599_v59  ;;  %v12919_v28 = vpop.eup %8355  ;;  %v4846_v58 = vadd.f32 %v12857_v2, %v4845_v38  ;;  %v12930_v59 = vpop.f32.mrf.mxu3  ;;  %v5038_v53 = vmul.f32 %v12914_v47, %v12868_v54  ;;  %v5009_v38 = vsub.f32 1.0, %v5008_v26 }
 0x702   : > { %8363 = vpow2.f32 %v6597_v32  ;;  %v12938_v32 = vpop.f32.mrf.mxu2  ;;  %v4876_v1 = vadd.f32 %v12862_v34, %v4875_v16  ;;  %v4985_v4 = vsel %vm12942_vm9, %v12851_v21, %v4981_v40  ;;  %v4883_v16 = vand.u32 2147483648, %v12836_v57 }
 0x703   : > { %8365 = vrcp.f32 %v12912_v33  ;;  %v4989_v12 = vor.u32 1.1754944e-38, %v4988_v13  ;;  %v4850_v21 = vsel %vm12960_vm11, %v12857_v2, %v4846_v58  ;;  %v4881_v40 = vand.u32 2147483647, %v12836_v57 }
 0x704   : > { %v4661_v10 = vpop.f32.mrf.mxu0  ;;  %v4854_v0 = vor.u32 1.1754944e-38, %v4853_v5  ;;  %v5039_v2 = vsub.f32 1.0, %v5038_v53  ;;  %v5010_v57 = vmul.f32 %v12896_v11, %v5009_v38  ;;  %vm4852_vm15 = vcmp.eq.f32.partialorder %v4851_v7, 8.507059e+37 }
 0x705   : > { %v12933_v39 = vpop.eup %8357  ;;  %v4990_v13 = vsel %vm4987_vm12, %v4989_v12, %v4985_v4  ;;  %v4880_v31 = vsel %vm12976_vm14, %v12862_v34, %v4876_v1  ;;  %v4884_v24 = vor.u32 1.1754944e-38, %v4883_v16  ;;  %vm4882_vm0 = vcmp.eq.f32.partialorder %v4881_v40, 8.507059e+37 }
 0x706   : > { %v8360_v35 = vpop.eup %8359  ;;  %v4903_v6 = vmul.f32 %v12933_v39, %v12888_v37  ;;  %v4855_v5 = vsel %vm4852_vm15, %v4854_v0, %v4850_v21  ;;  %v5317_v12 = vmul.f32 %v4990_v13, %v12778_v14  ;;  %v6601_v53 = vmul.f32 -1.442695, %v12894_v60 }
 0x707   : > { %v12953_v3 = vpop.f32.mrf.mxu1  ;;  %v8362_v8 = vpop.eup %8361  ;;  %v12972_v55 = vadd.f32 1.0, %v8360_v35  ;;  %vm5012_vm1 = vweird.f32 %v12854_v41  ;;  %v4885_v7 = vsel %vm4882_vm0, %v4884_v24, %v4880_v31  ;;  %v12998_v34 = vadd.f32 %v12896_v11, %v5010_v57 }
 0x708   : > { %v8364_v17 = vpop.eup %8363  ;;  %v12986_v35 = vadd.f32 1.0, %v8362_v8  ;;  %v4904_v4 = vsub.f32 1.0, %v4903_v6  ;;  %v5040_v8 = vmul.f32 %v12914_v47, %v5039_v2  ;;  %v6603_v0 = vmul.f32 -1.442695, %v12953_v3 }
 0x709   : > { %v12980_v58 = vpop.eup %8365  ;;  %v12988_v26 = vadd.f32 1.0, %v8364_v17  ;;  %vm5013_vm2 = vweird.f32 %v12896_v11  ;;  %v13001_v1 = vor.u32 1.1754944e-38, %v5018_v45  ;;  %v13004_v14 = vpop.f32.mrf.mxu3  ;;  %v5308_v16 = vmul.f32 %v4855_v5, %v12785_v62 }
 0x70a   : > { %v4933_v51 = vmul.f32 %v12980_v58, %v12912_v33  ;;  %8367 = vrcp.f32 %v12986_v35  ;;  %v5349_v24 = vmul.f32 %v5317_v12, %v12883_v43  ;;  %v5310_v21 = vmul.f32 %v4885_v7, %v12793_v63  ;;  %vm13066_vm11 = vmor %vm5012_vm1, %vm5013_vm2 }
 0x70b   : > { %8369 = vrcp.f32 %v12988_v26  ;;  %v4905_v40 = vmul.f32 %v12933_v39, %v4904_v4  ;;  %vm5042_vm3 = vweird.f32 %v12868_v54  ;;  %v14326_v6 = vand.u32 2147483647, %v12854_v41 }
 0x70c   : > { %v4934_v38 = vsub.f32 1.0, %v4933_v51  ;;  %v13008_v51 = vpop.f32.mrf.mxu2  ;;  %8371 = vpow2.f32 %v6601_v53  ;;  %v5041_v61 = vadd.f32 %v12914_v47, %v5040_v8  ;;  %vm5043_vm5 = vweird.f32 %v12914_v47  ;;  %v13029_v57 = vpop.f32.mrf.mxu0 }
 0x70d   : > { %vm13019_vm4 = vcmp.eq.f32.partialorder %v14326_v6, 8.507059e+37  ;;  %v5048_v43 = vand.u32 2147483648, %v12868_v54  ;;  %8373 = vpow2.f32 %v6603_v0  ;;  %vm4938_vm6 = vweird.f32 %v12980_v58  ;;  %vm13044_vm9 = vmor %vm5042_vm3, %vm5043_vm5 }
 0x70e   : > { %v4935_v17 = vmul.f32 %v12980_v58, %v4934_v38  ;;  %v5340_v13 = vmul.f32 %v5308_v16, %v12901_v50  ;;  %v5342_v2 = vmul.f32 %v5310_v21, %v4661_v10  ;;  %vm4908_vm7 = vweird.f32 %v12933_v39 }
 0x70f   : > { %v13015_v45 = vpop.f32.mrf.mxu1  ;;  %v4943_v31 = vand.u32 2147483648, %v12912_v33  ;;  %v5046_v5 = vand.u32 2147483647, %v12868_v54  ;;  %v5375_v12 = vpack.c.bf16 %v5349_v24, %v12923_v15  ;;  %v4906_v53 = vadd.f32 %v12933_v39, %v4905_v40 }
 0x710   : > { %v4936_v63 = vadd.f32 %v12980_v58, %v4935_v17  ;;  %v13035_v4 = vpop.eup %8367  ;;  %vm4937_vm8 = vweird.f32 %v12912_v33  ;;  %v4941_v7 = vand.u32 2147483647, %v12912_v33  ;;  %v5372_v50 = vpack.c.bf16 %v5342_v2, %v5340_v13 }
 0x711   : > { %v13048_v38 = vpop.eup %8369  ;;  %8375 = vrcp.f32 %v12972_v55  ;;  %v6598_v15 = vmul.f32 -1.442695, %v13008_v51  ;;  %v4913_v8 = vand.u32 2147483648, %v12888_v37  ;;  %vm13055_vm10 = vmor %vm4937_vm8, %vm4938_vm6  ;;  %v5045_v54 = vsel %vm13044_vm9, %v12914_v47, %v5041_v61  ;;  %5533 = vmatmul.bf16.gmra.mxu1 %v5375_v12 }
 0x712   : > { %v8372_v0 = vpop.eup %8371  ;;  %vm4907_vm12 = vweird.f32 %v12888_v37  ;;  %v4911_v24 = vand.u32 2147483647, %v12888_v37  ;;  %v4940_v17 = vsel %vm13055_vm10, %v12980_v58, %v4936_v63  ;;  %v5049_v21 = vor.u32 1.1754944e-38, %v5048_v43  ;;  %5572 = vmatmul.bf16.vlgmr.msrb.gmra.mxu2 %v5372_v50 }
 0x713   : > { %v8374_v47 = vpop.eup %8373  ;;  %v5015_v41 = vsel %vm13066_vm11, %v12896_v11, %v12998_v34  ;;  %v5098_v40 = vmul.f32 %v13035_v4, %v12986_v35  ;;  %vm13083_vm13 = vmor %vm4907_vm12, %vm4908_vm7  ;;  %v4944_v37 = vor.u32 1.1754944e-38, %v4943_v31  ;;  %vm5047_vm14 = vcmp.eq.f32.partialorder %v5046_v5, 8.507059e+37  ;;  %v13092_v34 = vpop.f32.mrf.mxu3 }
 0x714   : > { %v5068_v58 = vmul.f32 %v13048_v38, %v12988_v26  ;;  %v4910_v61 = vsel %vm13083_vm13, %v12933_v39, %v4906_v53  ;;  %vm4942_vm15 = vcmp.eq.f32.partialorder %v4941_v7, 8.507059e+37  ;;  %v5050_v11 = vsel %vm5047_vm14, %v5049_v21, %v5045_v54  ;;  %v13094_v63 = vpop.f32.mrf.mxu2  ;;  %v4666_v53 = vpop.f32.mrf.mxu0 }
 0x715   : > { %8377 = vpow2.f32 %v6598_v15  ;;  %v4914_v43 = vor.u32 1.1754944e-38, %v4913_v8  ;;  %v13096_v13 = vadd.f32 1.0, %v8372_v0  ;;  %v4945_v2 = vsel %vm4942_vm15, %v4944_v37, %v4940_v17 }
 0x716   : > { %v4964_v31 = vsub.f32 1.0, %v12906_v29  ;;  %v5020_v5 = vsel %vm13019_vm4, %v13001_v1, %v5015_v41  ;;  %vm4912_vm0 = vcmp.eq.f32.partialorder %v4911_v24, 8.507059e+37  ;;  %v13102_v12 = vadd.f32 1.0, %v8374_v47 }
 0x717   : > { %v13104_v39 = vpop.f32.mrf.mxu1  ;;  %v13106_v7 = vpop.eup %8375  ;;  %v6596_v10 = vmul.f32 -1.442695, %v12938_v32  ;;  %v5099_v50 = vsub.f32 1.0, %v5098_v40  ;;  %v4915_v15 = vsel %vm4912_vm0, %v4914_v43, %v4910_v61  ;;  %v5321_v8 = vmul.f32 %v5050_v11, %v12795_v27 }
 0x718   : > { %vm4967_vm1 = vweird.f32 %v12847_v25  ;;  %v4971_v29 = vand.u32 2147483647, %v12847_v25  ;;  %v5069_v62 = vsub.f32 1.0, %v5068_v58  ;;  %v6600_v1 = vmul.f32 -1.442695, %v13094_v63 }
 0x719   : > { %v5314_v33 = vmul.f32 %v4945_v2, %v12845_v56  ;;  %v13115_v54 = vadd.f32 1.0, %v12919_v28  ;;  %v5319_v0 = vmul.f32 %v5020_v5, %v12787_v49  ;;  %8379 = vrcp.f32 %v13096_v13 }
 0x71a   : > { %v6607_v16 = vmul.f32 -1.442695, %v13104_v39  ;;  %v4965_v27 = vmul.f32 %v12890_v19, %v4964_v31  ;;  %v5312_v24 = vmul.f32 %v4915_v15, %v12822_v20  ;;  %8381 = vrcp.f32 %v13102_v12 }
 0x71b   : > { %v5346_v17 = vmul.f32 %v5314_v33, %v4666_v53  ;;  %v8378_v21 = vpop.eup %8377  ;;  %8383 = vpow2.f32 %v6596_v10  ;;  %v5100_v56 = vmul.f32 %v13035_v4, %v5099_v50  ;;  %v5353_v28 = vmul.f32 %v5321_v8, %v13004_v14  ;;  %v13139_v58 = vpop.f32.mrf.mxu3 }
 0x71c   : > { %v6605_v47 = vmul.f32 -1.442695, %v13015_v45  ;;  %v5023_v49 = vmul.f32 %v13106_v7, %v12972_v55  ;;  %v5070_v41 = vmul.f32 %v13048_v38, %v5069_v62  ;;  %8385 = vpow2.f32 %v6600_v1  ;;  %v13141_v11 = vpop.f32.mrf.mxu0 }
 0x71d   : > { %v5344_v40 = vmul.f32 %v5312_v24, %v13029_v57  ;;  %vm4968_vm2 = vweird.f32 %v12890_v19  ;;  %v4973_v20 = vand.u32 2147483648, %v12847_v25  ;;  %v5351_v6 = vmul.f32 %v5319_v0, %v12930_v59  ;;  %v13147_v59 = vpop.f32.mrf.mxu2 }
 0x71e   : > { %8387 = vpow2.f32 %v6607_v16  ;;  %v13134_v37 = vadd.f32 %v12890_v19, %v4965_v27  ;;  %v13137_v14 = vadd.f32 1.0, %v8378_v21  ;;  %v5101_v43 = vadd.f32 %v13035_v4, %v5100_v56  ;;  %vm13158_vm5 = vmor %vm4967_vm1, %vm4968_vm2 }
 0x71f   : > { %8389 = vrcp.f32 %v13115_v54  ;;  %v5374_v61 = vpack.c.bf16 %v5346_v17, %v5344_v40  ;;  %v13143_v57 = vpop.eup %8379  ;;  %vm5103_vm3 = vweird.f32 %v13035_v4  ;;  %v5377_v2 = vpack.c.bf16 %v5353_v28, %v5351_v6  ;;  %v13179_v27 = vpop.f32.mrf.mxu1 }
 0x720   : > { %8391 = vpow2.f32 %v6605_v47  ;;  %v13149_v31 = vpop.eup %8381  ;;  %v5024_v5 = vsub.f32 1.0, %v5023_v49  ;;  %v5071_v53 = vadd.f32 %v13048_v38, %v5070_v41  ;;  %vm5073_vm4 = vweird.f32 %v13048_v38 }
 0x721   : > { %v5108_v10 = vand.u32 2147483648, %v12986_v35  ;;  %v8384_v50 = vpop.eup %8383  ;;  %vm13162_vm6 = vcmp.eq.f32.partialorder %v4971_v29, 8.507059e+37  ;;  %v5078_v62 = vand.u32 2147483648, %v12988_v26  ;;  %vm5102_vm7 = vweird.f32 %v12986_v35  ;;  %5538 = vmatmul.bf16.gmra.mxu1 %v5377_v2 }
 0x722   : > { %v5106_v1 = vand.u32 2147483647, %v12986_v35  ;;  %v8386_v33 = vpop.eup %8385  ;;  %v4974_v0 = vor.u32 1.1754944e-38, %v4973_v20  ;;  %vm5072_vm8 = vweird.f32 %v12988_v26  ;;  %v5076_v25 = vand.u32 2147483647, %v12988_v26  ;;  %vm13173_vm9 = vmor %vm5102_vm7, %vm5103_vm3  ;;  %5577 = vmatmul.bf16.gmra.mxu2 %v5374_v61 }
 0x723   : > { %v5128_v16 = vmul.f32 %v13143_v57, %v13096_v13  ;;  %v4970_v24 = vsel %vm13158_vm5, %v12890_v19, %v13134_v37  ;;  %vm13187_vm10 = vmor %vm5072_vm8, %vm5073_vm4  ;;  %8393 = vrcp.f32 %v13137_v14  ;;  %v5105_v17 = vsel %vm13173_vm9, %v13035_v4, %v5101_v43 }
 0x724   : > { %v8388_v35 = vpop.eup %8387  ;;  %v5158_v21 = vmul.f32 %v13149_v31, %v13102_v12  ;;  %v5025_v28 = vmul.f32 %v13106_v7, %v5024_v5  ;;  %v13200_v19 = vadd.f32 1.0, %v8384_v50  ;;  %v5075_v47 = vsel %vm13187_vm10, %v13048_v38, %v5071_v53  ;;  %v13210_v43 = vpop.f32.mrf.mxu0 }
 0x725   : > { %v13197_v56 = vpop.eup %8389  ;;  %v5109_v49 = vor.u32 1.1754944e-38, %v5108_v10  ;;  %v5033_v40 = vand.u32 2147483648, %v12972_v55  ;;  %v5079_v20 = vor.u32 1.1754944e-38, %v5078_v62  ;;  %vm5107_vm11 = vcmp.eq.f32.partialorder %v5106_v1, 8.507059e+37  ;;  %v13220_v50 = vpop.f32.mrf.mxu3 }
 0x726   : > { %v8392_v41 = vpop.eup %8391  ;;  %v13206_v4 = vadd.f32 1.0, %v8386_v33  ;;  %vm5077_vm12 = vcmp.eq.f32.partialorder %v5076_v25, 8.507059e+37  ;;  %v5129_v37 = vsub.f32 1.0, %v5128_v16  ;;  %v13208_v61 = vadd.f32 1.0, %v8388_v35  ;;  %v13233_v29 = vpop.f32.mrf.mxu2 }
 0x727   : > { %v5110_v6 = vsel %vm5107_vm11, %v5109_v49, %v5105_v17  ;;  %vm5028_vm13 = vweird.f32 %v13106_v7  ;;  %v5080_v2 = vsel %vm5077_vm12, %v5079_v20, %v5075_v47  ;;  %v6602_v38 = vmul.f32 -1.442695, %v13147_v59  ;;  %v13256_v26 = vpop.f32.mrf.mxu1 }
 0x728   : > { %v5159_v5 = vsub.f32 1.0, %v5158_v21  ;;  %v13215_v53 = vadd.f32 %v13106_v7, %v5025_v28  ;;  %8395 = vrcp.f32 %v13200_v19  ;;  %v13218_v10 = vadd.f32 1.0, %v8392_v41 }
 0x729   : > { %v4993_v15 = vmul.f32 %v13197_v56, %v13115_v54  ;;  %v13224_v62 = vpop.eup %8393  ;;  %v13228_v1 = vsel %vm13162_vm6, %v4974_v0, %v4970_v24  ;;  %v5031_v33 = vand.u32 2147483647, %v12972_v55  ;;  %v5325_v25 = vmul.f32 %v5110_v6, %v12849_v18 }
 0x72a   : > { %8397 = vrcp.f32 %v13206_v4  ;;  %vm5027_vm14 = vweird.f32 %v12972_v55  ;;  %v5323_v16 = vmul.f32 %v5080_v2, %v12824_v42  ;;  %v5130_v35 = vmul.f32 %v13143_v57, %v5129_v37 }
 0x72b   : > { %8399 = vrcp.f32 %v13208_v61  ;;  %vm13241_vm15 = vmor %vm5027_vm14, %vm5028_vm13  ;;  %v5034_v0 = vor.u32 1.1754944e-38, %v5033_v40  ;;  %v5160_v18 = vmul.f32 %v13149_v31, %v5159_v5  ;;  %v6609_v24 = vmul.f32 -1.442695, %v13179_v27 }
 0x72c   : > { %8401 = vpow2.f32 %v6602_v38  ;;  %v5030_v55 = vsel %vm13241_vm15, %v13106_v7, %v13215_v53  ;;  %v13253_v42 = vmul.f32 %v13224_v62, %v13137_v14  ;;  %v4994_v17 = vsub.f32 1.0, %v4993_v15  ;;  %v13272_v20 = vpop.f32.mrf.mxu0 }
 0x72d   : > { %8403 = vrcp.f32 %v13218_v10  ;;  %vm13258_vm0 = vcmp.eq.f32.partialorder %v5031_v33, 8.507059e+37  ;;  %vm5132_vm1 = vweird.f32 %v13096_v13  ;;  %vm5133_vm2 = vweird.f32 %v13143_v57 }
 0x72e   : > { %v5136_v28 = vand.u32 2147483647, %v13096_v13  ;;  %v5357_v7 = vmul.f32 %v5325_v25, %v13139_v58  ;;  %v13266_v47 = vpop.eup %8395  ;;  %v5131_v49 = vadd.f32 %v13143_v57, %v5130_v35  ;;  %v6604_v41 = vmul.f32 -1.442695, %v13233_v29  ;;  %vm13289_vm6 = vmor %vm5132_vm1, %vm5133_vm2 }
 0x72f   : > { %v5355_v40 = vmul.f32 %v5323_v16, %v13092_v34  ;;  %vm4998_vm3 = vweird.f32 %v13197_v56  ;;  %v5161_v37 = vadd.f32 %v13149_v31, %v5160_v18  ;;  %vm5163_vm4 = vweird.f32 %v13149_v31 }
 0x730   : > { %v13274_v6 = vpop.eup %8397  ;;  %8405 = vpow2.f32 %v6609_v24  ;;  %v6611_v58 = vmul.f32 -1.442695, %v13256_v26  ;;  %vm5162_vm5 = vweird.f32 %v13102_v12  ;;  %v5168_v38 = vand.u32 2147483648, %v13102_v12 }
 0x731   : > { %v13279_v2 = vpop.eup %8399  ;;  %v4995_v34 = vmul.f32 %v13197_v56, %v4994_v17  ;;  %v5001_v5 = vand.u32 2147483647, %v13115_v54  ;;  %v5166_v33 = vand.u32 2147483647, %v13102_v12  ;;  %v5003_v25 = vand.u32 2147483648, %v13115_v54  ;;  %vm13302_vm7 = vmor %vm5162_vm5, %vm5163_vm4  ;;  %v4637_v17 = vpop.f32.mrf.mxu3 }
 0x732   : > { %v8402_v53 = vpop.eup %8401  ;;  %8407 = vpow2.f32 %v6611_v58  ;;  %v5379_v16 = vpack.c.bf16 %v5357_v7, %v5355_v40  ;;  %v5113_v8 = vmul.f32 %v13274_v6, %v13206_v4  ;;  %v5138_v18 = vand.u32 2147483648, %v13096_v13  ;;  %v13314_v13 = vpop.f32.mrf.mxu2 }
 0x733   : > { %v13295_v35 = vpop.eup %8403  ;;  %v4996_v12 = vadd.f32 %v13197_v56, %v4995_v34  ;;  %vm4997_vm8 = vweird.f32 %v13115_v54  ;;  %v5135_v7 = vsel %vm13289_vm6, %v13143_v57, %v5131_v49  ;;  %v5165_v40 = vsel %vm13302_vm7, %v13149_v31, %v5161_v37 }
 0x734   : > { %v5218_v58 = vmul.f32 %v13279_v2, %v13208_v61  ;;  %vm4999_vm9 = vmor %vm4997_vm8, %vm4998_vm3  ;;  %v5004_v30 = vor.u32 1.1754944e-38, %v5003_v25  ;;  %5543 = vmatmul.bf16.gmra.mxu1 %v5379_v16  ;;  %v5169_v34 = vor.u32 1.1754944e-38, %v5168_v38  ;;  %vm5002_vm10 = vcmp.eq.f32.partialorder %v5001_v5, 8.507059e+37  ;;  %v13328_v24 = vpop.f32.mrf.mxu0 }
 0x735   : > { %v5000_v54 = vsel %vm4999_vm9, %v13197_v56, %v4996_v12  ;;  %v5053_v57 = vmul.f32 %v13266_v47, %v13200_v19  ;;  %vm5167_vm11 = vcmp.eq.f32.partialorder %v5166_v33, 8.507059e+37  ;;  %8409 = vpow2.f32 %v6604_v41 }
 0x736   : > { %v8406_v49 = vpop.eup %8405  ;;  %v5188_v31 = vmul.f32 %v13295_v35, %v13218_v10  ;;  %v5005_v37 = vsel %vm5002_vm10, %v5004_v30, %v5000_v54  ;;  %v5035_v15 = vsel %vm13258_vm0, %v5034_v0, %v5030_v55  ;;  %v5084_v25 = vsub.f32 1.0, %v13253_v42 }
 0x737   : > { %v5139_v16 = vor.u32 1.1754944e-38, %v5138_v18  ;;  %v5170_v38 = vsel %vm5167_vm11, %v5169_v34, %v5165_v40  ;;  %vm5137_vm12 = vcmp.eq.f32.partialorder %v5136_v28, 8.507059e+37  ;;  %v5219_v5 = vsub.f32 1.0, %v5218_v58 }
 0x738   : > { %v8408_v56 = vpop.eup %8407  ;;  %v5318_v12 = vmul.f32 %v5005_v37, %v12842_v44  ;;  %v5054_v33 = vsub.f32 1.0, %v5053_v57  ;;  %v5316_v41 = vmul.f32 %v13228_v1, %v12801_v22  ;;  %v13333_v30 = vadd.f32 1.0, %v8406_v49 }
 0x739   : > { %v5140_v9 = vsel %vm5137_vm12, %v5139_v16, %v5135_v7  ;;  %v13335_v21 = vadd.f32 1.0, %v8408_v56  ;;  %v5114_v0 = vsub.f32 1.0, %v5113_v8  ;;  %v5329_v55 = vmul.f32 %v5170_v38, %v12953_v3 }
 0x73a   : > { %v5189_v42 = vsub.f32 1.0, %v5188_v31  ;;  %v5350_v18 = vmul.f32 %v5318_v12, %v13210_v43  ;;  %v13340_v28 = vmul.f32 %v5035_v15, %v12875_v48  ;;  %v5348_v44 = vmul.f32 %v5316_v41, %v13141_v11  ;;  %v13352_v48 = vpop.f32.mrf.mxu3  ;;  %v13357_v54 = vpop.f32.mrf.mxu2 }
 0x73b   : > { %8411 = vrcp.f32 %v13335_v21  ;;  %v5055_v22 = vmul.f32 %v13266_v47, %v5054_v33  ;;  %v8410_v1 = vpop.eup %8409  ;;  %v5085_v7 = vmul.f32 %v13224_v62, %v5084_v25  ;;  %v5091_v40 = vand.u32 2147483647, %v13137_v14 }
 0x73c   : > { %v5327_v8 = vmul.f32 %v5140_v9, %v12894_v60  ;;  %v5220_v3 = vmul.f32 %v13279_v2, %v5219_v5  ;;  %v13349_v58 = vadd.f32 1.0, %v8402_v53  ;;  %8413 = vrcp.f32 %v13333_v30  ;;  %v13366_v31 = vpop.f32.mrf.mxu0 }
 0x73d   : > { %v5376_v43 = vpack.c.bf16 %v5350_v18, %v5348_v44  ;;  %vm5058_vm13 = vweird.f32 %v13266_v47  ;;  %v5115_v11 = vmul.f32 %v13274_v6, %v5114_v0  ;;  %v5190_v34 = vmul.f32 %v13295_v35, %v5189_v42 }
 0x73e   : > { %v5361_v57 = vmul.f32 %v5329_v55, %v4637_v17  ;;  %v5061_v9 = vand.u32 2147483647, %v13200_v19  ;;  %vm5088_vm14 = vweird.f32 %v13224_v62  ;;  %v13361_v60 = vadd.f32 1.0, %v8410_v1 }
 0x73f   : > { %5582 = vmatmul.bf16.gmra.mxu2 %v5376_v43  ;;  %v5056_v53 = vadd.f32 %v13266_v47, %v5055_v22  ;;  %vm5057_vm15 = vweird.f32 %v13200_v19  ;;  %v5063_v49 = vand.u32 2147483648, %v13200_v19  ;;  %v5221_v37 = vadd.f32 %v13279_v2, %v5220_v3 }
 0x740   : > { %vm5222_vm0 = vweird.f32 %v13208_v61  ;;  %vm5223_vm1 = vweird.f32 %v13279_v2  ;;  %v5359_v17 = vmul.f32 %v5327_v8, %v13220_v50  ;;  %vm13374_vm2 = vmor %vm5057_vm15, %vm5058_vm13  ;;  %vm5087_vm3 = vweird.f32 %v13137_v14 }
 0x741   : > { %v13378_v25 = vpop.eup %8411  ;;  %v5226_v19 = vand.u32 2147483647, %v13208_v61  ;;  %v5228_v16 = vand.u32 2147483648, %v13208_v61  ;;  %v5060_v38 = vsel %vm13374_vm2, %v13266_v47, %v5056_v53  ;;  %v5064_v56 = vor.u32 1.1754944e-38, %v5063_v49  ;;  %vm13396_vm6 = vmor %vm5222_vm0, %vm5223_vm1 }
 0x742   : > { %v5191_v50 = vadd.f32 %v13295_v35, %v5190_v34  ;;  %vm5193_vm4 = vweird.f32 %v13295_v35  ;;  %vm5062_vm5 = vcmp.eq.f32.partialorder %v5061_v9, 8.507059e+37  ;;  %v5381_v5 = vpack.c.bf16 %v5361_v57, %v5359_v17  ;;  %v13388_v12 = vpop.eup %8413  ;;  %v4642_v43 = vpop.f32.mrf.mxu3  ;;  %vm13440_vm12 = vmor %vm5087_vm3, %vm5088_vm14 }
 0x743   : > { %8415 = vrcp.f32 %v13361_v60  ;;  %v5198_v33 = vand.u32 2147483648, %v13218_v10  ;;  %v6608_v47 = vmul.f32 -1.442695, %v13357_v54  ;;  %v5065_v0 = vsel %vm5062_vm5, %v5064_v56, %v5060_v38 }
 0x744   : > { %vm5192_vm7 = vweird.f32 %v13218_v10  ;;  %v5196_v55 = vand.u32 2147483647, %v13218_v10  ;;  %v5225_v42 = vsel %vm13396_vm6, %v13279_v2, %v5221_v37  ;;  %v5278_v18 = vmul.f32 %v13378_v25, %v13335_v21  ;;  %5548 = vmatmul.bf16.gmra.mxu1 %v5381_v5  ;;  %v13428_v53 = vpop.f32.mrf.mxu0 }
 0x745   : > { %v5086_v61 = vadd.f32 %v13224_v62, %v5085_v7  ;;  %vm5118_vm8 = vweird.f32 %v13274_v6  ;;  %vm13412_vm9 = vmor %vm5192_vm7, %vm5193_vm4  ;;  %v5229_v22 = vor.u32 1.1754944e-38, %v5228_v16  ;;  %v5322_v10 = vmul.f32 %v5065_v0, %v12938_v32  ;;  %v13426_v32 = vpop.f32.mrf.mxu2 }
 0x746   : > { %8417 = vrcp.f32 %v13349_v58  ;;  %v5195_v2 = vsel %vm13412_vm9, %v13295_v35, %v5191_v50  ;;  %vm5227_vm10 = vcmp.eq.f32.partialorder %v5226_v19, 8.507059e+37  ;;  %v5248_v1 = vmul.f32 %v13388_v12, %v13333_v30 }
 0x747   : > { %v5199_v7 = vor.u32 1.1754944e-38, %v5198_v33  ;;  %v6606_v8 = vmul.f32 -1.442695, %v13314_v13  ;;  %v5230_v3 = vsel %vm5227_vm10, %v5229_v22, %v5225_v42  ;;  %v5354_v34 = vmul.f32 %v5322_v10, %v13328_v24 }
 0x748   : > { %v5116_v57 = vadd.f32 %v13274_v6, %v5115_v11  ;;  %vm5197_vm11 = vcmp.eq.f32.partialorder %v5196_v55, 8.507059e+37  ;;  %8419 = vpow2.f32 %v6608_v47  ;;  %v5279_v9 = vsub.f32 1.0, %v5278_v18 }
 0x749   : > { %v13430_v35 = vpop.eup %8415  ;;  %v5093_v49 = vand.u32 2147483648, %v13137_v14  ;;  %v5123_v37 = vand.u32 2147483648, %v13206_v4  ;;  %v5200_v17 = vsel %vm5197_vm11, %v5199_v7, %v5195_v2  ;;  %v5352_v15 = vmul.f32 %v13340_v28, %v13272_v20 }
 0x74a   : > { %vm5117_vm13 = vweird.f32 %v13206_v4  ;;  %v5121_v11 = vand.u32 2147483647, %v13206_v4  ;;  %v5333_v19 = vmul.f32 %v5230_v3, %v13104_v39  ;;  %v5249_v16 = vsub.f32 1.0, %v5248_v1  ;;  %v4645_v22 = vpop.f32.mrf.mxu3 }
 0x74b   : > { %vm13449_vm15 = vmor %vm5117_vm13, %vm5118_vm8  ;;  %8421 = vpow2.f32 %v6606_v8  ;;  %v5378_v20 = vpack.c.bf16 %v5354_v34, %v5352_v15  ;;  %v5090_v56 = vsel %vm13440_vm12, %v13224_v62, %v5086_v61  ;;  %v5331_v39 = vmul.f32 %v5200_v17, %v13015_v45 }
 0x74c   : > { %v13453_v28 = vpop.eup %8417  ;;  %v5120_v4 = vsel %vm13449_vm15, %v13274_v6, %v5116_v57  ;;  %v5280_v50 = vmul.f32 %v13378_v25, %v5279_v9  ;;  %v5094_v5 = vor.u32 1.1754944e-38, %v5093_v49  ;;  %v5124_v33 = vor.u32 1.1754944e-38, %v5123_v37  ;;  %v13482_v8 = vpop.f32.mrf.mxu0 }
 0x74d   : > { %v5173_v41 = vmul.f32 %v13430_v35, %v13361_v60  ;;  %vm5092_vm14 = vcmp.eq.f32.partialorder %v5091_v40, 8.507059e+37  ;;  %vm5122_vm0 = vcmp.eq.f32.partialorder %v5121_v11, 8.507059e+37  ;;  %v5250_v62 = vmul.f32 %v13388_v12, %v5249_v16  ;;  %v13480_v1 = vpop.f32.mrf.mxu2 }
 0x74e   : > { %v8420_v47 = vpop.eup %8419  ;;  %v5365_v0 = vmul.f32 %v5333_v19, %v4642_v43  ;;  %v5095_v55 = vsel %vm5092_vm14, %v5094_v5, %v5090_v56  ;;  %v5125_v42 = vsel %vm5122_vm0, %v5124_v33, %v5120_v4  ;;  %v5143_v45 = vmul.f32 %v13453_v28, %v13349_v58 }
 0x74f   : > { %5587 = vmatmul.bf16.gmra.mxu2 %v5378_v20  ;;  %v5281_v6 = vadd.f32 %v13378_v25, %v5280_v50  ;;  %vm5283_vm1 = vweird.f32 %v13378_v25  ;;  %v5363_v18 = vmul.f32 %v5331_v39, %v13352_v48  ;;  %v5174_v44 = vsub.f32 1.0, %v5173_v41 }
 0x750   : > { %v13473_v14 = vadd.f32 1.0, %v8420_v47  ;;  %vm5253_vm2 = vweird.f32 %v13388_v12  ;;  %v5288_v40 = vand.u32 2147483648, %v13335_v21  ;;  %v5251_v10 = vadd.f32 %v13388_v12, %v5250_v62 }
 0x751   : > { %v8422_v61 = vpop.eup %8421  ;;  %vm5282_vm3 = vweird.f32 %v13335_v21  ;;  %v5286_v2 = vand.u32 2147483647, %v13335_v21  ;;  %v5383_v7 = vpack.c.bf16 %v5365_v0, %v5363_v18  ;;  %v5324_v48 = vmul.f32 %v5095_v55, %v13008_v51 }
 0x752   : > { %v5258_v3 = vand.u32 2147483648, %v13333_v30  ;;  %vm13488_vm4 = vmor %vm5282_vm3, %vm5283_vm1  ;;  %v13492_v34 = vadd.f32 1.0, %v8422_v61  ;;  %vm5252_vm5 = vweird.f32 %v13333_v30  ;;  %v5256_v21 = vand.u32 2147483647, %v13333_v30  ;;  %v4647_v20 = vpop.f32.mrf.mxu3 }
 0x753   : > { %v5285_v57 = vsel %vm13488_vm4, %v13378_v25, %v5281_v6  ;;  %v5326_v51 = vmul.f32 %v5125_v42, %v13094_v63  ;;  %v5144_v9 = vsub.f32 1.0, %v5143_v45  ;;  %vm5254_vm6 = vmor %vm5252_vm5, %vm5253_vm2  ;;  %v5289_v49 = vor.u32 1.1754944e-38, %v5288_v40 }
 0x754   : > { %5553 = vmatmul.bf16.gmra.mxu1 %v5383_v7  ;;  %v6612_v37 = vmul.f32 -1.442695, %v13480_v1  ;;  %v5175_v17 = vmul.f32 %v13430_v35, %v5174_v44  ;;  %8423 = vrcp.f32 %v13473_v14  ;;  %v5255_v30 = vsel %vm5254_vm6, %v13388_v12, %v5251_v10  ;;  %v4686_v50 = vpop.f32.mrf.mxu0 }
 0x755   : > { %vm5287_vm7 = vcmp.eq.f32.partialorder %v5286_v2, 8.507059e+37  ;;  %v5259_v15 = vor.u32 1.1754944e-38, %v5258_v3  ;;  %v6610_v25 = vmul.f32 -1.442695, %v13426_v32  ;;  %v5358_v63 = vmul.f32 %v5326_v51, %v13428_v53 }
 0x756   : > { %v5290_v24 = vsel %vm5287_vm7, %v5289_v49, %v5285_v57  ;;  %8425 = vrcp.f32 %v13492_v34  ;;  %vm5257_vm8 = vcmp.eq.f32.partialorder %v5256_v21, 8.507059e+37  ;;  %v5145_v11 = vmul.f32 %v13453_v28, %v5144_v9 }
 0x757   : > { %v5260_v19 = vsel %vm5257_vm8, %v5259_v15, %v5255_v30  ;;  %8427 = vpow2.f32 %v6612_v37  ;;  %v5356_v16 = vmul.f32 %v5324_v48, %v13366_v31  ;;  %v5337_v38 = vmul.f32 %v5290_v24, %v13256_v26 }
 0x758   : > { %v5176_v12 = vadd.f32 %v13430_v35, %v5175_v17  ;;  %vm5178_vm9 = vweird.f32 %v13430_v35  ;;  %8429 = vpow2.f32 %v6610_v25  ;;  %v5183_v53 = vand.u32 2147483648, %v13361_v60 }
 0x759   : > { %v5380_v56 = vpack.c.bf16 %v5358_v63, %v5356_v16  ;;  %v5335_v39 = vmul.f32 %v5260_v19, %v13179_v27  ;;  %v5146_v5 = vadd.f32 %v13453_v28, %v5145_v11  ;;  %vm5148_vm10 = vweird.f32 %v13453_v28 }
 0x75a   : > { %v13514_v4 = vpop.eup %8423  ;;  %vm5177_vm11 = vweird.f32 %v13361_v60  ;;  %v5181_v26 = vand.u32 2147483647, %v13361_v60  ;;  %v5153_v33 = vand.u32 2147483648, %v13349_v58  ;;  %v5369_v47 = vmul.f32 %v5337_v38, %v4647_v20 }
 0x75b   : > { %vm13525_vm12 = vmor %vm5177_vm11, %vm5178_vm9  ;;  %vm5147_vm13 = vweird.f32 %v13349_v58  ;;  %v5151_v27 = vand.u32 2147483647, %v13349_v58  ;;  %v5233_v60 = vmul.f32 %v13514_v4, %v13473_v14  ;;  %v5184_v55 = vor.u32 1.1754944e-38, %v5183_v53 }
 0x75c   : > { %v13522_v31 = vpop.eup %8425  ;;  %v5180_v0 = vsel %vm13525_vm12, %v13430_v35, %v5176_v12  ;;  %vm5149_vm15 = vmor %vm5147_vm13, %vm5148_vm10  ;;  %v5367_v42 = vmul.f32 %v5335_v39, %v4645_v22  ;;  %vm5182_vm14 = vcmp.eq.f32.partialorder %v5181_v26, 8.507059e+37  ;;  %v5154_v61 = vor.u32 1.1754944e-38, %v5153_v33 }
 0x75d   : > { %v8428_v62 = vpop.eup %8427  ;;  %v5150_v6 = vsel %vm5149_vm15, %v13453_v28, %v5146_v5  ;;  %v5203_v18 = vmul.f32 %v13522_v31, %v13492_v34  ;;  %v5185_v58 = vsel %vm5182_vm14, %v5184_v55, %v5180_v0  ;;  %vm5152_vm0 = vcmp.eq.f32.partialorder %v5151_v27, 8.507059e+37  ;;  %v4689_v28 = vpop.f32.mrf.mxu0 }
 0x75e   : > { %v8430_v45 = vpop.eup %8429  ;;  %v13539_v44 = vadd.f32 1.0, %v8428_v62  ;;  %v5385_v40 = vpack.c.bf16 %v5369_v47, %v5367_v42  ;;  %v5234_v35 = vsub.f32 1.0, %v5233_v60  ;;  %v5155_v10 = vsel %vm5152_vm0, %v5154_v61, %v5150_v6 }
 0x75f   : > { %5592 = vmatmul.bf16.gmra.mxu2 %v5380_v56  ;;  %v13541_v2 = vadd.f32 1.0, %v8430_v45  ;;  %v5330_v22 = vmul.f32 %v5185_v58, %v13233_v29  ;;  %v5204_v7 = vsub.f32 1.0, %v5203_v18  ;;  %v5328_v48 = vmul.f32 %v5155_v10, %v13147_v59 }
 0x760   : > { %8431 = vrcp.f32 %v13539_v44  ;;  %v5235_v3 = vmul.f32 %v13514_v4, %v5234_v35  ;;  %vm5238_vm1 = vweird.f32 %v13514_v4  ;;  %v5243_v49 = vand.u32 2147483648, %v13473_v14 }
 0x761   : > { %v5362_v43 = vmul.f32 %v5330_v22, %v4686_v50  ;;  %8433 = vrcp.f32 %v13541_v2  ;;  %v5205_v21 = vmul.f32 %v13522_v31, %v5204_v7  ;;  %v5360_v57 = vmul.f32 %v5328_v48, %v13482_v8 }
 0x762   : > { %v5236_v51 = vadd.f32 %v13514_v4, %v5235_v3  ;;  %vm5208_vm2 = vweird.f32 %v13522_v31  ;;  %vm5237_vm3 = vweird.f32 %v13473_v14  ;;  %v5241_v59 = vand.u32 2147483647, %v13473_v14 }
 0x763   : > { %v5382_v29 = vpack.c.bf16 %v5362_v43, %v5360_v57  ;;  %v5206_v37 = vadd.f32 %v13522_v31, %v5205_v21  ;;  %v5213_v30 = vand.u32 2147483648, %v13492_v34  ;;  %vm5239_vm4 = vmor %vm5237_vm3, %vm5238_vm1  ;;  %vm5207_vm5 = vweird.f32 %v13492_v34 }
 0x764   : > { %5558 = vmatmul.bf16.gmra.mxu1 %v5385_v40  ;;  %v5211_v8 = vand.u32 2147483647, %v13492_v34  ;;  %v5240_v15 = vsel %vm5239_vm4, %v13514_v4, %v5236_v51  ;;  %vm5209_vm6 = vmor %vm5207_vm5, %vm5208_vm2  ;;  %v5244_v24 = vor.u32 1.1754944e-38, %v5243_v49  ;;  %vm5242_vm7 = vcmp.eq.f32.partialorder %v5241_v59, 8.507059e+37  ;;  %v5524_v45 = vpop.f32.mrf.mxu1  ;;  %v14367_v59 = vld [vmem:[#allocation27_spill] sm:$0xff] }
 0x765   : > { %v4691_v63 = vpop.f32.mrf.mxu0  ;;  %v5210_v11 = vsel %vm5209_vm6, %v13522_v31, %v5206_v37  ;;  %v5214_v19 = vor.u32 1.1754944e-38, %v5213_v30  ;;  %v5303_v33 = vand.u32 2147483648, %v13539_v44  ;;  %vm5297_vm11 = vweird.f32 %v13539_v44 }
 0x766   : > { %v8432_v9 = vpop.eup %8431  ;;  %v5245_v16 = vsel %vm5242_vm7, %v5244_v24, %v5240_v15  ;;  %vm5212_vm8 = vcmp.eq.f32.partialorder %v5211_v8, 8.507059e+37  ;;  %v5301_v47 = vand.u32 2147483647, %v13539_v44  ;;  %vm5267_vm13 = vweird.f32 %v13541_v2  ;;  %v14368_v15 = vld [vmem:[#allocation28_spill] sm:$0xff] }
 0x767   : > { %v8434_v17 = vpop.eup %8433  ;;  %v5293_v25 = vmul.f32 %v8432_v9, %v13539_v44  ;;  %v5215_v12 = vsel %vm5212_vm8, %v5214_v19, %v5210_v11  ;;  %v5334_v34 = vmul.f32 %v5245_v16, %v13357_v54  ;;  %vm5298_vm9 = vweird.f32 %v8432_v9  ;;  %v14369_v11 = vld [vmem:[#allocation29_spill] sm:$0xff] }
 0x768   : > { %v5263_v14 = vmul.f32 %v8434_v17, %v13541_v2  ;;  %v5332_v56 = vmul.f32 %v5215_v12, %v13314_v13  ;;  %vm5268_vm10 = vweird.f32 %v8434_v17  ;;  %v5273_v54 = vand.u32 2147483648, %v13541_v2  ;;  %vm5299_vm12 = vmor %vm5297_vm11, %vm5298_vm9 }
 0x769   : > { %v5294_v38 = vsub.f32 1.0, %v5293_v25  ;;  %v5366_v53 = vmul.f32 %v5334_v34, %v4691_v63  ;;  %v5271_v13 = vand.u32 2147483647, %v13541_v2  ;;  %vm5269_vm15 = vmor %vm5267_vm13, %vm5268_vm10  ;;  %v5304_v27 = vor.u32 1.1754944e-38, %v5303_v33 }
 0x76a   : > { %v5264_v20 = vsub.f32 1.0, %v5263_v14  ;;  %v5364_v50 = vmul.f32 %v5332_v56, %v4689_v28  ;;  %vm5302_vm14 = vcmp.eq.f32.partialorder %v5301_v47, 8.507059e+37  ;;  %v5274_v60 = vor.u32 1.1754944e-38, %v5273_v54  ;;  %v14373_v54 = vld [vmem:[#allocation33_spill] sm:$0xff] }
 0x76b   : > { %v5295_v4 = vmul.f32 %v8432_v9, %v5294_v38  ;;  %vm5272_vm0 = vcmp.eq.f32.partialorder %v5271_v13, 8.507059e+37  ;;  %v14370_v38 = vld [vmem:[#allocation30_spill] sm:$0xff] }
 0x76c   : > { %v5265_v39 = vmul.f32 %v8434_v17, %v5264_v20  ;;  %v5384_v31 = vpack.c.bf16 %v5366_v53, %v5364_v50  ;;  %v5526_v35 = vpop.f32.mrf.mxu1 }
 0x76d   : > { %v4694_v5 = vpop.f32.mrf.mxu0  ;;  %v5296_v26 = vadd.f32 %v8432_v9, %v5295_v4  ;;  %v14371_v4 = vld [vmem:[#allocation31_spill] sm:$0xff] }
 0x76e   : > { %v5266_v41 = vadd.f32 %v8434_v17, %v5265_v39 }
 0x76f   : > { %5597 = vmatmul.bf16.gmra.mxu2 %v5382_v29  ;;  %v5300_v62 = vsel %vm5299_vm12, %v8432_v9, %v5296_v26  ;;  %v14372_v26 = vld [vmem:[#allocation32_spill] sm:$0xff] }
 0x770   : > { %v5270_v0 = vsel %vm5269_vm15, %v8434_v17, %v5266_v41  ;;  %v5305_v55 = vsel %vm5302_vm14, %v5304_v27, %v5300_v62 }
 0x771   : > { %v5275_v42 = vsel %vm5272_vm0, %v5274_v60, %v5270_v0  ;;  %v5338_v18 = vmul.f32 %v5305_v55, %v13480_v1  ;;  %v14374_v60 = vld [vmem:[#allocation34_spill] sm:$0xff] }
 0x772   : > { %v5336_v61 = vmul.f32 %v5275_v42, %v13426_v32 }
 0x774   : > { %v5368_v44 = vmul.f32 %v5336_v61, %v4694_v5 }
 0x775   : > { %v4696_v6 = vpop.f32.mrf.mxu0 }
 0x776   : > { %v5370_v58 = vmul.f32 %v5338_v18, %v4696_v6  ;;  %v5529_v22 = vpop.f32.mrf.mxu1  ;;  %v14375_v6 = vld [vmem:[#allocation35_spill] sm:$0xff] }
 0x778   : > { %v5386_v40 = vpack.c.bf16 %v5370_v58, %v5368_v44 }
 0x77e   : > { %v5531_v3 = vpop.f32.mrf.mxu1 }
 0x77f   : > { %5602 = vmatmul.bf16.gmra.mxu2 %v5384_v31 }
 0x78e   : > { %v5534_v57 = vpop.f32.mrf.mxu1 }
 0x78f   : > { %5607 = vmatmul.bf16.gmra.mxu2 %v5386_v40  ;;  %v14376_v40 = vld [vmem:[#allocation36_spill] sm:$0xff] }
 0x795   : > { %v5573_v10 = vpop.f32.mrf.mxu2 }
 0x796   : > { %v5574_v2 = vadd.f32 %v5573_v10, %v5524_v45 }
 0x798   : > { %v5613_v7 = vadd.f32 %v5574_v2, %v12464_v23  ;;  %v5536_v23 = vpop.f32.mrf.mxu1 }
 0x79a   : > { %5629 = vst [vmem:[%s10570_s3] sm:$0xff] %v5613_v7  ;;  %v14377_v7 = vld [vmem:[#allocation37_spill] sm:$0xff] }
 0x79d   : > { %v5575_v28 = vpop.f32.mrf.mxu2 }
 0x79e   : > { %v5576_v48 = vadd.f32 %v5575_v28, %v5526_v35 }
 0x7a0   : > { %v5614_v1 = vadd.f32 %v5576_v48, %v12472_v46  ;;  %v5539_v49 = vpop.f32.mrf.mxu1 }
 0x7a2   : > { %5630 = vst [vmem:[%s10570_s3 + $0x8] sm:$0xff] %v5614_v1 }
 0x7a5   : > { %v5578_v32 = vpop.f32.mrf.mxu2 }
 0x7a6   : > { %v5579_v43 = vadd.f32 %v5578_v32, %v5529_v22  ;;  %v14378_v32 = vld [vmem:[#allocation38_spill] sm:$0xff] }
 0x7a8   : > { %v5615_v21 = vadd.f32 %v5579_v43, %v12482_v52  ;;  %v5541_v30 = vpop.f32.mrf.mxu1 }
 0x7aa   : > { %5631 = vst [vmem:[%s10570_s3 + $0x10] sm:$0xff] %v5615_v21 }
 0x7ad   : > { %v5580_v51 = vpop.f32.mrf.mxu2 }
 0x7ae   : > { %v5581_v29 = vadd.f32 %v5580_v51, %v5531_v3 }
 0x7b0   : > { %v5616_v9 = vadd.f32 %v5581_v29, %v12492_v36 }
 0x7b1   : > { %v5544_v36 = vpop.f32.mrf.mxu1 }
 0x7b2   : > { %5632 = vst [vmem:[%s10570_s3 + $0x18] sm:$0xff] %v5616_v9 }
 0x7b9   : > { %v5546_v34 = vpop.f32.mrf.mxu1 }
 0x7c1   : > { %v5549_v39 = vpop.f32.mrf.mxu1 }
 0x7c2   : > { %v5583_v37 = vpop.f32.mrf.mxu2 }
 0x7c3   : > { %v5584_v46 = vadd.f32 %v5583_v37, %v5534_v57 }
 0x7c5   : > { %v5617_v17 = vadd.f32 %v5584_v46, %v14367_v59 }
 0x7c7   : > { %5633 = vst [vmem:[%s10570_s3 + $0x20] sm:$0xff] %v5617_v17 }
 0x7c9   : > { %v5551_v33 = vpop.f32.mrf.mxu1 }
 0x7ca   : > { %v5585_v8 = vpop.f32.mrf.mxu2 }
 0x7cb   : > { %v5586_v52 = vadd.f32 %v5585_v8, %v5536_v23 }
 0x7cd   : > { %v5618_v25 = vadd.f32 %v5586_v52, %v14368_v15 }
 0x7cf   : > { %5634 = vst [vmem:[%s10570_s3 + $0x28] sm:$0xff] %v5618_v25 }
 0x7d1   : > { %v5554_v0 = vpop.f32.mrf.mxu1 }
 0x7d2   : > { %v5588_v24 = vpop.f32.mrf.mxu2 }
 0x7d3   : > { %v5589_v63 = vadd.f32 %v5588_v24, %v5539_v49 }
 0x7d5   : > { %v5619_v14 = vadd.f32 %v5589_v63, %v14369_v11 }
 0x7d7   : > { %5635 = vst [vmem:[%s10570_s3 + $0x30] sm:$0xff] %v5619_v14 }
 0x7d9   : > { %v5556_v61 = vpop.f32.mrf.mxu1 }
 0x7da   : > { %v5590_v19 = vpop.f32.mrf.mxu2 }
 0x7db   : > { %v5591_v16 = vadd.f32 %v5590_v19, %v5541_v30 }
 0x7dd   : > { %v5620_v12 = vadd.f32 %v5591_v16, %v14370_v38 }
 0x7df   : > { %5636 = vst [vmem:[%s10570_s3 + $0x38] sm:$0xff] %v5620_v12 }
 0x7e1   : > { %v5559_v10 = vpop.f32.mrf.mxu1 }
 0x7e2   : > { %v5593_v20 = vpop.f32.mrf.mxu2 }
 0x7e3   : > { %v5594_v56 = vadd.f32 %v5593_v20, %v5544_v36 }
 0x7e5   : > { %v5621_v53 = vadd.f32 %v5594_v56, %v14371_v4 }
 0x7e7   : > { %5637 = vst [vmem:[%s10570_s3 + $0x40] sm:$0xff] %v5621_v53 }
 0x7e9   : > { %v5561_v48 = vpop.f32.mrf.mxu1 }
 0x7ea   : > { %v5595_v50 = vpop.f32.mrf.mxu2 }
 0x7eb   : > { %v5596_v5 = vadd.f32 %v5595_v50, %v5546_v34 }
 0x7ed   : > { %v5622_v31 = vadd.f32 %v5596_v5, %v14372_v26 }
 0x7ef   : > { %5638 = vst [vmem:[%s10570_s3 + $0x48] sm:$0xff] %v5622_v31 }
 0x7f2   : > { %v5598_v41 = vpop.f32.mrf.mxu2 }
 0x7f3   : > { %v5599_v47 = vadd.f32 %v5598_v41, %v5549_v39 }
 0x7f5   : > { %v5623_v13 = vadd.f32 %v5599_v47, %v14373_v54 }
 0x7f7   : > { %5639 = vst [vmem:[%s10570_s3 + $0x50] sm:$0xff] %v5623_v13 }
 0x7fa   : > { %v5600_v62 = vpop.f32.mrf.mxu2 }
 0x7fb   : > { %v5601_v27 = vadd.f32 %v5600_v62, %v5551_v33 }
 0x7fd   : > { %v5624_v55 = vadd.f32 %v5601_v27, %v14374_v60 }
 0x7ff   : > { %5640 = vst [vmem:[%s10570_s3 + $0x58] sm:$0xff] %v5624_v55 }
 0x802   : > { %v5603_v42 = vpop.f32.mrf.mxu2 }
 0x803   : > { %v5604_v45 = vadd.f32 %v5603_v42, %v5554_v0 }
 0x805   : > { %v5625_v18 = vadd.f32 %v5604_v45, %v14375_v6 }
 0x807   : > { %5641 = vst [vmem:[%s10570_s3 + $0x60] sm:$0xff] %v5625_v18 }
 0x80a   : > { %v5605_v58 = vpop.f32.mrf.mxu2 }
 0x80b   : > { %v5606_v44 = vadd.f32 %v5605_v58, %v5556_v61 }
 0x80d   : > { %v5626_v35 = vadd.f32 %v5606_v44, %v14376_v40 }
 0x80f   : > { %5642 = vst [vmem:[%s10570_s3 + $0x68] sm:$0xff] %v5626_v35 }
 0x812   : > { %v5608_v2 = vpop.f32.mrf.mxu2 }
 0x813   : > { %v5609_v22 = vadd.f32 %v5608_v2, %v5559_v10 }
 0x815   : > { %v5627_v28 = vadd.f32 %v5609_v22, %v14377_v7 }
 0x817   : > { %5643 = vst [vmem:[%s10570_s3 + $0x70] sm:$0xff] %v5627_v28 }
 0x81a   : > { %v5610_v1 = vpop.f32.mrf.mxu2 }
 0x81b   : > { %v5611_v3 = vadd.f32 %v5610_v1, %v5561_v48 }
 0x81d   : > { %v5628_v43 = vadd.f32 %v5611_v3, %v14378_v32 }
 0x81f   : > { %5644 = vst [vmem:[%s10570_s3 + $0x78] sm:$0xff] %v5628_v43 }
 0x820   : > { %8702 = shalt.err (!%p8699_p13)
}
 0x821   : > { %s9428_s26 = smov 128   ;;  %s9429_s3 = smov 8  }
 0x822   : > { %7304 = dma.vmem_to_hbm [thread:$0]  (%p9577_p4), %s5659_s4, 2048, %s5661_s5, %s5646_s16, %s9428_s26, %s9428_s26, %s9429_s3  }
 0x823 PF: > { %s5675_s6 = sand.u32 1, %s9073_s27   ;;  %p14379_p11 = scmp.ge.s32.totalorder %s9085_s30, 2 }
 0x824   : > { %s5676_s0 = scalar_lea.sflag [#allocation6], %s5675_s6 }
 0x825   : > { %p7333_p0 = pnand %p14379_p11, %p9581_p6 }
 0x827   : > { %p7334_p2 = pneg %p7333_p0 }
 0x829   : > { %9068 = dma.done.wait (%p7334_p2), %s5676_s0, 2048  }
 0x82a   : > { %9070 = vsyncadd (%p7334_p2), %s5676_s0, 4294965248  ;;  %s14380_s24 = sld [smem:[#allocation26_spill]]  ;;  %p27_p1 = scmp.ge.s32.totalorder %s9549_s18, 4  }
 0x82b   : > { %s14381_s27 = smov %s9077_s28  ;;  %s14382_s28 = smov %s9081_s29 }
 0x82c   : > { %s14384_s30 = smov %s9549_s18  ;;  %29 = sbr.rel (!%p27_p1) target bundleno = 18 (0x12), region = 156 }
 0x830   : > { %s14383_s29 = smov %s14380_s24 }
 0x831   :  { %5682 = vsyncpa [#allocation5], 1 }
 0x832   :  { %5684 = vsyncpa [#allocation5 + $0x1], 1 }
 0x833   :  { %5685 = vsyncpa [#allocation8], 1 }
 0x834   :  { %5687 = vsyncpa [#allocation8 + $0x1], 1 }
 0x835   :  { %5688 = vsyncpa [#allocation11], 1 }
 0x836   :  { %5689 = vsyncpa [#allocation14], 1 }
 0x837   :  { %5690 = vsyncpa [#allocation17], 1 }
 0x838   :  { %5691 = vsyncpa [#allocation6], 1 }
 0x839   :  { %5693 = vsyncpa [#allocation6 + $0x1], 1 }

</bundles_post_ra>
